<compile_context>
chip_gen: v7x
topology: tpu7x:2x2x1
jax: 0.10.0
libtpu: 0.0.40
codegen_flags: <defaults>
</compile_context>

<pallas_src>
import jax
import jax.numpy as jnp
from jax.experimental import pallas as pl
from jax.experimental.pallas import tpu as pltpu

LANE = 128  # lane-dense output-channel padding


def _round_up(x, m):
    return ((x + m - 1) // m) * m


def _tpu_defaults():
    """(vmem_limit_bytes, default_block_m) tuned per TPU generation."""
    kind = ""
    try:
        kind = jax.devices()[0].device_kind.lower()
    except Exception:
        pass
    if ("v5" in kind) or ("v6" in kind):
        return 96 * 1024 * 1024, 1024      # 128 MiB physical VMEM parts
    return 32 * 1024 * 1024, 512           # v7x (64 MiB) / unknown: conservative


VMEM_LIMIT_BYTES, DEFAULT_BLOCK_M = _tpu_defaults()


# ---------------------------------------------------------------------------
# Kernel A: fused 1x1x1 Unit3Ds over x  (b1a | b2a | b0), two lane-dense outputs
# ---------------------------------------------------------------------------
def fused_1x1_bias_relu(x2d, w, b, ccp, block_m=None):
    """x2d: (M, K) bf16; w: (K, ccp + c0p) bf16 (BN scale folded in);
    b: (1, ccp + c0p) f32.  Returns (mid (M, ccp) bf16, rest (M, c0p) f32)."""
    M, K = x2d.shape
    cpt = w.shape[1]
    c0p = cpt - ccp

    # Big M tiles, but keep >=2 grid steps so both v7x TensorCores get work.
    bm = min(DEFAULT_BLOCK_M if block_m is None else block_m,
             _round_up(max(M // 2, 8), 8))
    Mp = _round_up(M, bm)
    if Mp != M:
        x2d = jnp.pad(x2d, ((0, Mp - M), (0, 0)))

    # K grid axis ("arbitrary") with a VMEM f32 accumulator: tile size stays
    # independent of Cin (v7x budget).  For all realistic I3D Cin, nk == 1.
    if K <= 1024:
        bk, Kp = K, K
    else:
        bk = 512
        Kp = _round_up(K, bk)
    if Kp != K:
        x2d = jnp.pad(x2d, ((0, 0), (0, Kp - K)))
        w = jnp.pad(w, ((0, Kp - K), (0, 0)))
    nk = Kp // bk

    def kernel(x_ref, w_ref, b_ref, o_mid_ref, o_b0_ref, acc_ref):
        @pl.when(pl.program_id(1) == 0)
        def _init():
            acc_ref[...] = jnp.zeros_like(acc_ref)

        acc_ref[...] += jnp.dot(x_ref[...], w_ref[...],
                                preferred_element_type=jnp.float32)

        @pl.when(pl.program_id(1) == pl.num_programs(1) - 1)
        def _epilogue():
            r = jnp.maximum(acc_ref[...] + b_ref[...], 0.0)
            o_mid_ref[...] = r[:, :ccp].astype(o_mid_ref.dtype)   # bf16 mid
            o_b0_ref[...] = r[:, ccp:]                            # f32 b0

    mid, rest = pl.pallas_call(
        kernel,
        out_shape=(jax.ShapeDtypeStruct((Mp, ccp), jnp.bfloat16),
                   jax.ShapeDtypeStruct((Mp, c0p), jnp.float32)),
        grid=(Mp // bm, nk),
        in_specs=[
            pl.BlockSpec((bm, bk), lambda i, k: (i, k)),
            pl.BlockSpec((bk, cpt), lambda i, k: (k, 0)),
            pl.BlockSpec((1, cpt), lambda i, k: (0, 0)),
        ],
        out_specs=(pl.BlockSpec((bm, ccp), lambda i, k: (i, 0)),
                   pl.BlockSpec((bm, c0p), lambda i, k: (i, 0))),
        scratch_shapes=[pltpu.VMEM((bm, cpt), jnp.float32)],
        compiler_params=pltpu.CompilerParams(
            dimension_semantics=("parallel", "arbitrary"),
            vmem_limit_bytes=VMEM_LIMIT_BYTES),
    )(x2d, w, b)
    return mid[:M], rest[:M]


# ---------------------------------------------------------------------------
# Kernel B: valid 3x3x3 conv (b1b + b2b fused), halo built in VMEM, dw folded
# ---------------------------------------------------------------------------
def _make_conv3x3_kernel(T, H, W, ccp):
    K3 = 3 * ccp

    def kernel(x_ref, border_ref, w_ref, b_ref, o_ref, xp_ref):
        # (1) Build the padded activation in VMEM: shell = ReLU(bn_bias)
        # constant (the exact value the reference's pad-before-1x1 produces),
        # interior = the bf16 mid block.  Nothing padded ever touches HBM.
        xp_ref[...] = jnp.broadcast_to(
            border_ref[...].reshape(1, 1, 1, ccp), xp_ref.shape)
        xp_ref[1:T + 1, 1:H + 1, 1:W + 1, :] = x_ref[...]
        xv = xp_ref[...]                                  # (T+2, H+2, W+2, ccp)

        # (2) 9 matmuls of K = 3*ccp (dw taps folded into the contraction),
        # accumulating directly into o_ref -- no large live accumulator.
        p = 0
        for dt in range(3):
            for dh in range(3):
                lhs = jnp.concatenate(
                    [xv[dt:dt + T, dh:dh + H, dw:dw + W, :] for dw in range(3)],
                    axis=-1).reshape(T * H * W, K3)
                contrib = jnp.dot(lhs, w_ref[p],
                                  preferred_element_type=jnp.float32)
                if p == 0:
                    o_ref[...] = contrib
                else:
                    o_ref[...] += contrib
                p += 1

        # (3) BN bias + ReLU epilogue.
        o_ref[...] = jnp.maximum(o_ref[...] + b_ref[...], 0.0)

    return kernel


def conv3x3_border_bias_relu(mid, border, w3, b3):
    """mid: (N, T, H, W, ccp) bf16 (unpadded); border: (1, ccp) bf16;
    w3: (9, 3*ccp, cp3) bf16; b3: (1, cp3) f32.  Returns (N, T*H*W, cp3) f32."""
    N, T, H, W, ccp = mid.shape
    cp3 = w3.shape[-1]
    # TODO(synk): tile over T (manual halo DMA) for production spatial sizes on v7x.
    return pl.pallas_call(
        _make_conv3x3_kernel(T, H, W, ccp),
        out_shape=jax.ShapeDtypeStruct((N, T * H * W, cp3), jnp.float32),
        grid=(N,),
        in_specs=[
            pl.BlockSpec((None, T, H, W, ccp), lambda n: (n, 0, 0, 0, 0)),
            pl.BlockSpec((1, ccp), lambda n: (0, 0)),
            pl.BlockSpec((9, 3 * ccp, cp3), lambda n: (0, 0, 0)),
            pl.BlockSpec((1, cp3), lambda n: (0, 0)),
        ],
        out_specs=pl.BlockSpec((None, T * H * W, cp3), lambda n: (n, 0, 0)),
        scratch_shapes=[pltpu.VMEM((T + 2, H + 2, W + 2, ccp), jnp.bfloat16)],
        compiler_params=pltpu.CompilerParams(
            dimension_semantics=("parallel",),
            vmem_limit_bytes=VMEM_LIMIT_BYTES),
    )(mid, border, w3, b3)


# ---------------------------------------------------------------------------
# Kernel C: MaxPool3dSamePadding(3, stride 1) + b3b 1x1 Unit3D, fully fused
# ---------------------------------------------------------------------------
def _make_pool_matmul_kernel(T, H, W, Cin):
    def kernel(x_ref, w_ref, b_ref, o_ref, xp_ref):
        # Zero-padded volume built in VMEM (matches F.pad value=0 of the ref).
        xp_ref[...] = jnp.zeros(xp_ref.shape, xp_ref.dtype)
        xp_ref[1:T + 1, 1:H + 1, 1:W + 1, :] = x_ref[...]
        xv = xp_ref[...]                                  # (T+2, H+2, W+2, Cin)
        # Separable 3-pass max (6 VPU max ops instead of 26).
        m = jnp.maximum(jnp.maximum(xv[0:T], xv[1:T + 1]), xv[2:T + 2])
        m = jnp.maximum(jnp.maximum(m[:, 0:H], m[:, 1:H + 1]), m[:, 2:H + 2])
        m = jnp.maximum(jnp.maximum(m[:, :, 0:W], m[:, :, 1:W + 1]),
                        m[:, :, 2:W + 2])
        # b3b 1x1 conv (BN scale folded into w) + bias + ReLU, fused in.
        pooled = m.reshape(T * H * W, Cin)
        acc = jnp.dot(pooled, w_ref[...], preferred_element_type=jnp.float32)
        o_ref[...] = jnp.maximum(acc + b_ref[...], 0.0)

    return kernel


def maxpool_matmul_bias_relu(x, wp, bp):
    """x: (N, T, H, W, Cin) bf16; wp: (Cin, cpp) bf16; bp: (1, cpp) f32."""
    N, T, H, W, Cin = x.shape
    cpp = wp.shape[-1]
    # TODO(synk): tile over T for production spatial sizes on v7x.
    return pl.pallas_call(
        _make_pool_matmul_kernel(T, H, W, Cin),
        out_shape=jax.ShapeDtypeStruct((N, T * H * W, cpp), jnp.float32),
        grid=(N,),
        in_specs=[
            pl.BlockSpec((None, T, H, W, Cin), lambda n: (n, 0, 0, 0, 0)),
            pl.BlockSpec((Cin, cpp), lambda n: (0, 0)),
            pl.BlockSpec((1, cpp), lambda n: (0, 0)),
        ],
        out_specs=pl.BlockSpec((None, T * H * W, cpp), lambda n: (n, 0, 0)),
        scratch_shapes=[pltpu.VMEM((T + 2, H + 2, W + 2, Cin), jnp.bfloat16)],
        compiler_params=pltpu.CompilerParams(
            dimension_semantics=("parallel",),
            vmem_limit_bytes=VMEM_LIMIT_BYTES),
    )(x, wp, bp)


# ---------------------------------------------------------------------------
# Parameters (deterministic synthetic -- matches nn.Conv3d / BatchNorm3d shapes)
# ---------------------------------------------------------------------------
def init_unit3d_params(key, cin, cout, kshape):
    """Returns (wm, bias): matmul-layout conv weight with BN scale folded in,
    and the BN bias.  wm: (kT*kH*kW*cin, cout) f32, K index =
    ((kt*kH + kh)*kW + kw)*cin + ci.  bias: (cout,) f32 = beta - mean*scale."""
    kT, kH, kW = kshape
    kw_, kg, kbeta, km, kv = jax.random.split(key, 5)
    fan_in = cin * kT * kH * kW
    bound = 1.0 / (fan_in ** 0.5)
    # PyTorch conv weight layout: (Cout, Cin, kT, kH, kW), no conv bias.
    w = jax.random.uniform(kw_, (cout, cin, kT, kH, kW), jnp.float32, -bound, bound)
    gamma = jax.random.uniform(kg, (cout,), jnp.float32, 0.5, 1.5)
    beta = jax.random.uniform(kbeta, (cout,), jnp.float32, -0.5, 0.5)
    rmean = jax.random.uniform(km, (cout,), jnp.float32, -0.5, 0.5)
    rvar = jax.random.uniform(kv, (cout,), jnp.float32, 0.5, 1.5)
    eps = 1e-3
    scale = gamma / jnp.sqrt(rvar + eps)
    bias = beta - rmean * scale
    wm = jnp.transpose(w, (2, 3, 4, 1, 0)).reshape(kT * kH * kW * cin, cout)
    return wm * scale[None, :], bias


def build_inception_params(key, cin, out_channels):
    C0, C1, C2, C3, C4, C5 = out_channels
    ks = jax.random.split(key, 6)
    w_b0, b_b0 = init_unit3d_params(ks[0], cin, C0, (1, 1, 1))
    w_b1a, b_b1a = init_unit3d_params(ks[1], cin, C1, (1, 1, 1))
    w_b1b, b_b1b = init_unit3d_params(ks[2], C1, C2, (3, 3, 3))
    w_b2a, b_b2a = init_unit3d_params(ks[3], cin, C3, (1, 1, 1))
    w_b2b, b_b2b = init_unit3d_params(ks[4], C3, C4, (3, 3, 3))
    w_b3b, b_b3b = init_unit3d_params(ks[5], cin, C5, (1, 1, 1))

    Cc = C1 + C3
    ccp = _round_up(Cc, LANE)          # conv-input channel width (lane-dense)
    c0p = _round_up(C0, LANE)
    cp3 = _round_up(C2 + C4, LANE)     # fused 3x3 output width
    cpp = _round_up(C5, LANE)          # pooled-branch output width

    # Fused 1x1 over x, output columns [b1a | b2a | pad->ccp | b0 | pad->c0p]
    # (mid first so the conv input starts at lane offset 0 -- no relayout).
    w1 = jnp.zeros((cin, ccp + c0p), jnp.float32)
    w1 = w1.at[:, :C1].set(w_b1a)
    w1 = w1.at[:, C1:Cc].set(w_b2a)
    w1 = w1.at[:, ccp:ccp + C0].set(w_b0)
    b1 = jnp.zeros((ccp + c0p,), jnp.float32)
    b1 = b1.at[:C1].set(b_b1a).at[C1:Cc].set(b_b2a).at[ccp:ccp + C0].set(b_b0)

    # Conv3d(kernel=1, padding=1) shell after BN+ReLU == ReLU(bn_bias); stored
    # in bf16 exactly as kernel A would emit it for a zero input row.
    border = jnp.zeros((ccp,), jnp.float32)
    border = border.at[:Cc].set(jnp.maximum(jnp.concatenate([b_b1a, b_b2a]), 0.0))

    # Fused 3x3 (b1b + b2b): block-diagonal over the [b1a | b2a] channels,
    # zero rows for the ccp padding.  Laid out (9, 3*ccp, cp3): one slab per
    # (dt, dh), dw folded into the contraction (rows ordered dw-major, then c).
    w3 = jnp.zeros((27, ccp, cp3), jnp.float32)
    w3 = w3.at[:, :C1, :C2].set(w_b1b.reshape(27, C1, C2))
    w3 = w3.at[:, C1:Cc, C2:C2 + C4].set(w_b2b.reshape(27, C3, C4))
    w3 = w3.reshape(9, 3 * ccp, cp3)
    b3 = jnp.zeros((cp3,), jnp.float32).at[:C2].set(b_b1b).at[C2:C2 + C4].set(b_b2b)

    # Branch 3 1x1 (fused into the max-pool kernel).
    wp = jnp.zeros((cin, cpp), jnp.float32).at[:, :C5].set(w_b3b)
    bp = jnp.zeros((cpp,), jnp.float32).at[:C5].set(b_b3b)

    return {
        "w1": w1.astype(jnp.bfloat16), "b1": b1.reshape(1, ccp + c0p),
        "border": border.astype(jnp.bfloat16).reshape(1, ccp),
        "w3": w3.astype(jnp.bfloat16), "b3": b3.reshape(1, cp3),
        "wp": wp.astype(jnp.bfloat16), "bp": bp.reshape(1, cpp),
        "dims": (C0, C1, C2, C3, C4, C5),
        "widths": (ccp, c0p, cp3, cpp),
    }


# ---------------------------------------------------------------------------
# InceptionModule forward
# ---------------------------------------------------------------------------
def inception_module(x_ncthw, params):
    C0, C1, C2, C3, C4, C5 = params["dims"]
    ccp, c0p, cp3, cpp = params["widths"]

    # NCTHW -> NTHWC fused with the bf16 cast: one boundary pass over x.
    x = jnp.transpose(x_ncthw, (0, 2, 3, 4, 1)).astype(jnp.bfloat16)
    N, T, H, W, Cin = x.shape
    M = N * T * H * W

    # (1) One fused matmul for the three 1x1 Unit3Ds reading x.
    mid2d, rest2d = fused_1x1_bias_relu(
        x.reshape(M, Cin), params["w1"], params["b1"], ccp)
    mid = mid2d.reshape(N, T, H, W, ccp)           # bf16, lane offset 0
    b0 = rest2d[:, :C0].reshape(N, T, H, W, C0)    # f32

    # (2) One fused valid 3x3x3 conv for b1b + b2b; the pad-before-1x1 shell
    # is written into the VMEM halo inside the kernel.
    y3 = conv3x3_border_bias_relu(mid, params["border"], params["w3"],
                                  params["b3"]).reshape(N, T, H, W, cp3)
    b1 = y3[..., :C2]
    b2 = y3[..., C2:C2 + C4]

    # (3) Branch 3: zero-same-padded max-pool with the b3b 1x1 fused in.
    yp = maxpool_matmul_bias_relu(x, params["wp"], params["bp"])
    b3 = yp[..., :C5].reshape(N, T, H, W, C5)

    out = jnp.concatenate([b0, b1, b2, b3], axis=-1)   # torch.cat(dim=1)
    out = jnp.transpose(out, (0, 4, 1, 2, 3))          # back to NCTHW
    return out.astype(x_ncthw.dtype)


if __name__ == "__main__":
    key = jax.random.PRNGKey(0)
    in_channels = 8
    out_channels = [8, 8, 16, 8, 16, 8]
    N, T, H, W = 2, 4, 8, 8

    kp, kx = jax.random.split(key)
    params = build_inception_params(kp, in_channels, out_channels)
    x = jax.random.normal(kx, (N, in_channels, T, H, W), jnp.float32)

    fwd = jax.jit(lambda v: inception_module(v, params))
    out = fwd(x)
    jax.block_until_ready(out)

    c_total = out_channels[0] + out_channels[2] + out_channels[4] + out_channels[5]
    assert out.shape == (N, c_total, T, H, W), out.shape
    assert bool(jnp.all(jnp.isfinite(out)))
    print("KERNEL_OK")
</pallas_src>

<mosaic_0001>
module attributes {stable_mosaic.version = 11 : i64} {
  func.func @kernel(%arg0: i32, %arg1: memref<1x4x8x8x8xbf16, #tpu.memory_space<vmem>>, %arg2: memref<8x128xbf16, #tpu.memory_space<vmem>>, %arg3: memref<1x128xf32, #tpu.memory_space<vmem>>, %arg4: memref<1x256x128xf32, #tpu.memory_space<vmem>>, %arg5: memref<6x10x10x8xbf16, #tpu.memory_space<vmem>>) attributes {dimension_semantics = [#tpu.dimension_semantics<parallel>], iteration_bounds = array<i64: 2>, scalar_prefetch = 0 : i64, scratch_operands = 1 : i64, tpu.core_type = #tpu.core_type<tc>, window_params = [{transform_indices = @transform_0, window_bounds = array<i64: 1, 4, 8, 8, 8>}, {pipeline_mode = #tpu.pipeline_mode<synchronous>, transform_indices = @transform_1, window_bounds = array<i64: 8, 128>}, {pipeline_mode = #tpu.pipeline_mode<synchronous>, transform_indices = @transform_2, window_bounds = array<i64: 1, 128>}, {transform_indices = @transform_3, window_bounds = array<i64: 1, 256, 128>}]} {
    %cst = arith.constant 0.000000e+00 : bf16
    %0 = vector.broadcast %cst : bf16 to vector<6x10x10x8xbf16>
    %c0 = arith.constant 0 : index
    %c0_0 = arith.constant 0 : index
    %c0_1 = arith.constant 0 : index
    %c0_2 = arith.constant 0 : index
    %1 = vector.load %arg5[%c0, %c0_0, %c0_1, %c0_2] : memref<6x10x10x8xbf16, #tpu.memory_space<vmem>>, vector<6x10x10x8xbf16>
    tpu.vector_store %arg5[%c0, %c0_0, %c0_1, %c0_2], %0 {strides = array<i32>} : memref<6x10x10x8xbf16, #tpu.memory_space<vmem>>, vector<6x10x10x8xbf16>,
    %c0_3 = arith.constant 0 : index
    %c0_4 = arith.constant 0 : index
    %c0_5 = arith.constant 0 : index
    %c0_6 = arith.constant 0 : index
    %c0_7 = arith.constant 0 : index
    %2 = vector.load %arg1[%c0_3, %c0_4, %c0_5, %c0_6, %c0_7] : memref<1x4x8x8x8xbf16, #tpu.memory_space<vmem>>, vector<1x4x8x8x8xbf16>
    %3 = vector.shape_cast %2 : vector<1x4x8x8x8xbf16> to vector<4x8x8x8xbf16>
    %c1 = arith.constant 1 : index
    %c1_8 = arith.constant 1 : index
    %c1_9 = arith.constant 1 : index
    %c0_10 = arith.constant 0 : index
    %4 = vector.load %arg5[%c1, %c1_8, %c1_9, %c0_10] : memref<6x10x10x8xbf16, #tpu.memory_space<vmem>>, vector<4x8x8x8xbf16>
    tpu.vector_store %arg5[%c1, %c1_8, %c1_9, %c0_10], %3 {strides = array<i32>} : memref<6x10x10x8xbf16, #tpu.memory_space<vmem>>, vector<4x8x8x8xbf16>,
    %c0_11 = arith.constant 0 : index
    %c0_12 = arith.constant 0 : index
    %c0_13 = arith.constant 0 : index
    %c0_14 = arith.constant 0 : index
    %5 = vector.load %arg5[%c0_11, %c0_12, %c0_13, %c0_14] : memref<6x10x10x8xbf16, #tpu.memory_space<vmem>>, vector<6x10x10x8xbf16>
    %6 = vector.extract_strided_slice %5 {offsets = [0, 0, 0, 0], sizes = [4, 10, 10, 8], strides = [1, 1, 1, 1]} : vector<6x10x10x8xbf16> to vector<4x10x10x8xbf16>
    %7 = vector.extract_strided_slice %5 {offsets = [1, 0, 0, 0], sizes = [4, 10, 10, 8], strides = [1, 1, 1, 1]} : vector<6x10x10x8xbf16> to vector<4x10x10x8xbf16>
    %8 = arith.maximumf %6, %7 : vector<4x10x10x8xbf16>
    %9 = vector.extract_strided_slice %5 {offsets = [2, 0, 0, 0], sizes = [4, 10, 10, 8], strides = [1, 1, 1, 1]} : vector<6x10x10x8xbf16> to vector<4x10x10x8xbf16>
    %10 = arith.maximumf %8, %9 : vector<4x10x10x8xbf16>
    %11 = vector.extract_strided_slice %10 {offsets = [0, 0, 0, 0], sizes = [4, 8, 10, 8], strides = [1, 1, 1, 1]} : vector<4x10x10x8xbf16> to vector<4x8x10x8xbf16>
    %12 = vector.extract_strided_slice %10 {offsets = [0, 1, 0, 0], sizes = [4, 8, 10, 8], strides = [1, 1, 1, 1]} : vector<4x10x10x8xbf16> to vector<4x8x10x8xbf16>
    %13 = arith.maximumf %11, %12 : vector<4x8x10x8xbf16>
    %14 = vector.extract_strided_slice %10 {offsets = [0, 2, 0, 0], sizes = [4, 8, 10, 8], strides = [1, 1, 1, 1]} : vector<4x10x10x8xbf16> to vector<4x8x10x8xbf16>
    %15 = arith.maximumf %13, %14 : vector<4x8x10x8xbf16>
    %16 = vector.extract_strided_slice %15 {offsets = [0, 0, 0, 0], sizes = [4, 8, 8, 8], strides = [1, 1, 1, 1]} : vector<4x8x10x8xbf16> to vector<4x8x8x8xbf16>
    %17 = vector.extract_strided_slice %15 {offsets = [0, 0, 1, 0], sizes = [4, 8, 8, 8], strides = [1, 1, 1, 1]} : vector<4x8x10x8xbf16> to vector<4x8x8x8xbf16>
    %18 = arith.maximumf %16, %17 : vector<4x8x8x8xbf16>
    %19 = vector.extract_strided_slice %15 {offsets = [0, 0, 2, 0], sizes = [4, 8, 8, 8], strides = [1, 1, 1, 1]} : vector<4x8x10x8xbf16> to vector<4x8x8x8xbf16>
    %20 = arith.maximumf %18, %19 : vector<4x8x8x8xbf16>
    %21 = vector.shape_cast %20 : vector<4x8x8x8xbf16> to vector<256x8xbf16>
    %c0_15 = arith.constant 0 : index
    %c0_16 = arith.constant 0 : index
    %22 = vector.load %arg2[%c0_15, %c0_16] : memref<8x128xbf16, #tpu.memory_space<vmem>>, vector<8x128xbf16>
    %cst_17 = arith.constant dense<0.000000e+00> : vector<256x128xf32>
    %23 = tpu.matmul %21, %22, %cst_17 {dimension_numbers = #tpu.dot_dimension_numbers<[1], [0], [0], [1], [0, 0, 1, 1], [], []>} : vector<256x8xbf16>, vector<8x128xbf16>, vector<256x128xf32> -> vector<256x128xf32>
    %c0_18 = arith.constant 0 : index
    %c0_19 = arith.constant 0 : index
    %24 = vector.load %arg3[%c0_18, %c0_19] : memref<1x128xf32, #tpu.memory_space<vmem>>, vector<1x128xf32>
    %25 = vector.broadcast %24 : vector<1x128xf32> to vector<256x128xf32>
    %26 = arith.addf %23, %25 : vector<256x128xf32>
    %cst_20 = arith.constant 0.000000e+00 : f32
    %27 = vector.broadcast %cst_20 : f32 to vector<256x128xf32>
    %28 = arith.maximumf %26, %27 : vector<256x128xf32>
    %c0_21 = arith.constant 0 : index
    %c0_22 = arith.constant 0 : index
    %c0_23 = arith.constant 0 : index
    %29 = vector.load %arg4[%c0_21, %c0_22, %c0_23] : memref<1x256x128xf32, #tpu.memory_space<vmem>>, vector<1x256x128xf32>
    %30 = vector.shape_cast %29 : vector<1x256x128xf32> to vector<256x128xf32>
    %31 = vector.shape_cast %28 : vector<256x128xf32> to vector<1x256x128xf32>
    tpu.vector_store %arg4[%c0_21, %c0_22, %c0_23], %31 {strides = array<i32>} : memref<1x256x128xf32, #tpu.memory_space<vmem>>, vector<1x256x128xf32>,
    return
  }
  func.func @transform_0(%arg0: i32) -> (i32, i32, i32, i32, i32) {
    %c0_i32 = arith.constant 0 : i32
    %c0_i32_0 = arith.constant 0 : i32
    %c0_i32_1 = arith.constant 0 : i32
    %c0_i32_2 = arith.constant 0 : i32
    %c0_i32_3 = arith.constant 0 : i32
    return %arg0, %c0_i32, %c0_i32_0, %c0_i32_1, %c0_i32_2 : i32, i32, i32, i32, i32
  }
  func.func @transform_1(%arg0: i32) -> (i32, i32) {
    %c0_i32 = arith.constant 0 : i32
    %c0_i32_0 = arith.constant 0 : i32
    %c0_i32_1 = arith.constant 0 : i32
    return %c0_i32, %c0_i32_0 : i32, i32
  }
  func.func @transform_2(%arg0: i32) -> (i32, i32) {
    %c0_i32 = arith.constant 0 : i32
    %c0_i32_0 = arith.constant 0 : i32
    %c0_i32_1 = arith.constant 0 : i32
    return %c0_i32, %c0_i32_0 : i32, i32
  }
  func.func @transform_3(%arg0: i32) -> (i32, i32, i32) {
    %c0_i32 = arith.constant 0 : i32
    %c0_i32_0 = arith.constant 0 : i32
    %c0_i32_1 = arith.constant 0 : i32
    return %arg0, %c0_i32, %c0_i32_0 : i32, i32, i32
  }
}

module attributes {stable_mosaic.version = 11 : i64} {
  func.func @kernel(%arg0: i32, %arg1: i32, %arg2: memref<256x8xbf16, #tpu.memory_space<vmem>>, %arg3: memref<8x256xbf16, #tpu.memory_space<vmem>>, %arg4: memref<1x256xf32, #tpu.memory_space<vmem>>, %arg5: memref<256x128xbf16, #tpu.memory_space<vmem>>, %arg6: memref<256x128xf32, #tpu.memory_space<vmem>>, %arg7: memref<256x256xf32, #tpu.memory_space<vmem>>) attributes {dimension_semantics = [#tpu.dimension_semantics<parallel>, #tpu.dimension_semantics<arbitrary>], iteration_bounds = array<i64: 2, 1>, scalar_prefetch = 0 : i64, scratch_operands = 1 : i64, tpu.core_type = #tpu.core_type<tc>, window_params = [{transform_indices = @transform_0, window_bounds = array<i64: 256, 8>}, {transform_indices = @transform_1, window_bounds = array<i64: 8, 256>}, {pipeline_mode = #tpu.pipeline_mode<synchronous>, transform_indices = @transform_2, window_bounds = array<i64: 1, 256>}, {transform_indices = @transform_3, window_bounds = array<i64: 256, 128>}, {transform_indices = @transform_4, window_bounds = array<i64: 256, 128>}]} {
    %c0_i32 = arith.constant 0 : i32
    %0 = arith.cmpi eq, %arg1, %c0_i32 : i32
    %1 = arith.extui %0 : i1 to i32
    %c0_i32_0 = arith.constant 0 : i32
    %2 = arith.cmpi ne, %1, %c0_i32_0 : i32
    scf.if %2 {
      %cst_10 = arith.constant 0.000000e+00 : f32
      %12 = vector.broadcast %cst_10 : f32 to vector<256x256xf32>
      %c0_11 = arith.constant 0 : index
      %c0_12 = arith.constant 0 : index
      %13 = vector.load %arg7[%c0_11, %c0_12] : memref<256x256xf32, #tpu.memory_space<vmem>>, vector<256x256xf32>
      tpu.vector_store %arg7[%c0_11, %c0_12], %12 {strides = array<i32>} : memref<256x256xf32, #tpu.memory_space<vmem>>, vector<256x256xf32>,
    } else {
    }
    %c0 = arith.constant 0 : index
    %c0_1 = arith.constant 0 : index
    %3 = vector.load %arg7[%c0, %c0_1] : memref<256x256xf32, #tpu.memory_space<vmem>>, vector<256x256xf32>
    %c0_2 = arith.constant 0 : index
    %c0_3 = arith.constant 0 : index
    %4 = vector.load %arg2[%c0_2, %c0_3] : memref<256x8xbf16, #tpu.memory_space<vmem>>, vector<256x8xbf16>
    %c0_4 = arith.constant 0 : index
    %c0_5 = arith.constant 0 : index
    %5 = vector.load %arg3[%c0_4, %c0_5] : memref<8x256xbf16, #tpu.memory_space<vmem>>, vector<8x256xbf16>
    %cst = arith.constant dense<0.000000e+00> : vector<256x256xf32>
    %6 = tpu.matmul %4, %5, %cst {dimension_numbers = #tpu.dot_dimension_numbers<[1], [0], [0], [1], [0, 0, 1, 1], [], []>} : vector<256x8xbf16>, vector<8x256xbf16>, vector<256x256xf32> -> vector<256x256xf32>
    %7 = arith.addf %3, %6 : vector<256x256xf32>
    %c0_6 = arith.constant 0 : index
    %c0_7 = arith.constant 0 : index
    %8 = vector.load %arg7[%c0_6, %c0_7] : memref<256x256xf32, #tpu.memory_space<vmem>>, vector<256x256xf32>
    tpu.vector_store %arg7[%c0_6, %c0_7], %7 {strides = array<i32>} : memref<256x256xf32, #tpu.memory_space<vmem>>, vector<256x256xf32>,
    %c0_i32_8 = arith.constant 0 : i32
    %9 = arith.cmpi eq, %arg1, %c0_i32_8 : i32
    %10 = arith.extui %9 : i1 to i32
    %c0_i32_9 = arith.constant 0 : i32
    %11 = arith.cmpi ne, %10, %c0_i32_9 : i32
    scf.if %11 {
      %c0_10 = arith.constant 0 : index
      %c0_11 = arith.constant 0 : index
      %12 = vector.load %arg7[%c0_10, %c0_11] : memref<256x256xf32, #tpu.memory_space<vmem>>, vector<256x256xf32>
      %c0_12 = arith.constant 0 : index
      %c0_13 = arith.constant 0 : index
      %13 = vector.load %arg4[%c0_12, %c0_13] : memref<1x256xf32, #tpu.memory_space<vmem>>, vector<1x256xf32>
      %14 = vector.broadcast %13 : vector<1x256xf32> to vector<256x256xf32>
      %15 = arith.addf %12, %14 : vector<256x256xf32>
      %cst_14 = arith.constant 0.000000e+00 : f32
      %16 = vector.broadcast %cst_14 : f32 to vector<256x256xf32>
      %17 = arith.maximumf %15, %16 : vector<256x256xf32>
      %18 = vector.extract_strided_slice %17 {offsets = [0, 0], sizes = [256, 128], strides = [1, 1]} : vector<256x256xf32> to vector<256x128xf32>
      %19 = arith.truncf %18 : vector<256x128xf32> to vector<256x128xbf16>
      %c0_15 = arith.constant 0 : index
      %c0_16 = arith.constant 0 : index
      %20 = vector.load %arg5[%c0_15, %c0_16] : memref<256x128xbf16, #tpu.memory_space<vmem>>, vector<256x128xbf16>
      tpu.vector_store %arg5[%c0_15, %c0_16], %19 {strides = array<i32>} : memref<256x128xbf16, #tpu.memory_space<vmem>>, vector<256x128xbf16>,
      %21 = vector.extract_strided_slice %17 {offsets = [0, 128], sizes = [256, 128], strides = [1, 1]} : vector<256x256xf32> to vector<256x128xf32>
      %c0_17 = arith.constant 0 : index
      %c0_18 = arith.constant 0 : index
      %22 = vector.load %arg6[%c0_17, %c0_18] : memref<256x128xf32, #tpu.memory_space<vmem>>, vector<256x128xf32>
      tpu.vector_store %arg6[%c0_17, %c0_18], %21 {strides = array<i32>} : memref<256x128xf32, #tpu.memory_space<vmem>>, vector<256x128xf32>,
    } else {
    }
    return
  }
  func.func @transform_0(%arg0: i32, %arg1: i32) -> (i32, i32) {
    %c0_i32 = arith.constant 0 : i32
    return %arg0, %arg1 : i32, i32
  }
  func.func @transform_1(%arg0: i32, %arg1: i32) -> (i32, i32) {
    %c0_i32 = arith.constant 0 : i32
    %c0_i32_0 = arith.constant 0 : i32
    return %arg1, %c0_i32 : i32, i32
  }
  func.func @transform_2(%arg0: i32, %arg1: i32) -> (i32, i32) {
    %c0_i32 = arith.constant 0 : i32
    %c0_i32_0 = arith.constant 0 : i32
    %c0_i32_1 = arith.constant 0 : i32
    return %c0_i32, %c0_i32_0 : i32, i32
  }
  func.func @transform_3(%arg0: i32, %arg1: i32) -> (i32, i32) {
    %c0_i32 = arith.constant 0 : i32
    %c0_i32_0 = arith.constant 0 : i32
    return %arg0, %c0_i32 : i32, i32
  }
  func.func @transform_4(%arg0: i32, %arg1: i32) -> (i32, i32) {
    %c0_i32 = arith.constant 0 : i32
    %c0_i32_0 = arith.constant 0 : i32
    return %arg0, %c0_i32 : i32, i32
  }
}

module attributes {stable_mosaic.version = 11 : i64} {
  func.func @kernel(%arg0: i32, %arg1: memref<1x4x8x8x128xbf16, #tpu.memory_space<vmem>>, %arg2: memref<1x128xbf16, #tpu.memory_space<vmem>>, %arg3: memref<9x384x128xbf16, #tpu.memory_space<vmem>>, %arg4: memref<1x128xf32, #tpu.memory_space<vmem>>, %arg5: memref<1x256x128xf32, #tpu.memory_space<vmem>>, %arg6: memref<6x10x10x128xbf16, #tpu.memory_space<vmem>>) attributes {dimension_semantics = [#tpu.dimension_semantics<parallel>], iteration_bounds = array<i64: 2>, scalar_prefetch = 0 : i64, scratch_operands = 1 : i64, tpu.core_type = #tpu.core_type<tc>, window_params = [{transform_indices = @transform_0, window_bounds = array<i64: 1, 4, 8, 8, 128>}, {pipeline_mode = #tpu.pipeline_mode<synchronous>, transform_indices = @transform_1, window_bounds = array<i64: 1, 128>}, {pipeline_mode = #tpu.pipeline_mode<synchronous>, transform_indices = @transform_2, window_bounds = array<i64: 9, 384, 128>}, {pipeline_mode = #tpu.pipeline_mode<synchronous>, transform_indices = @transform_3, window_bounds = array<i64: 1, 128>}, {transform_indices = @transform_4, window_bounds = array<i64: 1, 256, 128>}]} {
    %c0 = arith.constant 0 : index
    %c0_0 = arith.constant 0 : index
    %0 = vector.load %arg2[%c0, %c0_0] : memref<1x128xbf16, #tpu.memory_space<vmem>>, vector<1x128xbf16>
    %1 = vector.shape_cast %0 : vector<1x128xbf16> to vector<1x1x1x128xbf16>
    %2 = vector.shape_cast %1 : vector<1x1x1x128xbf16> to vector<1x1x1x128xbf16>
    %3 = vector.broadcast %2 : vector<1x1x1x128xbf16> to vector<6x10x10x128xbf16>
    %c0_1 = arith.constant 0 : index
    %c0_2 = arith.constant 0 : index
    %c0_3 = arith.constant 0 : index
    %c0_4 = arith.constant 0 : index
    %4 = vector.load %arg6[%c0_1, %c0_2, %c0_3, %c0_4] : memref<6x10x10x128xbf16, #tpu.memory_space<vmem>>, vector<6x10x10x128xbf16>
    tpu.vector_store %arg6[%c0_1, %c0_2, %c0_3, %c0_4], %3 {strides = array<i32>} : memref<6x10x10x128xbf16, #tpu.memory_space<vmem>>, vector<6x10x10x128xbf16>,
    %c0_5 = arith.constant 0 : index
    %c0_6 = arith.constant 0 : index
    %c0_7 = arith.constant 0 : index
    %c0_8 = arith.constant 0 : index
    %c0_9 = arith.constant 0 : index
    %5 = vector.load %arg1[%c0_5, %c0_6, %c0_7, %c0_8, %c0_9] : memref<1x4x8x8x128xbf16, #tpu.memory_space<vmem>>, vector<1x4x8x8x128xbf16>
    %6 = vector.shape_cast %5 : vector<1x4x8x8x128xbf16> to vector<4x8x8x128xbf16>
    %c1 = arith.constant 1 : index
    %c1_10 = arith.constant 1 : index
    %c1_11 = arith.constant 1 : index
    %c0_12 = arith.constant 0 : index
    %7 = vector.load %arg6[%c1, %c1_10, %c1_11, %c0_12] : memref<6x10x10x128xbf16, #tpu.memory_space<vmem>>, vector<4x8x8x128xbf16>
    tpu.vector_store %arg6[%c1, %c1_10, %c1_11, %c0_12], %6 {strides = array<i32>} : memref<6x10x10x128xbf16, #tpu.memory_space<vmem>>, vector<4x8x8x128xbf16>,
    %c0_13 = arith.constant 0 : index
    %c0_14 = arith.constant 0 : index
    %c0_15 = arith.constant 0 : index
    %c0_16 = arith.constant 0 : index
    %8 = vector.load %arg6[%c0_13, %c0_14, %c0_15, %c0_16] : memref<6x10x10x128xbf16, #tpu.memory_space<vmem>>, vector<6x10x10x128xbf16>
    %9 = vector.extract_strided_slice %8 {offsets = [0, 0, 0, 0], sizes = [4, 8, 8, 128], strides = [1, 1, 1, 1]} : vector<6x10x10x128xbf16> to vector<4x8x8x128xbf16>
    %10 = vector.extract_strided_slice %8 {offsets = [0, 0, 1, 0], sizes = [4, 8, 8, 128], strides = [1, 1, 1, 1]} : vector<6x10x10x128xbf16> to vector<4x8x8x128xbf16>
    %11 = vector.extract_strided_slice %8 {offsets = [0, 0, 2, 0], sizes = [4, 8, 8, 128], strides = [1, 1, 1, 1]} : vector<6x10x10x128xbf16> to vector<4x8x8x128xbf16>
    %12 = tpu.concatenate %9, %10, %11 in 3 : vector<4x8x8x128xbf16>, vector<4x8x8x128xbf16>, vector<4x8x8x128xbf16> -> vector<4x8x8x384xbf16>
    %13 = vector.shape_cast %12 : vector<4x8x8x384xbf16> to vector<256x384xbf16>
    %c0_17 = arith.constant 0 : index
    %c0_18 = arith.constant 0 : index
    %c0_19 = arith.constant 0 : index
    %14 = vector.load %arg3[%c0_17, %c0_18, %c0_19] : memref<9x384x128xbf16, #tpu.memory_space<vmem>>, vector<1x384x128xbf16>
    %15 = vector.shape_cast %14 : vector<1x384x128xbf16> to vector<384x128xbf16>
    %cst = arith.constant dense<0.000000e+00> : vector<256x128xf32>
    %16 = tpu.matmul %13, %15, %cst {dimension_numbers = #tpu.dot_dimension_numbers<[1], [0], [0], [1], [0, 0, 1, 1], [], []>} : vector<256x384xbf16>, vector<384x128xbf16>, vector<256x128xf32> -> vector<256x128xf32>
    %c0_20 = arith.constant 0 : index
    %c0_21 = arith.constant 0 : index
    %c0_22 = arith.constant 0 : index
    %17 = vector.load %arg5[%c0_20, %c0_21, %c0_22] : memref<1x256x128xf32, #tpu.memory_space<vmem>>, vector<1x256x128xf32>
    %18 = vector.shape_cast %17 : vector<1x256x128xf32> to vector<256x128xf32>
    %19 = vector.shape_cast %16 : vector<256x128xf32> to vector<1x256x128xf32>
    tpu.vector_store %arg5[%c0_20, %c0_21, %c0_22], %19 {strides = array<i32>} : memref<1x256x128xf32, #tpu.memory_space<vmem>>, vector<1x256x128xf32>,
    %20 = vector.extract_strided_slice %8 {offsets = [0, 1, 0, 0], sizes = [4, 8, 8, 128], strides = [1, 1, 1, 1]} : vector<6x10x10x128xbf16> to vector<4x8x8x128xbf16>
    %21 = vector.extract_strided_slice %8 {offsets = [0, 1, 1, 0], sizes = [4, 8, 8, 128], strides = [1, 1, 1, 1]} : vector<6x10x10x128xbf16> to vector<4x8x8x128xbf16>
    %22 = vector.extract_strided_slice %8 {offsets = [0, 1, 2, 0], sizes = [4, 8, 8, 128], strides = [1, 1, 1, 1]} : vector<6x10x10x128xbf16> to vector<4x8x8x128xbf16>
    %23 = tpu.concatenate %20, %21, %22 in 3 : vector<4x8x8x128xbf16>, vector<4x8x8x128xbf16>, vector<4x8x8x128xbf16> -> vector<4x8x8x384xbf16>
    %24 = vector.shape_cast %23 : vector<4x8x8x384xbf16> to vector<256x384xbf16>
    %c1_23 = arith.constant 1 : index
    %c0_24 = arith.constant 0 : index
    %c0_25 = arith.constant 0 : index
    %25 = vector.load %arg3[%c1_23, %c0_24, %c0_25] : memref<9x384x128xbf16, #tpu.memory_space<vmem>>, vector<1x384x128xbf16>
    %26 = vector.shape_cast %25 : vector<1x384x128xbf16> to vector<384x128xbf16>
    %cst_26 = arith.constant dense<0.000000e+00> : vector<256x128xf32>
    %27 = tpu.matmul %24, %26, %cst_26 {dimension_numbers = #tpu.dot_dimension_numbers<[1], [0], [0], [1], [0, 0, 1, 1], [], []>} : vector<256x384xbf16>, vector<384x128xbf16>, vector<256x128xf32> -> vector<256x128xf32>
    %c0_27 = arith.constant 0 : index
    %c0_28 = arith.constant 0 : index
    %c0_29 = arith.constant 0 : index
    %28 = vector.load %arg5[%c0_27, %c0_28, %c0_29] : memref<1x256x128xf32, #tpu.memory_space<vmem>>, vector<1x256x128xf32>
    %29 = vector.shape_cast %28 : vector<1x256x128xf32> to vector<256x128xf32>
    %30 = arith.addf %29, %27 : vector<256x128xf32>
    %c0_30 = arith.constant 0 : index
    %c0_31 = arith.constant 0 : index
    %c0_32 = arith.constant 0 : index
    %31 = vector.load %arg5[%c0_30, %c0_31, %c0_32] : memref<1x256x128xf32, #tpu.memory_space<vmem>>, vector<1x256x128xf32>
    %32 = vector.shape_cast %31 : vector<1x256x128xf32> to vector<256x128xf32>
    %33 = vector.shape_cast %30 : vector<256x128xf32> to vector<1x256x128xf32>
    tpu.vector_store %arg5[%c0_30, %c0_31, %c0_32], %33 {strides = array<i32>} : memref<1x256x128xf32, #tpu.memory_space<vmem>>, vector<1x256x128xf32>,
    %34 = vector.extract_strided_slice %8 {offsets = [0, 2, 0, 0], sizes = [4, 8, 8, 128], strides = [1, 1, 1, 1]} : vector<6x10x10x128xbf16> to vector<4x8x8x128xbf16>
    %35 = vector.extract_strided_slice %8 {offsets = [0, 2, 1, 0], sizes = [4, 8, 8, 128], strides = [1, 1, 1, 1]} : vector<6x10x10x128xbf16> to vector<4x8x8x128xbf16>
    %36 = vector.extract_strided_slice %8 {offsets = [0, 2, 2, 0], sizes = [4, 8, 8, 128], strides = [1, 1, 1, 1]} : vector<6x10x10x128xbf16> to vector<4x8x8x128xbf16>
    %37 = tpu.concatenate %34, %35, %36 in 3 : vector<4x8x8x128xbf16>, vector<4x8x8x128xbf16>, vector<4x8x8x128xbf16> -> vector<4x8x8x384xbf16>
    %38 = vector.shape_cast %37 : vector<4x8x8x384xbf16> to vector<256x384xbf16>
    %c2 = arith.constant 2 : index
    %c0_33 = arith.constant 0 : index
    %c0_34 = arith.constant 0 : index
    %39 = vector.load %arg3[%c2, %c0_33, %c0_34] : memref<9x384x128xbf16, #tpu.memory_space<vmem>>, vector<1x384x128xbf16>
    %40 = vector.shape_cast %39 : vector<1x384x128xbf16> to vector<384x128xbf16>
    %cst_35 = arith.constant dense<0.000000e+00> : vector<256x128xf32>
    %41 = tpu.matmul %38, %40, %cst_35 {dimension_numbers = #tpu.dot_dimension_numbers<[1], [0], [0], [1], [0, 0, 1, 1], [], []>} : vector<256x384xbf16>, vector<384x128xbf16>, vector<256x128xf32> -> vector<256x128xf32>
    %c0_36 = arith.constant 0 : index
    %c0_37 = arith.constant 0 : index
    %c0_38 = arith.constant 0 : index
    %42 = vector.load %arg5[%c0_36, %c0_37, %c0_38] : memref<1x256x128xf32, #tpu.memory_space<vmem>>, vector<1x256x128xf32>
    %43 = vector.shape_cast %42 : vector<1x256x128xf32> to vector<256x128xf32>
    %44 = arith.addf %43, %41 : vector<256x128xf32>
    %c0_39 = arith.constant 0 : index
    %c0_40 = arith.constant 0 : index
    %c0_41 = arith.constant 0 : index
    %45 = vector.load %arg5[%c0_39, %c0_40, %c0_41] : memref<1x256x128xf32, #tpu.memory_space<vmem>>, vector<1x256x128xf32>
    %46 = vector.shape_cast %45 : vector<1x256x128xf32> to vector<256x128xf32>
    %47 = vector.shape_cast %44 : vector<256x128xf32> to vector<1x256x128xf32>
    tpu.vector_store %arg5[%c0_39, %c0_40, %c0_41], %47 {strides = array<i32>} : memref<1x256x128xf32, #tpu.memory_space<vmem>>, vector<1x256x128xf32>,
    %48 = vector.extract_strided_slice %8 {offsets = [1, 0, 0, 0], sizes = [4, 8, 8, 128], strides = [1, 1, 1, 1]} : vector<6x10x10x128xbf16> to vector<4x8x8x128xbf16>
    %49 = vector.extract_strided_slice %8 {offsets = [1, 0, 1, 0], sizes = [4, 8, 8, 128], strides = [1, 1, 1, 1]} : vector<6x10x10x128xbf16> to vector<4x8x8x128xbf16>
    %50 = vector.extract_strided_slice %8 {offsets = [1, 0, 2, 0], sizes = [4, 8, 8, 128], strides = [1, 1, 1, 1]} : vector<6x10x10x128xbf16> to vector<4x8x8x128xbf16>
    %51 = tpu.concatenate %48, %49, %50 in 3 : vector<4x8x8x128xbf16>, vector<4x8x8x128xbf16>, vector<4x8x8x128xbf16> -> vector<4x8x8x384xbf16>
    %52 = vector.shape_cast %51 : vector<4x8x8x384xbf16> to vector<256x384xbf16>
    %c3 = arith.constant 3 : index
    %c0_42 = arith.constant 0 : index
    %c0_43 = arith.constant 0 : index
    %53 = vector.load %arg3[%c3, %c0_42, %c0_43] : memref<9x384x128xbf16, #tpu.memory_space<vmem>>, vector<1x384x128xbf16>
    %54 = vector.shape_cast %53 : vector<1x384x128xbf16> to vector<384x128xbf16>
    %cst_44 = arith.constant dense<0.000000e+00> : vector<256x128xf32>
    %55 = tpu.matmul %52, %54, %cst_44 {dimension_numbers = #tpu.dot_dimension_numbers<[1], [0], [0], [1], [0, 0, 1, 1], [], []>} : vector<256x384xbf16>, vector<384x128xbf16>, vector<256x128xf32> -> vector<256x128xf32>
    %c0_45 = arith.constant 0 : index
    %c0_46 = arith.constant 0 : index
    %c0_47 = arith.constant 0 : index
    %56 = vector.load %arg5[%c0_45, %c0_46, %c0_47] : memref<1x256x128xf32, #tpu.memory_space<vmem>>, vector<1x256x128xf32>
    %57 = vector.shape_cast %56 : vector<1x256x128xf32> to vector<256x128xf32>
    %58 = arith.addf %57, %55 : vector<256x128xf32>
    %c0_48 = arith.constant 0 : index
    %c0_49 = arith.constant 0 : index
    %c0_50 = arith.constant 0 : index
    %59 = vector.load %arg5[%c0_48, %c0_49, %c0_50] : memref<1x256x128xf32, #tpu.memory_space<vmem>>, vector<1x256x128xf32>
    %60 = vector.shape_cast %59 : vector<1x256x128xf32> to vector<256x128xf32>
    %61 = vector.shape_cast %58 : vector<256x128xf32> to vector<1x256x128xf32>
    tpu.vector_store %arg5[%c0_48, %c0_49, %c0_50], %61 {strides = array<i32>} : memref<1x256x128xf32, #tpu.memory_space<vmem>>, vector<1x256x128xf32>,
    %62 = vector.extract_strided_slice %8 {offsets = [1, 1, 0, 0], sizes = [4, 8, 8, 128], strides = [1, 1, 1, 1]} : vector<6x10x10x128xbf16> to vector<4x8x8x128xbf16>
    %63 = vector.extract_strided_slice %8 {offsets = [1, 1, 1, 0], sizes = [4, 8, 8, 128], strides = [1, 1, 1, 1]} : vector<6x10x10x128xbf16> to vector<4x8x8x128xbf16>
    %64 = vector.extract_strided_slice %8 {offsets = [1, 1, 2, 0], sizes = [4, 8, 8, 128], strides = [1, 1, 1, 1]} : vector<6x10x10x128xbf16> to vector<4x8x8x128xbf16>
    %65 = tpu.concatenate %62, %63, %64 in 3 : vector<4x8x8x128xbf16>, vector<4x8x8x128xbf16>, vector<4x8x8x128xbf16> -> vector<4x8x8x384xbf16>
    %66 = vector.shape_cast %65 : vector<4x8x8x384xbf16> to vector<256x384xbf16>
    %c4 = arith.constant 4 : index
    %c0_51 = arith.constant 0 : index
    %c0_52 = arith.constant 0 : index
    %67 = vector.load %arg3[%c4, %c0_51, %c0_52] : memref<9x384x128xbf16, #tpu.memory_space<vmem>>, vector<1x384x128xbf16>
    %68 = vector.shape_cast %67 : vector<1x384x128xbf16> to vector<384x128xbf16>
    %cst_53 = arith.constant dense<0.000000e+00> : vector<256x128xf32>
    %69 = tpu.matmul %66, %68, %cst_53 {dimension_numbers = #tpu.dot_dimension_numbers<[1], [0], [0], [1], [0, 0, 1, 1], [], []>} : vector<256x384xbf16>, vector<384x128xbf16>, vector<256x128xf32> -> vector<256x128xf32>
    %c0_54 = arith.constant 0 : index
    %c0_55 = arith.constant 0 : index
    %c0_56 = arith.constant 0 : index
    %70 = vector.load %arg5[%c0_54, %c0_55, %c0_56] : memref<1x256x128xf32, #tpu.memory_space<vmem>>, vector<1x256x128xf32>
    %71 = vector.shape_cast %70 : vector<1x256x128xf32> to vector<256x128xf32>
    %72 = arith.addf %71, %69 : vector<256x128xf32>
    %c0_57 = arith.constant 0 : index
    %c0_58 = arith.constant 0 : index
    %c0_59 = arith.constant 0 : index
    %73 = vector.load %arg5[%c0_57, %c0_58, %c0_59] : memref<1x256x128xf32, #tpu.memory_space<vmem>>, vector<1x256x128xf32>
    %74 = vector.shape_cast %73 : vector<1x256x128xf32> to vector<256x128xf32>
    %75 = vector.shape_cast %72 : vector<256x128xf32> to vector<1x256x128xf32>
    tpu.vector_store %arg5[%c0_57, %c0_58, %c0_59], %75 {strides = array<i32>} : memref<1x256x128xf32, #tpu.memory_space<vmem>>, vector<1x256x128xf32>,
    %76 = vector.extract_strided_slice %8 {offsets = [1, 2, 0, 0], sizes = [4, 8, 8, 128], strides = [1, 1, 1, 1]} : vector<6x10x10x128xbf16> to vector<4x8x8x128xbf16>
    %77 = vector.extract_strided_slice %8 {offsets = [1, 2, 1, 0], sizes = [4, 8, 8, 128], strides = [1, 1, 1, 1]} : vector<6x10x10x128xbf16> to vector<4x8x8x128xbf16>
    %78 = vector.extract_strided_slice %8 {offsets = [1, 2, 2, 0], sizes = [4, 8, 8, 128], strides = [1, 1, 1, 1]} : vector<6x10x10x128xbf16> to vector<4x8x8x128xbf16>
    %79 = tpu.concatenate %76, %77, %78 in 3 : vector<4x8x8x128xbf16>, vector<4x8x8x128xbf16>, vector<4x8x8x128xbf16> -> vector<4x8x8x384xbf16>
    %80 = vector.shape_cast %79 : vector<4x8x8x384xbf16> to vector<256x384xbf16>
    %c5 = arith.constant 5 : index
    %c0_60 = arith.constant 0 : index
    %c0_61 = arith.constant 0 : index
    %81 = vector.load %arg3[%c5, %c0_60, %c0_61] : memref<9x384x128xbf16, #tpu.memory_space<vmem>>, vector<1x384x128xbf16>
    %82 = vector.shape_cast %81 : vector<1x384x128xbf16> to vector<384x128xbf16>
    %cst_62 = arith.constant dense<0.000000e+00> : vector<256x128xf32>
    %83 = tpu.matmul %80, %82, %cst_62 {dimension_numbers = #tpu.dot_dimension_numbers<[1], [0], [0], [1], [0, 0, 1, 1], [], []>} : vector<256x384xbf16>, vector<384x128xbf16>, vector<256x128xf32> -> vector<256x128xf32>
    %c0_63 = arith.constant 0 : index
    %c0_64 = arith.constant 0 : index
    %c0_65 = arith.constant 0 : index
    %84 = vector.load %arg5[%c0_63, %c0_64, %c0_65] : memref<1x256x128xf32, #tpu.memory_space<vmem>>, vector<1x256x128xf32>
    %85 = vector.shape_cast %84 : vector<1x256x128xf32> to vector<256x128xf32>
    %86 = arith.addf %85, %83 : vector<256x128xf32>
    %c0_66 = arith.constant 0 : index
    %c0_67 = arith.constant 0 : index
    %c0_68 = arith.constant 0 : index
    %87 = vector.load %arg5[%c0_66, %c0_67, %c0_68] : memref<1x256x128xf32, #tpu.memory_space<vmem>>, vector<1x256x128xf32>
    %88 = vector.shape_cast %87 : vector<1x256x128xf32> to vector<256x128xf32>
    %89 = vector.shape_cast %86 : vector<256x128xf32> to vector<1x256x128xf32>
    tpu.vector_store %arg5[%c0_66, %c0_67, %c0_68], %89 {strides = array<i32>} : memref<1x256x128xf32, #tpu.memory_space<vmem>>, vector<1x256x128xf32>,
    %90 = vector.extract_strided_slice %8 {offsets = [2, 0, 0, 0], sizes = [4, 8, 8, 128], strides = [1, 1, 1, 1]} : vector<6x10x10x128xbf16> to vector<4x8x8x128xbf16>
    %91 = vector.extract_strided_slice %8 {offsets = [2, 0, 1, 0], sizes = [4, 8, 8, 128], strides = [1, 1, 1, 1]} : vector<6x10x10x128xbf16> to vector<4x8x8x128xbf16>
    %92 = vector.extract_strided_slice %8 {offsets = [2, 0, 2, 0], sizes = [4, 8, 8, 128], strides = [1, 1, 1, 1]} : vector<6x10x10x128xbf16> to vector<4x8x8x128xbf16>
    %93 = tpu.concatenate %90, %91, %92 in 3 : vector<4x8x8x128xbf16>, vector<4x8x8x128xbf16>, vector<4x8x8x128xbf16> -> vector<4x8x8x384xbf16>
    %94 = vector.shape_cast %93 : vector<4x8x8x384xbf16> to vector<256x384xbf16>
    %c6 = arith.constant 6 : index
    %c0_69 = arith.constant 0 : index
    %c0_70 = arith.constant 0 : index
    %95 = vector.load %arg3[%c6, %c0_69, %c0_70] : memref<9x384x128xbf16, #tpu.memory_space<vmem>>, vector<1x384x128xbf16>
    %96 = vector.shape_cast %95 : vector<1x384x128xbf16> to vector<384x128xbf16>
    %cst_71 = arith.constant dense<0.000000e+00> : vector<256x128xf32>
    %97 = tpu.matmul %94, %96, %cst_71 {dimension_numbers = #tpu.dot_dimension_numbers<[1], [0], [0], [1], [0, 0, 1, 1], [], []>} : vector<256x384xbf16>, vector<384x128xbf16>, vector<256x128xf32> -> vector<256x128xf32>
    %c0_72 = arith.constant 0 : index
    %c0_73 = arith.constant 0 : index
    %c0_74 = arith.constant 0 : index
    %98 = vector.load %arg5[%c0_72, %c0_73, %c0_74] : memref<1x256x128xf32, #tpu.memory_space<vmem>>, vector<1x256x128xf32>
    %99 = vector.shape_cast %98 : vector<1x256x128xf32> to vector<256x128xf32>
    %100 = arith.addf %99, %97 : vector<256x128xf32>
    %c0_75 = arith.constant 0 : index
    %c0_76 = arith.constant 0 : index
    %c0_77 = arith.constant 0 : index
    %101 = vector.load %arg5[%c0_75, %c0_76, %c0_77] : memref<1x256x128xf32, #tpu.memory_space<vmem>>, vector<1x256x128xf32>
    %102 = vector.shape_cast %101 : vector<1x256x128xf32> to vector<256x128xf32>
    %103 = vector.shape_cast %100 : vector<256x128xf32> to vector<1x256x128xf32>
    tpu.vector_store %arg5[%c0_75, %c0_76, %c0_77], %103 {strides = array<i32>} : memref<1x256x128xf32, #tpu.memory_space<vmem>>, vector<1x256x128xf32>,
    %104 = vector.extract_strided_slice %8 {offsets = [2, 1, 0, 0], sizes = [4, 8, 8, 128], strides = [1, 1, 1, 1]} : vector<6x10x10x128xbf16> to vector<4x8x8x128xbf16>
    %105 = vector.extract_strided_slice %8 {offsets = [2, 1, 1, 0], sizes = [4, 8, 8, 128], strides = [1, 1, 1, 1]} : vector<6x10x10x128xbf16> to vector<4x8x8x128xbf16>
    %106 = vector.extract_strided_slice %8 {offsets = [2, 1, 2, 0], sizes = [4, 8, 8, 128], strides = [1, 1, 1, 1]} : vector<6x10x10x128xbf16> to vector<4x8x8x128xbf16>
    %107 = tpu.concatenate %104, %105, %106 in 3 : vector<4x8x8x128xbf16>, vector<4x8x8x128xbf16>, vector<4x8x8x128xbf16> -> vector<4x8x8x384xbf16>
    %108 = vector.shape_cast %107 : vector<4x8x8x384xbf16> to vector<256x384xbf16>
    %c7 = arith.constant 7 : index
    %c0_78 = arith.constant 0 : index
    %c0_79 = arith.constant 0 : index
    %109 = vector.load %arg3[%c7, %c0_78, %c0_79] : memref<9x384x128xbf16, #tpu.memory_space<vmem>>, vector<1x384x128xbf16>
    %110 = vector.shape_cast %109 : vector<1x384x128xbf16> to vector<384x128xbf16>
    %cst_80 = arith.constant dense<0.000000e+00> : vector<256x128xf32>
    %111 = tpu.matmul %108, %110, %cst_80 {dimension_numbers = #tpu.dot_dimension_numbers<[1], [0], [0], [1], [0, 0, 1, 1], [], []>} : vector<256x384xbf16>, vector<384x128xbf16>, vector<256x128xf32> -> vector<256x128xf32>
    %c0_81 = arith.constant 0 : index
    %c0_82 = arith.constant 0 : index
    %c0_83 = arith.constant 0 : index
    %112 = vector.load %arg5[%c0_81, %c0_82, %c0_83] : memref<1x256x128xf32, #tpu.memory_space<vmem>>, vector<1x256x128xf32>
    %113 = vector.shape_cast %112 : vector<1x256x128xf32> to vector<256x128xf32>
    %114 = arith.addf %113, %111 : vector<256x128xf32>
    %c0_84 = arith.constant 0 : index
    %c0_85 = arith.constant 0 : index
    %c0_86 = arith.constant 0 : index
    %115 = vector.load %arg5[%c0_84, %c0_85, %c0_86] : memref<1x256x128xf32, #tpu.memory_space<vmem>>, vector<1x256x128xf32>
    %116 = vector.shape_cast %115 : vector<1x256x128xf32> to vector<256x128xf32>
    %117 = vector.shape_cast %114 : vector<256x128xf32> to vector<1x256x128xf32>
    tpu.vector_store %arg5[%c0_84, %c0_85, %c0_86], %117 {strides = array<i32>} : memref<1x256x128xf32, #tpu.memory_space<vmem>>, vector<1x256x128xf32>,
    %118 = vector.extract_strided_slice %8 {offsets = [2, 2, 0, 0], sizes = [4, 8, 8, 128], strides = [1, 1, 1, 1]} : vector<6x10x10x128xbf16> to vector<4x8x8x128xbf16>
    %119 = vector.extract_strided_slice %8 {offsets = [2, 2, 1, 0], sizes = [4, 8, 8, 128], strides = [1, 1, 1, 1]} : vector<6x10x10x128xbf16> to vector<4x8x8x128xbf16>
    %120 = vector.extract_strided_slice %8 {offsets = [2, 2, 2, 0], sizes = [4, 8, 8, 128], strides = [1, 1, 1, 1]} : vector<6x10x10x128xbf16> to vector<4x8x8x128xbf16>
    %121 = tpu.concatenate %118, %119, %120 in 3 : vector<4x8x8x128xbf16>, vector<4x8x8x128xbf16>, vector<4x8x8x128xbf16> -> vector<4x8x8x384xbf16>
    %122 = vector.shape_cast %121 : vector<4x8x8x384xbf16> to vector<256x384xbf16>
    %c8 = arith.constant 8 : index
    %c0_87 = arith.constant 0 : index
    %c0_88 = arith.constant 0 : index
    %123 = vector.load %arg3[%c8, %c0_87, %c0_88] : memref<9x384x128xbf16, #tpu.memory_space<vmem>>, vector<1x384x128xbf16>
    %124 = vector.shape_cast %123 : vector<1x384x128xbf16> to vector<384x128xbf16>
    %cst_89 = arith.constant dense<0.000000e+00> : vector<256x128xf32>
    %125 = tpu.matmul %122, %124, %cst_89 {dimension_numbers = #tpu.dot_dimension_numbers<[1], [0], [0], [1], [0, 0, 1, 1], [], []>} : vector<256x384xbf16>, vector<384x128xbf16>, vector<256x128xf32> -> vector<256x128xf32>
    %c0_90 = arith.constant 0 : index
    %c0_91 = arith.constant 0 : index
    %c0_92 = arith.constant 0 : index
    %126 = vector.load %arg5[%c0_90, %c0_91, %c0_92] : memref<1x256x128xf32, #tpu.memory_space<vmem>>, vector<1x256x128xf32>
    %127 = vector.shape_cast %126 : vector<1x256x128xf32> to vector<256x128xf32>
    %128 = arith.addf %127, %125 : vector<256x128xf32>
    %c0_93 = arith.constant 0 : index
    %c0_94 = arith.constant 0 : index
    %c0_95 = arith.constant 0 : index
    %129 = vector.load %arg5[%c0_93, %c0_94, %c0_95] : memref<1x256x128xf32, #tpu.memory_space<vmem>>, vector<1x256x128xf32>
    %130 = vector.shape_cast %129 : vector<1x256x128xf32> to vector<256x128xf32>
    %131 = vector.shape_cast %128 : vector<256x128xf32> to vector<1x256x128xf32>
    tpu.vector_store %arg5[%c0_93, %c0_94, %c0_95], %131 {strides = array<i32>} : memref<1x256x128xf32, #tpu.memory_space<vmem>>, vector<1x256x128xf32>,
    %c0_96 = arith.constant 0 : index
    %c0_97 = arith.constant 0 : index
    %c0_98 = arith.constant 0 : index
    %132 = vector.load %arg5[%c0_96, %c0_97, %c0_98] : memref<1x256x128xf32, #tpu.memory_space<vmem>>, vector<1x256x128xf32>
    %133 = vector.shape_cast %132 : vector<1x256x128xf32> to vector<256x128xf32>
    %c0_99 = arith.constant 0 : index
    %c0_100 = arith.constant 0 : index
    %134 = vector.load %arg4[%c0_99, %c0_100] : memref<1x128xf32, #tpu.memory_space<vmem>>, vector<1x128xf32>
    %135 = vector.broadcast %134 : vector<1x128xf32> to vector<256x128xf32>
    %136 = arith.addf %133, %135 : vector<256x128xf32>
    %cst_101 = arith.constant 0.000000e+00 : f32
    %137 = vector.broadcast %cst_101 : f32 to vector<256x128xf32>
    %138 = arith.maximumf %136, %137 : vector<256x128xf32>
    %c0_102 = arith.constant 0 : index
    %c0_103 = arith.constant 0 : index
    %c0_104 = arith.constant 0 : index
    %139 = vector.load %arg5[%c0_102, %c0_103, %c0_104] : memref<1x256x128xf32, #tpu.memory_space<vmem>>, vector<1x256x128xf32>
    %140 = vector.shape_cast %139 : vector<1x256x128xf32> to vector<256x128xf32>
    %141 = vector.shape_cast %138 : vector<256x128xf32> to vector<1x256x128xf32>
    tpu.vector_store %arg5[%c0_102, %c0_103, %c0_104], %141 {strides = array<i32>} : memref<1x256x128xf32, #tpu.memory_space<vmem>>, vector<1x256x128xf32>,
    return
  }
  func.func @transform_0(%arg0: i32) -> (i32, i32, i32, i32, i32) {
    %c0_i32 = arith.constant 0 : i32
    %c0_i32_0 = arith.constant 0 : i32
    %c0_i32_1 = arith.constant 0 : i32
    %c0_i32_2 = arith.constant 0 : i32
    %c0_i32_3 = arith.constant 0 : i32
    return %arg0, %c0_i32, %c0_i32_0, %c0_i32_1, %c0_i32_2 : i32, i32, i32, i32, i32
  }
  func.func @transform_1(%arg0: i32) -> (i32, i32) {
    %c0_i32 = arith.constant 0 : i32
    %c0_i32_0 = arith.constant 0 : i32
    %c0_i32_1 = arith.constant 0 : i32
    return %c0_i32, %c0_i32_0 : i32, i32
  }
  func.func @transform_2(%arg0: i32) -> (i32, i32, i32) {
    %c0_i32 = arith.constant 0 : i32
    %c0_i32_0 = arith.constant 0 : i32
    %c0_i32_1 = arith.constant 0 : i32
    %c0_i32_2 = arith.constant 0 : i32
    return %c0_i32, %c0_i32_0, %c0_i32_1 : i32, i32, i32
  }
  func.func @transform_3(%arg0: i32) -> (i32, i32) {
    %c0_i32 = arith.constant 0 : i32
    %c0_i32_0 = arith.constant 0 : i32
    %c0_i32_1 = arith.constant 0 : i32
    return %c0_i32, %c0_i32_0 : i32, i32
  }
  func.func @transform_4(%arg0: i32) -> (i32, i32, i32) {
    %c0_i32 = arith.constant 0 : i32
    %c0_i32_0 = arith.constant 0 : i32
    %c0_i32_1 = arith.constant 0 : i32
    return %arg0, %c0_i32, %c0_i32_0 : i32, i32, i32
  }
}

</mosaic_0001>

<bundles_post_ra>
// kernel: _lambda_.3
= control target key start
LH: loop header
LB: loop body
LE: loop exit
PB: predicated region body
PF: predicated region fallthrough
CT: control target
= control target key end

     0   :  { %10 = vsyncpa [#allocation4], 0  ;;  %s2095_s0 = inlined_call_operand.vmem [shape: bf16[512,8], index: 0, kind: input, shape index: {}]   ;;  %s2096_s1 = inlined_call_operand.hbm [shape: bf16[8,256], index: 1, kind: input, shape index: {}]   ;;  %s2097_s2 = inlined_call_operand.hbm [shape: f32[1,256], index: 2, kind: input, shape index: {}]   ;;  %s2098_s3 = inlined_call_operand.vmem [shape: bf16[512,128], index: 3, kind: output, shape index: {0}]   ;;  %s2099_s4 = inlined_call_operand.vmem [shape: f32[512,128], index: 4, kind: output, shape index: {1}]  }
   0x1   :  { %11 = vsyncpa [#allocation6], 0  ;;  %s1818_s15 = smov 0   ;;  %s1820_s16 = smov 0  }
   0x2   :  { %s1822_s17 = smov 0  }
   0x3 LB: > { %s1425_s18 = sadd.s32 4294967295, %s1788_s17   ;;  %s29_s19 = sadd.s32 1, %s1784_s16  ;;  %s1788_s17 = sphi %s1822_s17, %s17_s17   ;;  %s1784_s16 = sphi %s1820_s16, %s2109_s16   ;;  %s1780_s15 = sphi %s1818_s15, %s2108_s15  }
   0x4   : > { %p31_p0 = scmp.ge.s32.totalorder %s29_s19, 2  ;;  %p1427_p1 = scmp.ge.s32.totalorder %s1788_s17, 1 }
   0x5   : > { %p161_p2 = scmp.lt.s32.totalorder %s1788_s17, 3  ;;  %p1843_p4 = scmp.eq.s32.totalorder %s1425_s18, 0 }
   0x6   : > { %s2111_s19 = smov (%p31_p0, %s29_s19), 0  ;;  %s1790_s22 = smov [#allocation3]  }
   0x7   : > { %p1839_p3 = pnand %p1427_p1, %p161_p2  ;;  %s177_s23 = sshll.u32 %s1790_s22, 4  ;;  %s178_s23 = int_to_ptr.vmem [resolvable:$true] %s177_s23 }
   0x8   : > { %s2104_s21 = scalar_select %p1843_p4, 1, 0 }
   0x9   : > { %s2103_s20 = scalar_select %p1839_p3, 1, 0 }
   0xa   : > { %p1646_p5 = pneg %p1839_p3  ;;  %s1791_s24 = smov [#allocation5]  }
   0xb   : > { %s188_s25 = sshll.u32 %s1791_s24, 4  ;;  %s1702_s29 = scalar_lea.hbm %s2096_s1, 128  ;;  %s1855_s25 = int_to_ptr.vmem [resolvable:$true] %s188_s25 }
   0xc   : > { %p1851_p6 = pnand %p1843_p4, %p1646_p5  ;;  %p1703_p7 = scmp.ne.s32.totalorder %s2096_s1, %s1702_s29 }
   0xd   : > { %p1709_p11 = scmp.lt.u32.totalorder %s1702_s29, %s2096_s1 }
   0xe   : > { %p1704_p8 = pneg %p1851_p6 }
  0x10   : > { %p1705_p9 = pnand %p1704_p8, %p1703_p7 }
  0x12   : > { %p1706_p10 = pneg %p1705_p9 }
  0x14   : > { %p1711_p12 = pnand %p1709_p11, %p1706_p10 }
  0x16   : > { %1714 = shalt.err (!%p1711_p12)
}
  0x17   : > { %s1715_s8 = scalar_lea.vmem %s178_s23, 128  ;;  %p1723_p2 = scmp.lt.s32.totalorder %s178_s23, %s178_s23 }
  0x18   : > { %p1716_p13 = scmp.ne.s32.totalorder %s178_s23, %s1715_s8  ;;  %p1724_p5 = scmp.lt.s32.totalorder %s1715_s8, %s1715_s8 }
  0x1a   : > { %p1718_p0 = pnand %p1716_p13, %p1704_p8  ;;  %p1725_p4 = por %p1724_p5, %p1723_p2 }
  0x1c   : > { %p1719_p1 = pneg %p1718_p0 }
  0x1e   : > { %p1726_p3 = pnand %p1725_p4, %p1719_p1 }
  0x20   : > { %1729 = shalt.err (!%p1726_p3)
}
  0x21   : > { %1649 = dma.hbm_to_vmem [thread:$0]  (!%p1851_p6), %s2096_s1, 128, %s178_s23, [#allocation4]  }
  0x22   : > { %s1730_s13 = scalar_lea.hbm %s2097_s2, 32 }
  0x23   : > { %p1731_p7 = scmp.ne.s32.totalorder %s2097_s2, %s1730_s13  ;;  %p1737_p3 = scmp.lt.u32.totalorder %s1730_s13, %s2097_s2 }
  0x25   : > { %p1733_p9 = pnand %p1731_p7, %p1704_p8 }
  0x27   : > { %p1734_p4 = pneg %p1733_p9 }
  0x29   : > { %p1739_p10 = pnand %p1737_p3, %p1734_p4 }
  0x2b   : > { %1742 = shalt.err (!%p1739_p10)
}
  0x2c   : > { %s1743_s23 = scalar_lea.vmem %s1855_s25, 32  ;;  %p1751_p0 = scmp.lt.s32.totalorder %s1855_s25, %s1855_s25 }
  0x2d   : > { %p1744_p11 = scmp.ne.s32.totalorder %s1855_s25, %s1743_s23  ;;  %p1752_p1 = scmp.lt.s32.totalorder %s1743_s23, %s1743_s23 }
  0x2f   : > { %p1746_p12 = pnand %p1744_p11, %p1704_p8  ;;  %p1753_p2 = por %p1752_p1, %p1751_p0 }
  0x31   : > { %p1747_p13 = pneg %p1746_p12 }
  0x33   : > { %p1754_p5 = pnand %p1753_p2, %p1747_p13 }
  0x35   : > { %1757 = shalt.err (!%p1754_p5)
}
  0x36   : > { %1652 = dma.hbm_to_vmem [thread:$0]  (!%p1851_p6), %s2097_s2, 32, %s1855_s25, [#allocation6]  }
  0x37   : > { %p2106_p7 = scmp.ne.s32.totalorder %s2103_s20, 0 }
  0x38   : > { %p2107_p9 = scmp.ne.s32.totalorder (!%p2106_p7), %s2104_s21, 0 }
  0x39   : > { %213 = sbr.rel (%p2106_p7) target bundleno = 352 (0x160), region = 32 }
  0x40   : > { %1771 = dma.done.wait (%p2107_p9), [#allocation4], 128  }
  0x41   : > { %1773 = vsyncadd (%p2107_p9), [#allocation4], 4294967168 }
  0x42   : > { %1775 = dma.done.wait (%p2107_p9), [#allocation6], 32  }
  0x43   : > { %1777 = vsyncadd (%p2107_p9), [#allocation6], 4294967264  ;;  %s1434_s26 = sshll.u32 %s1780_s15, 5  ;;  %v1792_v0 = vmov 0   ;;  %v437_v1 = vld [vmem:[#allocation3] sm:$0xff]  ;;  %vm572_vm0 = vcmask 1043456   ;;  %v969_v21 = vlaneseq }
  0x44   : > { %611 = vmatprep.mubr.bf16.mxu0 %v1792_v0  ;;  %691 = vmatprep.mubr.bf16.mxu1 %v1792_v0  ;;  %p252_p6 = scmp.lt.s32.totalorder %s1434_s26, 63  ;;  %v1457_v2 = vcombine.high %v437_v1, %v437_v1  ;;  %v1456_v3 = vcombine.low %v437_v1, %v437_v1  ;;  %vm523_vm1 = vcmask 64512   ;;  %v967_v24 = vld [vmem:[#allocation5] sm:$0x3] }
  0x45   : > { %v970_v22 = vshrl.u32 %v969_v21, 7 }
  0x46   : > { %s2113_s26 = smov (!%p252_p6, %s1434_s26), 63  ;;  %1458 = vmatprep.subr.msk.bf16.mxu0 %vm572_vm0, %v1457_v2  ;;  %1636 = vmatprep.subr.msk.bf16.mxu1 %vm572_vm0, %v1457_v2  ;;  %v574_v5 = vsel %vm572_vm0, %v1456_v3, 0 }
  0x47   : > { %s1435_s20 = sshll.u32 %s2113_s26, 2  ;;  %580 = vmatpush1.bf16.msra.mxu0 %v574_v5  ;;  %1637 = vmatpush1.bf16.msra.mxu1 %v574_v5  ;;  %v971_v23 = vsub.s32 0, %v970_v22  ;;  %v975_v25 = vsub.s32 1, %v970_v22  ;;  %s1439_s15 = sshll.u32 %s2113_s26, 3 }
  0x48   : > { %s1923_s30 = scalar_lea.vmem %s2095_s0, %s1435_s20  ;;  %s1969_s6 = scalar_lea.vmem %s2099_s4, %s1439_s15 }
  0x49   : > { %v1686_v4 = vld [vmem:[%s1923_s30] sm:$0xff]   ;;  %v1688_v7 = vld [vmem:[%s1923_s30 + $0x8] sm:$0xff]   ;;  %v1690_v9 = vld [vmem:[%s1923_s30 + $0x10] sm:$0xff]   ;;  %v1957_v26 = vrot.slane %v967_v24, %v971_v23  ;;  %v1959_v27 = vrot.slane %v967_v24, %v975_v25  ;;  %s1982_s9 = scalar_lea.vmem %s2098_s3, %s1435_s20 }
  0x4a   : > { %v1687_v6 = vld [vmem:[%s1923_s30 + $0x40] sm:$0xff]   ;;  %1459 = vmatmul.mubr.msk.bf16.vlgmr.msra.gmra.mrb[0].mxu0 %vm523_vm1, %v1686_v4  ;;  %v1689_v8 = vld [vmem:[%s1923_s30 + $0x48] sm:$0xff]   ;;  %v1691_v10 = vld [vmem:[%s1923_s30 + $0x50] sm:$0xff]  }
  0x4b   : > { %1467 = vmatmul.mubr.msk.bf16.vlgmr.msra.gmra.mrb[0].mxu1 %vm523_vm1, %v1687_v6  ;;  %621 = vmatprep.mubr.bf16.mxu0 %v1792_v0  ;;  %v1692_v11 = vld [vmem:[%s1923_s30 + $0x18] sm:$0xff]   ;;  %v1694_v13 = vld [vmem:[%s1923_s30 + $0x20] sm:$0xff]   ;;  %v1696_v15 = vld [vmem:[%s1923_s30 + $0x28] sm:$0xff]  }
  0x4c   : > { %701 = vmatprep.mubr.bf16.mxu1 %v1792_v0  ;;  %v1693_v12 = vld [vmem:[%s1923_s30 + $0x58] sm:$0xff]   ;;  %v1695_v14 = vld [vmem:[%s1923_s30 + $0x60] sm:$0xff]   ;;  %v1697_v16 = vld [vmem:[%s1923_s30 + $0x68] sm:$0xff]  }
  0x4d   : > { %v1698_v17 = vld [vmem:[%s1923_s30 + $0x30] sm:$0xff]   ;;  %v1700_v19 = vld [vmem:[%s1923_s30 + $0x38] sm:$0xff]  }
  0x4e   : > { %v1699_v18 = vld [vmem:[%s1923_s30 + $0x70] sm:$0xff]   ;;  %v1701_v20 = vld [vmem:[%s1923_s30 + $0x78] sm:$0xff]  }
  0x52   : > { %1460 = vmatmul.mubr.msk.bf16.gmra.mrb[4].mxu0 %vm523_vm1, %v1688_v7 }
  0x53   : > { %1468 = vmatmul.mubr.msk.bf16.gmra.mrb[4].mxu1 %vm523_vm1, %v1689_v8  ;;  %631 = vmatprep.mubr.bf16.mxu0 %v1792_v0 }
  0x54   : > { %711 = vmatprep.mubr.bf16.mxu1 %v1792_v0 }
  0x5a   : > { %1461 = vmatmul.mubr.msk.bf16.gmra.mrb[8].mxu0 %vm523_vm1, %v1690_v9 }
  0x5b   : > { %1469 = vmatmul.mubr.msk.bf16.gmra.mrb[8].mxu1 %vm523_vm1, %v1691_v10  ;;  %641 = vmatprep.mubr.bf16.mxu0 %v1792_v0 }
  0x5c   : > { %721 = vmatprep.mubr.bf16.mxu1 %v1792_v0 }
  0x62   : > { %1462 = vmatmul.mubr.msk.bf16.gmra.mrb[12].mxu0 %vm523_vm1, %v1692_v11 }
  0x63   : > { %1470 = vmatmul.mubr.msk.bf16.gmra.mrb[12].mxu1 %vm523_vm1, %v1693_v12  ;;  %651 = vmatprep.mubr.bf16.mxu0 %v1792_v0 }
  0x64   : > { %731 = vmatprep.mubr.bf16.mxu1 %v1792_v0 }
  0x6a   : > { %1463 = vmatmul.mubr.msk.bf16.gmra.mrb[16].mxu0 %vm523_vm1, %v1694_v13 }
  0x6b   : > { %1471 = vmatmul.mubr.msk.bf16.gmra.mrb[16].mxu1 %vm523_vm1, %v1695_v14  ;;  %661 = vmatprep.mubr.bf16.mxu0 %v1792_v0 }
  0x6c   : > { %741 = vmatprep.mubr.bf16.mxu1 %v1792_v0 }
  0x72   : > { %1464 = vmatmul.mubr.msk.bf16.gmra.mrb[20].mxu0 %vm523_vm1, %v1696_v15 }
  0x73   : > { %1472 = vmatmul.mubr.msk.bf16.gmra.mrb[20].mxu1 %vm523_vm1, %v1697_v16  ;;  %671 = vmatprep.mubr.bf16.mxu0 %v1792_v0 }
  0x74   : > { %751 = vmatprep.mubr.bf16.mxu1 %v1792_v0 }
  0x7a   : > { %1465 = vmatmul.mubr.msk.bf16.gmra.mrb[24].mxu0 %vm523_vm1, %v1698_v17 }
  0x7b   : > { %1473 = vmatmul.mubr.msk.bf16.gmra.mrb[24].mxu1 %vm523_vm1, %v1699_v18  ;;  %681 = vmatprep.mubr.bf16.mxu0 %v1792_v0 }
  0x7c   : > { %761 = vmatprep.mubr.bf16.mxu1 %v1792_v0 }
  0x82   : > { %1466 = vmatmul.mubr.msk.bf16.gmra.mrb[28].mxu0 %vm523_vm1, %v1700_v19 }
  0x83   : > { %1474 = vmatmul.mubr.msk.bf16.gmra.mrb[28].mxu1 %vm523_vm1, %v1701_v20 }
 0x11d   : > { %v613_v28 = vpop.f32.mrb[0].mxu0 }
 0x11e   : > { %v693_v29 = vpop.f32.mrb[0].mxu1  ;;  %v979_v30 = vadd.f32 %v1957_v26, %v613_v28  ;;  %v615_v32 = vpop.f32.mrb[1].mxu0 }
 0x11f   : > { %v1011_v31 = vadd.f32 %v1957_v26, %v693_v29  ;;  %v695_v33 = vpop.f32.mrb[1].mxu1  ;;  %v980_v34 = vadd.f32 %v1959_v27, %v615_v32  ;;  %v617_v36 = vpop.f32.mrb[2].mxu0 }
 0x120   : > { %v1012_v35 = vadd.f32 %v1959_v27, %v695_v33  ;;  %v697_v37 = vpop.f32.mrb[2].mxu1  ;;  %v981_v38 = vadd.f32 %v1957_v26, %v617_v36  ;;  %v619_v40 = vpop.f32.mrb[3].mxu0  ;;  %v1043_v46 = vmax.f32 %v979_v30, 0.0 }
 0x121   : > { %v1013_v39 = vadd.f32 %v1957_v26, %v697_v37  ;;  %v699_v41 = vpop.f32.mrb[3].mxu1  ;;  %v1044_v42 = vmax.f32 %v980_v34, 0.0  ;;  %v982_v44 = vadd.f32 %v1959_v27, %v619_v40  ;;  %v1075_v47 = vmax.f32 %v1011_v31, 0.0 }
 0x122   : > { %v1076_v43 = vmax.f32 %v1012_v35, 0.0  ;;  %v1014_v45 = vadd.f32 %v1959_v27, %v699_v41  ;;  %v1045_v48 = vmax.f32 %v981_v38, 0.0 }
 0x123   : > { %v1077_v49 = vmax.f32 %v1013_v39, 0.0  ;;  %1267 = vst [vmem:[%s1969_s6] sm:$0xff] %v1044_v42  ;;  %v1046_v50 = vmax.f32 %v982_v44, 0.0 }
 0x124   : > { %1283 = vst [vmem:[%s1969_s6 + $0x80] sm:$0xff] %v1076_v43  ;;  %v1078_v51 = vmax.f32 %v1014_v45, 0.0  ;;  %v1544_v52 = vpack.c.bf16 %v1045_v48, %v1043_v46 }
 0x125   : > { %v1584_v53 = vpack.c.bf16 %v1077_v49, %v1075_v47  ;;  %1268 = vst [vmem:[%s1969_s6 + $0x8] sm:$0xff] %v1046_v50  ;;  %v623_v54 = vpop.f32.mrb[4].mxu0 }
 0x126   : > { %1284 = vst [vmem:[%s1969_s6 + $0x88] sm:$0xff] %v1078_v51  ;;  %v703_v55 = vpop.f32.mrb[4].mxu1  ;;  %1545 = vst [vmem:[%s1982_s9] sm:$0xff] %v1544_v52   ;;  %v983_v56 = vadd.f32 %v1957_v26, %v623_v54  ;;  %v625_v58 = vpop.f32.mrb[5].mxu0 }
 0x127   : > { %1628 = vst [vmem:[%s1982_s9 + $0x40] sm:$0xff] %v1584_v53   ;;  %v1015_v57 = vadd.f32 %v1957_v26, %v703_v55  ;;  %v705_v59 = vpop.f32.mrb[5].mxu1  ;;  %v984_v60 = vadd.f32 %v1959_v27, %v625_v58  ;;  %v627_v62 = vpop.f32.mrb[6].mxu0 }
 0x128   : > { %v1016_v61 = vadd.f32 %v1959_v27, %v705_v59  ;;  %v707_v63 = vpop.f32.mrb[6].mxu1  ;;  %v985_v0 = vadd.f32 %v1957_v26, %v627_v62  ;;  %v629_v2 = vpop.f32.mrb[7].mxu0  ;;  %v1047_v8 = vmax.f32 %v983_v56, 0.0 }
 0x129   : > { %v1017_v1 = vadd.f32 %v1957_v26, %v707_v63  ;;  %v709_v3 = vpop.f32.mrb[7].mxu1  ;;  %v1048_v4 = vmax.f32 %v984_v60, 0.0  ;;  %v986_v6 = vadd.f32 %v1959_v27, %v629_v2  ;;  %v1079_v9 = vmax.f32 %v1015_v57, 0.0 }
 0x12a   : > { %v1080_v5 = vmax.f32 %v1016_v61, 0.0  ;;  %v1018_v7 = vadd.f32 %v1959_v27, %v709_v3  ;;  %v1049_v10 = vmax.f32 %v985_v0, 0.0 }
 0x12b   : > { %v1081_v11 = vmax.f32 %v1017_v1, 0.0  ;;  %1269 = vst [vmem:[%s1969_s6 + $0x10] sm:$0xff] %v1048_v4  ;;  %v1050_v12 = vmax.f32 %v986_v6, 0.0 }
 0x12c   : > { %1285 = vst [vmem:[%s1969_s6 + $0x90] sm:$0xff] %v1080_v5  ;;  %v1082_v13 = vmax.f32 %v1018_v7, 0.0  ;;  %v1549_v14 = vpack.c.bf16 %v1049_v10, %v1047_v8 }
 0x12d   : > { %v1589_v15 = vpack.c.bf16 %v1081_v11, %v1079_v9  ;;  %1270 = vst [vmem:[%s1969_s6 + $0x18] sm:$0xff] %v1050_v12  ;;  %v633_v16 = vpop.f32.mrb[8].mxu0 }
 0x12e   : > { %1286 = vst [vmem:[%s1969_s6 + $0x98] sm:$0xff] %v1082_v13  ;;  %v713_v17 = vpop.f32.mrb[8].mxu1  ;;  %1621 = vst [vmem:[%s1982_s9 + $0x8] sm:$0xff] %v1549_v14   ;;  %v987_v18 = vadd.f32 %v1957_v26, %v633_v16  ;;  %v635_v20 = vpop.f32.mrb[9].mxu0 }
 0x12f   : > { %1629 = vst [vmem:[%s1982_s9 + $0x48] sm:$0xff] %v1589_v15   ;;  %v1019_v19 = vadd.f32 %v1957_v26, %v713_v17  ;;  %v715_v21 = vpop.f32.mrb[9].mxu1  ;;  %v988_v22 = vadd.f32 %v1959_v27, %v635_v20  ;;  %v637_v24 = vpop.f32.mrb[10].mxu0 }
 0x130   : > { %v1020_v23 = vadd.f32 %v1959_v27, %v715_v21  ;;  %v717_v25 = vpop.f32.mrb[10].mxu1  ;;  %v989_v28 = vadd.f32 %v1957_v26, %v637_v24  ;;  %v639_v30 = vpop.f32.mrb[11].mxu0  ;;  %v1051_v36 = vmax.f32 %v987_v18, 0.0 }
 0x131   : > { %v1021_v29 = vadd.f32 %v1957_v26, %v717_v25  ;;  %v719_v31 = vpop.f32.mrb[11].mxu1  ;;  %v1052_v32 = vmax.f32 %v988_v22, 0.0  ;;  %v990_v34 = vadd.f32 %v1959_v27, %v639_v30  ;;  %v1083_v37 = vmax.f32 %v1019_v19, 0.0 }
 0x132   : > { %v1084_v33 = vmax.f32 %v1020_v23, 0.0  ;;  %v1022_v35 = vadd.f32 %v1959_v27, %v719_v31  ;;  %v1053_v38 = vmax.f32 %v989_v28, 0.0 }
 0x133   : > { %v1085_v39 = vmax.f32 %v1021_v29, 0.0  ;;  %1271 = vst [vmem:[%s1969_s6 + $0x20] sm:$0xff] %v1052_v32  ;;  %v1054_v40 = vmax.f32 %v990_v34, 0.0 }
 0x134   : > { %1287 = vst [vmem:[%s1969_s6 + $0xa0] sm:$0xff] %v1084_v33  ;;  %v1086_v41 = vmax.f32 %v1022_v35, 0.0  ;;  %v1554_v42 = vpack.c.bf16 %v1053_v38, %v1051_v36 }
 0x135   : > { %v1594_v43 = vpack.c.bf16 %v1085_v39, %v1083_v37  ;;  %1272 = vst [vmem:[%s1969_s6 + $0x28] sm:$0xff] %v1054_v40  ;;  %v643_v44 = vpop.f32.mrb[12].mxu0 }
 0x136   : > { %1288 = vst [vmem:[%s1969_s6 + $0xa8] sm:$0xff] %v1086_v41  ;;  %v723_v45 = vpop.f32.mrb[12].mxu1  ;;  %1622 = vst [vmem:[%s1982_s9 + $0x10] sm:$0xff] %v1554_v42   ;;  %v991_v46 = vadd.f32 %v1957_v26, %v643_v44  ;;  %v645_v48 = vpop.f32.mrb[13].mxu0 }
 0x137   : > { %1630 = vst [vmem:[%s1982_s9 + $0x50] sm:$0xff] %v1594_v43   ;;  %v1023_v47 = vadd.f32 %v1957_v26, %v723_v45  ;;  %v725_v49 = vpop.f32.mrb[13].mxu1  ;;  %v992_v50 = vadd.f32 %v1959_v27, %v645_v48  ;;  %v647_v52 = vpop.f32.mrb[14].mxu0 }
 0x138   : > { %v1024_v51 = vadd.f32 %v1959_v27, %v725_v49  ;;  %v727_v53 = vpop.f32.mrb[14].mxu1  ;;  %v993_v54 = vadd.f32 %v1957_v26, %v647_v52  ;;  %v649_v56 = vpop.f32.mrb[15].mxu0  ;;  %v1055_v62 = vmax.f32 %v991_v46, 0.0 }
 0x139   : > { %v1025_v55 = vadd.f32 %v1957_v26, %v727_v53  ;;  %v729_v57 = vpop.f32.mrb[15].mxu1  ;;  %v1056_v58 = vmax.f32 %v992_v50, 0.0  ;;  %v994_v60 = vadd.f32 %v1959_v27, %v649_v56  ;;  %v1087_v63 = vmax.f32 %v1023_v47, 0.0 }
 0x13a   : > { %v1088_v59 = vmax.f32 %v1024_v51, 0.0  ;;  %v1026_v61 = vadd.f32 %v1959_v27, %v729_v57  ;;  %v1057_v0 = vmax.f32 %v993_v54, 0.0 }
 0x13b   : > { %v1089_v1 = vmax.f32 %v1025_v55, 0.0  ;;  %1273 = vst [vmem:[%s1969_s6 + $0x30] sm:$0xff] %v1056_v58  ;;  %v1058_v2 = vmax.f32 %v994_v60, 0.0 }
 0x13c   : > { %1289 = vst [vmem:[%s1969_s6 + $0xb0] sm:$0xff] %v1088_v59  ;;  %v1090_v3 = vmax.f32 %v1026_v61, 0.0  ;;  %v1559_v4 = vpack.c.bf16 %v1057_v0, %v1055_v62 }
 0x13d   : > { %v1599_v5 = vpack.c.bf16 %v1089_v1, %v1087_v63  ;;  %1274 = vst [vmem:[%s1969_s6 + $0x38] sm:$0xff] %v1058_v2  ;;  %v653_v6 = vpop.f32.mrb[16].mxu0 }
 0x13e   : > { %1290 = vst [vmem:[%s1969_s6 + $0xb8] sm:$0xff] %v1090_v3  ;;  %v733_v7 = vpop.f32.mrb[16].mxu1  ;;  %1623 = vst [vmem:[%s1982_s9 + $0x18] sm:$0xff] %v1559_v4   ;;  %v995_v8 = vadd.f32 %v1957_v26, %v653_v6  ;;  %v655_v10 = vpop.f32.mrb[17].mxu0 }
 0x13f   : > { %1631 = vst [vmem:[%s1982_s9 + $0x58] sm:$0xff] %v1599_v5   ;;  %v1027_v9 = vadd.f32 %v1957_v26, %v733_v7  ;;  %v735_v11 = vpop.f32.mrb[17].mxu1  ;;  %v996_v12 = vadd.f32 %v1959_v27, %v655_v10  ;;  %v657_v14 = vpop.f32.mrb[18].mxu0 }
 0x140   : > { %v1028_v13 = vadd.f32 %v1959_v27, %v735_v11  ;;  %v737_v15 = vpop.f32.mrb[18].mxu1  ;;  %v997_v16 = vadd.f32 %v1957_v26, %v657_v14  ;;  %v659_v18 = vpop.f32.mrb[19].mxu0  ;;  %v1059_v24 = vmax.f32 %v995_v8, 0.0 }
 0x141   : > { %v1029_v17 = vadd.f32 %v1957_v26, %v737_v15  ;;  %v739_v19 = vpop.f32.mrb[19].mxu1  ;;  %v1060_v20 = vmax.f32 %v996_v12, 0.0  ;;  %v998_v22 = vadd.f32 %v1959_v27, %v659_v18  ;;  %v1091_v25 = vmax.f32 %v1027_v9, 0.0 }
 0x142   : > { %v1092_v21 = vmax.f32 %v1028_v13, 0.0  ;;  %v1030_v23 = vadd.f32 %v1959_v27, %v739_v19  ;;  %v1061_v28 = vmax.f32 %v997_v16, 0.0 }
 0x143   : > { %v1093_v29 = vmax.f32 %v1029_v17, 0.0  ;;  %1275 = vst [vmem:[%s1969_s6 + $0x40] sm:$0xff] %v1060_v20  ;;  %v1062_v30 = vmax.f32 %v998_v22, 0.0 }
 0x144   : > { %1291 = vst [vmem:[%s1969_s6 + $0xc0] sm:$0xff] %v1092_v21  ;;  %v1094_v31 = vmax.f32 %v1030_v23, 0.0  ;;  %v1564_v32 = vpack.c.bf16 %v1061_v28, %v1059_v24 }
 0x145   : > { %v1604_v33 = vpack.c.bf16 %v1093_v29, %v1091_v25  ;;  %1276 = vst [vmem:[%s1969_s6 + $0x48] sm:$0xff] %v1062_v30  ;;  %v663_v34 = vpop.f32.mrb[20].mxu0 }
 0x146   : > { %1292 = vst [vmem:[%s1969_s6 + $0xc8] sm:$0xff] %v1094_v31  ;;  %v743_v35 = vpop.f32.mrb[20].mxu1  ;;  %1624 = vst [vmem:[%s1982_s9 + $0x20] sm:$0xff] %v1564_v32   ;;  %v999_v36 = vadd.f32 %v1957_v26, %v663_v34  ;;  %v665_v38 = vpop.f32.mrb[21].mxu0 }
 0x147   : > { %1632 = vst [vmem:[%s1982_s9 + $0x60] sm:$0xff] %v1604_v33   ;;  %v1031_v37 = vadd.f32 %v1957_v26, %v743_v35  ;;  %v745_v39 = vpop.f32.mrb[21].mxu1  ;;  %v1000_v40 = vadd.f32 %v1959_v27, %v665_v38  ;;  %v667_v42 = vpop.f32.mrb[22].mxu0 }
 0x148   : > { %v1032_v41 = vadd.f32 %v1959_v27, %v745_v39  ;;  %v747_v43 = vpop.f32.mrb[22].mxu1  ;;  %v1001_v44 = vadd.f32 %v1957_v26, %v667_v42  ;;  %v669_v46 = vpop.f32.mrb[23].mxu0  ;;  %v1063_v52 = vmax.f32 %v999_v36, 0.0 }
 0x149   : > { %v1033_v45 = vadd.f32 %v1957_v26, %v747_v43  ;;  %v749_v47 = vpop.f32.mrb[23].mxu1  ;;  %v1064_v48 = vmax.f32 %v1000_v40, 0.0  ;;  %v1002_v50 = vadd.f32 %v1959_v27, %v669_v46  ;;  %v1095_v53 = vmax.f32 %v1031_v37, 0.0 }
 0x14a   : > { %v1096_v49 = vmax.f32 %v1032_v41, 0.0  ;;  %v1034_v51 = vadd.f32 %v1959_v27, %v749_v47  ;;  %v1065_v54 = vmax.f32 %v1001_v44, 0.0 }
 0x14b   : > { %v1097_v55 = vmax.f32 %v1033_v45, 0.0  ;;  %1277 = vst [vmem:[%s1969_s6 + $0x50] sm:$0xff] %v1064_v48  ;;  %v1066_v56 = vmax.f32 %v1002_v50, 0.0 }
 0x14c   : > { %1293 = vst [vmem:[%s1969_s6 + $0xd0] sm:$0xff] %v1096_v49  ;;  %v1098_v57 = vmax.f32 %v1034_v51, 0.0  ;;  %v1569_v58 = vpack.c.bf16 %v1065_v54, %v1063_v52 }
 0x14d   : > { %v1609_v59 = vpack.c.bf16 %v1097_v55, %v1095_v53  ;;  %1278 = vst [vmem:[%s1969_s6 + $0x58] sm:$0xff] %v1066_v56  ;;  %v673_v60 = vpop.f32.mrb[24].mxu0 }
 0x14e   : > { %1294 = vst [vmem:[%s1969_s6 + $0xd8] sm:$0xff] %v1098_v57  ;;  %v753_v61 = vpop.f32.mrb[24].mxu1  ;;  %1625 = vst [vmem:[%s1982_s9 + $0x28] sm:$0xff] %v1569_v58   ;;  %v1003_v62 = vadd.f32 %v1957_v26, %v673_v60  ;;  %v675_v0 = vpop.f32.mrb[25].mxu0 }
 0x14f   : > { %1633 = vst [vmem:[%s1982_s9 + $0x68] sm:$0xff] %v1609_v59   ;;  %v1035_v63 = vadd.f32 %v1957_v26, %v753_v61  ;;  %v755_v1 = vpop.f32.mrb[25].mxu1  ;;  %v1004_v2 = vadd.f32 %v1959_v27, %v675_v0  ;;  %v677_v4 = vpop.f32.mrb[26].mxu0 }
 0x150   : > { %v1036_v3 = vadd.f32 %v1959_v27, %v755_v1  ;;  %v757_v5 = vpop.f32.mrb[26].mxu1  ;;  %v1005_v6 = vadd.f32 %v1957_v26, %v677_v4  ;;  %v679_v8 = vpop.f32.mrb[27].mxu0  ;;  %v1067_v14 = vmax.f32 %v1003_v62, 0.0 }
 0x151   : > { %v1037_v7 = vadd.f32 %v1957_v26, %v757_v5  ;;  %v759_v9 = vpop.f32.mrb[27].mxu1  ;;  %v1068_v10 = vmax.f32 %v1004_v2, 0.0  ;;  %v1006_v12 = vadd.f32 %v1959_v27, %v679_v8  ;;  %v1099_v15 = vmax.f32 %v1035_v63, 0.0 }
 0x152   : > { %v1100_v11 = vmax.f32 %v1036_v3, 0.0  ;;  %v1038_v13 = vadd.f32 %v1959_v27, %v759_v9  ;;  %v1069_v16 = vmax.f32 %v1005_v6, 0.0 }
 0x153   : > { %v1101_v17 = vmax.f32 %v1037_v7, 0.0  ;;  %1279 = vst [vmem:[%s1969_s6 + $0x60] sm:$0xff] %v1068_v10  ;;  %v1070_v18 = vmax.f32 %v1006_v12, 0.0 }
 0x154   : > { %1295 = vst [vmem:[%s1969_s6 + $0xe0] sm:$0xff] %v1100_v11  ;;  %v1102_v19 = vmax.f32 %v1038_v13, 0.0  ;;  %v1574_v20 = vpack.c.bf16 %v1069_v16, %v1067_v14 }
 0x155   : > { %v1614_v21 = vpack.c.bf16 %v1101_v17, %v1099_v15  ;;  %1280 = vst [vmem:[%s1969_s6 + $0x68] sm:$0xff] %v1070_v18  ;;  %v683_v22 = vpop.f32.mrb[28].mxu0 }
 0x156   : > { %1296 = vst [vmem:[%s1969_s6 + $0xe8] sm:$0xff] %v1102_v19  ;;  %v763_v23 = vpop.f32.mrb[28].mxu1  ;;  %1626 = vst [vmem:[%s1982_s9 + $0x30] sm:$0xff] %v1574_v20   ;;  %v1007_v24 = vadd.f32 %v1957_v26, %v683_v22  ;;  %v685_v28 = vpop.f32.mrb[29].mxu0 }
 0x157   : > { %1634 = vst [vmem:[%s1982_s9 + $0x70] sm:$0xff] %v1614_v21   ;;  %v1039_v25 = vadd.f32 %v1957_v26, %v763_v23  ;;  %v765_v29 = vpop.f32.mrb[29].mxu1  ;;  %v1008_v30 = vadd.f32 %v1959_v27, %v685_v28  ;;  %v687_v32 = vpop.f32.mrb[30].mxu0 }
 0x158   : > { %v1040_v31 = vadd.f32 %v1959_v27, %v765_v29  ;;  %v767_v33 = vpop.f32.mrb[30].mxu1  ;;  %v1009_v34 = vadd.f32 %v1957_v26, %v687_v32  ;;  %v689_v36 = vpop.f32.mrb[31].mxu0  ;;  %v1071_v42 = vmax.f32 %v1007_v24, 0.0 }
 0x159   : > { %v1041_v35 = vadd.f32 %v1957_v26, %v767_v33  ;;  %v769_v37 = vpop.f32.mrb[31].mxu1  ;;  %v1072_v38 = vmax.f32 %v1008_v30, 0.0  ;;  %v1010_v40 = vadd.f32 %v1959_v27, %v689_v36  ;;  %v1103_v43 = vmax.f32 %v1039_v25, 0.0 }
 0x15a   : > { %v1104_v39 = vmax.f32 %v1040_v31, 0.0  ;;  %v1042_v41 = vadd.f32 %v1959_v27, %v769_v37  ;;  %v1073_v44 = vmax.f32 %v1009_v34, 0.0 }
 0x15b   : > { %v1105_v45 = vmax.f32 %v1041_v35, 0.0  ;;  %1281 = vst [vmem:[%s1969_s6 + $0x70] sm:$0xff] %v1072_v38  ;;  %v1074_v46 = vmax.f32 %v1010_v40, 0.0 }
 0x15c   : > { %1297 = vst [vmem:[%s1969_s6 + $0xf0] sm:$0xff] %v1104_v39  ;;  %v1106_v26 = vmax.f32 %v1042_v41, 0.0  ;;  %v1579_v47 = vpack.c.bf16 %v1073_v44, %v1071_v42 }
 0x15d   : > { %v1619_v48 = vpack.c.bf16 %v1105_v45, %v1103_v43  ;;  %1282 = vst [vmem:[%s1969_s6 + $0x78] sm:$0xff] %v1074_v46 }
 0x15e   : > { %1298 = vst [vmem:[%s1969_s6 + $0xf8] sm:$0xff] %v1106_v26  ;;  %1627 = vst [vmem:[%s1982_s9 + $0x38] sm:$0xff] %v1579_v47  }
 0x15f   : > { %1635 = vst [vmem:[%s1982_s9 + $0x78] sm:$0xff] %v1619_v48  }
 0x160 PF: > { %s17_s17 = sadd.s32 1, %s1788_s17   ;;  %s2108_s15 = smov %s1784_s16 }
 0x161   : > { %p14_p8 = scmp.ge.s32.totalorder %s17_s17, 4   ;;  %s2109_s16 = smov %s2111_s19 }
 0x163   :  { %16 = sbr.rel (!%p14_p8) target bundleno = 3 (0x3), region = 92 }
 0x16a   :  { %1338 = vsyncpa [#allocation4], 1 }
 0x16b   :  { %1340 = vsyncpa [#allocation4 + $0x1], 1 }
 0x16c   :  { %1341 = vsyncpa [#allocation6], 1 }

// kernel: _lambda_.5
= control target key start
LH: loop header
LB: loop body
LE: loop exit
PB: predicated region body
PF: predicated region fallthrough
CT: control target
= control target key end

     0   :  { %8 = vsyncpa [#allocation4], 0  ;;  %s4210_s0 = inlined_call_operand.vmem [shape: bf16[2,4,8,8,8], index: 0, kind: input, shape index: {}]   ;;  %s4211_s1 = inlined_call_operand.hbm [shape: bf16[8,128], index: 1, kind: input, shape index: {}]   ;;  %s4212_s2 = inlined_call_operand.hbm [shape: f32[1,128], index: 2, kind: input, shape index: {}]   ;;  %s4213_s3 = inlined_call_operand.vmem [shape: f32[2,256,128], index: 3, kind: output, shape index: {}]  }
   0x1   :  { %9 = vsyncpa [#allocation6], 0  ;;  %s2780_s12 = smov 0  }
   0x2 LB: > { %s2786_s13 = sadd.s32 4294967295, %s2755_s12   ;;  %p2498_p0 = scmp.ge.s32.totalorder %s2755_s12, 1  ;;  %s2755_s12 = sphi %s2780_s12, %s15_s12  }
   0x3   : > { %p114_p1 = scmp.lt.s32.totalorder %s2755_s12, 3  ;;  %p4214_p2 = scmp.eq.s32.totalorder %s2786_s13, 0 }
   0x4   : > { %s2757_s15 = smov [#allocation3]   ;;  %s2758_s17 = smov [#allocation5]  }
   0x5   : > { %p2791_p3 = pnand %p2498_p0, %p114_p1  ;;  %s127_s16 = sshll.u32 %s2757_s15, 4  ;;  %s128_s16 = int_to_ptr.vmem [resolvable:$true] %s127_s16 }
   0x6   : > { %s138_s18 = sshll.u32 %s2758_s17, 4  ;;  %s2685_s22 = scalar_lea.hbm %s4211_s1, 64  ;;  %s2803_s18 = int_to_ptr.vmem [resolvable:$true] %s138_s18 }
   0x7   : > { %s4252_s14 = scalar_select %p2791_p3, 1, 0 }
   0x8   : > { %p2641_p4 = pneg %p2791_p3  ;;  %p2686_p6 = scmp.ne.s32.totalorder %s4211_s1, %s2685_s22 }
   0x9   : > { %p2692_p10 = scmp.lt.u32.totalorder %s2685_s22, %s4211_s1 }
   0xa   : > { %p2799_p5 = pnand %p4214_p2, %p2641_p4 }
   0xc   : > { %p2687_p7 = pneg %p2799_p5 }
   0xe   : > { %p2688_p8 = pnand %p2687_p7, %p2686_p6 }
  0x10   : > { %p2689_p9 = pneg %p2688_p8 }
  0x12   : > { %p2694_p11 = pnand %p2692_p10, %p2689_p9 }
  0x14   : > { %2697 = shalt.err (!%p2694_p11)
}
  0x15   : > { %s2698_s27 = scalar_lea.vmem %s128_s16, 64  ;;  %p2706_p1 = scmp.lt.s32.totalorder %s128_s16, %s128_s16 }
  0x16   : > { %p2699_p12 = scmp.ne.s32.totalorder %s128_s16, %s2698_s27  ;;  %p2707_p4 = scmp.lt.s32.totalorder %s2698_s27, %s2698_s27 }
  0x18   : > { %p2701_p13 = pnand %p2699_p12, %p2687_p7  ;;  %p2708_p2 = por %p2707_p4, %p2706_p1 }
  0x1a   : > { %p2702_p0 = pneg %p2701_p13 }
  0x1c   : > { %p2709_p3 = pnand %p2708_p2, %p2702_p0 }
  0x1e   : > { %2712 = shalt.err (!%p2709_p3)
}
  0x1f   : > { %2644 = dma.hbm_to_vmem [thread:$0]  (!%p2799_p5), %s4211_s1, 64, %s128_s16, [#allocation4]  }
  0x20   : > { %s2713_s5 = scalar_lea.hbm %s4212_s2, 16 }
  0x21   : > { %p2714_p6 = scmp.ne.s32.totalorder %s4212_s2, %s2713_s5  ;;  %p2720_p3 = scmp.lt.u32.totalorder %s2713_s5, %s4212_s2 }
  0x23   : > { %p2716_p8 = pnand %p2714_p6, %p2687_p7 }
  0x25   : > { %p2717_p2 = pneg %p2716_p8 }
  0x27   : > { %p2722_p9 = pnand %p2720_p3, %p2717_p2 }
  0x29   : > { %2725 = shalt.err (!%p2722_p9)
}
  0x2a   : > { %s2726_s10 = scalar_lea.vmem %s2803_s18, 16  ;;  %s2733_s11 = scalar_lea.vmem %s2803_s18, 32 }
  0x2b   : > { %p2727_p10 = scmp.ne.s32.totalorder %s2803_s18, %s2726_s10  ;;  %p2734_p13 = scmp.lt.s32.totalorder %s2803_s18, %s2803_s18 }
  0x2c   : > { %p2735_p0 = scmp.lt.s32.totalorder %s2733_s11, %s2726_s10 }
  0x2d   : > { %p2729_p11 = pnand %p2727_p10, %p2687_p7 }
  0x2e   : > { %p2736_p1 = por %p2735_p0, %p2734_p13 }
  0x2f   : > { %p2730_p12 = pneg %p2729_p11 }
  0x31   : > { %p2737_p4 = pnand %p2736_p1, %p2730_p12 }
  0x33   : > { %2740 = shalt.err (!%p2737_p4)
}
  0x34   : > { %2647 = dma.hbm_to_vmem [thread:$0]  (!%p2799_p5), %s4212_s2, 16, %s2803_s18, [#allocation6]  }
  0x35   : > { %p4254_p6 = scmp.ne.s32.totalorder %s4252_s14, 0 }
  0x37   : > { %159 = sbr.rel (%p4254_p6) target bundleno = 610 (0x262), region = 32 }
  0x3e   : > { %p4255_p7 = scmp.eq.s32.totalorder %s2786_s13, 0 }
  0x40   : > { %2746 = dma.done.wait (%p4255_p7), [#allocation4], 64   ;;  %p4256_p8 = pmov %p4255_p7 }
  0x41   : > { %p4257_p2 = pmov %p4255_p7 }
  0x42   : > { %2748 = vsyncadd (%p4256_p8), [#allocation4], 4294967232 }
  0x43   : > { %2750 = dma.done.wait (%p4257_p2), [#allocation6], 16   ;;  %p4258_p3 = pmov %p4257_p2 }
  0x44   : > { %p187_p9 = scmp.lt.s32.totalorder %s2786_s13, 1  ;;  %vm198_vm0 = vcmask 60416   ;;  %v2759_v0 = vmov 0   ;;  %vm200_vm1 = vcmask 57344   ;;  %vm2190_vm2 = vcmask 1043456  }
  0x45   : > { %2752 = vsyncadd (%p4258_p3), [#allocation6], 4294967280  ;;  %199 = vst.msk [vmem:[#allocation2] sm:$0xf] %vm198_vm0, %v2759_v0  ;;  %vm674_vm3 = vsmask.f32 7938 }
  0x46   : > { %202 = vst.msk [vmem:[#allocation2 + $0x8] sm:$0xf] %vm198_vm0, %v2759_v0  ;;  %204 = vst.msk [vmem:[#allocation2 + $0x10] sm:$0xf] %vm198_vm0, %v2759_v0  ;;  %s4356_s13 = smov (!%p187_p9, %s2786_s13), 1  ;;  %vm1858_vm7 = vcmask 1042432  }
  0x47   : > { %206 = vst.msk [vmem:[#allocation2 + $0x18] sm:$0xf] %vm198_vm0, %v2759_v0  ;;  %220 = vst.msk [vmem:[#allocation2 + $0x50] sm:$0xf] %vm198_vm0, %v2759_v0  ;;  %s2576_s14 = sshll.u32 %s4356_s13, 7  ;;  %vm1859_vm8 = vcmask 1046532  }
  0x48   : > { %222 = vst.msk [vmem:[#allocation2 + $0x58] sm:$0xf] %vm198_vm0, %v2759_v0  ;;  %224 = vst.msk [vmem:[#allocation2 + $0x60] sm:$0xf] %vm198_vm0, %v2759_v0  ;;  %s3113_s19 = scalar_lea.vmem %s4210_s0, %s2576_s14  ;;  %v2053_v1 = vld [vmem:[#allocation3] sm:$0xf] }
  0x49   : > { %226 = vst.msk [vmem:[#allocation2 + $0x68] sm:$0xf] %vm198_vm0, %v2759_v0  ;;  %240 = vst.msk [vmem:[#allocation2 + $0xa0] sm:$0xf] %vm198_vm0, %v2759_v0  ;;  %v320_v2 = vld [vmem:[%s3113_s19] sm:$0xf]  ;;  %2631 = vmatprep.subr.msk.bf16.mxu0 %vm2190_vm2, %v2053_v1  ;;  %2632 = vmatprep.subr.msk.bf16.mxu1 %vm2190_vm2, %v2053_v1 }
  0x4a   : > { %242 = vst.msk [vmem:[#allocation2 + $0xa8] sm:$0xf] %vm198_vm0, %v2759_v0  ;;  %244 = vst.msk [vmem:[#allocation2 + $0xb0] sm:$0xf] %vm198_vm0, %v2759_v0  ;;  %v321_v3 = vld [vmem:[%s3113_s19 + $0x4] sm:$0xf] }
  0x4b   : > { %246 = vst.msk [vmem:[#allocation2 + $0xb8] sm:$0xf] %vm198_vm0, %v2759_v0  ;;  %208 = vst.msk [vmem:[#allocation2 + $0x20] sm:$0xf] %vm198_vm0, %v2759_v0  ;;  %v2192_v4 = vsel %vm2190_vm2, %v2053_v1, 0  ;;  %v353_v7 = vshrl.u32 %v320_v2, 16 }
  0x4c   : > { %210 = vst.msk [vmem:[#allocation2 + $0x28] sm:$0xf] %vm198_vm0, %v2759_v0  ;;  %212 = vst.msk [vmem:[#allocation2 + $0x30] sm:$0xf] %vm198_vm0, %v2759_v0  ;;  %v322_v5 = vld [vmem:[%s3113_s19 + $0x8] sm:$0xf]  ;;  %2596 = vmatpush3.bf16.msra.mxu0 %v2192_v4  ;;  %2630 = vmatpush3.bf16.msra.mxu1 %v2192_v4 }
  0x4d   : > { %214 = vst.msk [vmem:[#allocation2 + $0x38] sm:$0xf] %vm198_vm0, %v2759_v0  ;;  %216 = vst.msk [vmem:[#allocation2 + $0x40] sm:$0xf] %vm198_vm0, %v2759_v0  ;;  %v328_v6 = vld [vmem:[%s3113_s19 + $0x20] sm:$0xf] }
  0x4e   : > { %218 = vst.msk [vmem:[#allocation2 + $0x48] sm:$0xf] %vm198_vm0, %v2759_v0  ;;  %228 = vst.msk [vmem:[#allocation2 + $0x70] sm:$0xf] %vm198_vm0, %v2759_v0  ;;  %v329_v8 = vld [vmem:[%s3113_s19 + $0x24] sm:$0xf] }
  0x4f   : > { %230 = vst.msk [vmem:[#allocation2 + $0x78] sm:$0xf] %vm198_vm0, %v2759_v0  ;;  %232 = vst.msk [vmem:[#allocation2 + $0x80] sm:$0xf] %vm198_vm0, %v2759_v0  ;;  %v356_v9 = vshll.u32 %v320_v2, 16  ;;  %v361_v10 = vshrl.u32 %v321_v3, 16 }
  0x50   : > { %234 = vst.msk [vmem:[#allocation2 + $0x88] sm:$0xf] %vm198_vm0, %v2759_v0  ;;  %236 = vst.msk [vmem:[#allocation2 + $0x90] sm:$0xf] %vm198_vm0, %v2759_v0  ;;  %vm680_vm4 = vsmask.f32 256 }
  0x51   : > { %238 = vst.msk [vmem:[#allocation2 + $0x98] sm:$0xf] %vm198_vm0, %v2759_v0  ;;  %248 = vst.msk [vmem:[#allocation2 + $0xc0] sm:$0xf] %vm198_vm0, %v2759_v0  ;;  %v330_v11 = vld [vmem:[%s3113_s19 + $0x28] sm:$0xf] }
  0x52   : > { %250 = vst.msk [vmem:[#allocation2 + $0xc8] sm:$0xf] %vm198_vm0, %v2759_v0  ;;  %252 = vst.msk [vmem:[#allocation2 + $0xd0] sm:$0xf] %vm198_vm0, %v2759_v0  ;;  %v355_v12 = vrot.slane %v353_v7, 7  ;;  %v364_v13 = vshll.u32 %v321_v3, 16 }
  0x53   : > { %254 = vst.msk [vmem:[#allocation2 + $0xd8] sm:$0xf] %vm198_vm0, %v2759_v0  ;;  %256 = vst.msk [vmem:[#allocation2 + $0xe0] sm:$0xf] %vm198_vm0, %v2759_v0  ;;  %v369_v14 = vshrl.u32 %v322_v5, 16  ;;  %v372_v15 = vshll.u32 %v322_v5, 16 }
  0x54   : > { %258 = vst.msk [vmem:[#allocation2 + $0xe8] sm:$0xf] %vm198_vm0, %v2759_v0  ;;  %260 = vst.msk [vmem:[#allocation2 + $0xf0] sm:$0xf] %vm198_vm0, %v2759_v0  ;;  %v363_v16 = vrot.slane %v361_v10, 7  ;;  %v417_v17 = vshrl.u32 %v328_v6, 16  ;;  %v358_v22 = vor.u32 %v356_v9, %v355_v12 }
  0x55   : > { %262 = vst.msk [vmem:[#allocation2 + $0xf8] sm:$0xf] %vm198_vm0, %v2759_v0  ;;  %264 = vst.msk [vmem:[#allocation2 + $0x100] sm:$0xf] %vm198_vm0, %v2759_v0  ;;  %v420_v18 = vshll.u32 %v328_v6, 16  ;;  %v425_v19 = vshrl.u32 %v329_v8, 16 }
  0x56   : > { %266 = vst.msk [vmem:[#allocation2 + $0x108] sm:$0xf] %vm198_vm0, %v2759_v0  ;;  %268 = vst.msk [vmem:[#allocation2 + $0x110] sm:$0xf] %vm198_vm0, %v2759_v0  ;;  %v676_v20 = vld [vmem:[#allocation2 + $0x58] sm:$0xf]  ;;  %v366_v28 = vor.u32 %v364_v13, %v363_v16 }
  0x57   : > { %270 = vst.msk [vmem:[#allocation2 + $0x118] sm:$0xf] %vm198_vm0, %v2759_v0  ;;  %272 = vst.msk [vmem:[#allocation2 + $0x120] sm:$0xf] %vm198_vm0, %v2759_v0  ;;  %v359_v23 = vrot.slane %v355_v12, 4  ;;  %v371_v24 = vrot.slane %v369_v14, 7 }
  0x58   : > { %274 = vst.msk [vmem:[#allocation2 + $0x128] sm:$0xf] %vm198_vm0, %v2759_v0  ;;  %276 = vst.msk [vmem:[#allocation2 + $0x130] sm:$0xf] %vm198_vm0, %v2759_v0  ;;  %v428_v25 = vshll.u32 %v329_v8, 16  ;;  %v367_v29 = vrot.slane %v363_v16, 4 }
  0x59   : > { %278 = vst.msk [vmem:[#allocation2 + $0x138] sm:$0xf] %vm198_vm0, %v2759_v0  ;;  %280 = vst.msk [vmem:[#allocation2 + $0x140] sm:$0xf] %vm198_vm0, %v2759_v0  ;;  %v685_v27 = vld [vmem:[#allocation2 + $0x60] sm:$0xf]  ;;  %v374_v34 = vor.u32 %v372_v15, %v371_v24 }
  0x5a   : > { %282 = vst.msk [vmem:[#allocation2 + $0x148] sm:$0xf] %vm198_vm0, %v2759_v0  ;;  %284 = vst.msk [vmem:[#allocation2 + $0x150] sm:$0xf] %vm198_vm0, %v2759_v0  ;;  %v419_v30 = vrot.slane %v417_v17, 7  ;;  %v427_v31 = vrot.slane %v425_v19, 7 }
  0x5b   : > { %286 = vst.msk [vmem:[#allocation2 + $0x158] sm:$0xf] %vm198_vm0, %v2759_v0  ;;  %288 = vst.msk [vmem:[#allocation2 + $0x160] sm:$0xf] %vm198_vm0, %v2759_v0  ;;  %v375_v35 = vrot.slane %v371_v24, 4  ;;  %v433_v36 = vshrl.u32 %v330_v11, 16 }
  0x5c   : > { %290 = vst.msk [vmem:[#allocation2 + $0x168] sm:$0xf] %vm198_vm0, %v2759_v0  ;;  %292 = vst.msk [vmem:[#allocation2 + $0x170] sm:$0xf] %vm198_vm0, %v2759_v0  ;;  %v436_v37 = vshll.u32 %v330_v11, 16  ;;  %v422_v39 = vor.u32 %v420_v18, %v419_v30  ;;  %v423_v40 = vrot.slane %v419_v30, 4  ;;  %v430_v41 = vor.u32 %v428_v25, %v427_v31 }
  0x5d   : > { %294 = vst.msk [vmem:[#allocation2 + $0x178] sm:$0xf] %vm198_vm0, %v2759_v0  ;;  %296 = vst.msk [vmem:[#allocation2 + $0x180] sm:$0xf] %vm198_vm0, %v2759_v0  ;;  %v691_v38 = vld [vmem:[#allocation2 + $0x68] sm:$0xf] }
  0x5e   : > { %298 = vst.msk [vmem:[#allocation2 + $0x188] sm:$0xf] %vm198_vm0, %v2759_v0  ;;  %300 = vst.msk [vmem:[#allocation2 + $0x190] sm:$0xf] %vm198_vm0, %v2759_v0  ;;  %v431_v42 = vrot.slane %v427_v31, 4  ;;  %v435_v45 = vrot.slane %v433_v36, 7 }
  0x5f   : > { %302 = vst.msk [vmem:[#allocation2 + $0x198] sm:$0xf] %vm198_vm0, %v2759_v0  ;;  %304 = vst.msk [vmem:[#allocation2 + $0x1a0] sm:$0xf] %vm198_vm0, %v2759_v0  ;;  %v727_v44 = vld [vmem:[#allocation2 + $0xa8] sm:$0xf] }
  0x60   : > { %306 = vst.msk [vmem:[#allocation2 + $0x1a8] sm:$0xf] %vm198_vm0, %v2759_v0  ;;  %308 = vst.msk [vmem:[#allocation2 + $0x1b0] sm:$0xf] %vm198_vm0, %v2759_v0  ;;  %v733_v50 = vld [vmem:[#allocation2 + $0xb0] sm:$0xf]  ;;  %v438_v58 = vor.u32 %v436_v37, %v435_v45 }
  0x61   : > { %310 = vst.msk [vmem:[#allocation2 + $0x1b8] sm:$0xf] %vm198_vm0, %v2759_v0  ;;  %312 = vst.msk [vmem:[#allocation2 + $0x1c0] sm:$0xf] %vm198_vm0, %v2759_v0  ;;  %v739_v56 = vld [vmem:[#allocation2 + $0xb8] sm:$0xf] }
  0x62   : > { %314 = vst.msk [vmem:[#allocation2 + $0x1c8] sm:$0xf] %vm198_vm0, %v2759_v0  ;;  %316 = vst.msk [vmem:[#allocation2 + $0x1d0] sm:$0xf] %vm198_vm0, %v2759_v0  ;;  %v439_v59 = vrot.slane %v435_v45, 4  ;;  %vm2141_vm13 = vcmask 64512  }
  0x63   : > { %318 = vst.msk [vmem:[#allocation2 + $0x1d8] sm:$0xf] %vm198_vm0, %v2759_v0  ;;  %vm3123_vm5 = vmand %vm198_vm0, %vm674_vm3  ;;  %v871_v63 = vld [vmem:[#allocation2] sm:$0xf]  ;;  %v873_v3 = vld [vmem:[#allocation2 + $0x8] sm:$0xf] }
  0x64   : > { %201 = vst.msk [vmem:[#allocation2 + $0x4] sm:$0x1] %vm200_vm1, %v2759_v0  ;;  %203 = vst.msk [vmem:[#allocation2 + $0xc] sm:$0x1] %vm200_vm1, %v2759_v0  ;;  %v677_v46 = vsel %vm3123_vm5, %v358_v22, %v676_v20  ;;  %v686_v48 = vsel %vm3123_vm5, %v366_v28, %v685_v27  ;;  %v692_v52 = vsel %vm3123_vm5, %v374_v34, %v691_v38  ;;  %v3157_v4 = vld [vmem:[#allocation2 + $0x50] sm:$0xf] }
  0x65   : > { %205 = vst.msk [vmem:[#allocation2 + $0x14] sm:$0x1] %vm200_vm1, %v2759_v0  ;;  %207 = vst.msk [vmem:[#allocation2 + $0x1c] sm:$0x1] %vm200_vm1, %v2759_v0  ;;  %v728_v54 = vsel %vm3123_vm5, %v422_v39, %v727_v44  ;;  %v734_v61 = vsel %vm3123_vm5, %v430_v41, %v733_v50  ;;  %v740_v1 = vsel %vm3123_vm5, %v438_v58, %v739_v56  ;;  %v3161_v6 = vld [vmem:[#allocation2 + $0xa0] sm:$0xf] }
  0x66   : > { %221 = vst.msk [vmem:[#allocation2 + $0x54] sm:$0x1] %vm200_vm1, %v2759_v0  ;;  %223 = vst.msk [vmem:[#allocation2 + $0x5c] sm:$0x1] %vm200_vm1, %v2759_v0  ;;  %v875_v8 = vld [vmem:[#allocation2 + $0x10] sm:$0xf]  ;;  %v991_v10 = vmax.bf16 %v3157_v4, %v871_v63 }
  0x67   : > { %225 = vst.msk [vmem:[#allocation2 + $0x64] sm:$0x1] %vm200_vm1, %v2759_v0  ;;  %227 = vst.msk [vmem:[#allocation2 + $0x6c] sm:$0x1] %vm200_vm1, %v2759_v0  ;;  %v877_v14 = vld [vmem:[#allocation2 + $0x18] sm:$0xf] }
  0x68   : > { %241 = vst.msk [vmem:[#allocation2 + $0xa4] sm:$0x1] %vm200_vm1, %v2759_v0  ;;  %243 = vst.msk [vmem:[#allocation2 + $0xac] sm:$0x1] %vm200_vm1, %v2759_v0  ;;  %v1071_v27 = vmax.bf16 %v991_v10, %v3161_v6  ;;  %v336_v41 = vld [vmem:[%s3113_s19 + $0x40] sm:$0xf] }
  0x69   : > { %245 = vst.msk [vmem:[#allocation2 + $0xb4] sm:$0x1] %vm200_vm1, %v2759_v0  ;;  %247 = vst.msk [vmem:[#allocation2 + $0xbc] sm:$0x1] %vm200_vm1, %v2759_v0  ;;  %vm1279_vm9 = vsmask.f32 3328 }
  0x6a   : > { %209 = vst.msk [vmem:[#allocation2 + $0x24] sm:$0x1] %vm200_vm1, %v2759_v0  ;;  %211 = vst.msk [vmem:[#allocation2 + $0x2c] sm:$0x1] %vm200_vm1, %v2759_v0  ;;  %vm1280_vm10 = vsmask.f32 7440 }
  0x6b   : > { %213 = vst.msk [vmem:[#allocation2 + $0x34] sm:$0x1] %vm200_vm1, %v2759_v0  ;;  %215 = vst.msk [vmem:[#allocation2 + $0x3c] sm:$0x1] %vm200_vm1, %v2759_v0  ;;  %v874_v7 = vld [vmem:[#allocation2 + $0xc] sm:$0x1] }
  0x6c   : > { %217 = vst.msk [vmem:[#allocation2 + $0x44] sm:$0x1] %vm200_vm1, %v2759_v0  ;;  %219 = vst.msk [vmem:[#allocation2 + $0x4c] sm:$0x1] %vm200_vm1, %v2759_v0  ;;  %v876_v13 = vld [vmem:[#allocation2 + $0x14] sm:$0x1] }
  0x6d   : > { %229 = vst.msk [vmem:[#allocation2 + $0x74] sm:$0x1] %vm200_vm1, %v2759_v0  ;;  %231 = vst.msk [vmem:[#allocation2 + $0x7c] sm:$0x1] %vm200_vm1, %v2759_v0  ;;  %v682_v21 = vld [vmem:[#allocation2 + $0x5c] sm:$0x1] }
  0x6e   : > { %233 = vst.msk [vmem:[#allocation2 + $0x84] sm:$0x1] %vm200_vm1, %v2759_v0  ;;  %235 = vst.msk [vmem:[#allocation2 + $0x8c] sm:$0x1] %vm200_vm1, %v2759_v0  ;;  %v688_v33 = vld [vmem:[#allocation2 + $0x64] sm:$0x1] }
  0x6f   : > { %237 = vst.msk [vmem:[#allocation2 + $0x94] sm:$0x1] %vm200_vm1, %v2759_v0  ;;  %239 = vst.msk [vmem:[#allocation2 + $0x9c] sm:$0x1] %vm200_vm1, %v2759_v0  ;;  %v694_v43 = vld [vmem:[#allocation2 + $0x6c] sm:$0x1] }
  0x70   : > { %249 = vst.msk [vmem:[#allocation2 + $0xc4] sm:$0x1] %vm200_vm1, %v2759_v0  ;;  %251 = vst.msk [vmem:[#allocation2 + $0xcc] sm:$0x1] %vm200_vm1, %v2759_v0  ;;  %v730_v49 = vld [vmem:[#allocation2 + $0xac] sm:$0x1] }
  0x71   : > { %253 = vst.msk [vmem:[#allocation2 + $0xd4] sm:$0x1] %vm200_vm1, %v2759_v0  ;;  %255 = vst.msk [vmem:[#allocation2 + $0xdc] sm:$0x1] %vm200_vm1, %v2759_v0  ;;  %v736_v55 = vld [vmem:[#allocation2 + $0xb4] sm:$0x1] }
  0x72   : > { %257 = vst.msk [vmem:[#allocation2 + $0xe4] sm:$0x1] %vm200_vm1, %v2759_v0  ;;  %259 = vst.msk [vmem:[#allocation2 + $0xec] sm:$0x1] %vm200_vm1, %v2759_v0  ;;  %v742_v57 = vld [vmem:[#allocation2 + $0xbc] sm:$0x1] }
  0x73   : > { %261 = vst.msk [vmem:[#allocation2 + $0xf4] sm:$0x1] %vm200_vm1, %v2759_v0  ;;  %263 = vst.msk [vmem:[#allocation2 + $0xfc] sm:$0x1] %vm200_vm1, %v2759_v0  ;;  %v3159_v5 = vld [vmem:[#allocation2 + $0x54] sm:$0x1] }
  0x74   : > { %265 = vst.msk [vmem:[#allocation2 + $0x104] sm:$0x1] %vm200_vm1, %v2759_v0  ;;  %267 = vst.msk [vmem:[#allocation2 + $0x10c] sm:$0x1] %vm200_vm1, %v2759_v0  ;;  %v3163_v9 = vld [vmem:[#allocation2 + $0xa4] sm:$0x1] }
  0x75   : > { %269 = vst.msk [vmem:[#allocation2 + $0x114] sm:$0x1] %vm200_vm1, %v2759_v0  ;;  %271 = vst.msk [vmem:[#allocation2 + $0x11c] sm:$0x1] %vm200_vm1, %v2759_v0  ;;  %v878_v15 = vld [vmem:[#allocation2 + $0x1c] sm:$0x1] }
  0x76   : > { %273 = vst.msk [vmem:[#allocation2 + $0x124] sm:$0x1] %vm200_vm1, %v2759_v0  ;;  %275 = vst.msk [vmem:[#allocation2 + $0x12c] sm:$0x1] %vm200_vm1, %v2759_v0  ;;  %v481_v58 = vshrl.u32 %v336_v41, 16  ;;  %s2577_s20 = sshll.u32 %s4356_s13, 8 }
  0x77   : > { %277 = vst.msk [vmem:[#allocation2 + $0x134] sm:$0x1] %vm200_vm1, %v2759_v0  ;;  %279 = vst.msk [vmem:[#allocation2 + $0x13c] sm:$0x1] %vm200_vm1, %v2759_v0  ;;  %s4142_s23 = scalar_lea.vmem %s4213_s3, %s2577_s20 }
  0x78   : > { %281 = vst.msk [vmem:[#allocation2 + $0x144] sm:$0x1] %vm200_vm1, %v2759_v0  ;;  %283 = vst.msk [vmem:[#allocation2 + $0x14c] sm:$0x1] %vm200_vm1, %v2759_v0 }
  0x79   : > { %285 = vst.msk [vmem:[#allocation2 + $0x154] sm:$0x1] %vm200_vm1, %v2759_v0  ;;  %287 = vst.msk [vmem:[#allocation2 + $0x15c] sm:$0x1] %vm200_vm1, %v2759_v0 }
  0x7a   : > { %289 = vst.msk [vmem:[#allocation2 + $0x164] sm:$0x1] %vm200_vm1, %v2759_v0  ;;  %291 = vst.msk [vmem:[#allocation2 + $0x16c] sm:$0x1] %vm200_vm1, %v2759_v0  ;;  %v778_v50 = vld [vmem:[#allocation2 + $0xfc] sm:$0x1] }
  0x7b   : > { %293 = vst.msk [vmem:[#allocation2 + $0x174] sm:$0x1] %vm200_vm1, %v2759_v0  ;;  %295 = vst.msk [vmem:[#allocation2 + $0x17c] sm:$0x1] %vm200_vm1, %v2759_v0 }
  0x7c   : > { %297 = vst.msk [vmem:[#allocation2 + $0x184] sm:$0x1] %vm200_vm1, %v2759_v0  ;;  %299 = vst.msk [vmem:[#allocation2 + $0x18c] sm:$0x1] %vm200_vm1, %v2759_v0 }
  0x7d   : > { %301 = vst.msk [vmem:[#allocation2 + $0x194] sm:$0x1] %vm200_vm1, %v2759_v0  ;;  %303 = vst.msk [vmem:[#allocation2 + $0x19c] sm:$0x1] %vm200_vm1, %v2759_v0 }
  0x7e   : > { %305 = vst.msk [vmem:[#allocation2 + $0x1a4] sm:$0x1] %vm200_vm1, %v2759_v0  ;;  %307 = vst.msk [vmem:[#allocation2 + $0x1ac] sm:$0x1] %vm200_vm1, %v2759_v0 }
  0x7f   : > { %309 = vst.msk [vmem:[#allocation2 + $0x1b4] sm:$0x1] %vm200_vm1, %v2759_v0  ;;  %311 = vst.msk [vmem:[#allocation2 + $0x1bc] sm:$0x1] %vm200_vm1, %v2759_v0  ;;  %v826_v16 = vld [vmem:[#allocation2 + $0x14c] sm:$0x1] }
  0x80   : > { %313 = vst.msk [vmem:[#allocation2 + $0x1c4] sm:$0x1] %vm200_vm1, %v2759_v0  ;;  %315 = vst.msk [vmem:[#allocation2 + $0x1cc] sm:$0x1] %vm200_vm1, %v2759_v0 }
  0x81   : > { %317 = vst.msk [vmem:[#allocation2 + $0x1d4] sm:$0x1] %vm200_vm1, %v2759_v0  ;;  %319 = vst.msk [vmem:[#allocation2 + $0x1dc] sm:$0x1] %vm200_vm1, %v2759_v0  ;;  %v872_v0 = vld [vmem:[#allocation2 + $0x4] sm:$0x1] }
  0x82   : > { %vm3129_vm6 = vmand %vm200_vm1, %vm680_vm4  ;;  %678 = vst [vmem:[#allocation2 + $0x58] sm:$0xf] %v677_v46  ;;  %v992_v11 = vmax.bf16 %v3159_v5, %v872_v0 }
  0x83   : > { %v683_v47 = vsel %vm3129_vm6, %v359_v23, %v682_v21  ;;  %687 = vst [vmem:[#allocation2 + $0x60] sm:$0xf] %v686_v48  ;;  %v689_v51 = vsel %vm3129_vm6, %v367_v29, %v688_v33  ;;  %v695_v53 = vsel %vm3129_vm6, %v375_v35, %v694_v43  ;;  %693 = vst [vmem:[#allocation2 + $0x68] sm:$0xf] %v692_v52  ;;  %v337_v48 = vld [vmem:[%s3113_s19 + $0x44] sm:$0xf] }
  0x84   : > { %684 = vst [vmem:[#allocation2 + $0x5c] sm:$0x1] %v683_v47  ;;  %690 = vst [vmem:[#allocation2 + $0x64] sm:$0x1] %v689_v51  ;;  %v731_v60 = vsel %vm3129_vm6, %v423_v40, %v730_v49  ;;  %v737_v62 = vsel %vm3129_vm6, %v431_v42, %v736_v55  ;;  %v743_v2 = vsel %vm3129_vm6, %v439_v59, %v742_v57  ;;  %v338_v57 = vld [vmem:[%s3113_s19 + $0x48] sm:$0xf] }
  0x85   : > { %696 = vst [vmem:[#allocation2 + $0x6c] sm:$0x1] %v695_v53  ;;  %729 = vst [vmem:[#allocation2 + $0xa8] sm:$0xf] %v728_v54  ;;  %v1072_v35 = vmax.bf16 %v992_v11, %v3163_v9  ;;  %v484_v59 = vshll.u32 %v336_v41, 16 }
  0x86   : > { %732 = vst [vmem:[#allocation2 + $0xac] sm:$0x1] %v731_v60  ;;  %735 = vst [vmem:[#allocation2 + $0xb0] sm:$0xf] %v734_v61  ;;  %v489_v60 = vshrl.u32 %v337_v48, 16  ;;  %v492_v61 = vshll.u32 %v337_v48, 16 }
  0x87   : > { %738 = vst [vmem:[#allocation2 + $0xb4] sm:$0x1] %v737_v62  ;;  %741 = vst [vmem:[#allocation2 + $0xb8] sm:$0xf] %v740_v1 }
  0x88   : > { %744 = vst [vmem:[#allocation2 + $0xbc] sm:$0x1] %v743_v2  ;;  %v3238_v2 = vrot.slane %v481_v58, 7  ;;  %vm3244_vm11 = vmor %vm1858_vm7, %vm1859_vm8 }
  0x89   : > { %v3171_v17 = vld [vmem:[#allocation2 + $0x58] sm:$0xf]  ;;  %vm3258_vm12 = vmor %vm1279_vm9, %vm1280_vm10 }
  0x8a   : > { %v3175_v19 = vld [vmem:[#allocation2 + $0x60] sm:$0xf]  ;;  %v3179_v21 = vld [vmem:[#allocation2 + $0x68] sm:$0xf]  ;;  %v993_v23 = vmax.bf16 %v3171_v17, %v873_v3  ;;  %v3240_v3 = vrot.slane %v489_v60, 7  ;;  %v487_v58 = vrot.slane %v3238_v2, 4 }
  0x8b   : > { %v3173_v18 = vld [vmem:[#allocation2 + $0x5c] sm:$0x1]  ;;  %4263 = vst [vmem:[#allocation9_spill] sm:$0xff] %v3175_v19  ;;  %v3177_v20 = vld [vmem:[#allocation2 + $0x64] sm:$0x1]  ;;  %4265 = vst [vmem:[#allocation11_spill] sm:$0xff] %v3179_v21  ;;  %v995_v25 = vmax.bf16 %v3175_v19, %v875_v8  ;;  %v997_v33 = vmax.bf16 %v3179_v21, %v877_v14 }
  0x8c   : > { %4264 = vst [vmem:[#allocation10_spill] sm:$0xff] %v3177_v20  ;;  %v3181_v22 = vld [vmem:[#allocation2 + $0x6c] sm:$0x1]  ;;  %v994_v24 = vmax.bf16 %v3173_v18, %v874_v7  ;;  %v3187_v28 = vld [vmem:[#allocation2 + $0xa8] sm:$0xf]  ;;  %v996_v31 = vmax.bf16 %v3177_v20, %v876_v13  ;;  %v497_v7 = vshrl.u32 %v338_v57, 16 }
  0x8d   : > { %4266 = vst [vmem:[#allocation12_spill] sm:$0xff] %v3181_v22  ;;  %v3189_v29 = vld [vmem:[#allocation2 + $0xac] sm:$0x1]  ;;  %v3191_v30 = vld [vmem:[#allocation2 + $0xb0] sm:$0xf]  ;;  %v998_v34 = vmax.bf16 %v3181_v22, %v878_v15  ;;  %v1073_v40 = vmax.bf16 %v993_v23, %v3187_v28  ;;  %v500_v8 = vshll.u32 %v338_v57, 16  ;;  %v486_v57 = vor.u32 %v484_v59, %v3238_v2 }
  0x8e   : > { %v3197_v36 = vld [vmem:[#allocation2 + $0xb4] sm:$0x1]  ;;  %v3207_v42 = vld [vmem:[#allocation2 + $0xb8] sm:$0xf]  ;;  %v1074_v45 = vmax.bf16 %v994_v24, %v3189_v29  ;;  %v3215_v46 = vmax.bf16 %v995_v25, %v3191_v30 }
  0x8f   : > { %4267 = vst [vmem:[#allocation13_spill] sm:$0xff] %v3197_v36  ;;  %4268 = vst [vmem:[#allocation14_spill] sm:$0xff] %v3207_v42  ;;  %v3209_v43 = vld [vmem:[#allocation2 + $0xbc] sm:$0x1]  ;;  %v3218_v47 = vmax.bf16 %v996_v31, %v3197_v36  ;;  %v3226_v51 = vmax.bf16 %v997_v33, %v3207_v42  ;;  %v1151_v53 = vmax.bf16 %v1073_v40, %v1071_v27 }
  0x90   : > { %v3229_v52 = vmax.bf16 %v998_v34, %v3209_v43  ;;  %v1152_v54 = vmax.bf16 %v1074_v45, %v1072_v35  ;;  %v1153_v55 = vmax.bf16 %v3215_v46, %v1073_v40 }
  0x91   : > { %v1154_v56 = vmax.bf16 %v3218_v47, %v1074_v45  ;;  %v1215_v62 = vmax.bf16 %v1151_v53, %v3215_v46  ;;  %v344_v53 = vld [vmem:[%s3113_s19 + $0x60] sm:$0xf] }
  0x92   : > { %v1216_v63 = vmax.bf16 %v1152_v54, %v3218_v47  ;;  %v1217_v0 = vmax.bf16 %v1153_v55, %v3226_v51  ;;  %v548_v2 = vshll.u32 %v344_v53, 16 }
  0x93   : > { %v1218_v1 = vmax.bf16 %v1154_v56, %v3229_v52  ;;  %v1283_v10 = vshrl.u32 %v1215_v62, 16  ;;  %v1286_v11 = vshll.u32 %v1215_v62, 16  ;;  %v2509_v25 = vrot.slane %v1215_v62, 9  ;;  %v345_v56 = vld [vmem:[%s3113_s19 + $0x64] sm:$0xf] }
  0x94   : > { %v1292_v13 = vshll.u32 %v1216_v63, 16  ;;  %v1297_v14 = vshrl.u32 %v1217_v0, 16  ;;  %v1300_v23 = vshll.u32 %v1217_v0, 16  ;;  %v1863_v27 = vrot.slane %v1216_v63, 5 }
  0x95   : > { %v1306_v24 = vshll.u32 %v1218_v1, 16  ;;  %v1285_v31 = vrot.slane %v1283_v10, 4  ;;  %v1288_v33 = vrot.slane %v1286_v11, 5  ;;  %v2510_v48 = vrot.slane %v1217_v0, 9  ;;  %v346_v10 = vld [vmem:[%s3113_s19 + $0x68] sm:$0xf] }
  0x96   : > { %v1294_v34 = vrot.slane %v1292_v13, 5  ;;  %v1299_v35 = vrot.slane %v1297_v14, 4  ;;  %v1302_v40 = vrot.slane %v1300_v23, 5  ;;  %v3250_v45 = vsel %vm3244_vm11, %v2509_v25, %v1863_v27 }
  0x97   : > { %v1308_v41 = vrot.slane %v1306_v24, 5  ;;  %v1289_v54 = vor.u32 %v1288_v33, %v1285_v31  ;;  %v1867_v55 = vrot.slane %v1218_v1, 5  ;;  %v494_v11 = vor.u32 %v492_v61, %v3240_v3  ;;  %v775_v24 = vld [vmem:[#allocation2 + $0xf8] sm:$0xf] }
  0x98   : > { %v1303_v63 = vor.u32 %v1302_v40, %v1299_v35  ;;  %v495_v13 = vrot.slane %v3240_v3, 4  ;;  %v499_v14 = vrot.slane %v497_v7, 7  ;;  %v545_v23 = vshrl.u32 %v344_v53, 16  ;;  %v781_v3 = vld [vmem:[#allocation2 + $0x100] sm:$0xf] }
  0x99   : > { %v1290_v1 = vrot.slane %v1289_v54, 4  ;;  %v1868_v59 = vsel %vm3244_vm11, %v2510_v48, %v1867_v55  ;;  %v553_v33 = vshrl.u32 %v345_v56, 16  ;;  %v556_v61 = vshll.u32 %v345_v56, 16  ;;  %v784_v7 = vld [vmem:[#allocation2 + $0x104] sm:$0x1] }
  0x9a   : > { %v1304_v25 = vrot.slane %v1303_v63, 4  ;;  %v502_v27 = vor.u32 %v500_v8, %v499_v14  ;;  %v503_v31 = vrot.slane %v499_v14, 4  ;;  %v547_v40 = vrot.slane %v545_v23, 7  ;;  %v787_v54 = vld [vmem:[#allocation2 + $0x108] sm:$0xf] }
  0x9b   : > { %v1295_v35 = vsel %vm3258_vm12, %v1290_v1, %v1294_v34  ;;  %v561_v49 = vshrl.u32 %v346_v10, 16  ;;  %v555_v53 = vrot.slane %v553_v33, 7  ;;  %v564_v44 = vshll.u32 %v346_v10, 16  ;;  %v790_v63 = vld [vmem:[#allocation2 + $0x10c] sm:$0x1] }
  0x9c   : > { %v1309_v48 = vsel %vm3258_vm12, %v1304_v25, %v1308_v41  ;;  %v1762_v55 = vmax.bf16 %v1295_v35, %v1215_v62  ;;  %v823_v8 = vld [vmem:[#allocation2 + $0x148] sm:$0xf]  ;;  %v550_v39 = vor.u32 %v548_v2, %v547_v40  ;;  %v551_v38 = vrot.slane %v547_v40, 4  ;;  %v829_v34 = vld [vmem:[#allocation2 + $0x150] sm:$0xf] }
  0x9d   : > { %v1763_v14 = vmax.bf16 %v1309_v48, %v1217_v0  ;;  %v563_v37 = vrot.slane %v561_v49, 7  ;;  %v558_v1 = vor.u32 %v556_v61, %v555_v53  ;;  %v559_v23 = vrot.slane %v555_v53, 4  ;;  %v832_v41 = vld [vmem:[#allocation2 + $0x154] sm:$0x1]  ;;  %v835_v62 = vld [vmem:[#allocation2 + $0x158] sm:$0xf] }
  0x9e   : > { %v2021_v56 = vmax.bf16 %v3250_v45, %v1762_v55  ;;  %v776_v12 = vsel %vm3123_vm5, %v486_v57, %v775_v24  ;;  %v779_v0 = vsel %vm3129_vm6, %v487_v58, %v778_v50  ;;  %v838_v49 = vld [vmem:[#allocation2 + $0x15c] sm:$0x1]  ;;  %v931_v2 = vld [vmem:[#allocation2 + $0xf0] sm:$0xf]  ;;  %v782_v45 = vsel %vm3123_vm5, %v494_v11, %v781_v3  ;;  %v972_v40 = vld [vmem:[#allocation2 + $0x194] sm:$0x1] }
  0x9f   : > { %v2022_v25 = vmax.bf16 %v1868_v59, %v1763_v14  ;;  %v566_v10 = vor.u32 %v564_v44, %v563_v37  ;;  %v567_v33 = vrot.slane %v563_v37, 4  ;;  %777 = vst [vmem:[#allocation2 + $0xf8] sm:$0xf] %v776_v12  ;;  %780 = vst [vmem:[#allocation2 + $0xfc] sm:$0x1] %v779_v0  ;;  %v785_v57 = vsel %vm3129_vm6, %v495_v13, %v784_v7 }
  0xa0   : > { %v788_v24 = vsel %vm3123_vm5, %v502_v27, %v787_v54  ;;  %v791_v37 = vsel %vm3129_vm6, %v503_v31, %v790_v63  ;;  %v932_v12 = vld [vmem:[#allocation2 + $0xf4] sm:$0x1]  ;;  %v323_v44 = vld [vmem:[%s3113_s19 + $0xc] sm:$0xf]  ;;  %783 = vst [vmem:[#allocation2 + $0x100] sm:$0xf] %v782_v45  ;;  %v824_v50 = vsel %vm3123_vm5, %v550_v39, %v823_v8  ;;  %v827_v58 = vsel %vm3129_vm6, %v551_v38, %v826_v16 }
  0xa1   : > { %v2542_v59 = vcombine.low %v2021_v56, %v2022_v25  ;;  %786 = vst [vmem:[#allocation2 + $0x104] sm:$0x1] %v785_v57  ;;  %789 = vst [vmem:[#allocation2 + $0x108] sm:$0xf] %v788_v24  ;;  %v830_v11 = vsel %vm3123_vm5, %v558_v1, %v829_v34  ;;  %v951_v13 = vld [vmem:[#allocation2 + $0x140] sm:$0xf]  ;;  %v833_v31 = vsel %vm3129_vm6, %v559_v23, %v832_v41 }
  0xa2   : > { %792 = vst [vmem:[#allocation2 + $0x10c] sm:$0x1] %v791_v37  ;;  %v324_v27 = vld [vmem:[%s3113_s19 + $0x10] sm:$0xf]  ;;  %825 = vst [vmem:[#allocation2 + $0x148] sm:$0xf] %v824_v50  ;;  %v836_v35 = vsel %vm3123_vm5, %v566_v10, %v835_v62  ;;  %v839_v39 = vsel %vm3129_vm6, %v567_v33, %v838_v49  ;;  %v1031_v61 = vmax.bf16 %v931_v2, %v3161_v6 }
  0xa3   : > { %828 = vst [vmem:[#allocation2 + $0x14c] sm:$0x1] %v827_v58  ;;  %831 = vst [vmem:[#allocation2 + $0x150] sm:$0xf] %v830_v11  ;;  %v952_v16 = vld [vmem:[#allocation2 + $0x144] sm:$0x1]  ;;  %2597 = vmatprep.mubr.msk.bf16.mxu0 %vm2141_vm13, %v2542_v59  ;;  %v1032_v3 = vmax.bf16 %v932_v12, %v3163_v9  ;;  %v1051_v7 = vmax.bf16 %v951_v13, %v931_v2 }
  0xa4   : > { %v971_v38 = vld [vmem:[#allocation2 + $0x190] sm:$0xf]  ;;  %834 = vst [vmem:[#allocation2 + $0x154] sm:$0x1] %v833_v31  ;;  %837 = vst [vmem:[#allocation2 + $0x158] sm:$0xf] %v836_v35  ;;  %v1052_v54 = vmax.bf16 %v952_v16, %v932_v12  ;;  %v3307_v63 = vmax.bf16 %v1031_v61, %v951_v13 }
  0xa5   : > { %840 = vst [vmem:[#allocation2 + $0x15c] sm:$0x1] %v839_v39  ;;  %v3302_v48 = vld [vmem:[%s3113_s19 + $0x2c] sm:$0xf]  ;;  %v3305_v55 = vld [vmem:[%s3113_s19 + $0x30] sm:$0xf]  ;;  %v3309_v56 = vmax.bf16 %v1032_v3, %v952_v16  ;;  %v3311_v1 = vmax.bf16 %v1051_v7, %v971_v38 }
  0xa6   : > { %v377_v53 = vshrl.u32 %v323_v44, 16  ;;  %v380_v8 = vshll.u32 %v323_v44, 16  ;;  %v385_v14 = vshrl.u32 %v324_v27, 16  ;;  %v388_v34 = vshll.u32 %v324_v27, 16  ;;  %v697_v62 = vld [vmem:[#allocation2 + $0x70] sm:$0xf] }
  0xa7   : > { %4273 = vst [vmem:[#allocation15_spill] sm:$0xff] %v3311_v1  ;;  %v3313_v23 = vmax.bf16 %v1052_v54, %v972_v40  ;;  %v933_v25 = vld [vmem:[#allocation2 + $0xf8] sm:$0xf]  ;;  %v441_v33 = vshrl.u32 %v3302_v48, 16  ;;  %v449_v49 = vshrl.u32 %v3305_v55, 16 }
  0xa8   : > { %v3315_v41 = vrot.slane %v377_v53, 7  ;;  %v3317_v10 = vrot.slane %v385_v14, 7  ;;  %v934_v2 = vld [vmem:[#allocation2 + $0xfc] sm:$0x1]  ;;  %v1033_v45 = vmax.bf16 %v933_v25, %v3187_v28  ;;  %v935_v12 = vld [vmem:[#allocation2 + $0x100] sm:$0xf] }
  0xa9   : > { %4274 = vst [vmem:[#allocation16_spill] sm:$0xff] %v3313_v23  ;;  %v936_v44 = vld [vmem:[#allocation2 + $0x104] sm:$0x1]  ;;  %v937_v59 = vld [vmem:[#allocation2 + $0x108] sm:$0xf]  ;;  %v1034_v13 = vmax.bf16 %v934_v2, %v3189_v29  ;;  %v1035_v61 = vmax.bf16 %v935_v12, %v3191_v30 }
  0xaa   : > { %v382_v57 = vor.u32 %v380_v8, %v3315_v41  ;;  %v383_v24 = vrot.slane %v3315_v41, 4  ;;  %v973_v50 = vld [vmem:[#allocation2 + $0x198] sm:$0xf]  ;;  %v974_v58 = vld [vmem:[#allocation2 + $0x19c] sm:$0x1]  ;;  %v390_v27 = vor.u32 %v388_v34, %v3317_v10  ;;  %v1036_v3 = vmax.bf16 %v936_v44, %v3197_v36 }
  0xab   : > { %v975_v11 = vld [vmem:[#allocation2 + $0x1a0] sm:$0xf]  ;;  %v938_v39 = vld [vmem:[#allocation2 + $0x10c] sm:$0x1]  ;;  %v953_v16 = vld [vmem:[#allocation2 + $0x148] sm:$0xf]  ;;  %v1037_v7 = vmax.bf16 %v937_v59, %v3207_v42 }
  0xac   : > { %v954_v38 = vld [vmem:[#allocation2 + $0x14c] sm:$0x1]  ;;  %v976_v40 = vld [vmem:[#allocation2 + $0x1a4] sm:$0x1]  ;;  %v698_v54 = vsel %vm3123_vm5, %v382_v57, %v697_v62  ;;  %v955_v53 = vld [vmem:[#allocation2 + $0x150] sm:$0xf]  ;;  %v1038_v34 = vmax.bf16 %v938_v39, %v3209_v43  ;;  %v1053_v41 = vmax.bf16 %v953_v16, %v933_v25  ;;  %v1113_v31 = vmax.bf16 %v1033_v45, %v953_v16 }
  0xad   : > { %v956_v8 = vld [vmem:[#allocation2 + $0x154] sm:$0x1]  ;;  %v957_v14 = vld [vmem:[#allocation2 + $0x158] sm:$0xf]  ;;  %v1054_v35 = vmax.bf16 %v954_v38, %v934_v2  ;;  %699 = vst [vmem:[#allocation2 + $0x70] sm:$0xf] %v698_v54  ;;  %v1055_v1 = vmax.bf16 %v955_v53, %v935_v12  ;;  %v1114_v20 = vmax.bf16 %v1034_v13, %v954_v38  ;;  %v3338_v36 = vmax.bf16 %v1035_v61, %v955_v53 }
  0xae   : > { %v958_v37 = vld [vmem:[#allocation2 + $0x15c] sm:$0x1]  ;;  %v977_v0 = vld [vmem:[#allocation2 + $0x1a8] sm:$0xf]  ;;  %v978_v23 = vld [vmem:[#allocation2 + $0x1ac] sm:$0x1]  ;;  %v1056_v22 = vmax.bf16 %v956_v8, %v936_v44  ;;  %v1057_v21 = vmax.bf16 %v957_v14, %v937_v59  ;;  %v3340_v62 = vmax.bf16 %v1036_v3, %v956_v8  ;;  %v3342_v57 = vmax.bf16 %v1037_v7, %v957_v14 }
  0xaf   : > { %v1058_v42 = vmax.bf16 %v958_v37, %v938_v39  ;;  %v3344_v19 = vmax.bf16 %v1038_v34, %v958_v37  ;;  %v3346_v25 = vmax.bf16 %v1053_v41, %v973_v50  ;;  %v3348_v2 = vmax.bf16 %v1054_v35, %v974_v58  ;;  %v700_v16 = vld [vmem:[#allocation2 + $0x74] sm:$0x1]  ;;  %v703_v39 = vld [vmem:[#allocation2 + $0x78] sm:$0xf]  ;;  %v745_v3 = vld [vmem:[#allocation2 + $0xc0] sm:$0xf] }
  0xb0   : > { %v3350_v45 = vmax.bf16 %v1055_v1, %v975_v11  ;;  %v3352_v12 = vmax.bf16 %v1056_v22, %v976_v40  ;;  %v3354_v44 = vmax.bf16 %v1057_v21, %v977_v0  ;;  %v1183_v13 = vmax.bf16 %v1113_v31, %v3307_v63  ;;  %v748_v7 = vld [vmem:[#allocation2 + $0xc4] sm:$0x1]  ;;  %v751_v14 = vld [vmem:[#allocation2 + $0xc8] sm:$0xf]  ;;  %v754_v34 = vld [vmem:[#allocation2 + $0xcc] sm:$0x1] }
  0xb1   : > { %v3356_v59 = vmax.bf16 %v1058_v42, %v978_v23  ;;  %v1184_v38 = vmax.bf16 %v1114_v20, %v3309_v56  ;;  %v1185_v37 = vmax.bf16 %v3338_v36, %v1113_v31  ;;  %v1186_v50 = vmax.bf16 %v3340_v62, %v1114_v20  ;;  %v2669_v32 = vld [vmem:[#allocation2 + $0x108] sm:$0xf] }
  0xb2   : > { %4275 = vst [vmem:[#allocation17_spill] sm:$0xff] %v3352_v12  ;;  %4276 = vst [vmem:[#allocation18_spill] sm:$0xff] %v3354_v44  ;;  %v391_v58 = vrot.slane %v3317_v10, 4  ;;  %v3364_v1 = vmax.bf16 %v1183_v13, %v3338_v36  ;;  %v443_v22 = vrot.slane %v441_v33, 7  ;;  %v451_v11 = vrot.slane %v449_v49, 7 }
  0xb3   : > { %4277 = vst [vmem:[#allocation19_spill] sm:$0xff] %v3356_v59  ;;  %v701_v21 = vsel %vm3129_vm6, %v383_v24, %v700_v16  ;;  %v1248_v42 = vmax.bf16 %v1184_v38, %v3340_v62  ;;  %v3370_v63 = vmax.bf16 %v1185_v37, %v3342_v57  ;;  %v1250_v56 = vmax.bf16 %v1186_v50, %v3344_v19  ;;  %v706_v24 = vld [vmem:[#allocation2 + $0x7c] sm:$0x1] }
  0xb4   : > { %702 = vst [vmem:[#allocation2 + $0x74] sm:$0x1] %v701_v21  ;;  %v704_v20 = vsel %vm3123_vm5, %v390_v27, %v703_v39  ;;  %v1507_v23 = vshrl.u32 %v3364_v1, 16  ;;  %v1510_v10 = vshll.u32 %v3364_v1, 16  ;;  %v2525_v33 = vrot.slane %v3364_v1, 9 }
  0xb5   : > { %v4278_v0 = vshll.u32 %v3302_v48, 16  ;;  %705 = vst [vmem:[#allocation2 + $0x78] sm:$0xf] %v704_v20  ;;  %v1516_v31 = vshll.u32 %v1248_v42, 16  ;;  %v1521_v35 = vshrl.u32 %v3370_v63, 16  ;;  %v1524_v40 = vshll.u32 %v3370_v63, 16 }
  0xb6   : > { %v1530_v61 = vshll.u32 %v1250_v56, 16  ;;  %v1509_v27 = vrot.slane %v1507_v23, 4  ;;  %v1512_v54 = vrot.slane %v1510_v10, 5  ;;  %v1927_v53 = vrot.slane %v1248_v42, 5  ;;  %v3383_v39 = vld [vmem:[#allocation2 + $0x20] sm:$0xf] }
  0xb7   : > { %v446_v49 = vor.u32 %v4278_v0, %v443_v22  ;;  %v2526_v8 = vrot.slane %v3370_v63, 9  ;;  %v1518_v41 = vrot.slane %v1516_v31, 5  ;;  %v1523_v48 = vrot.slane %v1521_v35, 4  ;;  %v3387_v20 = vld [vmem:[#allocation2 + $0x24] sm:$0x1] }
  0xb8   : > { %v1526_v16 = vrot.slane %v1524_v40, 5  ;;  %v1532_v13 = vrot.slane %v1530_v61, 5  ;;  %v1513_v38 = vor.u32 %v1512_v54, %v1509_v27  ;;  %v1928_v37 = vsel %vm3244_vm11, %v2525_v33, %v1927_v53  ;;  %v3389_v42 = vld [vmem:[#allocation2 + $0x70] sm:$0xf]  ;;  %v3395_v40 = vld [vmem:[#allocation2 + $0x28] sm:$0xf] }
  0xb9   : > { %v1931_v50 = vrot.slane %v1250_v56, 5  ;;  %v447_v21 = vrot.slane %v443_v22, 4  ;;  %v4279_v10 = vshll.u32 %v3305_v55, 16  ;;  %v455_v31 = vrot.slane %v451_v11, 4  ;;  %v339_v61 = vld [vmem:[%s3113_s19 + $0x4c] sm:$0xf] }
  0xba   : > { %v1527_v23 = vor.u32 %v1526_v16, %v1523_v48  ;;  %v707_v35 = vsel %vm3129_vm6, %v391_v58, %v706_v24  ;;  %v1514_v33 = vrot.slane %v1513_v38, 4  ;;  %v746_v56 = vsel %vm3123_vm5, %v446_v49, %v745_v3  ;;  %v340_v27 = vld [vmem:[%s3113_s19 + $0x50] sm:$0xf]  ;;  %v347_v49 = vld [vmem:[%s3113_s19 + $0x6c] sm:$0xf] }
  0xbb   : > { %v454_v0 = vor.u32 %v4279_v10, %v451_v11  ;;  %v1932_v22 = vsel %vm3244_vm11, %v2526_v8, %v1931_v50  ;;  %708 = vst [vmem:[#allocation2 + $0x7c] sm:$0x1] %v707_v35  ;;  %v749_v55 = vsel %vm3129_vm6, %v447_v21, %v748_v7  ;;  %v900_v11 = vld [vmem:[#allocation2 + $0x74] sm:$0x1]  ;;  %747 = vst [vmem:[#allocation2 + $0xc0] sm:$0xf] %v746_v56 }
  0xbc   : > { %v1528_v54 = vrot.slane %v1527_v23, 4  ;;  %750 = vst [vmem:[#allocation2 + $0xc4] sm:$0x1] %v749_v55  ;;  %v755_v24 = vsel %vm3129_vm6, %v455_v31, %v754_v34  ;;  %v901_v53 = vld [vmem:[#allocation2 + $0x78] sm:$0xf]  ;;  %v999_v8 = vmax.bf16 %v3389_v42, %v3383_v39  ;;  %v1519_v3 = vsel %vm3258_vm12, %v1514_v33, %v1518_v41 }
  0xbd   : > { %v752_v58 = vsel %vm3123_vm5, %v454_v0, %v751_v14  ;;  %756 = vst [vmem:[#allocation2 + $0xcc] sm:$0x1] %v755_v24  ;;  %v1000_v7 = vmax.bf16 %v900_v11, %v3387_v20  ;;  %v1001_v48 = vmax.bf16 %v901_v53, %v3395_v40  ;;  %v348_v16 = vld [vmem:[%s3113_s19 + $0x70] sm:$0xf]  ;;  %v505_v38 = vshrl.u32 %v339_v61, 16 }
  0xbe   : > { %753 = vst [vmem:[#allocation2 + $0xc8] sm:$0xf] %v752_v58  ;;  %v1533_v14 = vsel %vm3258_vm12, %v1528_v54, %v1532_v13  ;;  %v1778_v34 = vmax.bf16 %v1519_v3, %v3364_v1  ;;  %v508_v50 = vshll.u32 %v339_v61, 16  ;;  %v513_v21 = vshrl.u32 %v340_v27, 16  ;;  %v882_v0 = vld [vmem:[#allocation2 + $0x2c] sm:$0x1] }
  0xbf   : > { %v1779_v39 = vmax.bf16 %v1533_v14, %v3370_v63  ;;  %v507_v42 = vrot.slane %v505_v38, 7  ;;  %v516_v23 = vshll.u32 %v340_v27, 16  ;;  %v569_v41 = vshrl.u32 %v347_v49, 16  ;;  %v793_v11 = vld [vmem:[#allocation2 + $0x110] sm:$0xf] }
  0xc0   : > { %v2037_v10 = vmax.bf16 %v1928_v37, %v1778_v34  ;;  %v515_v31 = vrot.slane %v513_v21, 7  ;;  %v572_v20 = vshll.u32 %v347_v49, 16  ;;  %v577_v35 = vshrl.u32 %v348_v16, 16  ;;  %v796_v13 = vld [vmem:[#allocation2 + $0x114] sm:$0x1] }
  0xc1   : > { %v2038_v40 = vmax.bf16 %v1932_v22, %v1779_v39  ;;  %v510_v33 = vor.u32 %v508_v50, %v507_v42  ;;  %v511_v56 = vrot.slane %v507_v42, 4  ;;  %v571_v55 = vrot.slane %v569_v41, 7  ;;  %v799_v24 = vld [vmem:[#allocation2 + $0x118] sm:$0xf]  ;;  %v802_v27 = vld [vmem:[#allocation2 + $0x11c] sm:$0x1] }
  0xc2   : > { %v902_v54 = vld [vmem:[#allocation2 + $0x7c] sm:$0x1]  ;;  %v518_v1 = vor.u32 %v516_v23, %v515_v31  ;;  %v519_v61 = vrot.slane %v515_v31, 4  ;;  %v3421_v58 = vrot.slane %v577_v35, 7  ;;  %v580_v63 = vshll.u32 %v348_v16, 16 }
  0xc3   : > { %v841_v53 = vld [vmem:[#allocation2 + $0x160] sm:$0xf]  ;;  %v844_v37 = vld [vmem:[#allocation2 + $0x164] sm:$0x1]  ;;  %v2550_v3 = vcombine.low %v2037_v10, %v2038_v40  ;;  %v1002_v22 = vmax.bf16 %v902_v54, %v882_v0  ;;  %v574_v14 = vor.u32 %v572_v20, %v571_v55  ;;  %v575_v34 = vrot.slane %v571_v55, 4 }
  0xc4   : > { %v3423_v38 = vld [vmem:[#allocation2 + $0xc0] sm:$0xf]  ;;  %v3425_v49 = vld [vmem:[#allocation2 + $0xc4] sm:$0x1]  ;;  %v3429_v21 = vld [vmem:[#allocation2 + $0xcc] sm:$0x1]  ;;  %v582_v42 = vor.u32 %v580_v63, %v3421_v58  ;;  %v794_v0 = vsel %vm3123_vm5, %v510_v33, %v793_v11  ;;  %v4281_v35 = vmax.bf16 %v3229_v52, %v3218_v47  ;;  %v803_v55 = vsel %vm3129_vm6, %v519_v61, %v802_v27 }
  0xc5   : > { %v3427_v50 = vld [vmem:[#allocation2 + $0xc8] sm:$0xf]  ;;  %v3432_v39 = vmax.bf16 %v999_v8, %v3423_v38  ;;  %v3435_v16 = vmax.bf16 %v1000_v7, %v3425_v49  ;;  %v583_v23 = vrot.slane %v3421_v58, 4  ;;  %2613 = vmatprep.mubr.msk.bf16.mxu1 %vm2141_vm13, %v2550_v3  ;;  %v3444_v10 = vmax.bf16 %v1002_v22, %v3429_v21  ;;  %795 = vst [vmem:[#allocation2 + $0x110] sm:$0xf] %v794_v0 }
  0xc6   : > { %v3441_v41 = vmax.bf16 %v1001_v48, %v3427_v50  ;;  %v797_v8 = vsel %vm3129_vm6, %v511_v56, %v796_v13  ;;  %v4280_v48 = vmax.bf16 %v3226_v51, %v3215_v46  ;;  %v847_v33 = vld [vmem:[#allocation2 + $0x168] sm:$0xf]  ;;  %v800_v56 = vsel %vm3123_vm5, %v518_v1, %v799_v24  ;;  %804 = vst [vmem:[#allocation2 + $0x11c] sm:$0x1] %v803_v55 }
  0xc7   : > { %v1157_v7 = vmax.bf16 %v3432_v39, %v3226_v51  ;;  %v1158_v31 = vmax.bf16 %v3435_v16, %v3229_v52  ;;  %v1220_v40 = vmax.bf16 %v4281_v35, %v3435_v16  ;;  %798 = vst [vmem:[#allocation2 + $0x114] sm:$0x1] %v797_v8  ;;  %v842_v11 = vsel %vm3123_vm5, %v574_v14, %v841_v53  ;;  %v3481_v0 = vld [vmem:[#allocation2 + $0x48] sm:$0xf] }
  0xc8   : > { %v1219_v20 = vmax.bf16 %v4280_v48, %v3432_v39  ;;  %v845_v46 = vsel %vm3129_vm6, %v575_v34, %v844_v37  ;;  %801 = vst [vmem:[#allocation2 + $0x118] sm:$0xf] %v800_v56  ;;  %843 = vst [vmem:[#allocation2 + $0x160] sm:$0xf] %v842_v11  ;;  %v848_v58 = vsel %vm3123_vm5, %v582_v42, %v847_v33  ;;  %v850_v37 = vld [vmem:[#allocation2 + $0x16c] sm:$0x1] }
  0xc9   : > { %v3471_v51 = vmax.bf16 %v1157_v7, %v3441_v41  ;;  %v1222_v47 = vmax.bf16 %v1158_v31, %v3444_v10  ;;  %846 = vst [vmem:[#allocation2 + $0x164] sm:$0x1] %v845_v46  ;;  %v1320_v54 = vshll.u32 %v1220_v40, 16  ;;  %v1871_v61 = vrot.slane %v1220_v40, 5  ;;  %849 = vst [vmem:[#allocation2 + $0x168] sm:$0xf] %v848_v58 }
  0xca   : > { %v1311_v52 = vshrl.u32 %v1219_v20, 16  ;;  %v1314_v13 = vshll.u32 %v1219_v20, 16  ;;  %v2511_v1 = vrot.slane %v1219_v20, 9  ;;  %v3483_v48 = vld [vmem:[#allocation2 + $0x98] sm:$0xf]  ;;  %v851_v40 = vsel %vm3129_vm6, %v583_v23, %v850_v37 }
  0xcb   : > { %v1325_v27 = vshrl.u32 %v3471_v51, 16  ;;  %v1328_v53 = vshll.u32 %v3471_v51, 16  ;;  %v1322_v3 = vrot.slane %v1320_v54, 5  ;;  %v1334_v22 = vshll.u32 %v1222_v47, 16  ;;  %852 = vst [vmem:[#allocation2 + $0x16c] sm:$0x1] %v851_v40 }
  0xcc   : > { %v1313_v63 = vrot.slane %v1311_v52, 4  ;;  %v1316_v24 = vrot.slane %v1314_v13, 5  ;;  %v1872_v14 = vsel %vm3244_vm11, %v2511_v1, %v1871_v61  ;;  %v2512_v34 = vrot.slane %v3471_v51, 9  ;;  %v3487_v33 = vld [vmem:[#allocation2 + $0x110] sm:$0xf] }
  0xcd   : > { %v1327_v42 = vrot.slane %v1325_v27, 4  ;;  %v1330_v7 = vrot.slane %v1328_v53, 5  ;;  %v1875_v31 = vrot.slane %v1222_v47, 5  ;;  %v1336_v35 = vrot.slane %v1334_v22, 5  ;;  %4282 = vst [vmem:[#allocation20_spill] sm:$0xff] %v3487_v33 }
  0xce   : > { %v1317_v8 = vor.u32 %v1316_v24, %v1313_v63  ;;  %v3489_v56 = vld [vmem:[#allocation2 + $0x114] sm:$0x1]  ;;  %v1187_v55 = vmax.bf16 %v3342_v57, %v3338_v36  ;;  %v1188_v11 = vmax.bf16 %v3344_v19, %v3340_v62  ;;  %v1039_v13 = vmax.bf16 %v3487_v33, %v3423_v38  ;;  %v3501_v54 = vld [vmem:[%s3113_s19 + $0x18] sm:$0xf]  ;;  %v3505_v61 = vld [vmem:[#allocation2 + $0x11c] sm:$0x1] }
  0xcf   : > { %4283 = vst [vmem:[#allocation21_spill] sm:$0xff] %v3489_v56  ;;  %v1331_v52 = vor.u32 %v1330_v7, %v1327_v42  ;;  %v1876_v47 = vsel %vm3244_vm11, %v2512_v34, %v1875_v31  ;;  %v325_v23 = vld [vmem:[%s3113_s19 + $0x14] sm:$0xf]  ;;  %v3503_v1 = vld [vmem:[#allocation2 + $0x118] sm:$0xf]  ;;  %4285 = vst [vmem:[#allocation23_spill] sm:$0xff] %v3505_v61  ;;  %v1040_v62 = vmax.bf16 %v3489_v56, %v3425_v49 }
  0xd0   : > { %v1318_v46 = vrot.slane %v1317_v8, 4  ;;  %4284 = vst [vmem:[#allocation22_spill] sm:$0xff] %v3503_v1  ;;  %v3507_v36 = vld [vmem:[#allocation2 + $0x160] sm:$0xf]  ;;  %v3519_v53 = vld [vmem:[#allocation2 + $0x164] sm:$0x1]  ;;  %v1041_v37 = vmax.bf16 %v3503_v1, %v3427_v50  ;;  %v1042_v49 = vmax.bf16 %v3505_v61, %v3429_v21 }
  0xd1   : > { %4286 = vst [vmem:[#allocation24_spill] sm:$0xff] %v3507_v36  ;;  %v1332_v27 = vrot.slane %v1331_v52, 4  ;;  %4287 = vst [vmem:[#allocation25_spill] sm:$0xff] %v3519_v53  ;;  %v3525_v34 = vld [vmem:[#allocation2 + $0x168] sm:$0xf]  ;;  %v3528_v8 = vmax.bf16 %v1039_v13, %v3507_v36  ;;  %v3531_v42 = vmax.bf16 %v1040_v62, %v3519_v53  ;;  %v393_v7 = vshrl.u32 %v325_v23, 16 }
  0xd2   : > { %v1323_v24 = vsel %vm3258_vm12, %v1318_v46, %v1322_v3  ;;  %4288 = vst [vmem:[#allocation26_spill] sm:$0xff] %v3525_v34  ;;  %v3536_v31 = vmax.bf16 %v1041_v37, %v3525_v34  ;;  %v3539_v50 = vld [vmem:[%s3113_s19 + $0x34] sm:$0xf]  ;;  %v396_v40 = vshll.u32 %v325_v23, 16  ;;  %v401_v21 = vshrl.u32 %v3501_v54, 16 }
  0xd3   : > { %v1764_v22 = vmax.bf16 %v1323_v24, %v1219_v20  ;;  %v1337_v3 = vsel %vm3258_vm12, %v1332_v27, %v1336_v35  ;;  %v1189_v52 = vmax.bf16 %v3528_v8, %v3342_v57  ;;  %v1190_v13 = vmax.bf16 %v3531_v42, %v3344_v19  ;;  %v962_v38 = vld [vmem:[#allocation2 + $0x16c] sm:$0x1]  ;;  %v334_v61 = vld [vmem:[%s3113_s19 + $0x38] sm:$0xf] }
  0xd4   : > { %v1765_v20 = vmax.bf16 %v1337_v3, %v3471_v51  ;;  %v1251_v62 = vmax.bf16 %v1187_v55, %v3528_v8  ;;  %v1252_v35 = vmax.bf16 %v1188_v11, %v3531_v42  ;;  %v395_v24 = vrot.slane %v393_v7, 7 }
  0xd5   : > { %v2023_v46 = vmax.bf16 %v1872_v14, %v1764_v22  ;;  %v403_v27 = vrot.slane %v401_v21, 7  ;;  %v1253_v23 = vmax.bf16 %v1189_v52, %v3536_v31  ;;  %v404_v63 = vshll.u32 %v3501_v54, 16 }
  0xd6   : > { %v2024_v37 = vmax.bf16 %v1876_v47, %v1765_v20  ;;  %v457_v51 = vshrl.u32 %v3539_v50, 16  ;;  %v3552_v14 = vmax.bf16 %v1042_v49, %v962_v38  ;;  %v1535_v57 = vshrl.u32 %v1251_v62, 16 }
  0xd7   : > { %v1538_v22 = vshll.u32 %v1251_v62, 16  ;;  %v1544_v3 = vshll.u32 %v1252_v35, 16  ;;  %v1549_v55 = vshrl.u32 %v1253_v23, 16  ;;  %v1552_v58 = vshll.u32 %v1253_v23, 16 }
  0xd8   : > { %v2543_v19 = vcombine.low %v2023_v46, %v2024_v37  ;;  %v2527_v11 = vrot.slane %v1251_v62, 9  ;;  %v1254_v7 = vmax.bf16 %v1190_v13, %v3552_v14  ;;  %v1537_v47 = vrot.slane %v1535_v57, 4  ;;  %v709_v37 = vld [vmem:[#allocation2 + $0x80] sm:$0xf] }
  0xd9   : > { %v1540_v21 = vrot.slane %v1538_v22, 5  ;;  %v1546_v20 = vrot.slane %v1544_v3, 5  ;;  %v1551_v54 = vrot.slane %v1549_v55, 4  ;;  %v1554_v52 = vrot.slane %v1552_v58, 5  ;;  %v712_v22 = vld [vmem:[#allocation2 + $0x84] sm:$0x1] }
  0xda   : > { %2598 = vmatmul.mubr.msk.bf16.vlgmr.msra.gmra.mrb[0].mxu0 %vm2141_vm13, %v2543_v19  ;;  %v1935_v34 = vrot.slane %v1252_v35, 5  ;;  %v2528_v38 = vrot.slane %v1253_v23, 9  ;;  %v1558_v53 = vshll.u32 %v1254_v7, 16  ;;  %v1939_v36 = vrot.slane %v1254_v7, 5  ;;  %v715_v3 = vld [vmem:[#allocation2 + $0x88] sm:$0xf] }
  0xdb   : > { %v1541_v49 = vor.u32 %v1540_v21, %v1537_v47  ;;  %v398_v46 = vor.u32 %v396_v40, %v395_v24  ;;  %v1555_v1 = vor.u32 %v1554_v52, %v1551_v54  ;;  %v399_v13 = vrot.slane %v395_v24, 4  ;;  %v718_v47 = vld [vmem:[#allocation2 + $0x8c] sm:$0x1]  ;;  %v757_v52 = vld [vmem:[#allocation2 + $0xd0] sm:$0xf] }
  0xdc   : > { %v1936_v56 = vsel %vm3244_vm11, %v2527_v11, %v1935_v34  ;;  %v406_v57 = vor.u32 %v404_v63, %v403_v27  ;;  %v1560_v55 = vrot.slane %v1558_v53, 5  ;;  %v1940_v58 = vsel %vm3244_vm11, %v2528_v38, %v1939_v36  ;;  %v760_v24 = vld [vmem:[#allocation2 + $0xd4] sm:$0x1] }
  0xdd   : > { %v1542_v19 = vrot.slane %v1541_v49, 4  ;;  %v407_v35 = vrot.slane %v403_v27, 4  ;;  %v1556_v7 = vrot.slane %v1555_v1, 4  ;;  %v459_v21 = vrot.slane %v457_v51, 7  ;;  %v341_v27 = vld [vmem:[%s3113_s19 + $0x54] sm:$0xf] }
  0xde   : > { %v460_v40 = vshll.u32 %v3539_v50, 16  ;;  %v465_v54 = vshrl.u32 %v334_v61, 16  ;;  %v468_v63 = vshll.u32 %v334_v61, 16  ;;  %v710_v53 = vsel %vm3123_vm5, %v398_v46, %v709_v37  ;;  %v342_v46 = vld [vmem:[%s3113_s19 + $0x58] sm:$0xf] }
  0xdf   : > { %v1547_v34 = vsel %vm3258_vm12, %v1542_v19, %v1546_v20  ;;  %v713_v36 = vsel %vm3129_vm6, %v399_v13, %v712_v22  ;;  %v1561_v1 = vsel %vm3258_vm12, %v1556_v7, %v1560_v55  ;;  %v463_v11 = vrot.slane %v459_v21, 4  ;;  %711 = vst [vmem:[#allocation2 + $0x80] sm:$0xf] %v710_v53  ;;  %v349_v37 = vld [vmem:[%s3113_s19 + $0x74] sm:$0xf] }
  0xe0   : > { %v1780_v50 = vmax.bf16 %v1547_v34, %v1251_v62  ;;  %v462_v51 = vor.u32 %v460_v40, %v459_v21  ;;  %714 = vst [vmem:[#allocation2 + $0x84] sm:$0x1] %v713_v36  ;;  %v1781_v20 = vmax.bf16 %v1561_v1, %v1253_v23  ;;  %v467_v38 = vrot.slane %v465_v54, 7  ;;  %v763_v23 = vld [vmem:[#allocation2 + $0xd8] sm:$0xf] }
  0xe1   : > { %v716_v61 = vsel %vm3123_vm5, %v406_v57, %v715_v3  ;;  %v719_v49 = vsel %vm3129_vm6, %v407_v35, %v718_v47  ;;  %v761_v22 = vsel %vm3129_vm6, %v463_v11, %v760_v24  ;;  %v766_v19 = vld [vmem:[#allocation2 + $0xdc] sm:$0x1]  ;;  %v521_v55 = vshrl.u32 %v341_v27, 16  ;;  %v883_v35 = vld [vmem:[#allocation2 + $0x30] sm:$0xf] }
  0xe2   : > { %v2039_v13 = vmax.bf16 %v1936_v56, %v1780_v50  ;;  %717 = vst [vmem:[#allocation2 + $0x88] sm:$0xf] %v716_v61  ;;  %720 = vst [vmem:[#allocation2 + $0x8c] sm:$0x1] %v719_v49  ;;  %v758_v62 = vsel %vm3123_vm5, %v462_v51, %v757_v52  ;;  %v2040_v7 = vmax.bf16 %v1940_v58, %v1781_v20  ;;  %v471_v3 = vrot.slane %v467_v38, 4 }
  0xe3   : > { %v470_v57 = vor.u32 %v468_v63, %v467_v38  ;;  %759 = vst [vmem:[#allocation2 + $0xd0] sm:$0xf] %v758_v62  ;;  %762 = vst [vmem:[#allocation2 + $0xd4] sm:$0x1] %v761_v22  ;;  %v884_v47 = vld [vmem:[#allocation2 + $0x34] sm:$0x1] }
  0xe4   : > { %v524_v56 = vshll.u32 %v341_v27, 16  ;;  %v350_v21 = vld [vmem:[%s3113_s19 + $0x78] sm:$0xf]  ;;  %v523_v40 = vrot.slane %v521_v55, 7  ;;  %v529_v54 = vshrl.u32 %v342_v46, 16  ;;  %v532_v34 = vshll.u32 %v342_v46, 16 }
  0xe5   : > { %v585_v53 = vshrl.u32 %v349_v37, 16  ;;  %v2551_v52 = vcombine.low %v2039_v13, %v2040_v7  ;;  %v764_v36 = vsel %vm3123_vm5, %v470_v57, %v763_v23  ;;  %v767_v24 = vsel %vm3129_vm6, %v471_v3, %v766_v19  ;;  %v885_v58 = vld [vmem:[#allocation2 + $0x38] sm:$0xf]  ;;  %v886_v63 = vld [vmem:[#allocation2 + $0x3c] sm:$0x1] }
  0xe6   : > { %v588_v1 = vshll.u32 %v349_v37, 16  ;;  %v805_v50 = vld [vmem:[#allocation2 + $0x120] sm:$0xf]  ;;  %v808_v51 = vld [vmem:[#allocation2 + $0x124] sm:$0x1]  ;;  %v526_v27 = vor.u32 %v524_v56, %v523_v40  ;;  %v527_v11 = vrot.slane %v523_v40, 4 }
  0xe7   : > { %765 = vst [vmem:[#allocation2 + $0xd8] sm:$0xf] %v764_v36  ;;  %768 = vst [vmem:[#allocation2 + $0xdc] sm:$0x1] %v767_v24  ;;  %v531_v20 = vrot.slane %v529_v54, 7  ;;  %v587_v38 = vrot.slane %v585_v53, 7  ;;  %2614 = vmatmul.mubr.msk.bf16.vlgmr.msra.gmra.mrb[0].mxu1 %vm2141_vm13, %v2551_v52 }
  0xe8   : > { %v811_v61 = vld [vmem:[#allocation2 + $0x128] sm:$0xf]  ;;  %v3587_v49 = vld [vmem:[#allocation2 + $0x80] sm:$0xf]  ;;  %v3589_v46 = vld [vmem:[#allocation2 + $0x84] sm:$0x1]  ;;  %v806_v24 = vsel %vm3123_vm5, %v526_v27, %v805_v50 }
  0xe9   : > { %4289 = vst [vmem:[#allocation27_spill] sm:$0xff] %v3587_v49  ;;  %4290 = vst [vmem:[#allocation28_spill] sm:$0xff] %v3589_v46  ;;  %v593_v13 = vshrl.u32 %v350_v21, 16  ;;  %v596_v62 = vshll.u32 %v350_v21, 16  ;;  %v814_v22 = vld [vmem:[#allocation2 + $0x12c] sm:$0x1]  ;;  %v1003_v55 = vmax.bf16 %v3587_v49, %v883_v35  ;;  %v1004_v7 = vmax.bf16 %v3589_v46, %v884_v47 }
  0xea   : > { %v853_v37 = vld [vmem:[#allocation2 + $0x170] sm:$0xf]  ;;  %v534_v57 = vor.u32 %v532_v34, %v531_v20  ;;  %v535_v3 = vrot.slane %v531_v20, 4  ;;  %v856_v56 = vld [vmem:[#allocation2 + $0x174] sm:$0x1]  ;;  %v590_v53 = vor.u32 %v588_v1, %v587_v38  ;;  %v591_v52 = vrot.slane %v587_v38, 4 }
  0xeb   : > { %v3598_v40 = vld [vmem:[%s3113_s19 + $0x1c] sm:$0xf]  ;;  %v3600_v54 = vld [vmem:[#allocation2 + $0x88] sm:$0xf]  ;;  %v3602_v21 = vld [vmem:[#allocation2 + $0x8c] sm:$0x1]  ;;  %v809_v20 = vsel %vm3129_vm6, %v527_v11, %v808_v51 }
  0xec   : > { %4291 = vst [vmem:[#allocation29_spill] sm:$0xff] %v3600_v54  ;;  %4292 = vst [vmem:[#allocation30_spill] sm:$0xff] %v3602_v21  ;;  %v595_v36 = vrot.slane %v593_v13, 7  ;;  %v3606_v19 = vld [vmem:[#allocation2 + $0xd0] sm:$0xf]  ;;  %v1005_v47 = vmax.bf16 %v3600_v54, %v885_v58  ;;  %v1006_v34 = vmax.bf16 %v3602_v21, %v886_v63  ;;  %v812_v1 = vsel %vm3123_vm5, %v534_v57, %v811_v61 }
  0xed   : > { %4293 = vst [vmem:[#allocation31_spill] sm:$0xff] %v3606_v19  ;;  %v3608_v35 = vld [vmem:[#allocation2 + $0xd4] sm:$0x1]  ;;  %807 = vst [vmem:[#allocation2 + $0x120] sm:$0xf] %v806_v24  ;;  %v3617_v38 = vmax.bf16 %v1003_v55, %v3606_v19  ;;  %v815_v63 = vsel %vm3129_vm6, %v535_v3, %v814_v22  ;;  %v854_v51 = vsel %vm3123_vm5, %v590_v53, %v853_v37  ;;  %v409_v61 = vshrl.u32 %v3598_v40, 16 }
  0xee   : > { %4294 = vst [vmem:[#allocation32_spill] sm:$0xff] %v3608_v35  ;;  %v3620_v50 = vmax.bf16 %v1004_v7, %v3608_v35  ;;  %v598_v27 = vor.u32 %v596_v62, %v595_v36  ;;  %v599_v13 = vrot.slane %v595_v36, 4  ;;  %810 = vst [vmem:[#allocation2 + $0x124] sm:$0x1] %v809_v20  ;;  %v859_v58 = vld [vmem:[#allocation2 + $0x178] sm:$0xf]  ;;  %v857_v11 = vsel %vm3129_vm6, %v591_v52, %v856_v56 }
  0xef   : > { %813 = vst [vmem:[#allocation2 + $0x128] sm:$0xf] %v812_v1  ;;  %v862_v23 = vld [vmem:[#allocation2 + $0x17c] sm:$0x1]  ;;  %v3629_v55 = vld [vmem:[#allocation2 + $0xd8] sm:$0xf]  ;;  %v1161_v62 = vmax.bf16 %v3617_v38, %v3441_v41  ;;  %v4297_v22 = vmax.bf16 %v3441_v41, %v3432_v39  ;;  %v4298_v3 = vmax.bf16 %v3444_v10, %v3435_v16 }
  0xf0   : > { %4295 = vst [vmem:[#allocation33_spill] sm:$0xff] %v3629_v55  ;;  %v3631_v7 = vld [vmem:[#allocation2 + $0xdc] sm:$0x1]  ;;  %v1162_v57 = vmax.bf16 %v3620_v50, %v3444_v10  ;;  %816 = vst [vmem:[#allocation2 + $0x12c] sm:$0x1] %v815_v63  ;;  %v3646_v53 = vmax.bf16 %v1005_v47, %v3629_v55  ;;  %v860_v36 = vsel %vm3123_vm5, %v598_v27, %v859_v58  ;;  %v3657_v63 = vrot.slane %v409_v61, 7 }
  0xf1   : > { %4296 = vst [vmem:[#allocation34_spill] sm:$0xff] %v3631_v7  ;;  %v1223_v37 = vmax.bf16 %v4297_v22, %v3617_v38  ;;  %v1224_v56 = vmax.bf16 %v4298_v3, %v3620_v50  ;;  %855 = vst [vmem:[#allocation2 + $0x170] sm:$0xf] %v854_v51  ;;  %v3649_v52 = vmax.bf16 %v1006_v34, %v3631_v7 }
  0xf2   : > { %858 = vst [vmem:[#allocation2 + $0x174] sm:$0x1] %v857_v11  ;;  %v863_v39 = vsel %vm3129_vm6, %v599_v13, %v862_v23  ;;  %861 = vst [vmem:[#allocation2 + $0x178] sm:$0xf] %v860_v36  ;;  %v1225_v10 = vmax.bf16 %v1161_v62, %v3646_v53  ;;  %v412_v23 = vshll.u32 %v3598_v40, 16 }
  0xf3   : > { %v1339_v41 = vshrl.u32 %v1223_v37, 16  ;;  %v1342_v24 = vshll.u32 %v1223_v37, 16  ;;  %v1348_v20 = vshll.u32 %v1224_v56, 16  ;;  %v2513_v16 = vrot.slane %v1223_v37, 9  ;;  %864 = vst [vmem:[#allocation2 + $0x17c] sm:$0x1] %v863_v39 }
  0xf4   : > { %v1226_v47 = vmax.bf16 %v1162_v57, %v3649_v52  ;;  %v1879_v1 = vrot.slane %v1224_v56, 5  ;;  %v3659_v27 = vld [vmem:[#allocation2 + $0x120] sm:$0xf]  ;;  %v1353_v13 = vshrl.u32 %v1225_v10, 16  ;;  %v1356_v58 = vshll.u32 %v1225_v10, 16 }
  0xf5   : > { %v1341_v34 = vrot.slane %v1339_v41, 4  ;;  %v1344_v51 = vrot.slane %v1342_v24, 5  ;;  %v1350_v11 = vrot.slane %v1348_v20, 5  ;;  %4299 = vst [vmem:[#allocation35_spill] sm:$0xff] %v3659_v27  ;;  %v3664_v36 = vld [vmem:[#allocation2 + $0x124] sm:$0x1]  ;;  %v1043_v39 = vmax.bf16 %v3659_v27, %v3606_v19 }
  0xf6   : > { %v1362_v22 = vshll.u32 %v1226_v47, 16  ;;  %v1880_v3 = vsel %vm3244_vm11, %v2513_v16, %v1879_v1  ;;  %4300 = vst [vmem:[#allocation36_spill] sm:$0xff] %v3664_v36  ;;  %v2514_v57 = vrot.slane %v1225_v10, 9  ;;  %v1883_v56 = vrot.slane %v1226_v47, 5  ;;  %v3666_v61 = vld [vmem:[#allocation2 + $0x128] sm:$0xf] }
  0xf7   : > { %v1345_v62 = vor.u32 %v1344_v51, %v1341_v34  ;;  %4301 = vst [vmem:[#allocation37_spill] sm:$0xff] %v3666_v61  ;;  %v1355_v41 = vrot.slane %v1353_v13, 4  ;;  %v1358_v24 = vrot.slane %v1356_v58, 5  ;;  %v3670_v20 = vld [vmem:[#allocation2 + $0x12c] sm:$0x1]  ;;  %v1044_v21 = vmax.bf16 %v3664_v36, %v3608_v35 }
  0xf8   : > { %v1364_v40 = vrot.slane %v1362_v22, 5  ;;  %4302 = vst [vmem:[#allocation38_spill] sm:$0xff] %v3670_v20  ;;  %v1884_v1 = vsel %vm3244_vm11, %v2514_v57, %v1883_v56  ;;  %v3676_v34 = vld [vmem:[#allocation2 + $0x170] sm:$0xf]  ;;  %v1045_v51 = vmax.bf16 %v3666_v61, %v3629_v55  ;;  %v1046_v13 = vmax.bf16 %v3670_v20, %v3631_v7  ;;  %v335_v56 = vld [vmem:[%s3113_s19 + $0x3c] sm:$0xf] }
  0xf9   : > { %v1346_v16 = vrot.slane %v1345_v62, 4  ;;  %4303 = vst [vmem:[#allocation39_spill] sm:$0xff] %v3676_v34  ;;  %v3678_v47 = vld [vmem:[#allocation2 + $0x174] sm:$0x1]  ;;  %v1359_v58 = vor.u32 %v1358_v24, %v1355_v41  ;;  %v3684_v22 = vld [vmem:[#allocation2 + $0x178] sm:$0xf]  ;;  %v3689_v62 = vmax.bf16 %v1043_v39, %v3676_v34  ;;  %v414_v36 = vor.u32 %v412_v23, %v3657_v63 }
  0xfa   : > { %4304 = vst [vmem:[#allocation40_spill] sm:$0xff] %v3678_v47  ;;  %4305 = vst [vmem:[#allocation41_spill] sm:$0xff] %v3684_v22  ;;  %v3686_v27 = vld [vmem:[#allocation2 + $0x17c] sm:$0x1]  ;;  %v3692_v57 = vmax.bf16 %v1044_v21, %v3678_v47  ;;  %v3699_v55 = vmax.bf16 %v1045_v51, %v3684_v22  ;;  %v415_v24 = vrot.slane %v3657_v63, 4  ;;  %v476_v63 = vshll.u32 %v335_v56, 16 }
  0xfb   : > { %4306 = vst [vmem:[#allocation42_spill] sm:$0xff] %v3686_v27  ;;  %v1351_v61 = vsel %vm3258_vm12, %v1346_v16, %v1350_v11  ;;  %v3702_v41 = vmax.bf16 %v1046_v13, %v3686_v27  ;;  %v1360_v20 = vrot.slane %v1359_v58, 4  ;;  %v1193_v21 = vmax.bf16 %v3689_v62, %v3536_v31 }
  0xfc   : > { %v1766_v39 = vmax.bf16 %v1351_v61, %v1223_v37  ;;  %v1194_v47 = vmax.bf16 %v3692_v57, %v3552_v14  ;;  %v4307_v11 = vmax.bf16 %v3536_v31, %v3528_v8  ;;  %v4308_v16 = vmax.bf16 %v3552_v14, %v3531_v42  ;;  %v721_v31 = vld [vmem:[#allocation2 + $0x90] sm:$0xf]  ;;  %v724_v14 = vld [vmem:[#allocation2 + $0x94] sm:$0x1] }
  0xfd   : > { %v473_v13 = vshrl.u32 %v335_v56, 16  ;;  %v1365_v37 = vsel %vm3258_vm12, %v1360_v20, %v1364_v40  ;;  %v1257_v58 = vmax.bf16 %v1193_v21, %v3699_v55  ;;  %v890_v40 = vld [vmem:[#allocation2 + $0x4c] sm:$0x1] }
  0xfe   : > { %v1255_v23 = vmax.bf16 %v4307_v11, %v3689_v62  ;;  %v1256_v51 = vmax.bf16 %v4308_v16, %v3692_v57  ;;  %v2025_v61 = vmax.bf16 %v1880_v3, %v1766_v39  ;;  %v1258_v27 = vmax.bf16 %v1194_v47, %v3702_v41  ;;  %v3721_v47 = vld [vmem:[#allocation2 + $0x9c] sm:$0x1] }
  0xff   : > { %v1767_v22 = vmax.bf16 %v1365_v37, %v1225_v10  ;;  %v1577_v11 = vshrl.u32 %v1257_v58, 16  ;;  %v1580_v54 = vshll.u32 %v1257_v58, 16  ;;  %v2530_v49 = vrot.slane %v1257_v58, 9 }
 0x100   : > { %v1563_v34 = vshrl.u32 %v1255_v23, 16  ;;  %v1566_v7 = vshll.u32 %v1255_v23, 16  ;;  %v1572_v8 = vshll.u32 %v1256_v51, 16  ;;  %v1586_v35 = vshll.u32 %v1258_v27, 16 }
 0x101   : > { %v2529_v42 = vrot.slane %v1255_v23, 9  ;;  %v2026_v16 = vmax.bf16 %v1884_v1, %v1767_v22  ;;  %v1579_v3 = vrot.slane %v1577_v11, 4  ;;  %v1582_v20 = vrot.slane %v1580_v54, 5  ;;  %v769_v1 = vld [vmem:[#allocation2 + $0xe0] sm:$0xf] }
 0x102   : > { %v1565_v56 = vrot.slane %v1563_v34, 4  ;;  %v1568_v46 = vrot.slane %v1566_v7, 5  ;;  %v1574_v19 = vrot.slane %v1572_v8, 5  ;;  %v1588_v39 = vrot.slane %v1586_v35, 5  ;;  %v772_v54 = vld [vmem:[#allocation2 + $0xe4] sm:$0x1] }
 0x103   : > { %v1943_v21 = vrot.slane %v1256_v51, 5  ;;  %v2544_v10 = vcombine.low %v2025_v61, %v2026_v16  ;;  %v1947_v33 = vrot.slane %v1258_v27, 5  ;;  %v1583_v59 = vor.u32 %v1582_v20, %v1579_v3  ;;  %v3732_v34 = vld [vmem:[#allocation2 + $0xe8] sm:$0xf]  ;;  %v3734_v22 = vld [vmem:[#allocation2 + $0xec] sm:$0x1] }
 0x104   : > { %v1569_v37 = vor.u32 %v1568_v46, %v1565_v56  ;;  %v475_v12 = vrot.slane %v473_v13, 7  ;;  %v722_v7 = vsel %vm3123_vm5, %v414_v36, %v721_v31  ;;  %v725_v27 = vsel %vm3129_vm6, %v415_v24, %v724_v14  ;;  %v3764_v16 = vld [vmem:[#allocation2 + $0x188] sm:$0xf] }
 0x105   : > { %v1944_v44 = vsel %vm3244_vm11, %v2529_v42, %v1943_v21  ;;  %2601 = vmatprep.mubr.msk.bf16.mxu0 %vm2141_vm13, %v2544_v10  ;;  %v1948_v46 = vsel %vm3244_vm11, %v2530_v49, %v1947_v33  ;;  %723 = vst [vmem:[#allocation2 + $0x90] sm:$0xf] %v722_v7  ;;  %v1010_v36 = vmax.bf16 %v3721_v47, %v890_v40  ;;  %v1584_v51 = vrot.slane %v1583_v59, 4  ;;  %v343_v33 = vld [vmem:[%s3113_s19 + $0x5c] sm:$0xf] }
 0x106   : > { %v1570_v35 = vrot.slane %v1569_v37, 4  ;;  %v478_v13 = vor.u32 %v476_v63, %v475_v12  ;;  %v479_v61 = vrot.slane %v475_v12, 4  ;;  %726 = vst [vmem:[#allocation2 + $0x94] sm:$0x1] %v725_v27  ;;  %v4309_v8 = vmax.bf16 %v3483_v48, %v3481_v0  ;;  %v351_v49 = vld [vmem:[%s3113_s19 + $0x7c] sm:$0xf] }
 0x107   : > { %v3748_v11 = vmax.bf16 %v1010_v36, %v3734_v22  ;;  %v1163_v59 = vmax.bf16 %v3646_v53, %v3617_v38  ;;  %v3754_v63 = vld [vmem:[#allocation2 + $0x138] sm:$0xf]  ;;  %v3756_v42 = vld [vmem:[#allocation2 + $0x13c] sm:$0x1]  ;;  %v1589_v0 = vsel %vm3258_vm12, %v1584_v51, %v1588_v39  ;;  %v537_v40 = vshrl.u32 %v343_v33, 16 }
 0x108   : > { %v3741_v31 = vmax.bf16 %v4309_v8, %v3732_v34  ;;  %v1575_v24 = vsel %vm3258_vm12, %v1570_v35, %v1574_v19  ;;  %v770_v19 = vsel %vm3123_vm5, %v478_v13, %v769_v1  ;;  %v773_v14 = vsel %vm3129_vm6, %v479_v61, %v772_v54  ;;  %v3766_v21 = vld [vmem:[#allocation2 + $0x18c] sm:$0x1]  ;;  %v887_v37 = vld [vmem:[#allocation2 + $0x40] sm:$0xf]  ;;  %v888_v54 = vld [vmem:[#allocation2 + $0x44] sm:$0x1] }
 0x109   : > { %v1782_v48 = vmax.bf16 %v1575_v24, %v1255_v23  ;;  %v1783_v56 = vmax.bf16 %v1589_v0, %v1257_v58  ;;  %771 = vst [vmem:[#allocation2 + $0xe0] sm:$0xf] %v770_v19  ;;  %774 = vst [vmem:[#allocation2 + $0xe4] sm:$0x1] %v773_v14  ;;  %v540_v3 = vshll.u32 %v343_v33, 16  ;;  %v601_v20 = vshrl.u32 %v351_v49, 16 }
 0x10a   : > { %v604_v39 = vshll.u32 %v351_v49, 16  ;;  %v1049_v23 = vmax.bf16 %v3754_v63, %v3732_v34  ;;  %v1050_v7 = vmax.bf16 %v3756_v42, %v3734_v22  ;;  %v539_v35 = vrot.slane %v537_v40, 7  ;;  %v817_v27 = vld [vmem:[#allocation2 + $0x130] sm:$0xf]  ;;  %v820_v13 = vld [vmem:[#allocation2 + $0x134] sm:$0x1] }
 0x10b   : > { %v2041_v10 = vmax.bf16 %v1944_v44, %v1782_v48  ;;  %v2042_v1 = vmax.bf16 %v1948_v46, %v1783_v56  ;;  %v603_v58 = vrot.slane %v601_v20, 7  ;;  %v865_v44 = vld [vmem:[#allocation2 + $0x180] sm:$0xf]  ;;  %v2663_v33 = vld [vmem:[#allocation2 + $0xf0] sm:$0xf]  ;;  %v4310_v49 = vmax.bf16 %v3161_v6, %v3157_v4 }
 0x10c   : > { %v3774_v51 = vld [vmem:[#allocation2 + $0x90] sm:$0xf]  ;;  %v3777_v61 = vmax.bf16 %v1049_v23, %v3764_v16  ;;  %v3780_v8 = vmax.bf16 %v1050_v7, %v3766_v21  ;;  %v542_v14 = vor.u32 %v540_v3, %v539_v35  ;;  %v543_v56 = vrot.slane %v539_v35, 4  ;;  %v868_v40 = vld [vmem:[#allocation2 + $0x184] sm:$0x1] }
 0x10d   : > { %v1091_v24 = vmax.bf16 %v2663_v33, %v4310_v49  ;;  %v2552_v0 = vcombine.low %v2041_v10, %v2042_v1  ;;  %v3787_v48 = vld [vmem:[#allocation2 + $0x94] sm:$0x1]  ;;  %v1007_v19 = vmax.bf16 %v3774_v51, %v887_v37  ;;  %v606_v23 = vor.u32 %v604_v39, %v603_v58  ;;  %v2665_v3 = vld [vmem:[#allocation2 + $0xf8] sm:$0xf]  ;;  %v2666_v39 = vld [vmem:[#allocation2 + $0xfc] sm:$0x1] }
 0x10e   : > { %v1008_v20 = vmax.bf16 %v3787_v48, %v888_v54  ;;  %v607_v7 = vrot.slane %v603_v58, 4  ;;  %v2664_v36 = vld [vmem:[#allocation2 + $0xf4] sm:$0x1]  ;;  %v4311_v46 = vmax.bf16 %v3163_v9, %v3159_v5  ;;  %v818_v4 = vsel %vm3123_vm5, %v542_v14, %v817_v27  ;;  %v2667_v27 = vld [vmem:[#allocation2 + $0x100] sm:$0xf] }
 0x10f   : > { %2617 = vmatprep.mubr.msk.bf16.mxu1 %vm2141_vm13, %v2552_v0  ;;  %v821_v6 = vsel %vm3129_vm6, %v543_v56, %v820_v13  ;;  %v4312_v10 = vmax.bf16 %v3187_v28, %v3171_v17  ;;  %v4313_v1 = vmax.bf16 %v3189_v29, %v3173_v18  ;;  %819 = vst [vmem:[#allocation2 + $0x130] sm:$0xf] %v818_v4  ;;  %v4314_v17 = vld [vmem:[#allocation9_spill] sm:$0xff]  ;;  %v2668_v18 = vld [vmem:[#allocation2 + $0x104] sm:$0x1]  ;;  %v4317_v13 = vld [vmem:[#allocation10_spill] sm:$0xff] }
 0x110   : > { %v1092_v12 = vmax.bf16 %v2664_v36, %v4311_v46  ;;  %v3805_v5 = vld [vmem:[#allocation2 + $0xe0] sm:$0xf]  ;;  %v3807_v9 = vld [vmem:[#allocation2 + $0xe4] sm:$0x1]  ;;  %822 = vst [vmem:[#allocation2 + $0x134] sm:$0x1] %v821_v6  ;;  %v866_v35 = vsel %vm3123_vm5, %v606_v23, %v865_v44  ;;  %v869_v58 = vsel %vm3129_vm6, %v607_v7, %v868_v40  ;;  %v4315_v28 = vmax.bf16 %v3191_v30, %v4314_v17 }
 0x111   : > { %v1093_v37 = vmax.bf16 %v2665_v3, %v4312_v10  ;;  %v1094_v54 = vmax.bf16 %v2666_v39, %v4313_v1  ;;  %v4316_v29 = vld [vmem:[#allocation13_spill] sm:$0xff]  ;;  %v1087_v49 = vmax.bf16 %v1007_v19, %v3805_v5  ;;  %v1088_v26 = vmax.bf16 %v1008_v20, %v3807_v9  ;;  %867 = vst [vmem:[#allocation2 + $0x180] sm:$0xf] %v866_v35  ;;  %v4319_v44 = vld [vmem:[#allocation14_spill] sm:$0xff]  ;;  %v4320_v0 = vld [vmem:[#allocation11_spill] sm:$0xff] }
 0x112   : > { %v3816_v36 = vmax.bf16 %v2667_v27, %v4315_v28  ;;  %v4318_v46 = vmax.bf16 %v4316_v29, %v4317_v13  ;;  %870 = vst [vmem:[#allocation2 + $0x184] sm:$0x1] %v869_v58  ;;  %v4321_v14 = vmax.bf16 %v4319_v44, %v4320_v0  ;;  %v2670_v30 = vld [vmem:[#allocation2 + $0x10c] sm:$0x1]  ;;  %v4322_v40 = vld [vmem:[#allocation12_spill] sm:$0xff]  ;;  %v4324_v1 = vmax.bf16 %v3649_v52, %v3620_v50 }
 0x113   : > { %v4323_v23 = vmax.bf16 %v3209_v43, %v4322_v40  ;;  %v1167_v4 = vmax.bf16 %v1093_v37, %v1091_v24  ;;  %v1168_v6 = vmax.bf16 %v1094_v54, %v1092_v12  ;;  %v1165_v3 = vmax.bf16 %v1087_v49, %v3646_v53 }
 0x114   : > { %v3821_v33 = vmax.bf16 %v2668_v18, %v4318_v46  ;;  %v3828_v56 = vmax.bf16 %v2669_v32, %v4321_v14  ;;  %v1169_v19 = vmax.bf16 %v3816_v36, %v1093_v37  ;;  %v1166_v10 = vmax.bf16 %v1088_v26, %v3649_v52 }
 0x115   : > { %v3833_v7 = vmax.bf16 %v2670_v30, %v4323_v23  ;;  %v1227_v39 = vmax.bf16 %v1163_v59, %v1087_v49  ;;  %v1228_v43 = vmax.bf16 %v4324_v1, %v1088_v26  ;;  %v3846_v35 = vmax.bf16 %v1167_v4, %v3816_v36 }
 0x116   : > { %v1170_v20 = vmax.bf16 %v3821_v33, %v1094_v54  ;;  %v3849_v12 = vmax.bf16 %v1168_v6, %v3821_v33  ;;  %v3852_v24 = vmax.bf16 %v1169_v19, %v3828_v56  ;;  %v1229_v54 = vmax.bf16 %v1165_v3, %v3741_v31  ;;  %v3860_v13 = vld [vmem:[#allocation2 + $0x130] sm:$0xf] }
 0x117   : > { %v1230_v38 = vmax.bf16 %v1166_v10, %v3748_v11  ;;  %v1367_v53 = vshrl.u32 %v1227_v39, 16  ;;  %v1370_v59 = vshll.u32 %v1227_v39, 16  ;;  %v1376_v50 = vshll.u32 %v1228_v43, 16  ;;  %v3864_v11 = vld [vmem:[#allocation2 + $0x134] sm:$0x1] }
 0x118   : > { %v3855_v37 = vmax.bf16 %v1170_v20, %v3833_v7  ;;  %v2515_v52 = vrot.slane %v1227_v39, 9  ;;  %v1887_v58 = vrot.slane %v1228_v43, 5  ;;  %v1395_v27 = vshrl.u32 %v3846_v35, 16  ;;  %v3866_v30 = vld [vmem:[#allocation2 + $0x180] sm:$0xf] }
 0x119   : > { %v1369_v17 = vrot.slane %v1367_v53, 4  ;;  %v1372_v28 = vrot.slane %v1370_v59, 5  ;;  %v1381_v18 = vshrl.u32 %v1229_v54, 16  ;;  %v1384_v29 = vshll.u32 %v1229_v54, 16  ;;  %v3868_v23 = vld [vmem:[#allocation2 + $0x184] sm:$0x1] }
 0x11a   : > { %v1378_v46 = vrot.slane %v1376_v50, 5  ;;  %v1390_v49 = vshll.u32 %v1230_v38, 16  ;;  %v1888_v31 = vsel %vm3244_vm11, %v2515_v52, %v1887_v58  ;;  %v2516_v26 = vrot.slane %v1229_v54, 9 }
 0x11b   : > { %v1373_v32 = vor.u32 %v1372_v28, %v1369_v17  ;;  %v1383_v44 = vrot.slane %v1381_v18, 4  ;;  %v1386_v0 = vrot.slane %v1384_v29, 5  ;;  %v1891_v14 = vrot.slane %v1230_v38, 5 }
 0x11c   : > { %v1392_v40 = vrot.slane %v1390_v49, 5  ;;  %v1047_v4 = vmax.bf16 %v3860_v13, %v3805_v5  ;;  %v1048_v6 = vmax.bf16 %v3864_v11, %v3807_v9  ;;  %v1397_v19 = vrot.slane %v1395_v27, 4 }
 0x11d   : > { %v1374_v20 = vrot.slane %v1373_v32, 4  ;;  %v1387_v3 = vor.u32 %v1386_v0, %v1383_v44  ;;  %v1892_v10 = vsel %vm3244_vm11, %v2516_v26, %v1891_v14  ;;  %v1398_v1 = vshll.u32 %v3846_v35, 16 }
 0x11e   : > { %v1127_v43 = vmax.bf16 %v1047_v4, %v3866_v30  ;;  %v1128_v38 = vmax.bf16 %v1048_v6, %v3868_v23  ;;  %v1404_v53 = vshll.u32 %v3849_v12, 16  ;;  %v1409_v59 = vshrl.u32 %v3852_v24, 16 }
 0x11f   : > { %v1379_v50 = vsel %vm3258_vm12, %v1374_v20, %v1378_v46  ;;  %v1388_v52 = vrot.slane %v1387_v3, 4  ;;  %v1400_v58 = vrot.slane %v1398_v1, 5  ;;  %v1412_v27 = vshll.u32 %v3852_v24, 16 }
 0x120   : > { %v1768_v17 = vmax.bf16 %v1379_v50, %v1227_v39  ;;  %v1197_v28 = vmax.bf16 %v1127_v43, %v3699_v55  ;;  %v1198_v18 = vmax.bf16 %v1128_v38, %v3702_v41  ;;  %v4325_v29 = vmax.bf16 %v3699_v55, %v3689_v62 }
 0x121   : > { %v1393_v26 = vsel %vm3258_vm12, %v1388_v52, %v1392_v40  ;;  %v4326_v32 = vmax.bf16 %v3702_v41, %v3692_v57  ;;  %v1401_v44 = vor.u32 %v1400_v58, %v1397_v19  ;;  %v1406_v0 = vrot.slane %v1404_v53, 5 }
 0x122   : > { %v1259_v49 = vmax.bf16 %v4325_v29, %v1127_v43  ;;  %v1769_v14 = vmax.bf16 %v1393_v26, %v1229_v54  ;;  %v2027_v4 = vmax.bf16 %v1888_v31, %v1768_v17  ;;  %v1261_v39 = vmax.bf16 %v1197_v28, %v3777_v61 }
 0x123   : > { %v1260_v46 = vmax.bf16 %v4326_v32, %v1128_v38  ;;  %v1262_v6 = vmax.bf16 %v1198_v18, %v3780_v8  ;;  %v1402_v17 = vrot.slane %v1401_v44, 4  ;;  %v1411_v28 = vrot.slane %v1409_v59, 4 }
 0x124   : > { %v1591_v20 = vshrl.u32 %v1259_v49, 16  ;;  %v1594_v3 = vshll.u32 %v1259_v49, 16  ;;  %v2531_v55 = vrot.slane %v1259_v49, 9  ;;  %v2028_v62 = vmax.bf16 %v1892_v10, %v1769_v14 }
 0x125   : > { %v1600_v1 = vshll.u32 %v1260_v46, 16  ;;  %v1605_v43 = vshrl.u32 %v1261_v39, 16  ;;  %v1608_v50 = vshll.u32 %v1261_v39, 16  ;;  %v1614_v40 = vshll.u32 %v1262_v6, 16 }
 0x126   : > { %v1593_v52 = vrot.slane %v1591_v20, 4  ;;  %v1596_v29 = vrot.slane %v1594_v3, 5  ;;  %v1951_v41 = vrot.slane %v1260_v46, 5  ;;  %v2545_v19 = vcombine.low %v2027_v4, %v2028_v62 }
 0x127   : > { %v1602_v57 = vrot.slane %v1600_v1, 5  ;;  %v1607_v38 = vrot.slane %v1605_v43, 4  ;;  %v1610_v54 = vrot.slane %v1608_v50, 5  ;;  %v1616_v31 = vrot.slane %v1614_v40, 5 }
 0x128   : > { %v1597_v53 = vor.u32 %v1596_v29, %v1593_v52  ;;  %v1952_v61 = vsel %vm3244_vm11, %v2531_v55, %v1951_v41  ;;  %v2532_v8 = vrot.slane %v1261_v39, 9  ;;  %v1955_v58 = vrot.slane %v1262_v6, 5  ;;  %2602 = vmatmul.mubr.msk.bf16.gmra.mrb[4].mxu0 %vm2141_vm13, %v2545_v19  ;;  %v4327_v52 = vld [vmem:[#allocation15_spill] sm:$0xff]  ;;  %v4328_v41 = vld [vmem:[#allocation16_spill] sm:$0xff] }
 0x129   : > { %v1611_v10 = vor.u32 %v1610_v54, %v1607_v38  ;;  %v1414_v18 = vrot.slane %v1412_v27, 5  ;;  %v1418_v46 = vshll.u32 %v3855_v37, 16  ;;  %v2517_v14 = vrot.slane %v3846_v35, 9 }
 0x12a   : > { %v1598_v26 = vrot.slane %v1597_v53, 4  ;;  %v1956_v32 = vsel %vm3244_vm11, %v2532_v8, %v1955_v58  ;;  %v1407_v20 = vsel %vm3258_vm12, %v1402_v17, %v1406_v0  ;;  %v1895_v6 = vrot.slane %v3849_v12, 5  ;;  %v4330_v8 = vld [vmem:[#allocation18_spill] sm:$0xff]  ;;  %v2672_v17 = vld [vmem:[#allocation2 + $0xc0] sm:$0xf] }
 0x12b   : > { %v1612_v4 = vrot.slane %v1611_v10, 4  ;;  %v1415_v3 = vor.u32 %v1414_v18, %v1411_v28  ;;  %v1420_v59 = vrot.slane %v1418_v46, 5  ;;  %v1770_v27 = vmax.bf16 %v1407_v20, %v3846_v35  ;;  %v2671_v10 = vld [vmem:[#allocation2 + $0x70] sm:$0xf]  ;;  %v2674_v46 = vld [vmem:[#allocation2 + $0xc4] sm:$0x1] }
 0x12c   : > { %v1603_v44 = vsel %vm3258_vm12, %v1598_v26, %v1602_v57  ;;  %v2518_v1 = vrot.slane %v3852_v24, 9  ;;  %v1896_v50 = vsel %vm3244_vm11, %v2517_v14, %v1895_v6  ;;  %v1899_v40 = vrot.slane %v3855_v37, 5  ;;  %v4331_v26 = vld [vmem:[#allocation19_spill] sm:$0xff] }
 0x12d   : > { %v1617_v55 = vsel %vm3258_vm12, %v1612_v4, %v1616_v31  ;;  %v1784_v62 = vmax.bf16 %v1603_v44, %v1259_v49  ;;  %v1416_v43 = vrot.slane %v1415_v3, 4  ;;  %v2029_v12 = vmax.bf16 %v1896_v50, %v1770_v27 }
 0x12e   : > { %v1785_v0 = vmax.bf16 %v1617_v55, %v1261_v39  ;;  %v1199_v29 = vmax.bf16 %v3346_v25, %v4327_v52  ;;  %v1200_v19 = vmax.bf16 %v3348_v2, %v4328_v41  ;;  %v1201_v49 = vmax.bf16 %v3350_v45, %v3346_v25  ;;  %v4329_v39 = vld [vmem:[#allocation17_spill] sm:$0xff] }
 0x12f   : > { %v2043_v57 = vmax.bf16 %v1952_v61, %v1784_v62  ;;  %v1421_v35 = vsel %vm3258_vm12, %v1416_v43, %v1420_v59  ;;  %v1900_v37 = vsel %vm3244_vm11, %v2518_v1, %v1899_v40  ;;  %v1202_v31 = vmax.bf16 %v4329_v39, %v3348_v2  ;;  %v2676_v41 = vld [vmem:[#allocation2 + $0xc8] sm:$0xf] }
 0x130   : > { %v2044_v38 = vmax.bf16 %v1956_v32, %v1785_v0  ;;  %v1771_v54 = vmax.bf16 %v1421_v35, %v3852_v24  ;;  %v1263_v53 = vmax.bf16 %v1199_v29, %v3350_v45  ;;  %v1264_v61 = vmax.bf16 %v1200_v19, %v4329_v39  ;;  %v2673_v24 = vld [vmem:[#allocation2 + $0x74] sm:$0x1]  ;;  %v2675_v35 = vld [vmem:[#allocation2 + $0x78] sm:$0xf] }
 0x131   : > { %v1265_v58 = vmax.bf16 %v1201_v49, %v4330_v8  ;;  %v1019_v28 = vmax.bf16 %v2672_v17, %v2671_v10  ;;  %v1266_v32 = vmax.bf16 %v1202_v31, %v4331_v26  ;;  %v1020_v14 = vmax.bf16 %v2674_v46, %v2673_v24  ;;  %v2677_v49 = vld [vmem:[#allocation2 + $0x7c] sm:$0x1]  ;;  %v4332_v31 = vld [vmem:[#allocation20_spill] sm:$0xff]  ;;  %v4333_v17 = vld [vmem:[#allocation21_spill] sm:$0xff] }
 0x132   : > { %v2553_v18 = vcombine.low %v2043_v57, %v2044_v38  ;;  %v2030_v25 = vmax.bf16 %v1900_v37, %v1771_v54  ;;  %v1619_v4 = vshrl.u32 %v1263_v53, 16  ;;  %v1622_v20 = vshll.u32 %v1263_v53, 16  ;;  %v4335_v46 = vld [vmem:[#allocation23_spill] sm:$0xff] }
 0x133   : > { %v1628_v3 = vshll.u32 %v1264_v61, 16  ;;  %v1633_v2 = vshrl.u32 %v1265_v58, 16  ;;  %v1636_v44 = vshll.u32 %v1265_v58, 16  ;;  %v1642_v59 = vshll.u32 %v1266_v32, 16 }
 0x134   : > { %2618 = vmatmul.mubr.msk.bf16.gmra.mrb[4].mxu1 %vm2141_vm13, %v2553_v18  ;;  %v2546_v6 = vcombine.low %v2029_v12, %v2030_v25  ;;  %v2533_v27 = vrot.slane %v1263_v53, 9  ;;  %v1621_v1 = vrot.slane %v1619_v4, 4  ;;  %v1624_v55 = vrot.slane %v1622_v20, 5  ;;  %v2678_v12 = vld [vmem:[#allocation2 + $0xcc] sm:$0x1] }
 0x135   : > { %v1630_v62 = vrot.slane %v1628_v3, 5  ;;  %v1635_v43 = vrot.slane %v1633_v2, 4  ;;  %v1638_v50 = vrot.slane %v1636_v44, 5  ;;  %v1644_v0 = vrot.slane %v1642_v59, 5  ;;  %v2679_v44 = vld [vmem:[#allocation2 + $0x110] sm:$0xf] }
 0x136   : > { %2605 = vmatprep.mubr.msk.bf16.mxu0 %vm2141_vm13, %v2546_v6  ;;  %v1959_v40 = vrot.slane %v1264_v61, 5  ;;  %v2534_v52 = vrot.slane %v1265_v58, 9  ;;  %v1625_v29 = vor.u32 %v1624_v55, %v1621_v1  ;;  %v1963_v57 = vrot.slane %v1266_v32, 5  ;;  %v4334_v32 = vld [vmem:[#allocation22_spill] sm:$0xff]  ;;  %v4336_v59 = vld [vmem:[#allocation24_spill] sm:$0xff]  ;;  %v4337_v55 = vld [vmem:[#allocation25_spill] sm:$0xff] }
 0x137   : > { %v1021_v19 = vmax.bf16 %v2676_v41, %v2675_v35  ;;  %v1022_v38 = vmax.bf16 %v2678_v12, %v2677_v49  ;;  %v1639_v54 = vor.u32 %v1638_v50, %v1635_v43  ;;  %v3937_v10 = vmax.bf16 %v1019_v28, %v4332_v31  ;;  %v2680_v1 = vld [vmem:[#allocation2 + $0x114] sm:$0x1] }
 0x138   : > { %v1960_v37 = vsel %vm3244_vm11, %v2533_v27, %v1959_v40  ;;  %v3940_v18 = vmax.bf16 %v1020_v14, %v4333_v17  ;;  %v1626_v61 = vrot.slane %v1625_v29, 4  ;;  %v1964_v25 = vsel %vm3244_vm11, %v2534_v52, %v1963_v57  ;;  %v4338_v29 = vld [vmem:[#allocation26_spill] sm:$0xff] }
 0x139   : > { %v3945_v24 = vmax.bf16 %v1021_v19, %v4334_v32  ;;  %v3948_v4 = vmax.bf16 %v1022_v38, %v4335_v46  ;;  %v1640_v20 = vrot.slane %v1639_v54, 4  ;;  %v1171_v3 = vmax.bf16 %v3828_v56, %v3816_v36  ;;  %v979_v54 = vld [vmem:[#allocation2 + $0x1b0] sm:$0xf]  ;;  %v980_v32 = vld [vmem:[#allocation2 + $0x1b4] sm:$0x1] }
 0x13a   : > { %v1172_v28 = vmax.bf16 %v3833_v7, %v3821_v33  ;;  %v1173_v14 = vmax.bf16 %v3937_v10, %v3828_v56  ;;  %v1631_v2 = vsel %vm3258_vm12, %v1626_v61, %v1630_v62  ;;  %v1174_v6 = vmax.bf16 %v3940_v18, %v3833_v7  ;;  %v2681_v7 = vld [vmem:[#allocation2 + $0x118] sm:$0xf] }
 0x13b   : > { %v1059_v27 = vmax.bf16 %v2679_v44, %v4336_v59  ;;  %v1060_v43 = vmax.bf16 %v2680_v1, %v4337_v55  ;;  %v1645_v36 = vsel %vm3258_vm12, %v1640_v20, %v1644_v0  ;;  %v1786_v50 = vmax.bf16 %v1631_v2, %v1263_v53  ;;  %v982_v59 = vld [vmem:[#allocation2 + $0x1bc] sm:$0x1]  ;;  %v2683_v55 = vld [vmem:[#allocation2 + $0x16c] sm:$0x1] }
 0x13c   : > { %v1235_v33 = vmax.bf16 %v1171_v3, %v3937_v10  ;;  %v1236_v56 = vmax.bf16 %v1172_v28, %v3940_v18  ;;  %v1787_v40 = vmax.bf16 %v1645_v36, %v1265_v58  ;;  %v1237_v62 = vmax.bf16 %v1173_v14, %v3945_v24  ;;  %v981_v14 = vld [vmem:[#allocation2 + $0x1b8] sm:$0xf]  ;;  %v2682_v1 = vld [vmem:[#allocation2 + $0x11c] sm:$0x1] }
 0x13d   : > { %v1238_v52 = vmax.bf16 %v1174_v6, %v3948_v4  ;;  %v1061_v57 = vmax.bf16 %v2681_v7, %v4338_v29  ;;  %v2045_v35 = vmax.bf16 %v1960_v37, %v1786_v50  ;;  %v1062_v36 = vmax.bf16 %v2683_v55, %v2682_v1 }
 0x13e   : > { %v1423_v41 = vshrl.u32 %v1235_v33, 16  ;;  %v1426_v19 = vshll.u32 %v1235_v33, 16  ;;  %v1432_v49 = vshll.u32 %v1236_v56, 16  ;;  %v2046_v12 = vmax.bf16 %v1964_v25, %v1787_v40 }
 0x13f   : > { %v1437_v38 = vshrl.u32 %v1237_v62, 16  ;;  %v1440_v0 = vshll.u32 %v1237_v62, 16  ;;  %v1446_v53 = vshll.u32 %v1238_v52, 16  ;;  %v2519_v58 = vrot.slane %v1235_v33, 9 }
 0x140   : > { %v1425_v31 = vrot.slane %v1423_v41, 4  ;;  %v1428_v17 = vrot.slane %v1426_v19, 5  ;;  %v1434_v61 = vrot.slane %v1432_v49, 5  ;;  %v2554_v46 = vcombine.low %v2045_v35, %v2046_v12 }
 0x141   : > { %v1439_v20 = vrot.slane %v1437_v38, 4  ;;  %v1442_v3 = vrot.slane %v1440_v0, 5  ;;  %v1448_v28 = vrot.slane %v1446_v53, 5  ;;  %v1903_v37 = vrot.slane %v1236_v56, 5  ;;  %v4340_v38 = vld [vmem:[#allocation31_spill] sm:$0xff] }
 0x142   : > { %v1429_v2 = vor.u32 %v1428_v17, %v1425_v31  ;;  %v2520_v6 = vrot.slane %v1237_v62, 9  ;;  %v1907_v44 = vrot.slane %v1238_v52, 5  ;;  %2621 = vmatprep.mubr.msk.bf16.mxu1 %vm2141_vm13, %v2554_v46  ;;  %v3970_v50 = vmax.bf16 %v1059_v27, %v979_v54 }
 0x143   : > { %v1443_v25 = vor.u32 %v1442_v3, %v1439_v20  ;;  %v3972_v40 = vmax.bf16 %v1060_v43, %v980_v32  ;;  %v1904_v29 = vsel %vm3244_vm11, %v2519_v58, %v1903_v37  ;;  %v3978_v35 = vmax.bf16 %v1061_v57, %v981_v14  ;;  %v4339_v57 = vld [vmem:[#allocation27_spill] sm:$0xff]  ;;  %v4342_v58 = vld [vmem:[#allocation32_spill] sm:$0xff] }
 0x144   : > { %v1430_v7 = vrot.slane %v1429_v2, 4  ;;  %v1908_v56 = vsel %vm3244_vm11, %v2520_v6, %v1907_v44  ;;  %v3980_v41 = vmax.bf16 %v1062_v36, %v982_v59  ;;  %v1203_v19 = vmax.bf16 %v4330_v8, %v3350_v45 }
 0x145   : > { %v1444_v52 = vrot.slane %v1443_v25, 4  ;;  %v1204_v27 = vmax.bf16 %v4331_v26, %v4329_v39  ;;  %v1205_v49 = vmax.bf16 %v3970_v50, %v4330_v8  ;;  %v1206_v12 = vmax.bf16 %v3972_v40, %v4331_v26  ;;  %v4341_v8 = vld [vmem:[#allocation28_spill] sm:$0xff] }
 0x146   : > { %v1435_v43 = vsel %vm3258_vm12, %v1430_v7, %v1434_v61  ;;  %v1023_v0 = vmax.bf16 %v4340_v38, %v4339_v57  ;;  %v1267_v45 = vmax.bf16 %v1203_v19, %v3970_v50  ;;  %v1024_v32 = vmax.bf16 %v4342_v58, %v4341_v8  ;;  %v4347_v38 = vld [vmem:[#allocation35_spill] sm:$0xff] }
 0x147   : > { %v1449_v53 = vsel %vm3258_vm12, %v1444_v52, %v1448_v28  ;;  %v1772_v54 = vmax.bf16 %v1435_v43, %v1235_v33  ;;  %v1268_v39 = vmax.bf16 %v1204_v27, %v3972_v40  ;;  %v1269_v17 = vmax.bf16 %v1205_v49, %v3978_v35  ;;  %v4343_v27 = vld [vmem:[#allocation29_spill] sm:$0xff]  ;;  %v4345_v49 = vld [vmem:[#allocation30_spill] sm:$0xff] }
 0x148   : > { %v1773_v31 = vmax.bf16 %v1449_v53, %v1237_v62  ;;  %v1270_v61 = vmax.bf16 %v1206_v12, %v3980_v41  ;;  %v1647_v46 = vshrl.u32 %v1267_v45, 16  ;;  %v1650_v20 = vshll.u32 %v1267_v45, 16  ;;  %v4346_v12 = vld [vmem:[#allocation34_spill] sm:$0xff] }
 0x149   : > { %v2031_v26 = vmax.bf16 %v1904_v29, %v1772_v54  ;;  %v1656_v3 = vshll.u32 %v1268_v39, 16  ;;  %v1661_v2 = vshrl.u32 %v1269_v17, 16  ;;  %v1664_v28 = vshll.u32 %v1269_v17, 16 }
 0x14a   : > { %v2032_v14 = vmax.bf16 %v1908_v56, %v1773_v31  ;;  %v1670_v33 = vshll.u32 %v1270_v61, 16  ;;  %v1649_v37 = vrot.slane %v1647_v46, 4  ;;  %v1652_v6 = vrot.slane %v1650_v20, 5  ;;  %v4344_v56 = vld [vmem:[#allocation33_spill] sm:$0xff]  ;;  %v4350_v20 = vld [vmem:[#allocation38_spill] sm:$0xff] }
 0x14b   : > { %v1658_v44 = vrot.slane %v1656_v3, 5  ;;  %v2535_v59 = vrot.slane %v1267_v45, 9  ;;  %v1663_v25 = vrot.slane %v1661_v2, 4  ;;  %v1666_v1 = vrot.slane %v1664_v28, 5 }
 0x14c   : > { %v2547_v62 = vcombine.low %v2031_v26, %v2032_v14  ;;  %v1672_v55 = vrot.slane %v1670_v33, 5  ;;  %v1653_v36 = vor.u32 %v1652_v6, %v1649_v37  ;;  %v1967_v7 = vrot.slane %v1268_v39, 5  ;;  %v4349_v26 = vld [vmem:[#allocation37_spill] sm:$0xff] }
 0x14d   : > { %v2536_v52 = vrot.slane %v1269_v17, 9  ;;  %v1971_v19 = vrot.slane %v1270_v61, 5  ;;  %v1667_v29 = vor.u32 %v1666_v1, %v1663_v25  ;;  %v1025_v43 = vmax.bf16 %v4344_v56, %v4343_v27  ;;  %v4348_v61 = vld [vmem:[#allocation36_spill] sm:$0xff] }
 0x14e   : > { %2606 = vmatmul.mubr.msk.bf16.gmra.mrb[8].mxu0 %vm2141_vm13, %v2547_v62  ;;  %v1026_v57 = vmax.bf16 %v4346_v12, %v4345_v49  ;;  %v4008_v53 = vmax.bf16 %v1023_v0, %v4347_v38  ;;  %v1654_v54 = vrot.slane %v1653_v36, 4  ;;  %v1968_v31 = vsel %vm3244_vm11, %v2535_v59, %v1967_v7 }
 0x14f   : > { %v1972_v39 = vsel %vm3244_vm11, %v2536_v52, %v1971_v19  ;;  %v4015_v8 = vmax.bf16 %v1024_v32, %v4348_v61  ;;  %v1668_v58 = vrot.slane %v1667_v29, 4  ;;  %v4018_v46 = vmax.bf16 %v1025_v43, %v4349_v26 }
 0x150   : > { %v4021_v3 = vmax.bf16 %v1026_v57, %v4350_v20  ;;  %v1175_v0 = vmax.bf16 %v3945_v24, %v3937_v10  ;;  %v1659_v14 = vsel %vm3258_vm12, %v1654_v54, %v1658_v44  ;;  %v1176_v2 = vmax.bf16 %v3948_v4, %v3940_v18  ;;  %v4351_v10 = vld [vmem:[#allocation39_spill] sm:$0xff]  ;;  %v983_v57 = vld [vmem:[#allocation2 + $0x1c0] sm:$0xf] }
 0x151   : > { %v1177_v32 = vmax.bf16 %v4008_v53, %v3945_v24  ;;  %v1178_v28 = vmax.bf16 %v4015_v8, %v3948_v4  ;;  %v1673_v33 = vsel %vm3258_vm12, %v1668_v58, %v1672_v55  ;;  %v1788_v37 = vmax.bf16 %v1659_v14, %v1267_v45 }
 0x152   : > { %v1239_v6 = vmax.bf16 %v1175_v0, %v4008_v53  ;;  %v1063_v59 = vmax.bf16 %v4351_v10, %v4347_v38  ;;  %v1789_v62 = vmax.bf16 %v1673_v33, %v1269_v17  ;;  %v1240_v44 = vmax.bf16 %v1176_v2, %v4015_v8  ;;  %v984_v0 = vld [vmem:[#allocation2 + $0x1c4] sm:$0x1] }
 0x153   : > { %v1241_v18 = vmax.bf16 %v1177_v32, %v4018_v46  ;;  %v1242_v25 = vmax.bf16 %v1178_v28, %v4021_v3  ;;  %v2047_v24 = vmax.bf16 %v1968_v31, %v1788_v37  ;;  %v986_v32 = vld [vmem:[#allocation2 + $0x1cc] sm:$0x1]  ;;  %v4352_v28 = vld [vmem:[#allocation40_spill] sm:$0xff] }
 0x154   : > { %v1451_v1 = vshrl.u32 %v1239_v6, 16  ;;  %v1454_v36 = vshll.u32 %v1239_v6, 16  ;;  %v2521_v4 = vrot.slane %v1239_v6, 9  ;;  %v2048_v7 = vmax.bf16 %v1972_v39, %v1789_v62  ;;  %v985_v39 = vld [vmem:[#allocation2 + $0x1c8] sm:$0xf] }
 0x155   : > { %v1460_v52 = vshll.u32 %v1240_v44, 16  ;;  %v1465_v55 = vshrl.u32 %v1241_v18, 16  ;;  %v1468_v45 = vshll.u32 %v1241_v18, 16  ;;  %v1474_v27 = vshll.u32 %v1242_v25, 16  ;;  %v4353_v37 = vld [vmem:[#allocation41_spill] sm:$0xff] }
 0x156   : > { %v1453_v19 = vrot.slane %v1451_v1, 4  ;;  %v1456_v29 = vrot.slane %v1454_v36, 5  ;;  %v1911_v56 = vrot.slane %v1240_v44, 5  ;;  %v2555_v43 = vcombine.low %v2047_v24, %v2048_v7  ;;  %v4354_v44 = vld [vmem:[#allocation42_spill] sm:$0xff] }
 0x157   : > { %v1462_v17 = vrot.slane %v1460_v52, 5  ;;  %v1467_v49 = vrot.slane %v1465_v55, 4  ;;  %v1470_v12 = vrot.slane %v1468_v45, 5  ;;  %v1476_v54 = vrot.slane %v1474_v27, 5 }
 0x158   : > { %v1457_v38 = vor.u32 %v1456_v29, %v1453_v19  ;;  %v1912_v31 = vsel %vm3244_vm11, %v2521_v4, %v1911_v56  ;;  %v2522_v58 = vrot.slane %v1241_v18, 9  ;;  %2622 = vmatmul.mubr.msk.bf16.gmra.mrb[8].mxu1 %vm2141_vm13, %v2555_v43  ;;  %v1915_v2 = vrot.slane %v1242_v25, 5 }
 0x159   : > { %v1471_v14 = vor.u32 %v1470_v12, %v1467_v49  ;;  %v1064_v33 = vmax.bf16 %v4352_v28, %v4348_v61  ;;  %v1065_v10 = vmax.bf16 %v4353_v37, %v4349_v26  ;;  %v1066_v24 = vmax.bf16 %v4354_v44, %v4350_v20 }
 0x15a   : > { %v1458_v62 = vrot.slane %v1457_v38, 4  ;;  %v4050_v1 = vmax.bf16 %v1063_v59, %v983_v57  ;;  %v1207_v36 = vmax.bf16 %v3978_v35, %v3970_v50  ;;  %v1916_v25 = vsel %vm3244_vm11, %v2522_v58, %v1915_v2 }
 0x15b   : > { %v1472_v4 = vrot.slane %v1471_v14, 4  ;;  %v4056_v7 = vmax.bf16 %v1064_v33, %v984_v0  ;;  %v4058_v52 = vmax.bf16 %v1065_v10, %v985_v39  ;;  %v4062_v26 = vmax.bf16 %v1066_v24, %v986_v32  ;;  %v2684_v10 = vld [vmem:[#allocation2 + $0x98] sm:$0xf] }
 0x15c   : > { %v1463_v61 = vsel %vm3258_vm12, %v1458_v62, %v1462_v17  ;;  %v1208_v20 = vmax.bf16 %v3980_v41, %v3972_v40  ;;  %v1209_v59 = vmax.bf16 %v4050_v1, %v3978_v35  ;;  %v1271_v19 = vmax.bf16 %v1207_v36, %v4050_v1 }
 0x15d   : > { %v1477_v50 = vsel %vm3258_vm12, %v1472_v4, %v1476_v54  ;;  %v1774_v55 = vmax.bf16 %v1463_v61, %v1239_v6  ;;  %v1210_v45 = vmax.bf16 %v4056_v7, %v3980_v41  ;;  %v1027_v40 = vmax.bf16 %v3805_v5, %v3774_v51 }
 0x15e   : > { %v1775_v29 = vmax.bf16 %v1477_v50, %v1241_v18  ;;  %v1272_v27 = vmax.bf16 %v1208_v20, %v4056_v7  ;;  %v1273_v56 = vmax.bf16 %v1209_v59, %v4058_v52  ;;  %v1675_v17 = vshrl.u32 %v1271_v19, 16 }
 0x15f   : > { %v2033_v43 = vmax.bf16 %v1912_v31, %v1774_v55  ;;  %v1274_v35 = vmax.bf16 %v1210_v45, %v4062_v26  ;;  %v1678_v49 = vshll.u32 %v1271_v19, 16  ;;  %v2537_v18 = vrot.slane %v1271_v19, 9 }
 0x160   : > { %v2034_v12 = vmax.bf16 %v1916_v25, %v1775_v29  ;;  %v1684_v6 = vshll.u32 %v1272_v27, 16  ;;  %v1689_v57 = vshrl.u32 %v1273_v56, 16  ;;  %v1692_v38 = vshll.u32 %v1273_v56, 16 }
 0x161   : > { %v1677_v41 = vrot.slane %v1675_v17, 4  ;;  %v1680_v54 = vrot.slane %v1678_v49, 5  ;;  %v1698_v58 = vshll.u32 %v1274_v35, 16  ;;  %v1975_v51 = vrot.slane %v1272_v27, 5 }
 0x162   : > { %v2548_v0 = vcombine.low %v2033_v43, %v2034_v12  ;;  %v1686_v39 = vrot.slane %v1684_v6, 5  ;;  %v1691_v14 = vrot.slane %v1689_v57, 4  ;;  %v1694_v2 = vrot.slane %v1692_v38, 5 }
 0x163   : > { %v1681_v32 = vor.u32 %v1680_v54, %v1677_v41  ;;  %v1700_v28 = vrot.slane %v1698_v58, 5  ;;  %v2538_v5 = vrot.slane %v1273_v56, 9  ;;  %v1979_v33 = vrot.slane %v1274_v35, 5  ;;  %v987_v41 = vld [vmem:[#allocation2 + $0x1d0] sm:$0xf] }
 0x164   : > { %2609 = vmatprep.mubr.msk.bf16.mxu0 %vm2141_vm13, %v2548_v0  ;;  %v1695_v31 = vor.u32 %v1694_v2, %v1691_v14  ;;  %v1028_v37 = vmax.bf16 %v3807_v9, %v3787_v48  ;;  %v1029_v62 = vmax.bf16 %v2684_v10, %v3732_v34  ;;  %v1976_v24 = vsel %vm3244_vm11, %v2537_v18, %v1975_v51  ;;  %v989_v18 = vld [vmem:[#allocation2 + $0x1d8] sm:$0xf]  ;;  %v990_v51 = vld [vmem:[#allocation2 + $0x1dc] sm:$0x1] }
 0x165   : > { %v1682_v44 = vrot.slane %v1681_v32, 4  ;;  %v1030_v36 = vmax.bf16 %v3734_v22, %v3721_v47  ;;  %v1107_v4 = vmax.bf16 %v1027_v40, %v3860_v13  ;;  %v1980_v61 = vsel %vm3244_vm11, %v2538_v5, %v1979_v33 }
 0x166   : > { %v1696_v25 = vrot.slane %v1695_v31, 4  ;;  %v1108_v20 = vmax.bf16 %v1028_v37, %v3864_v11  ;;  %v1109_v48 = vmax.bf16 %v1029_v62, %v3754_v63  ;;  %v1179_v59 = vmax.bf16 %v4018_v46, %v4008_v53 }
 0x167   : > { %v1687_v34 = vsel %vm3258_vm12, %v1682_v44, %v1686_v39  ;;  %v1110_v9 = vmax.bf16 %v1030_v36, %v3756_v42  ;;  %v1180_v47 = vmax.bf16 %v4021_v3, %v4015_v8  ;;  %v1181_v55 = vmax.bf16 %v1107_v4, %v4018_v46 }
 0x168   : > { %v1701_v22 = vsel %vm3258_vm12, %v1696_v25, %v1700_v28  ;;  %v1790_v50 = vmax.bf16 %v1687_v34, %v1271_v19  ;;  %v1182_v45 = vmax.bf16 %v1108_v20, %v4021_v3  ;;  %v1243_v27 = vmax.bf16 %v1179_v59, %v1107_v4 }
 0x169   : > { %v1791_v29 = vmax.bf16 %v1701_v22, %v1273_v56  ;;  %v1244_v40 = vmax.bf16 %v1180_v47, %v1108_v20  ;;  %v1245_v35 = vmax.bf16 %v1181_v55, %v1109_v48  ;;  %v1067_v53 = vmax.bf16 %v3866_v30, %v3860_v13  ;;  %v988_v30 = vld [vmem:[#allocation2 + $0x1d4] sm:$0x1] }
 0x16a   : > { %v2049_v43 = vmax.bf16 %v1976_v24, %v1790_v50  ;;  %v1246_v17 = vmax.bf16 %v1182_v45, %v1110_v9  ;;  %v1479_v12 = vshrl.u32 %v1243_v27, 16  ;;  %v1482_v8 = vshll.u32 %v1243_v27, 16 }
 0x16b   : > { %v2050_v49 = vmax.bf16 %v1980_v61, %v1791_v29  ;;  %v1488_v6 = vshll.u32 %v1244_v40, 16  ;;  %v1493_v57 = vshrl.u32 %v1245_v35, 16  ;;  %v1496_v38 = vshll.u32 %v1245_v35, 16 }
 0x16c   : > { %v1502_v19 = vshll.u32 %v1246_v17, 16  ;;  %v1068_v46 = vmax.bf16 %v3868_v23, %v3864_v11  ;;  %v1481_v56 = vrot.slane %v1479_v12, 4  ;;  %v1484_v54 = vrot.slane %v1482_v8, 5 }
 0x16d   : > { %v2556_v3 = vcombine.low %v2049_v43, %v2050_v49  ;;  %v2523_v58 = vrot.slane %v1243_v27, 9  ;;  %v1490_v0 = vrot.slane %v1488_v6, 5  ;;  %v1495_v39 = vrot.slane %v1493_v57, 4 }
 0x16e   : > { %v1498_v14 = vrot.slane %v1496_v38, 5  ;;  %v1919_v13 = vrot.slane %v1244_v40, 5  ;;  %v1485_v2 = vor.u32 %v1484_v54, %v1481_v56  ;;  %v2524_v32 = vrot.slane %v1245_v35, 9 }
 0x16f   : > { %2625 = vmatprep.mubr.msk.bf16.mxu1 %vm2141_vm13, %v2556_v3  ;;  %v1923_v28 = vrot.slane %v1246_v17, 5  ;;  %v1069_v5 = vmax.bf16 %v3764_v16, %v3754_v63  ;;  %v1504_v23 = vrot.slane %v1502_v19, 5  ;;  %v1070_v31 = vmax.bf16 %v3766_v21, %v3756_v42 }
 0x170   : > { %v1499_v11 = vor.u32 %v1498_v14, %v1495_v39  ;;  %v1147_v33 = vmax.bf16 %v1067_v53, %v987_v41  ;;  %v1486_v37 = vrot.slane %v1485_v2, 4  ;;  %v1920_v10 = vsel %vm3244_vm11, %v2523_v58, %v1919_v13  ;;  %v4135_v13 = vld [vmem:[#allocation5] ss:$0 sm:$0xff] }
 0x171   : > { %v1148_v62 = vmax.bf16 %v1068_v46, %v988_v30  ;;  %v1149_v44 = vmax.bf16 %v1069_v5, %v989_v18  ;;  %v1150_v36 = vmax.bf16 %v1070_v31, %v990_v51  ;;  %v1211_v4 = vmax.bf16 %v4058_v52, %v4050_v1 }
 0x172   : > { %v1500_v24 = vrot.slane %v1499_v11, 4  ;;  %v1212_v63 = vmax.bf16 %v4062_v26, %v4056_v7  ;;  %v1491_v16 = vsel %vm3258_vm12, %v1486_v37, %v1490_v0  ;;  %v1924_v42 = vsel %vm3244_vm11, %v2524_v32, %v1923_v28 }
 0x173   : > { %v1213_v21 = vmax.bf16 %v1147_v33, %v4058_v52  ;;  %v1214_v25 = vmax.bf16 %v1148_v62, %v4062_v26  ;;  %v1776_v20 = vmax.bf16 %v1491_v16, %v1243_v27  ;;  %v1275_v48 = vmax.bf16 %v1211_v4, %v1147_v33 }
 0x174   : > { %v1505_v61 = vsel %vm3258_vm12, %v1500_v24, %v1504_v23  ;;  %v1276_v34 = vmax.bf16 %v1212_v63, %v1148_v62 }
 0x175   : > { %v1777_v1 = vmax.bf16 %v1505_v61, %v1245_v35  ;;  %v1277_v9 = vmax.bf16 %v1213_v21, %v1149_v44  ;;  %v1278_v59 = vmax.bf16 %v1214_v25, %v1150_v36  ;;  %v2035_v7 = vmax.bf16 %v1920_v10, %v1776_v20 }
 0x176   : > { %v1703_v47 = vshrl.u32 %v1275_v48, 16  ;;  %v1706_v22 = vshll.u32 %v1275_v48, 16  ;;  %v1712_v50 = vshll.u32 %v1276_v34, 16  ;;  %v2539_v12 = vrot.slane %v1275_v48, 9 }
 0x177   : > { %v2036_v55 = vmax.bf16 %v1924_v42, %v1777_v1  ;;  %v1717_v45 = vshrl.u32 %v1277_v9, 16  ;;  %v1720_v29 = vshll.u32 %v1277_v9, 16  ;;  %v1726_v40 = vshll.u32 %v1278_v59, 16 }
 0x178   : > { %v1705_v52 = vrot.slane %v1703_v47, 4  ;;  %v1708_v43 = vrot.slane %v1706_v22, 5  ;;  %v1714_v27 = vrot.slane %v1712_v50, 5  ;;  %v1983_v8 = vrot.slane %v1276_v34, 5 }
 0x179   : > { %v2549_v26 = vcombine.low %v2035_v7, %v2036_v55  ;;  %v1719_v17 = vrot.slane %v1717_v45, 4  ;;  %v1722_v53 = vrot.slane %v1720_v29, 5  ;;  %v1728_v6 = vrot.slane %v1726_v40, 5 }
 0x17a   : > { %v1709_v49 = vor.u32 %v1708_v43, %v1705_v52  ;;  %v2540_v57 = vrot.slane %v1277_v9, 9  ;;  %v1987_v38 = vrot.slane %v1278_v59, 5  ;;  %v1984_v3 = vsel %vm3244_vm11, %v2539_v12, %v1983_v8 }
 0x17b   : > { %2610 = vmatmul.mubr.msk.bf16.gmra.mrb[12].mxu0 %vm2141_vm13, %v2549_v26  ;;  %v1723_v35 = vor.u32 %v1722_v53, %v1719_v17 }
 0x17c   : > { %v1710_v19 = vrot.slane %v1709_v49, 4  ;;  %v1988_v58 = vsel %vm3244_vm11, %v2540_v57, %v1987_v38 }
 0x17d   : > { %v1724_v41 = vrot.slane %v1723_v35, 4 }
 0x17e   : > { %v1715_v46 = vsel %vm3258_vm12, %v1710_v19, %v1714_v27 }
 0x17f   : > { %v1729_v56 = vsel %vm3258_vm12, %v1724_v41, %v1728_v6  ;;  %v1792_v54 = vmax.bf16 %v1715_v46, %v1275_v48 }
 0x180   : > { %v1793_v18 = vmax.bf16 %v1729_v56, %v1277_v9 }
 0x181   : > { %v2051_v0 = vmax.bf16 %v1984_v3, %v1792_v54 }
 0x182   : > { %v2052_v39 = vmax.bf16 %v1988_v58, %v1793_v18 }
 0x184   : > { %v2557_v14 = vcombine.low %v2051_v0, %v2052_v39 }
 0x186   : > { %2626 = vmatmul.mubr.msk.bf16.gmra.mrb[12].mxu1 %vm2141_vm13, %v2557_v14 }
 0x1ad   : > { %v2599_v30 = vpop.f32.mrb[0].mxu0 }
 0x1ae   : > { %v2237_v2 = vadd.f32 %v2599_v30, %v4135_v13  ;;  %v2228_v32 = vpop.f32.mrb[1].mxu0 }
 0x1af   : > { %v2229_v15 = vadd.f32 %v4135_v13, %v2228_v32  ;;  %v2600_v60 = vpop.f32.mrb[2].mxu0 }
 0x1b0   : > { %v2357_v28 = vmax.f32 %v2237_v2, 0.0  ;;  %v2240_v51 = vadd.f32 %v2600_v60, %v4135_v13  ;;  %v2231_v5 = vpop.f32.mrb[3].mxu0 }
 0x1b1   : > { %v2355_v11 = vmax.f32 %v2229_v15, 0.0  ;;  %v2232_v23 = vadd.f32 %v4135_v13, %v2231_v5 }
 0x1b2   : > { %2389 = vst [vmem:[%s4142_s23 + $0x10] sm:$0xff] %v2357_v28  ;;  %v2358_v31 = vmax.f32 %v2240_v51, 0.0 }
 0x1b3   : > { %2387 = vst [vmem:[%s4142_s23] sm:$0xff] %v2355_v11  ;;  %v2356_v33 = vmax.f32 %v2232_v23, 0.0 }
 0x1b4   : > { %2390 = vst [vmem:[%s4142_s23 + $0x18] sm:$0xff] %v2358_v31 }
 0x1b5   : > { %2388 = vst [vmem:[%s4142_s23 + $0x8] sm:$0xff] %v2356_v33 }
 0x1ba   : > { %v2615_v37 = vpop.f32.mrb[0].mxu1 }
 0x1bb   : > { %v2301_v10 = vadd.f32 %v2615_v37, %v4135_v13  ;;  %v2292_v62 = vpop.f32.mrb[1].mxu1 }
 0x1bc   : > { %v2293_v44 = vadd.f32 %v4135_v13, %v2292_v62  ;;  %v2616_v24 = vpop.f32.mrb[2].mxu1 }
 0x1bd   : > { %v2373_v36 = vmax.f32 %v2301_v10, 0.0  ;;  %v2304_v4 = vadd.f32 %v2616_v24, %v4135_v13  ;;  %v2295_v63 = vpop.f32.mrb[3].mxu1 }
 0x1be   : > { %v2371_v16 = vmax.f32 %v2293_v44, 0.0  ;;  %v2296_v42 = vadd.f32 %v4135_v13, %v2295_v63 }
 0x1bf   : > { %2405 = vst [vmem:[%s4142_s23 + $0x90] sm:$0xff] %v2373_v36  ;;  %v2374_v21 = vmax.f32 %v2304_v4, 0.0 }
 0x1c0   : > { %2403 = vst [vmem:[%s4142_s23 + $0x80] sm:$0xff] %v2371_v16  ;;  %v2372_v25 = vmax.f32 %v2296_v42, 0.0 }
 0x1c1   : > { %2406 = vst [vmem:[%s4142_s23 + $0x98] sm:$0xff] %v2374_v21 }
 0x1c2   : > { %2404 = vst [vmem:[%s4142_s23 + $0x88] sm:$0xff] %v2372_v25 }
 0x1fb   : > { %v2603_v61 = vpop.f32.mrb[4].mxu0 }
 0x1fc   : > { %v2253_v20 = vadd.f32 %v2603_v61, %v4135_v13  ;;  %v2244_v48 = vpop.f32.mrb[5].mxu0 }
 0x1fd   : > { %v2245_v34 = vadd.f32 %v4135_v13, %v2244_v48  ;;  %v2604_v1 = vpop.f32.mrb[6].mxu0 }
 0x1fe   : > { %v2361_v9 = vmax.f32 %v2253_v20, 0.0  ;;  %v2256_v59 = vadd.f32 %v2604_v1, %v4135_v13  ;;  %v2247_v7 = vpop.f32.mrb[7].mxu0 }
 0x1ff   : > { %v2359_v47 = vmax.f32 %v2245_v34, 0.0  ;;  %v2248_v22 = vadd.f32 %v4135_v13, %v2247_v7 }
 0x200   : > { %2393 = vst [vmem:[%s4142_s23 + $0x30] sm:$0xff] %v2361_v9  ;;  %v2362_v50 = vmax.f32 %v2256_v59, 0.0 }
 0x201   : > { %2391 = vst [vmem:[%s4142_s23 + $0x20] sm:$0xff] %v2359_v47  ;;  %v2360_v55 = vmax.f32 %v2248_v22, 0.0 }
 0x202   : > { %2394 = vst [vmem:[%s4142_s23 + $0x38] sm:$0xff] %v2362_v50 }
 0x203   : > { %2392 = vst [vmem:[%s4142_s23 + $0x28] sm:$0xff] %v2360_v55 }
 0x207   : > { %v2619_v45 = vpop.f32.mrb[4].mxu1 }
 0x208   : > { %v2317_v29 = vadd.f32 %v2619_v45, %v4135_v13  ;;  %v2308_v40 = vpop.f32.mrb[5].mxu1 }
 0x209   : > { %v2309_v52 = vadd.f32 %v4135_v13, %v2308_v40  ;;  %v2620_v43 = vpop.f32.mrb[6].mxu1 }
 0x20a   : > { %v2377_v26 = vmax.f32 %v2317_v29, 0.0  ;;  %v2320_v17 = vadd.f32 %v2620_v43, %v4135_v13  ;;  %v2311_v53 = vpop.f32.mrb[7].mxu1 }
 0x20b   : > { %v2375_v49 = vmax.f32 %v2309_v52, 0.0  ;;  %v2312_v27 = vadd.f32 %v4135_v13, %v2311_v53 }
 0x20c   : > { %2409 = vst [vmem:[%s4142_s23 + $0xb0] sm:$0xff] %v2377_v26  ;;  %v2378_v12 = vmax.f32 %v2320_v17, 0.0 }
 0x20d   : > { %2407 = vst [vmem:[%s4142_s23 + $0xa0] sm:$0xff] %v2375_v49  ;;  %v2376_v8 = vmax.f32 %v2312_v27, 0.0 }
 0x20e   : > { %2410 = vst [vmem:[%s4142_s23 + $0xb8] sm:$0xff] %v2378_v12 }
 0x20f   : > { %2408 = vst [vmem:[%s4142_s23 + $0xa8] sm:$0xff] %v2376_v8 }
 0x221   : > { %v2607_v35 = vpop.f32.mrb[8].mxu0 }
 0x222   : > { %v2269_v6 = vadd.f32 %v2607_v35, %v4135_v13  ;;  %v2260_v57 = vpop.f32.mrb[9].mxu0 }
 0x223   : > { %v2261_v38 = vadd.f32 %v4135_v13, %v2260_v57  ;;  %v2608_v19 = vpop.f32.mrb[10].mxu0 }
 0x224   : > { %v2365_v41 = vmax.f32 %v2269_v6, 0.0  ;;  %v2272_v46 = vadd.f32 %v2608_v19, %v4135_v13  ;;  %v2263_v3 = vpop.f32.mrb[11].mxu0 }
 0x225   : > { %v2363_v56 = vmax.f32 %v2261_v38, 0.0  ;;  %v2264_v54 = vadd.f32 %v4135_v13, %v2263_v3 }
 0x226   : > { %2397 = vst [vmem:[%s4142_s23 + $0x50] sm:$0xff] %v2365_v41  ;;  %v2366_v58 = vmax.f32 %v2272_v46, 0.0 }
 0x227   : > { %2395 = vst [vmem:[%s4142_s23 + $0x40] sm:$0xff] %v2363_v56  ;;  %v2364_v18 = vmax.f32 %v2264_v54, 0.0 }
 0x228   : > { %2398 = vst [vmem:[%s4142_s23 + $0x58] sm:$0xff] %v2366_v58 }
 0x229   : > { %2396 = vst [vmem:[%s4142_s23 + $0x48] sm:$0xff] %v2364_v18 }
 0x22b   : > { %v2623_v0 = vpop.f32.mrb[8].mxu1 }
 0x22c   : > { %v2333_v39 = vadd.f32 %v2623_v0, %v4135_v13  ;;  %v2324_v14 = vpop.f32.mrb[9].mxu1 }
 0x22d   : > { %v2325_v30 = vadd.f32 %v4135_v13, %v2324_v14  ;;  %v2624_v2 = vpop.f32.mrb[10].mxu1 }
 0x22e   : > { %v2381_v32 = vmax.f32 %v2333_v39, 0.0  ;;  %v2336_v15 = vadd.f32 %v2624_v2, %v4135_v13  ;;  %v2327_v60 = vpop.f32.mrb[11].mxu1 }
 0x22f   : > { %v2379_v28 = vmax.f32 %v2325_v30, 0.0  ;;  %v2328_v51 = vadd.f32 %v4135_v13, %v2327_v60 }
 0x230   : > { %2413 = vst [vmem:[%s4142_s23 + $0xd0] sm:$0xff] %v2381_v32  ;;  %v2382_v5 = vmax.f32 %v2336_v15, 0.0 }
 0x231   : > { %2411 = vst [vmem:[%s4142_s23 + $0xc0] sm:$0xff] %v2379_v28  ;;  %v2380_v11 = vmax.f32 %v2328_v51, 0.0 }
 0x232   : > { %2414 = vst [vmem:[%s4142_s23 + $0xd8] sm:$0xff] %v2382_v5 }
 0x233   : > { %2412 = vst [vmem:[%s4142_s23 + $0xc8] sm:$0xff] %v2380_v11 }
 0x24e   : > { %v2611_v23 = vpop.f32.mrb[12].mxu0 }
 0x24f   : > { %v2285_v31 = vadd.f32 %v2611_v23, %v4135_v13  ;;  %v2276_v33 = vpop.f32.mrb[13].mxu0 }
 0x250   : > { %v2277_v37 = vadd.f32 %v4135_v13, %v2276_v33  ;;  %v2612_v10 = vpop.f32.mrb[14].mxu0 }
 0x251   : > { %v2369_v62 = vmax.f32 %v2285_v31, 0.0  ;;  %v2288_v44 = vadd.f32 %v2612_v10, %v4135_v13  ;;  %v2279_v24 = vpop.f32.mrb[15].mxu0 }
 0x252   : > { %v2367_v36 = vmax.f32 %v2277_v37, 0.0  ;;  %v2280_v4 = vadd.f32 %v4135_v13, %v2279_v24 }
 0x253   : > { %2401 = vst [vmem:[%s4142_s23 + $0x70] sm:$0xff] %v2369_v62  ;;  %v2370_v63 = vmax.f32 %v2288_v44, 0.0 }
 0x254   : > { %2399 = vst [vmem:[%s4142_s23 + $0x60] sm:$0xff] %v2367_v36  ;;  %v2368_v16 = vmax.f32 %v2280_v4, 0.0 }
 0x255   : > { %2402 = vst [vmem:[%s4142_s23 + $0x78] sm:$0xff] %v2370_v63 }
 0x256   : > { %2400 = vst [vmem:[%s4142_s23 + $0x68] sm:$0xff] %v2368_v16 }
 0x259   : > { %v2627_v42 = vpop.f32.mrb[12].mxu1 }
 0x25a   : > { %v2349_v21 = vadd.f32 %v2627_v42, %v4135_v13  ;;  %v2340_v25 = vpop.f32.mrb[13].mxu1 }
 0x25b   : > { %v2341_v61 = vadd.f32 %v4135_v13, %v2340_v25  ;;  %v2628_v20 = vpop.f32.mrb[14].mxu1 }
 0x25c   : > { %v2385_v48 = vmax.f32 %v2349_v21, 0.0  ;;  %v2352_v34 = vadd.f32 %v2628_v20, %v4135_v13  ;;  %v2343_v1 = vpop.f32.mrb[15].mxu1 }
 0x25d   : > { %v2383_v9 = vmax.f32 %v2341_v61, 0.0  ;;  %v2344_v59 = vadd.f32 %v4135_v13, %v2343_v1 }
 0x25e   : > { %2417 = vst [vmem:[%s4142_s23 + $0xf0] sm:$0xff] %v2385_v48  ;;  %v2386_v7 = vmax.f32 %v2352_v34, 0.0 }
 0x25f   : > { %2415 = vst [vmem:[%s4142_s23 + $0xe0] sm:$0xff] %v2383_v9  ;;  %v2384_v47 = vmax.f32 %v2344_v59, 0.0 }
 0x260   : > { %2418 = vst [vmem:[%s4142_s23 + $0xf8] sm:$0xff] %v2386_v7 }
 0x261   : > { %2416 = vst [vmem:[%s4142_s23 + $0xe8] sm:$0xff] %v2384_v47 }
 0x262 PF: > { %s15_s12 = sadd.s32 1, %s2755_s12  }
 0x263   : > { %p12_p5 = scmp.ge.s32.totalorder %s15_s12, 4  }
 0x265   :  { %14 = sbr.rel (!%p12_p5) target bundleno = 2 (0x2), region = 72 }
 0x26c   :  { %2440 = vsyncpa [#allocation4], 1 }
 0x26d   :  { %2442 = vsyncpa [#allocation4 + $0x1], 1 }
 0x26e   :  { %2443 = vsyncpa [#allocation6], 1 }

// kernel: _lambda_.4
= control target key start
LH: loop header
LB: loop body
LE: loop exit
PB: predicated region body
PF: predicated region fallthrough
CT: control target
= control target key end

     0   :  { %s11850_s15 = smov 0   ;;  %s15110_s0 = inlined_call_operand.vmem [shape: bf16[2,4,8,8,128], index: 0, kind: input, shape index: {}]   ;;  %s15111_s1 = inlined_call_operand.vmem [shape: bf16[1,128], index: 1, kind: input, shape index: {}]   ;;  %s15112_s2 = inlined_call_operand.vmem [shape: bf16[9,384,128], index: 2, kind: input, shape index: {}]   ;;  %s15113_s3 = inlined_call_operand.vmem [shape: f32[1,128], index: 3, kind: input, shape index: {}]   ;;  %s15114_s4 = inlined_call_operand.vmem [shape: f32[2,256,128], index: 4, kind: output, shape index: {}]  }
   0x1 LB: > { %s7850_s16 = sadd.s32 4294967295, %s11823_s15   ;;  %p7854_p0 = scmp.ge.s32.totalorder %s11823_s15, 1  ;;  %s11823_s15 = sphi %s11850_s15, %s14_s15  }
   0x2   : > { %p162_p1 = scmp.lt.s32.totalorder %s11823_s15, 3 }
   0x4   : > { %p163_p2 = pnand %p7854_p0, %p162_p1 }
   0x6   : > { %166 = sbr.rel (%p163_p2) target bundleno = 1199 (0x4af), region = 36 }
   0xd   : > { %v11487_v0 = vld [vmem:[%s15112_s2 + $0x40] sm:$0xff]   ;;  %v11489_v2 = vld [vmem:[%s15112_s2 + $0x48] sm:$0xff]   ;;  %v11491_v4 = vld [vmem:[%s15112_s2 + $0x50] sm:$0xff]   ;;  %p188_p3 = scmp.lt.s32.totalorder %s7850_s16, 1  ;;  %v203_v6 = vlaneseq  ;;  %vm684_vm0 = vcmask 1043456   ;;  %vm690_vm1 = vcmask 1040384  }
   0xe   : > { %v11488_v1 = vld [vmem:[%s15112_s2] sm:$0xff]   ;;  %8687 = vmatprep.subr.bf16.mxu0 %v11487_v0  ;;  %10343 = vmatprep.subr.bf16.mxu1 %v11487_v0  ;;  %v11490_v3 = vld [vmem:[%s15112_s2 + $0x8] sm:$0xff]   ;;  %v11492_v5 = vld [vmem:[%s15112_s2 + $0x10] sm:$0xff]   ;;  %vm685_vm2 = vsmask.f32 7938 }
   0xf   : > { %8688 = vmatpush3.bf16.msra.mxu0 %v11488_v1  ;;  %10351 = vmatpush3.bf16.msra.mxu1 %v11488_v1  ;;  %v11493_v7 = vld [vmem:[%s15112_s2 + $0x58] sm:$0xff]   ;;  %s15907_s16 = smov (!%p188_p3, %s7850_s16), 1  ;;  %v204_v9 = vshrl.u32 %v203_v6, 7  ;;  %v11495_v10 = vld [vmem:[%s15112_s2 + $0x60] sm:$0xff]   ;;  %v11497_v12 = vld [vmem:[%s15112_s2 + $0x68] sm:$0xff]  }
  0x10   : > { %8689 = vmatprep.subr.bf16.mxu0 %v11489_v2  ;;  %10344 = vmatprep.subr.bf16.mxu1 %v11489_v2  ;;  %v11494_v8 = vld [vmem:[%s15112_s2 + $0x18] sm:$0xff]   ;;  %s8685_s9 = sshll.u32 %s15907_s16, 7  ;;  %v11496_v11 = vld [vmem:[%s15112_s2 + $0x20] sm:$0xff]   ;;  %v11498_v17 = vld [vmem:[%s15112_s2 + $0x28] sm:$0xff]   ;;  %vm691_vm3 = vsmask.f32 256 }
  0x11   : > { %v205_v13 = vsub.s32 0, %v204_v9  ;;  %s11897_s18 = scalar_lea.vmem %s15110_s0, %s8685_s9  ;;  %v199_v14 = vld [vmem:[%s15111_s1] sm:$0x1]  ;;  %v11912_v20 = vld [vmem:[%s15112_s2 + $0x70] sm:$0xff]   ;;  %v11501_v29 = vld [vmem:[%s15112_s2 + $0x78] sm:$0xff]   ;;  %s8686_s25 = sshll.u32 %s15907_s16, 8 }
  0x12   : > { %v201_v15 = vpack.i.b16 %v199_v14, %v199_v14  ;;  %v11903_v16 = vld [vmem:[%s11897_s18 + $0x40] sm:$0xf]  ;;  %v11917_v21 = vld [vmem:[%s15112_s2 + $0x30] sm:$0xff]   ;;  %v11922_v23 = vld [vmem:[%s11897_s18 + $0x44] sm:$0xf]  ;;  %s13190_s28 = scalar_lea.vmem %s15114_s4, %s8686_s25 }
  0x13   : > { %8690 = vmatpush3.bf16.msra.mxu0 %v11490_v3  ;;  %10352 = vmatpush3.bf16.msra.mxu1 %v11490_v3  ;;  %v492_v19 = vshrl.u32 %v11903_v16, 16  ;;  %v11927_v25 = vld [vmem:[%s11897_s18 + $0x48] sm:$0xf]  ;;  %v500_v26 = vshrl.u32 %v11922_v23, 16  ;;  %v495_v27 = vshll.u32 %v11903_v16, 16  ;;  %v11502_v31 = vld [vmem:[%s15112_s2 + $0x38] sm:$0xff]   ;;  %vm12082_vm4 = vmand %vm684_vm0, %vm685_vm2 }
  0x14   : > { %8691 = vmatprep.subr.bf16.mxu0 %v11491_v4  ;;  %10345 = vmatprep.subr.bf16.mxu1 %v11491_v4  ;;  %v206_v18 = vrot.slane %v201_v15, %v205_v13  ;;  %v508_v28 = vshrl.u32 %v11927_v25, 16  ;;  %v503_v32 = vshll.u32 %v11922_v23, 16  ;;  %v11506_v34 = vld [vmem:[%s15112_s2 + $0x1c0] sm:$0xff]   ;;  %v511_v37 = vshll.u32 %v11927_v25, 16  ;;  %v12089_v42 = vld [vmem:[%s11897_s18 + $0x4c] sm:$0xf]  ;;  %vm12096_vm5 = vmand %vm690_vm1, %vm691_vm3 }
  0x15   : > { %v11924_v24 = vrot.slane %v492_v19, 7  ;;  %v12059_v30 = vrot.slane %v500_v26, 7  ;;  %v12074_v36 = vld [vmem:[%s15112_s2 + $0x80] sm:$0xff]   ;;  %v12092_v43 = vld [vmem:[%s11897_s18 + $0x50] sm:$0xf]  ;;  %v516_v45 = vshrl.u32 %v12089_v42, 16 }
  0x16   : > { %v11919_v22 = vcombine.low %v206_v18, %v206_v18  ;;  %v12065_v33 = vrot.slane %v508_v28, 7  ;;  %v519_v46 = vshll.u32 %v12089_v42, 16  ;;  %v524_v47 = vshrl.u32 %v12092_v43, 16 }
  0x17   : > { %8692 = vmatpush3.bf16.msra.mxu0 %v11492_v5  ;;  %10353 = vmatpush3.bf16.msra.mxu1 %v11492_v5  ;;  %v498_v35 = vrot.slane %v11924_v24, 4  ;;  %v497_v38 = vor.u32 %v495_v27, %v11924_v24  ;;  %v506_v40 = vrot.slane %v12059_v30, 4  ;;  %v527_v48 = vshll.u32 %v12092_v43, 16 }
  0x18   : > { %8693 = vmatprep.subr.bf16.mxu0 %v11493_v7  ;;  %10346 = vmatprep.subr.bf16.mxu1 %v11493_v7  ;;  %211 = vst [vmem:[#allocation2] sm:$0xf] %v11919_v22  ;;  %212 = vst [vmem:[#allocation2 + $0x4] sm:$0x1] %v11919_v22  ;;  %v514_v41 = vrot.slane %v12065_v33, 4  ;;  %v505_v56 = vor.u32 %v503_v32, %v12059_v30  ;;  %v513_v9 = vor.u32 %v511_v37, %v12065_v33 }
  0x19   : > { %213 = vst [vmem:[#allocation2 + $0x8] sm:$0xf] %v11919_v22  ;;  %214 = vst [vmem:[#allocation2 + $0xc] sm:$0x1] %v11919_v22 }
  0x1a   : > { %215 = vst [vmem:[#allocation2 + $0x10] sm:$0xf] %v11919_v22  ;;  %216 = vst [vmem:[#allocation2 + $0x14] sm:$0x1] %v11919_v22 }
  0x1b   : > { %8694 = vmatpush3.bf16.msra.mxu0 %v11494_v8  ;;  %10354 = vmatpush3.bf16.msra.mxu1 %v11494_v8  ;;  %217 = vst [vmem:[#allocation2 + $0x18] sm:$0xf] %v11919_v22  ;;  %218 = vst [vmem:[#allocation2 + $0x1c] sm:$0x1] %v11919_v22 }
  0x1c   : > { %8695 = vmatprep.subr.bf16.mxu0 %v11495_v10  ;;  %10347 = vmatprep.subr.bf16.mxu1 %v11495_v10  ;;  %219 = vst [vmem:[#allocation2 + $0x20] sm:$0xf] %v11919_v22  ;;  %220 = vst [vmem:[#allocation2 + $0x24] sm:$0x1] %v11919_v22 }
  0x1d   : > { %221 = vst [vmem:[#allocation2 + $0x28] sm:$0xf] %v11919_v22  ;;  %222 = vst [vmem:[#allocation2 + $0x2c] sm:$0x1] %v11919_v22 }
  0x1e   : > { %223 = vst [vmem:[#allocation2 + $0x30] sm:$0xf] %v11919_v22  ;;  %224 = vst [vmem:[#allocation2 + $0x34] sm:$0x1] %v11919_v22 }
  0x1f   : > { %8696 = vmatpush3.bf16.msra.mxu0 %v11496_v11  ;;  %10355 = vmatpush3.bf16.msra.mxu1 %v11496_v11  ;;  %225 = vst [vmem:[#allocation2 + $0x38] sm:$0xf] %v11919_v22  ;;  %226 = vst [vmem:[#allocation2 + $0x3c] sm:$0x1] %v11919_v22  ;;  %v12104_v49 = vld [vmem:[#allocation2] sm:$0xf] }
  0x20   : > { %8697 = vmatprep.subr.bf16.mxu0 %v11497_v12  ;;  %10348 = vmatprep.subr.bf16.mxu1 %v11497_v12  ;;  %227 = vst [vmem:[#allocation2 + $0x40] sm:$0xf] %v11919_v22  ;;  %228 = vst [vmem:[#allocation2 + $0x44] sm:$0x1] %v11919_v22  ;;  %v883_v50 = vld [vmem:[#allocation2 + $0x4] sm:$0x1] }
  0x21   : > { %229 = vst [vmem:[#allocation2 + $0x48] sm:$0xf] %v11919_v22  ;;  %230 = vst [vmem:[#allocation2 + $0x4c] sm:$0x1] %v11919_v22  ;;  %v12106_v51 = vld [vmem:[#allocation2 + $0x8] sm:$0xf]  ;;  %v12109_v53 = vcombine.low %v12104_v49, %v883_v50 }
  0x22   : > { %231 = vst [vmem:[#allocation2 + $0x50] sm:$0xf] %v11919_v22  ;;  %232 = vst [vmem:[#allocation2 + $0x54] sm:$0x1] %v11919_v22  ;;  %v885_v52 = vld [vmem:[#allocation2 + $0xc] sm:$0x1]  ;;  %v7892_v32 = vcombine.low %v12104_v49, %v12106_v51 }
  0x23   : > { %8698 = vmatpush3.bf16.msra.mxu0 %v11498_v17  ;;  %10356 = vmatpush3.bf16.msra.mxu1 %v11498_v17  ;;  %233 = vst [vmem:[#allocation2 + $0x58] sm:$0xf] %v11919_v22  ;;  %234 = vst [vmem:[#allocation2 + $0x5c] sm:$0x1] %v11919_v22  ;;  %v12113_v57 = vcombine.low %v12106_v51, %v885_v52  ;;  %v12122_v62 = vld [vmem:[#allocation2 + $0x10] sm:$0xf] }
  0x24   : > { %235 = vst [vmem:[#allocation2 + $0x60] sm:$0xf] %v11919_v22  ;;  %236 = vst [vmem:[#allocation2 + $0x64] sm:$0x1] %v11919_v22  ;;  %8699 = vmatprep.subr.bf16.mxu0 %v11912_v20  ;;  %10349 = vmatprep.subr.bf16.mxu1 %v11912_v20  ;;  %v1163_v63 = vshrl.u32 %v12109_v53, 16  ;;  %v1165_v0 = vshll.u32 %v12109_v53, 16 }
  0x25   : > { %237 = vst [vmem:[#allocation2 + $0x68] sm:$0xf] %v11919_v22  ;;  %238 = vst [vmem:[#allocation2 + $0x6c] sm:$0x1] %v11919_v22  ;;  %v887_v2 = vld [vmem:[#allocation2 + $0x14] sm:$0x1] }
  0x26   : > { %239 = vst [vmem:[#allocation2 + $0x70] sm:$0xf] %v11919_v22  ;;  %240 = vst [vmem:[#allocation2 + $0x74] sm:$0x1] %v11919_v22  ;;  %v12129_v3 = vld [vmem:[#allocation2 + $0x18] sm:$0xf]  ;;  %v12136_v8 = vcombine.low %v12122_v62, %v887_v2 }
  0x27   : > { %241 = vst [vmem:[#allocation2 + $0x78] sm:$0xf] %v11919_v22  ;;  %242 = vst [vmem:[#allocation2 + $0x7c] sm:$0x1] %v11919_v22  ;;  %8700 = vmatpush3.bf16.msra.mxu0 %v11917_v21  ;;  %10357 = vmatpush3.bf16.msra.mxu1 %v11917_v21  ;;  %v1170_v5 = vshrl.u32 %v12113_v57, 16  ;;  %v1172_v6 = vshll.u32 %v12113_v57, 16  ;;  %v12177_v33 = vcombine.low %v12122_v62, %v12129_v3 }
  0x28   : > { %243 = vst [vmem:[#allocation2 + $0x80] sm:$0xf] %v11919_v22  ;;  %244 = vst [vmem:[#allocation2 + $0x84] sm:$0x1] %v11919_v22  ;;  %8701 = vmatprep.subr.bf16.mxu0 %v11501_v29  ;;  %10350 = vmatprep.subr.bf16.mxu1 %v11501_v29  ;;  %v889_v7 = vld [vmem:[#allocation2 + $0x1c] sm:$0x1] }
  0x29   : > { %245 = vst [vmem:[#allocation2 + $0x88] sm:$0xf] %v11919_v22  ;;  %246 = vst [vmem:[#allocation2 + $0x8c] sm:$0x1] %v11919_v22  ;;  %v1167_v11 = vrot.slane %v1165_v0, 1  ;;  %v12142_v14 = vcombine.low %v12129_v3, %v889_v7  ;;  %v1174_v16 = vrot.slane %v1172_v6, 1 }
  0x2a   : > { %247 = vst [vmem:[#allocation2 + $0x90] sm:$0xf] %v11919_v22  ;;  %248 = vst [vmem:[#allocation2 + $0x94] sm:$0x1] %v11919_v22  ;;  %v1177_v17 = vshrl.u32 %v12136_v8, 16  ;;  %v1179_v18 = vshll.u32 %v12136_v8, 16 }
  0x2b   : > { %249 = vst [vmem:[#allocation2 + $0x98] sm:$0xf] %v11919_v22  ;;  %250 = vst [vmem:[#allocation2 + $0x9c] sm:$0x1] %v11919_v22  ;;  %8702 = vmatpush3.bf16.msra.mxu0 %v11502_v31  ;;  %10358 = vmatpush3.bf16.msra.mxu1 %v11502_v31  ;;  %v1168_v21 = vor.u32 %v1167_v11, %v1163_v63  ;;  %v1184_v23 = vshrl.u32 %v12142_v14, 16  ;;  %v1186_v24 = vshll.u32 %v12142_v14, 16 }
  0x2c   : > { %251 = vst [vmem:[#allocation2 + $0xa0] sm:$0xf] %v11919_v22  ;;  %252 = vst [vmem:[#allocation2 + $0xa4] sm:$0x1] %v11919_v22  ;;  %8959 = vmatprep.subr.bf16.mxu0 %v11506_v34  ;;  %9911 = vmatprep.subr.bf16.mxu1 %v12074_v36  ;;  %v12150_v26 = vor.u32 %v1174_v16, %v1170_v5  ;;  %v1181_v27 = vrot.slane %v1179_v18, 1  ;;  %v11507_v49 = vld [vmem:[%s15112_s2 + $0x180] sm:$0xff]  }
  0x2d   : > { %253 = vst [vmem:[#allocation2 + $0xa8] sm:$0xf] %v11919_v22  ;;  %254 = vst [vmem:[#allocation2 + $0xac] sm:$0x1] %v11919_v22  ;;  %v12156_v30 = vld [vmem:[#allocation2 + $0x20] sm:$0xf] }
  0x2e   : > { %255 = vst [vmem:[#allocation2 + $0xb0] sm:$0xf] %v11919_v22  ;;  %256 = vst [vmem:[#allocation2 + $0xb4] sm:$0x1] %v11919_v22  ;;  %v891_v31 = vld [vmem:[#allocation2 + $0x24] sm:$0x1]  ;;  %v7893_v50 = vcombine.low %v1168_v21, %v12150_v26 }
  0x2f   : > { %257 = vst [vmem:[#allocation2 + $0xb8] sm:$0xf] %v11919_v22  ;;  %258 = vst [vmem:[#allocation2 + $0xbc] sm:$0x1] %v11919_v22  ;;  %v1188_v34 = vrot.slane %v1186_v24, 1  ;;  %v526_v16 = vrot.slane %v524_v47, 7 }
  0x30   : > { %259 = vst [vmem:[#allocation2 + $0xc0] sm:$0xf] %v11919_v22  ;;  %260 = vst [vmem:[#allocation2 + $0xc4] sm:$0x1] %v11919_v22  ;;  %v12164_v37 = vld [vmem:[#allocation2 + $0x28] sm:$0xf]  ;;  %1802 = vmatprep.mubr.bf16.mxu0 %v7893_v50 }
  0x31   : > { %261 = vst [vmem:[#allocation2 + $0xc8] sm:$0xf] %v11919_v22  ;;  %262 = vst [vmem:[#allocation2 + $0xcc] sm:$0x1] %v11919_v22  ;;  %1803 = vmatmul.mubr.bf16.vlgmr.msra.gmra.mrb[0].mxu0 %v7892_v32  ;;  %v12206_v18 = vld [vmem:[#allocation2 + $0x30] sm:$0xf]  ;;  %v529_v47 = vor.u32 %v527_v48, %v526_v16 }
  0x32   : > { %263 = vst [vmem:[#allocation2 + $0xd0] sm:$0xf] %v11919_v22  ;;  %264 = vst [vmem:[#allocation2 + $0xd4] sm:$0x1] %v11919_v22  ;;  %8960 = vmatpush3.bf16.msra.mxu0 %v11507_v49  ;;  %v897_v48 = vld [vmem:[#allocation2 + $0x3c] sm:$0x1] }
  0x33   : > { %265 = vst [vmem:[#allocation2 + $0xd8] sm:$0xf] %v11919_v22  ;;  %266 = vst [vmem:[#allocation2 + $0xdc] sm:$0x1] %v11919_v22 }
  0x34   : > { %267 = vst [vmem:[#allocation2 + $0xe0] sm:$0xf] %v11919_v22  ;;  %268 = vst [vmem:[#allocation2 + $0xe4] sm:$0x1] %v11919_v22 }
  0x35   : > { %269 = vst [vmem:[#allocation2 + $0xe8] sm:$0xf] %v11919_v22  ;;  %270 = vst [vmem:[#allocation2 + $0xec] sm:$0x1] %v11919_v22 }
  0x36   : > { %271 = vst [vmem:[#allocation2 + $0xf0] sm:$0xf] %v11919_v22  ;;  %272 = vst [vmem:[#allocation2 + $0xf4] sm:$0x1] %v11919_v22 }
  0x37   : > { %273 = vst [vmem:[#allocation2 + $0xf8] sm:$0xf] %v11919_v22  ;;  %274 = vst [vmem:[#allocation2 + $0xfc] sm:$0x1] %v11919_v22 }
  0x38   : > { %275 = vst [vmem:[#allocation2 + $0x100] sm:$0xf] %v11919_v22  ;;  %276 = vst [vmem:[#allocation2 + $0x104] sm:$0x1] %v11919_v22 }
  0x39   : > { %277 = vst [vmem:[#allocation2 + $0x108] sm:$0xf] %v11919_v22  ;;  %278 = vst [vmem:[#allocation2 + $0x10c] sm:$0x1] %v11919_v22 }
  0x3a   : > { %279 = vst [vmem:[#allocation2 + $0x110] sm:$0xf] %v11919_v22  ;;  %280 = vst [vmem:[#allocation2 + $0x114] sm:$0x1] %v11919_v22 }
  0x3b   : > { %281 = vst [vmem:[#allocation2 + $0x118] sm:$0xf] %v11919_v22  ;;  %282 = vst [vmem:[#allocation2 + $0x11c] sm:$0x1] %v11919_v22 }
  0x3c   : > { %283 = vst [vmem:[#allocation2 + $0x120] sm:$0xf] %v11919_v22  ;;  %284 = vst [vmem:[#allocation2 + $0x124] sm:$0x1] %v11919_v22 }
  0x3d   : > { %285 = vst [vmem:[#allocation2 + $0x128] sm:$0xf] %v11919_v22  ;;  %286 = vst [vmem:[#allocation2 + $0x12c] sm:$0x1] %v11919_v22  ;;  %v12119_v60 = vld [vmem:[#allocation2 + $0xf0] sm:$0xf] }
  0x3e   : > { %287 = vst [vmem:[#allocation2 + $0x130] sm:$0xf] %v11919_v22  ;;  %288 = vst [vmem:[#allocation2 + $0x134] sm:$0x1] %v11919_v22  ;;  %v786_v54 = vld [vmem:[#allocation2 + $0xf8] sm:$0xf] }
  0x3f   : > { %289 = vst [vmem:[#allocation2 + $0x138] sm:$0xf] %v11919_v22  ;;  %290 = vst [vmem:[#allocation2 + $0x13c] sm:$0x1] %v11919_v22  ;;  %v789_v55 = vld [vmem:[#allocation2 + $0xfc] sm:$0x1]  ;;  %v787_v58 = vsel %vm12082_vm4, %v497_v38, %v786_v54 }
  0x40   : > { %291 = vst [vmem:[#allocation2 + $0x140] sm:$0xf] %v11919_v22  ;;  %292 = vst [vmem:[#allocation2 + $0x144] sm:$0x1] %v11919_v22  ;;  %v790_v59 = vsel %vm12096_vm5, %v498_v35, %v789_v55  ;;  %v943_v61 = vld [vmem:[#allocation2 + $0xf4] sm:$0x1]  ;;  %v12173_v55 = vor.u32 %v1181_v27, %v1177_v17 }
  0x41   : > { %293 = vst [vmem:[#allocation2 + $0x148] sm:$0xf] %v11919_v22  ;;  %294 = vst [vmem:[#allocation2 + $0x14c] sm:$0x1] %v11919_v22  ;;  %v12127_v1 = vcombine.low %v12119_v60, %v943_v61  ;;  %v792_v10 = vld [vmem:[#allocation2 + $0x100] sm:$0xf] }
  0x42   : > { %295 = vst [vmem:[#allocation2 + $0x150] sm:$0xf] %v11919_v22  ;;  %296 = vst [vmem:[#allocation2 + $0x154] sm:$0x1] %v11919_v22  ;;  %v795_v15 = vld [vmem:[#allocation2 + $0x104] sm:$0x1]  ;;  %v793_v19 = vsel %vm12082_vm4, %v505_v56, %v792_v10 }
  0x43   : > { %297 = vst [vmem:[#allocation2 + $0x158] sm:$0xf] %v11919_v22  ;;  %298 = vst [vmem:[#allocation2 + $0x15c] sm:$0x1] %v11919_v22  ;;  %v1331_v12 = vshrl.u32 %v12127_v1, 16  ;;  %v1333_v13 = vshll.u32 %v12127_v1, 16  ;;  %v796_v28 = vsel %vm12096_vm5, %v506_v40, %v795_v15  ;;  %v12167_v40 = vcombine.low %v12156_v30, %v891_v31 }
  0x44   : > { %299 = vst [vmem:[#allocation2 + $0x160] sm:$0xf] %v11919_v22  ;;  %300 = vst [vmem:[#allocation2 + $0x164] sm:$0x1] %v11919_v22  ;;  %v798_v20 = vld [vmem:[#allocation2 + $0x108] sm:$0xf] }
  0x45   : > { %301 = vst [vmem:[#allocation2 + $0x168] sm:$0xf] %v11919_v22  ;;  %302 = vst [vmem:[#allocation2 + $0x16c] sm:$0x1] %v11919_v22  ;;  %v801_v25 = vld [vmem:[#allocation2 + $0x10c] sm:$0x1]  ;;  %v799_v29 = vsel %vm12082_vm4, %v513_v9, %v798_v20 }
  0x46   : > { %303 = vst [vmem:[#allocation2 + $0x170] sm:$0xf] %v11919_v22  ;;  %304 = vst [vmem:[#allocation2 + $0x174] sm:$0x1] %v11919_v22  ;;  %v802_v35 = vsel %vm12096_vm5, %v514_v41, %v801_v25  ;;  %v893_v38 = vld [vmem:[#allocation2 + $0x2c] sm:$0x1] }
  0x47   : > { %305 = vst [vmem:[#allocation2 + $0x178] sm:$0xf] %v11919_v22  ;;  %306 = vst [vmem:[#allocation2 + $0x17c] sm:$0x1] %v11919_v22  ;;  %v12180_v41 = vcombine.low %v12164_v37, %v893_v38  ;;  %v11520_v61 = vld [vmem:[%s15112_s2 + $0x1c8] sm:$0xff]   ;;  %v1191_v63 = vshrl.u32 %v12167_v40, 16 }
  0x48   : > { %307 = vst [vmem:[#allocation2 + $0x180] sm:$0xf] %v11919_v22  ;;  %308 = vst [vmem:[#allocation2 + $0x184] sm:$0x1] %v11919_v22  ;;  %v804_v0 = vld [vmem:[#allocation2 + $0x110] sm:$0xf]  ;;  %8961 = vmatprep.subr.bf16.mxu0 %v11520_v61 }
  0x49   : > { %309 = vst [vmem:[#allocation2 + $0x188] sm:$0xf] %v11919_v22  ;;  %310 = vst [vmem:[#allocation2 + $0x18c] sm:$0x1] %v11919_v22  ;;  %v807_v2 = vld [vmem:[#allocation2 + $0x114] sm:$0x1] }
  0x4a   : > { %311 = vst [vmem:[#allocation2 + $0x190] sm:$0xf] %v11919_v22  ;;  %312 = vst [vmem:[#allocation2 + $0x194] sm:$0x1] %v11919_v22  ;;  %v1193_v5 = vshll.u32 %v12167_v40, 16  ;;  %v1198_v6 = vshrl.u32 %v12180_v41, 16 }
  0x4b   : > { %313 = vst [vmem:[#allocation2 + $0x198] sm:$0xf] %v11919_v22  ;;  %314 = vst [vmem:[#allocation2 + $0x19c] sm:$0x1] %v11919_v22  ;;  %v1200_v7 = vshll.u32 %v12180_v41, 16  ;;  %v518_v9 = vrot.slane %v516_v45, 7 }
  0x4c   : > { %315 = vst [vmem:[#allocation2 + $0x1a0] sm:$0xf] %v11919_v22  ;;  %316 = vst [vmem:[#allocation2 + $0x1a4] sm:$0x1] %v11919_v22  ;;  %v810_v10 = vld [vmem:[#allocation2 + $0x118] sm:$0xf] }
  0x4d   : > { %317 = vst [vmem:[#allocation2 + $0x1a8] sm:$0xf] %v11919_v22  ;;  %318 = vst [vmem:[#allocation2 + $0x1ac] sm:$0x1] %v11919_v22  ;;  %v11521_v15 = vld [vmem:[%s15112_s2 + $0x188] sm:$0xff]   ;;  %v1202_v20 = vrot.slane %v1200_v7, 1  ;;  %v521_v21 = vor.u32 %v519_v46, %v518_v9 }
  0x4e   : > { %319 = vst [vmem:[#allocation2 + $0x1b0] sm:$0xf] %v11919_v22  ;;  %320 = vst [vmem:[#allocation2 + $0x1b4] sm:$0x1] %v11919_v22  ;;  %v813_v17 = vld [vmem:[#allocation2 + $0x11c] sm:$0x1]  ;;  %8962 = vmatpush3.bf16.msra.mxu0 %v11521_v15 }
  0x4f   : > { %321 = vst [vmem:[#allocation2 + $0x1b8] sm:$0xf] %v11919_v22  ;;  %322 = vst [vmem:[#allocation2 + $0x1bc] sm:$0x1] %v11919_v22  ;;  %v530_v25 = vrot.slane %v526_v16, 4  ;;  %v12226_v32 = vor.u32 %v1202_v20, %v1198_v6  ;;  %v11514_v61 = vld [vmem:[%s15112_s2 + $0x88] sm:$0xff]  }
  0x50   : > { %323 = vst [vmem:[#allocation2 + $0x1c0] sm:$0xf] %v11919_v22  ;;  %324 = vst [vmem:[#allocation2 + $0x1c4] sm:$0x1] %v11919_v22  ;;  %v895_v27 = vld [vmem:[#allocation2 + $0x34] sm:$0x1] }
  0x51   : > { %325 = vst [vmem:[#allocation2 + $0x1c8] sm:$0xf] %v11919_v22  ;;  %326 = vst [vmem:[#allocation2 + $0x1cc] sm:$0x1] %v11919_v22 }
  0x52   : > { %327 = vst [vmem:[#allocation2 + $0x1d0] sm:$0xf] %v11919_v22  ;;  %328 = vst [vmem:[#allocation2 + $0x1d4] sm:$0x1] %v11919_v22 }
  0x53   : > { %329 = vst [vmem:[#allocation2 + $0x1d8] sm:$0xf] %v11919_v22  ;;  %330 = vst [vmem:[#allocation2 + $0x1dc] sm:$0x1] %v11919_v22  ;;  %v1335_v22 = vrot.slane %v1333_v13, 1 }
  0x54   : > { %15404 = vst [vmem:[#allocation3_spill] sm:$0xff] %v12113_v57  ;;  %788 = vst [vmem:[#allocation2 + $0xf8] sm:$0xf] %v787_v58 }
  0x55   : > { %791 = vst [vmem:[#allocation2 + $0xfc] sm:$0x1] %v790_v59  ;;  %15405 = vst [vmem:[#allocation4_spill] sm:$0xff] %v12136_v8  ;;  %v1336_v58 = vor.u32 %v1335_v22, %v1331_v12  ;;  %v12184_v59 = vor.u32 %v1188_v34, %v1184_v23  ;;  %v522_v22 = vrot.slane %v518_v9, 4  ;;  %v11534_v23 = vld [vmem:[%s15112_s2 + $0x1d0] sm:$0xff]   ;;  %v805_v34 = vsel %vm12082_vm4, %v521_v21, %v804_v0 }
  0x56   : > { %794 = vst [vmem:[#allocation2 + $0x100] sm:$0xf] %v793_v19  ;;  %797 = vst [vmem:[#allocation2 + $0x104] sm:$0x1] %v796_v28  ;;  %v1195_v19 = vrot.slane %v1193_v5, 1  ;;  %v12255_v0 = vcombine.low %v12206_v18, %v895_v27  ;;  %8963 = vmatprep.subr.bf16.mxu0 %v11534_v23  ;;  %v11535_v9 = vld [vmem:[%s15112_s2 + $0x190] sm:$0xff]  }
  0x57   : > { %800 = vst [vmem:[#allocation2 + $0x108] sm:$0xf] %v799_v29  ;;  %803 = vst [vmem:[#allocation2 + $0x10c] sm:$0x1] %v802_v35  ;;  %v12199_v13 = vcombine.low %v12173_v55, %v12184_v59  ;;  %v12218_v28 = vld [vmem:[#allocation2 + $0x38] sm:$0xf]  ;;  %v808_v43 = vsel %vm12096_vm5, %v522_v22, %v807_v2  ;;  %8964 = vmatpush3.bf16.msra.mxu0 %v11535_v9 }
  0x58   : > { %15406 = vst [vmem:[#allocation5_spill] sm:$0xff] %v12180_v41  ;;  %v12224_v31 = vor.u32 %v1195_v19, %v1191_v63  ;;  %15407 = vst [vmem:[#allocation6_spill] sm:$0xff] %v12226_v32  ;;  %v12263_v7 = vcombine.low %v12218_v28, %v897_v48  ;;  %v1205_v15 = vshrl.u32 %v12255_v0, 16  ;;  %v1207_v16 = vshll.u32 %v12255_v0, 16  ;;  %v12285_v23 = vld [vmem:[%s15112_s2 + $0x90] sm:$0xff]   ;;  %v11545_v27 = vld [vmem:[%s15112_s2 + $0x198] sm:$0xff]  }
  0x59   : > { %1810 = vmatprep.mubr.bf16.mxu0 %v12199_v13  ;;  %806 = vst [vmem:[#allocation2 + $0x110] sm:$0xf] %v805_v34  ;;  %809 = vst [vmem:[#allocation2 + $0x114] sm:$0x1] %v808_v43  ;;  %v12296_v34 = vcombine.low %v12156_v30, %v12164_v37 }
  0x5a   : > { %15411 = vst [vmem:[#allocation10_spill] sm:$0xff] %v12255_v0  ;;  %15413 = vst [vmem:[#allocation12_spill] sm:$0xff] %v12263_v7  ;;  %1811 = vmatmul.mubr.bf16.gmra.mrb[4].mxu0 %v12177_v33  ;;  %v1212_v20 = vshrl.u32 %v12263_v7, 16  ;;  %v1214_v21 = vshll.u32 %v12263_v7, 16 }
  0x5b   : > { %v944_v52 = vld [vmem:[#allocation2 + $0xf8] sm:$0xf] }
  0x5c   : > { %v945_v54 = vld [vmem:[#allocation2 + $0xfc] sm:$0x1]  ;;  %v12235_v38 = vcombine.low %v12119_v60, %v944_v52  ;;  %v12250_v60 = vcombine.low %v12224_v31, %v12226_v32  ;;  %v1216_v43 = vrot.slane %v1214_v21, 1 }
  0x5d   : > { %v12182_v56 = vcombine.low %v944_v52, %v945_v54  ;;  %v12208_v45 = vld [vmem:[#allocation2 + $0x100] sm:$0xf]  ;;  %v947_v46 = vld [vmem:[#allocation2 + $0x104] sm:$0x1]  ;;  %v811_v54 = vsel %vm12082_vm4, %v529_v47, %v810_v10  ;;  %v814_v52 = vsel %vm12096_vm5, %v530_v25, %v813_v17  ;;  %v352_v10 = vld [vmem:[%s11897_s18 + $0x54] sm:$0xf] }
  0x5e   : > { %v12222_v29 = vld [vmem:[#allocation2 + $0x108] sm:$0xf]  ;;  %15409 = vst [vmem:[#allocation8_spill] sm:$0xff] %v12235_v38  ;;  %v949_v50 = vld [vmem:[#allocation2 + $0x10c] sm:$0x1]  ;;  %v12238_v49 = vcombine.low %v12208_v45, %v947_v46  ;;  %1818 = vmatprep.mubr.bf16.mxu0 %v12250_v60  ;;  %v532_v47 = vshrl.u32 %v352_v10, 16  ;;  %v12308_v21 = vor.u32 %v1216_v43, %v1212_v20 }
  0x5f   : > { %v1338_v11 = vshrl.u32 %v12182_v56, 16  ;;  %v1340_v12 = vshll.u32 %v12182_v56, 16  ;;  %v12246_v63 = vcombine.low %v12222_v29, %v949_v50  ;;  %812 = vst [vmem:[#allocation2 + $0x118] sm:$0xf] %v811_v54  ;;  %815 = vst [vmem:[#allocation2 + $0x11c] sm:$0x1] %v814_v52 }
  0x60   : > { %v1345_v5 = vshrl.u32 %v12238_v49, 16  ;;  %v1347_v6 = vshll.u32 %v12238_v49, 16  ;;  %v353_v17 = vld [vmem:[%s11897_s18 + $0x58] sm:$0xf]  ;;  %v535_v25 = vshll.u32 %v352_v10, 16  ;;  %15419 = vst [vmem:[#allocation18_spill] sm:$0xff] %v12308_v21 }
  0x61   : > { %v1342_v24 = vrot.slane %v1340_v12, 1  ;;  %15410 = vst [vmem:[#allocation9_spill] sm:$0xff] %v12246_v63  ;;  %v1354_v12 = vshll.u32 %v12246_v63, 16  ;;  %v540_v48 = vshrl.u32 %v353_v17, 16  ;;  %v816_v50 = vld [vmem:[#allocation2 + $0x120] sm:$0xf] }
  0x62   : > { %v1349_v19 = vrot.slane %v1347_v6, 1  ;;  %v819_v54 = vld [vmem:[#allocation2 + $0x124] sm:$0x1]  ;;  %v950_v6 = vld [vmem:[#allocation2 + $0x110] sm:$0xf]  ;;  %1819 = vmatmul.mubr.bf16.gmra.mrb[8].mxu0 %v12296_v34 }
  0x63   : > { %v12232_v35 = vor.u32 %v1342_v24, %v1338_v11  ;;  %v11544_v11 = vld [vmem:[%s15112_s2 + $0x1d8] sm:$0xff]   ;;  %v1356_v22 = vrot.slane %v1354_v12, 1  ;;  %v1209_v24 = vrot.slane %v1207_v16, 1  ;;  %v951_v10 = vld [vmem:[#allocation2 + $0x114] sm:$0x1]  ;;  %v12304_v16 = vcombine.low %v12208_v45, %v12222_v29 }
  0x64   : > { %v12292_v46 = vor.u32 %v1349_v19, %v1345_v5  ;;  %v543_v5 = vshll.u32 %v353_v17, 16  ;;  %8965 = vmatprep.subr.bf16.mxu0 %v11544_v11  ;;  %v12306_v9 = vcombine.low %v950_v6, %v951_v10  ;;  %v542_v4 = vrot.slane %v540_v48, 7  ;;  %v331_v45 = vld [vmem:[%s11897_s18] sm:$0xf]  ;;  %v825_v10 = vld [vmem:[#allocation2 + $0x12c] sm:$0x1] }
  0x65   : > { %15408 = vst [vmem:[#allocation7_spill] sm:$0xff] %v12232_v35  ;;  %v12258_v2 = vcombine.low %v1336_v58, %v12232_v35  ;;  %v1352_v58 = vshrl.u32 %v12246_v63, 16  ;;  %v12300_v12 = vor.u32 %v1209_v24, %v1205_v15  ;;  %15417 = vst [vmem:[#allocation16_spill] sm:$0xff] %v12304_v16  ;;  %8966 = vmatpush3.bf16.msra.mxu0 %v11545_v27  ;;  %v12339_v29 = vld [vmem:[#allocation2 + $0x50] sm:$0xf] }
  0x66   : > { %15414 = vst [vmem:[#allocation13_spill] sm:$0xff] %v12292_v46  ;;  %v952_v19 = vld [vmem:[#allocation2 + $0x118] sm:$0xf]  ;;  %15418 = vst [vmem:[#allocation17_spill] sm:$0xff] %v12306_v9  ;;  %v953_v11 = vld [vmem:[#allocation2 + $0x11c] sm:$0x1] }
  0x67   : > { %15412 = vst [vmem:[#allocation11_spill] sm:$0xff] %v12258_v2  ;;  %1898 = vmatprep.mubr.bf16.mxu1 %v12258_v2  ;;  %v12298_v52 = vor.u32 %v1356_v22, %v1352_v58  ;;  %15416 = vst [vmem:[#allocation15_spill] sm:$0xff] %v12300_v12  ;;  %v822_v58 = vld [vmem:[#allocation2 + $0x128] sm:$0xf]  ;;  %v11554_v22 = vld [vmem:[%s15112_s2 + $0x1e0] sm:$0xff]   ;;  %v1359_v20 = vshrl.u32 %v12306_v9, 16  ;;  %v12325_v48 = vcombine.low %v12300_v12, %v12308_v21 }
  0x68   : > { %1899 = vmatmul.mubr.bf16.vlgmr.msra.gmra.mrb[0].mxu1 %v12235_v38  ;;  %v1361_v43 = vshll.u32 %v12306_v9, 16  ;;  %v903_v38 = vld [vmem:[#allocation2 + $0x54] sm:$0x1]  ;;  %8967 = vmatprep.subr.bf16.mxu0 %v11554_v22 }
  0x69   : > { %9912 = vmatpush3.bf16.msra.mxu1 %v12074_v36  ;;  %15415 = vst [vmem:[#allocation14_spill] sm:$0xff] %v12298_v52  ;;  %v534_v36 = vrot.slane %v532_v47, 7  ;;  %v12315_v15 = vcombine.low %v12292_v46, %v12298_v52  ;;  %v12319_v47 = vcombine.low %v952_v19, %v953_v11  ;;  %v546_v11 = vrot.slane %v542_v4, 4  ;;  %1826 = vmatprep.mubr.bf16.mxu0 %v12325_v48 }
  0x6a   : > { %9913 = vmatprep.subr.bf16.mxu1 %v11514_v61  ;;  %v1363_v2 = vrot.slane %v1361_v43, 1 }
  0x6b   : > { %15420 = vst [vmem:[#allocation19_spill] sm:$0xff] %v12315_v15  ;;  %v537_v17 = vor.u32 %v535_v25, %v534_v36  ;;  %v538_v24 = vrot.slane %v534_v36, 4  ;;  %15421 = vst [vmem:[#allocation20_spill] sm:$0xff] %v12319_v47  ;;  %v11555_v25 = vld [vmem:[%s15112_s2 + $0x1a0] sm:$0xff]   ;;  %1906 = vmatprep.mubr.bf16.mxu1 %v12315_v15  ;;  %v545_v36 = vor.u32 %v543_v5, %v542_v4  ;;  %v1366_v52 = vshrl.u32 %v12319_v47, 16 }
  0x6c   : > { %v1368_v35 = vshll.u32 %v12319_v47, 16  ;;  %v364_v5 = vshrl.u32 %v331_v45, 16  ;;  %v11529_v4 = vld [vmem:[%s15112_s2 + $0xa0] sm:$0xff]   ;;  %v12355_v22 = vor.u32 %v1363_v2, %v1359_v20  ;;  %8968 = vmatpush3.bf16.msra.mxu0 %v11555_v25  ;;  %v12366_v20 = vcombine.low %v12339_v29, %v903_v38 }
  0x6d   : > { %9914 = vmatpush3.bf16.msra.mxu1 %v11514_v61  ;;  %v11524_v61 = vld [vmem:[%s15112_s2 + $0x98] sm:$0xff]   ;;  %v817_v42 = vsel %vm12082_vm4, %v537_v17, %v816_v50  ;;  %v820_v27 = vsel %vm12096_vm5, %v538_v24, %v819_v54  ;;  %v823_v50 = vsel %vm12082_vm4, %v545_v36, %v822_v58  ;;  %v826_v54 = vsel %vm12096_vm5, %v546_v11, %v825_v10  ;;  %v333_v11 = vld [vmem:[%s11897_s18 + $0x8] sm:$0xf] }
  0x6e   : > { %9915 = vmatprep.subr.bf16.mxu1 %v12285_v23  ;;  %818 = vst [vmem:[#allocation2 + $0x120] sm:$0xf] %v817_v42  ;;  %821 = vst [vmem:[#allocation2 + $0x124] sm:$0x1] %v820_v27  ;;  %v367_v17 = vshll.u32 %v331_v45, 16  ;;  %v1370_v24 = vrot.slane %v1368_v35, 1  ;;  %v12357_v27 = vcombine.low %v950_v6, %v952_v19  ;;  %v12361_v58 = vcombine.low %v12206_v18, %v12218_v28 }
  0x6f   : > { %15422 = vst [vmem:[#allocation21_spill] sm:$0xff] %v12355_v22  ;;  %824 = vst [vmem:[#allocation2 + $0x128] sm:$0xf] %v823_v50  ;;  %v366_v43 = vrot.slane %v364_v5, 7  ;;  %v687_v45 = vld [vmem:[#allocation2 + $0x58] sm:$0xf] }
  0x70   : > { %1907 = vmatmul.mubr.bf16.gmra.mrb[4].mxu1 %v12304_v16  ;;  %827 = vst [vmem:[#allocation2 + $0x12c] sm:$0x1] %v826_v54  ;;  %15423 = vst [vmem:[#allocation22_spill] sm:$0xff] %v12357_v27  ;;  %v693_v10 = vld [vmem:[#allocation2 + $0x5c] sm:$0x1]  ;;  %v12363_v36 = vor.u32 %v1370_v24, %v1366_v52  ;;  %v11532_v6 = vld [vmem:[%s15112_s2 + $0xa8] sm:$0xff]   ;;  %1827 = vmatmul.mubr.bf16.gmra.mrb[12].mxu0 %v12361_v58 }
  0x71   : > { %9916 = vmatpush3.bf16.msra.mxu1 %v12285_v23  ;;  %15424 = vst [vmem:[#allocation23_spill] sm:$0xff] %v12361_v58  ;;  %v369_v23 = vor.u32 %v367_v17, %v366_v43  ;;  %v370_v2 = vrot.slane %v366_v43, 4  ;;  %v332_v35 = vld [vmem:[%s11897_s18 + $0x4] sm:$0xf]  ;;  %v15123_v5 = vrot.slane %v12167_v40, 1  ;;  %v380_v54 = vshrl.u32 %v333_v11, 16 }
  0x72   : > { %9917 = vmatprep.subr.bf16.mxu1 %v11524_v61  ;;  %15425 = vst [vmem:[#allocation24_spill] sm:$0xff] %v12363_v36  ;;  %v372_v25 = vshrl.u32 %v332_v35, 16  ;;  %v375_v28 = vshll.u32 %v332_v35, 16  ;;  %v12377_v52 = vcombine.low %v12355_v22, %v12363_v36  ;;  %v696_v17 = vld [vmem:[#allocation2 + $0x60] sm:$0xf]  ;;  %v11562_v43 = vld [vmem:[%s15112_s2 + $0x1e8] sm:$0xff]  }
  0x73   : > { %v688_v38 = vsel %vm12082_vm4, %v369_v23, %v687_v45  ;;  %v694_v50 = vsel %vm12096_vm5, %v370_v2, %v693_v10  ;;  %v699_v24 = vld [vmem:[#allocation2 + $0x64] sm:$0x1]  ;;  %v383_v19 = vshll.u32 %v333_v11, 16  ;;  %v15427_v45 = vrot.slane %v12142_v14, 1  ;;  %v702_v36 = vld [vmem:[#allocation2 + $0x68] sm:$0xf]  ;;  %8969 = vmatprep.subr.bf16.mxu0 %v11562_v43 }
  0x74   : > { %15426 = vst [vmem:[#allocation25_spill] sm:$0xff] %v12377_v52  ;;  %689 = vst [vmem:[#allocation2 + $0x58] sm:$0xf] %v688_v38  ;;  %v374_v42 = vrot.slane %v372_v25, 7  ;;  %1914 = vmatprep.mubr.bf16.mxu1 %v12377_v52  ;;  %v382_v2 = vrot.slane %v380_v54, 7  ;;  %v11539_v38 = vld [vmem:[%s15112_s2 + $0xb0] sm:$0xff]  }
  0x75   : > { %9918 = vmatpush3.bf16.msra.mxu1 %v11524_v61  ;;  %v12386_v35 = vld [vmem:[#allocation2 + $0x120] sm:$0xf]  ;;  %v955_v61 = vld [vmem:[#allocation2 + $0x124] sm:$0x1]  ;;  %695 = vst [vmem:[#allocation2 + $0x5c] sm:$0x1] %v694_v50  ;;  %v12392_v10 = vcombine.low %v15427_v45, %v15123_v5 }
  0x76   : > { %9919 = vmatprep.subr.bf16.mxu1 %v11529_v4  ;;  %v12397_v23 = vcombine.low %v12386_v35, %v955_v61  ;;  %v705_v22 = vld [vmem:[#allocation2 + $0x6c] sm:$0x1]  ;;  %v956_v25 = vld [vmem:[#allocation2 + $0x128] sm:$0xf]  ;;  %v1221_v50 = vshll.u32 %v12366_v20, 16  ;;  %v377_v45 = vor.u32 %v375_v28, %v374_v42  ;;  %v378_v5 = vrot.slane %v374_v42, 4 }
  0x77   : > { %15428 = vst [vmem:[#allocation26_spill] sm:$0xff] %v12392_v10  ;;  %v957_v11 = vld [vmem:[#allocation2 + $0x12c] sm:$0x1]  ;;  %v15429_v52 = vrot.slane %v12113_v57, 1  ;;  %v15430_v16 = vrot.slane %v12109_v53, 1  ;;  %v385_v42 = vor.u32 %v383_v19, %v382_v2  ;;  %v386_v28 = vrot.slane %v382_v2, 4 }
  0x78   : > { %1915 = vmatmul.mubr.bf16.gmra.mrb[8].mxu1 %v12357_v27  ;;  %v12406_v54 = vcombine.low %v956_v25, %v957_v11  ;;  %v1373_v10 = vshrl.u32 %v12397_v23, 16  ;;  %v1375_v27 = vshll.u32 %v12397_v23, 16  ;;  %v700_v43 = vsel %vm12096_vm5, %v378_v5, %v699_v24  ;;  %v11564_v11 = vld [vmem:[%s15112_s2 + $0x1a8] sm:$0xff]   ;;  %v335_v24 = vld [vmem:[%s11897_s18 + $0x10] sm:$0xf] }
  0x79   : > { %9920 = vmatpush3.bf16.msra.mxu1 %v11529_v4  ;;  %v12414_v46 = vcombine.low %v15430_v16, %v15429_v52  ;;  %v697_v4 = vsel %vm12082_vm4, %v377_v45, %v696_v17  ;;  %v1219_v16 = vshrl.u32 %v12366_v20, 16  ;;  %701 = vst [vmem:[#allocation2 + $0x64] sm:$0x1] %v700_v43  ;;  %v334_v19 = vld [vmem:[%s11897_s18 + $0xc] sm:$0xf]  ;;  %v703_v17 = vsel %vm12082_vm4, %v385_v42, %v702_v36 }
  0x7a   : > { %9921 = vmatprep.subr.bf16.mxu1 %v11532_v6  ;;  %v1377_v61 = vrot.slane %v1375_v27, 1  ;;  %v1380_v57 = vshrl.u32 %v12406_v54, 16  ;;  %v1382_v53 = vshll.u32 %v12406_v54, 16  ;;  %698 = vst [vmem:[#allocation2 + $0x60] sm:$0xf] %v697_v4  ;;  %v706_v5 = vsel %vm12096_vm5, %v386_v28, %v705_v22  ;;  %8970 = vmatpush3.bf16.msra.mxu0 %v11564_v11  ;;  %v11542_v22 = vld [vmem:[%s15112_s2 + $0xb8] sm:$0xff]  }
  0x7b   : > { %v388_v2 = vshrl.u32 %v334_v19, 16  ;;  %v904_v15 = vld [vmem:[#allocation2 + $0x58] sm:$0xf]  ;;  %704 = vst [vmem:[#allocation2 + $0x68] sm:$0xf] %v703_v17  ;;  %v391_v4 = vshll.u32 %v334_v19, 16  ;;  %v12445_v11 = vcombine.low %v12386_v35, %v956_v25 }
  0x7c   : > { %v12433_v27 = vor.u32 %v1377_v61, %v1373_v10  ;;  %v1384_v45 = vrot.slane %v1382_v53, 1  ;;  %v905_v21 = vld [vmem:[#allocation2 + $0x5c] sm:$0x1]  ;;  %707 = vst [vmem:[#allocation2 + $0x6c] sm:$0x1] %v706_v5  ;;  %v1223_v42 = vrot.slane %v1221_v50, 1 }
  0x7d   : > { %9922 = vmatpush3.bf16.msra.mxu1 %v11532_v6  ;;  %v12437_v36 = vcombine.low %v904_v15, %v905_v21  ;;  %v390_v6 = vrot.slane %v388_v2, 7  ;;  %v396_v10 = vshrl.u32 %v335_v24, 16  ;;  %v708_v61 = vld [vmem:[#allocation2 + $0x70] sm:$0xf]  ;;  %15434 = vst [vmem:[#allocation30_spill] sm:$0xff] %v12445_v11  ;;  %v399_v53 = vshll.u32 %v335_v24, 16 }
  0x7e   : > { %15431 = vst [vmem:[#allocation27_spill] sm:$0xff] %v12433_v27  ;;  %9923 = vmatprep.subr.bf16.mxu1 %v11539_v38  ;;  %v12442_v28 = vor.u32 %v1384_v45, %v1380_v57  ;;  %v711_v19 = vld [vmem:[#allocation2 + $0x74] sm:$0x1]  ;;  %v11549_v5 = vld [vmem:[%s15112_s2 + $0x100] sm:$0xff]   ;;  %v15145_v25 = vrot.slane %v12180_v41, 1  ;;  %v1224_v12 = vor.u32 %v1223_v42, %v1219_v16 }
  0x7f   : > { %15432 = vst [vmem:[#allocation28_spill] sm:$0xff] %v12437_v36  ;;  %v1226_v21 = vshrl.u32 %v12437_v36, 16  ;;  %v1228_v50 = vshll.u32 %v12437_v36, 16  ;;  %v393_v2 = vor.u32 %v391_v4, %v390_v6  ;;  %v394_v43 = vrot.slane %v390_v6, 4  ;;  %v11573_v57 = vld [vmem:[%s15112_s2 + $0x1f0] sm:$0xff]  }
  0x80   : > { %15433 = vst [vmem:[#allocation29_spill] sm:$0xff] %v12442_v28  ;;  %v12459_v35 = vcombine.low %v12433_v27, %v12442_v28  ;;  %v398_v24 = vrot.slane %v396_v10, 7  ;;  %v714_v45 = vld [vmem:[#allocation2 + $0x78] sm:$0xf]  ;;  %v717_v17 = vld [vmem:[#allocation2 + $0x7c] sm:$0x1]  ;;  %8971 = vmatprep.subr.bf16.mxu0 %v11573_v57 }
  0x81   : > { %9924 = vmatpush3.bf16.msra.mxu1 %v11539_v38  ;;  %v1230_v4 = vrot.slane %v1228_v50, 1  ;;  %v906_v6 = vld [vmem:[#allocation2 + $0x60] sm:$0xf]  ;;  %v907_v32 = vld [vmem:[#allocation2 + $0x64] sm:$0x1]  ;;  %v709_v58 = vsel %vm12082_vm4, %v393_v2, %v708_v61  ;;  %v712_v28 = vsel %vm12096_vm5, %v394_v43, %v711_v19  ;;  %v11574_v38 = vld [vmem:[%s15112_s2 + $0x1b0] sm:$0xff]  }
  0x82   : > { %15435 = vst [vmem:[#allocation31_spill] sm:$0xff] %v12459_v35  ;;  %9925 = vmatprep.subr.bf16.mxu1 %v11542_v22  ;;  %1922 = vmatprep.mubr.bf16.mxu1 %v12459_v35  ;;  %v12472_v10 = vcombine.low %v906_v6, %v907_v32  ;;  %v401_v42 = vor.u32 %v399_v53, %v398_v24  ;;  %v402_v50 = vrot.slane %v398_v24, 4  ;;  %710 = vst [vmem:[#allocation2 + $0x70] sm:$0xf] %v709_v58  ;;  %v908_v57 = vld [vmem:[#allocation2 + $0x68] sm:$0xf] }
  0x83   : > { %713 = vst [vmem:[#allocation2 + $0x74] sm:$0x1] %v712_v28  ;;  %1923 = vmatmul.mubr.bf16.gmra.mrb[12].mxu1 %v12445_v11  ;;  %v1231_v61 = vor.u32 %v1230_v4, %v1226_v21  ;;  %v15437_v43 = vrot.slane %v12142_v14, 1  ;;  %v15438_v19 = vrot.slane %v12136_v8, 1  ;;  %v909_v32 = vld [vmem:[#allocation2 + $0x6c] sm:$0x1]  ;;  %8972 = vmatpush3.bf16.msra.mxu0 %v11574_v38  ;;  %v12482_v52 = vcombine.low %v904_v15, %v906_v6 }
  0x84   : > { %15436 = vst [vmem:[#allocation32_spill] sm:$0xff] %v12472_v10  ;;  %v12485_v53 = vcombine.low %v12339_v29, %v904_v15  ;;  %9927 = vmatprep.mubr.bf16.mxu1 %v12414_v46  ;;  %v12488_v58 = vcombine.low %v908_v57, %v909_v32  ;;  %v1233_v14 = vshrl.u32 %v12472_v10, 16  ;;  %v1235_v28 = vshll.u32 %v12472_v10, 16  ;;  %v336_v21 = vld [vmem:[%s11897_s18 + $0x14] sm:$0xf] }
  0x85   : > { %v12480_v2 = vcombine.low %v15438_v19, %v15437_v43  ;;  %15440 = vst [vmem:[#allocation34_spill] sm:$0xff] %v12482_v52  ;;  %9926 = vmatpush3.bf16.msra.mxu1 %v11542_v22  ;;  %v12493_v24 = vcombine.low %v1224_v12, %v1231_v61  ;;  %v715_v38 = vsel %vm12082_vm4, %v401_v42, %v714_v45  ;;  %v337_v29 = vld [vmem:[%s11897_s18 + $0x18] sm:$0xf]  ;;  %v404_v45 = vshrl.u32 %v336_v21, 16  ;;  %v720_v16 = vld [vmem:[#allocation2 + $0x80] sm:$0xf] }
  0x86   : > { %15441 = vst [vmem:[#allocation35_spill] sm:$0xff] %v12485_v53  ;;  %15442 = vst [vmem:[#allocation36_spill] sm:$0xff] %v12488_v58  ;;  %8823 = vmatprep.subr.bf16.mxu1 %v11549_v5  ;;  %v718_v15 = vsel %vm12096_vm5, %v402_v50, %v717_v17  ;;  %v1237_v46 = vrot.slane %v1235_v28, 1  ;;  %v1240_v22 = vshrl.u32 %v12488_v58, 16  ;;  %v1242_v43 = vshll.u32 %v12488_v58, 16  ;;  %v11550_v5 = vld [vmem:[%s15112_s2 + $0xc0] sm:$0xff]  }
  0x87   : > { %15439 = vst [vmem:[#allocation33_spill] sm:$0xff] %v12480_v2  ;;  %15443 = vst [vmem:[#allocation37_spill] sm:$0xff] %v12493_v24  ;;  %1834 = vmatprep.mubr.bf16.mxu0 %v12493_v24  ;;  %v11556_v17 = vld [vmem:[%s15112_s2 + $0x108] sm:$0xff]   ;;  %v407_v42 = vshll.u32 %v336_v21, 16  ;;  %v412_v50 = vshrl.u32 %v337_v29, 16  ;;  %v415_v19 = vshll.u32 %v337_v29, 16  ;;  %v12519_v11 = vcombine.low %v906_v6, %v908_v57 }
  0x88   : > { %716 = vst [vmem:[#allocation2 + $0x78] sm:$0xf] %v715_v38  ;;  %719 = vst [vmem:[#allocation2 + $0x7c] sm:$0x1] %v718_v15  ;;  %1835 = vmatmul.mubr.bf16.gmra.mrb[16].mxu0 %v12485_v53  ;;  %v1238_v32 = vor.u32 %v1237_v46, %v1233_v14  ;;  %v1244_v28 = vrot.slane %v1242_v43, 1  ;;  %v15444_v38 = vrot.slane %v12167_v40, 1 }
  0x89   : > { %v723_v4 = vld [vmem:[#allocation2 + $0x84] sm:$0x1]  ;;  %v726_v8 = vld [vmem:[#allocation2 + $0x88] sm:$0xf]  ;;  %v729_v24 = vld [vmem:[#allocation2 + $0x8c] sm:$0x1] }
  0x8a   : > { %v12516_v15 = vcombine.low %v15444_v38, %v15145_v25  ;;  %15446 = vst [vmem:[#allocation39_spill] sm:$0xff] %v12519_v11  ;;  %v910_v21 = vld [vmem:[#allocation2 + $0x70] sm:$0xf]  ;;  %v911_v29 = vld [vmem:[#allocation2 + $0x74] sm:$0x1]  ;;  %v406_v27 = vrot.slane %v404_v45, 7  ;;  %v12521_v14 = vor.u32 %v1244_v28, %v1240_v22  ;;  %v12528_v43 = vcombine.low %v1231_v61, %v1238_v32 }
  0x8b   : > { %v414_v53 = vrot.slane %v412_v50, 7  ;;  %v12523_v46 = vcombine.low %v910_v21, %v911_v29  ;;  %v11557_v40 = vld [vmem:[%s15112_s2 + $0xc8] sm:$0xff]   ;;  %v12530_v38 = vcombine.low %v908_v57, %v910_v21  ;;  %9928 = vmatmul.mubr.bf16.vlgmr.msra.gmra.mrb[16].mxu1 %v12480_v2  ;;  %v15155_v50 = vrot.slane %v12472_v10, 1  ;;  %v11561_v57 = vld [vmem:[%s15112_s2 + $0x110] sm:$0xff]  }
  0x8c   : > { %15445 = vst [vmem:[#allocation38_spill] sm:$0xff] %v12516_v15  ;;  %v409_v6 = vor.u32 %v407_v42, %v406_v27  ;;  %v410_v25 = vrot.slane %v406_v27, 4  ;;  %v12534_v45 = vcombine.low %v1238_v32, %v12521_v14  ;;  %9931 = vmatprep.mubr.bf16.mxu1 %v12516_v15  ;;  %8824 = vmatpush3.bf16.msra.mxu1 %v11550_v5  ;;  %v15154_v61 = vrot.slane %v12488_v58, 1  ;;  %v12597_v15 = vld [vmem:[%s11897_s18 + $0x28] sm:$0xf] }
  0x8d   : > { %15447 = vst [vmem:[#allocation40_spill] sm:$0xff] %v12523_v46  ;;  %15448 = vst [vmem:[#allocation41_spill] sm:$0xff] %v12530_v38  ;;  %v417_v12 = vor.u32 %v415_v19, %v414_v53  ;;  %v418_v41 = vrot.slane %v414_v53, 4  ;;  %v1249_v22 = vshll.u32 %v12523_v46, 16  ;;  %8825 = vmatprep.subr.bf16.mxu1 %v11556_v17  ;;  %v1247_v29 = vshrl.u32 %v12523_v46, 16 }
  0x8e   : > { %15449 = vst [vmem:[#allocation42_spill] sm:$0xff] %v12534_v45  ;;  %v721_v42 = vsel %vm12082_vm4, %v409_v6, %v720_v16  ;;  %v724_v5 = vsel %vm12096_vm5, %v410_v25, %v723_v4  ;;  %1842 = vmatprep.mubr.bf16.mxu0 %v12534_v45  ;;  %v339_v16 = vld [vmem:[%s11897_s18 + $0x20] sm:$0xf]  ;;  %v15451_v25 = vrot.slane %v12263_v7, 1  ;;  %v738_v58 = vld [vmem:[#allocation2 + $0xa8] sm:$0xf] }
  0x8f   : > { %v12543_v27 = vld [vmem:[#allocation2 + $0x78] sm:$0xf]  ;;  %v913_v53 = vld [vmem:[#allocation2 + $0x7c] sm:$0x1]  ;;  %v727_v19 = vsel %vm12082_vm4, %v417_v12, %v726_v8  ;;  %v730_v32 = vsel %vm12096_vm5, %v418_v41, %v729_v24  ;;  %v1251_v17 = vrot.slane %v1249_v22, 1  ;;  %v15452_v8 = vrot.slane %v12255_v0, 1 }
  0x90   : > { %v12555_v28 = vcombine.low %v12543_v27, %v913_v53  ;;  %722 = vst [vmem:[#allocation2 + $0x80] sm:$0xf] %v721_v42  ;;  %725 = vst [vmem:[#allocation2 + $0x84] sm:$0x1] %v724_v5  ;;  %v11563_v41 = vld [vmem:[%s15112_s2 + $0xd0] sm:$0xff]   ;;  %v428_v24 = vshrl.u32 %v339_v16, 16  ;;  %1843 = vmatmul.mubr.bf16.gmra.mrb[20].mxu0 %v12519_v11  ;;  %8826 = vmatpush3.bf16.msra.mxu1 %v11557_v40  ;;  %v12600_v7 = vcombine.low %v910_v21, %v12543_v27 }
  0x91   : > { %728 = vst [vmem:[#allocation2 + $0x88] sm:$0xf] %v727_v19  ;;  %731 = vst [vmem:[#allocation2 + $0x8c] sm:$0x1] %v730_v32  ;;  %v12563_v4 = vcombine.low %v15452_v8, %v15451_v25  ;;  %v431_v12 = vshll.u32 %v339_v16, 16  ;;  %v15454_v42 = vrot.slane %v12437_v36, 1  ;;  %v12589_v8 = vcombine.low %v15155_v50, %v15154_v61  ;;  %8827 = vmatprep.subr.bf16.mxu1 %v11561_v57 }
  0x92   : > { %15450 = vst [vmem:[#allocation43_spill] sm:$0xff] %v12555_v28  ;;  %v12568_v6 = vld [vmem:[#allocation2 + $0xa0] sm:$0xf]  ;;  %v1254_v22 = vshrl.u32 %v12555_v28, 16  ;;  %v1256_v53 = vshll.u32 %v12555_v28, 16  ;;  %v15455_v5 = vrot.slane %v12366_v20, 1  ;;  %v1252_v2 = vor.u32 %v1251_v17, %v1247_v29 }
  0x93   : > { %15453 = vst [vmem:[#allocation44_spill] sm:$0xff] %v12563_v4  ;;  %v923_v32 = vld [vmem:[#allocation2 + $0xa4] sm:$0x1]  ;;  %v11570_v16 = vld [vmem:[%s15112_s2 + $0x118] sm:$0xff]   ;;  %15457 = vst [vmem:[#allocation46_spill] sm:$0xff] %v12589_v8  ;;  %9932 = vmatmul.mubr.bf16.gmra.mrb[20].mxu1 %v12563_v4  ;;  %v447_v52 = vshll.u32 %v12597_v15, 16 }
  0x94   : > { %v12577_v19 = vcombine.low %v15455_v5, %v15454_v42  ;;  %v11583_v25 = vld [vmem:[%s15112_s2 + $0x1f8] sm:$0xff]   ;;  %v430_v42 = vrot.slane %v428_v24, 7  ;;  %v12593_v40 = vcombine.low %v12568_v6, %v923_v32  ;;  %v340_v5 = vld [vmem:[%s11897_s18 + $0x24] sm:$0xf]  ;;  %v1258_v36 = vrot.slane %v1256_v53, 1  ;;  %15458 = vst [vmem:[#allocation47_spill] sm:$0xff] %v12600_v7  ;;  %8828 = vmatpush3.bf16.msra.mxu1 %v11563_v41 }
  0x95   : > { %v741_v0 = vld [vmem:[#allocation2 + $0xac] sm:$0x1]  ;;  %v436_v10 = vshrl.u32 %v340_v5, 16  ;;  %8973 = vmatprep.subr.bf16.mxu0 %v11583_v25  ;;  %v439_v32 = vshll.u32 %v340_v5, 16  ;;  %v11585_v50 = vld [vmem:[%s15112_s2 + $0x1b8] sm:$0xff]   ;;  %v444_v53 = vshrl.u32 %v12597_v15, 16  ;;  %8829 = vmatprep.subr.bf16.mxu1 %v11570_v16  ;;  %v12625_v20 = vcombine.low %v12521_v14, %v1252_v2 }
  0x96   : > { %15456 = vst [vmem:[#allocation45_spill] sm:$0xff] %v12577_v19  ;;  %v433_v61 = vor.u32 %v431_v12, %v430_v42  ;;  %v434_v57 = vrot.slane %v430_v42, 4  ;;  %v1277_v24 = vshll.u32 %v12593_v40, 16  ;;  %v12607_v29 = vor.u32 %v1258_v36, %v1254_v22  ;;  %9935 = vmatprep.mubr.bf16.mxu1 %v12577_v19  ;;  %v11571_v12 = vld [vmem:[%s15112_s2 + $0xd8] sm:$0xff]   ;;  %v11579_v25 = vld [vmem:[%s15112_s2 + $0x120] sm:$0xff]   ;;  %8974 = vmatpush3.bf16.msra.mxu0 %v11585_v50 }
  0x97   : > { %v438_v17 = vrot.slane %v436_v10, 7  ;;  %v12618_v42 = vld [vmem:[#allocation2 + $0x80] sm:$0xf]  ;;  %v915_v36 = vld [vmem:[#allocation2 + $0x84] sm:$0x1]  ;;  %15459 = vst [vmem:[#allocation48_spill] sm:$0xff] %v12625_v20 }
  0x98   : > { %v916_v22 = vld [vmem:[#allocation2 + $0x88] sm:$0xf]  ;;  %v739_v5 = vsel %vm12082_vm4, %v433_v61, %v738_v58  ;;  %v742_v10 = vsel %vm12096_vm5, %v434_v57, %v741_v0  ;;  %v744_v41 = vld [vmem:[#allocation2 + $0xb0] sm:$0xf]  ;;  %v12628_v21 = vcombine.low %v1252_v2, %v12607_v29  ;;  %v917_v19 = vld [vmem:[#allocation2 + $0x8c] sm:$0x1]  ;;  %v12631_v4 = vcombine.low %v12618_v42, %v915_v36  ;;  %8830 = vmatpush3.bf16.msra.mxu1 %v11571_v12 }
  0x99   : > { %740 = vst [vmem:[#allocation2 + $0xa8] sm:$0xf] %v739_v5  ;;  %743 = vst [vmem:[#allocation2 + $0xac] sm:$0x1] %v742_v10  ;;  %v1275_v58 = vshrl.u32 %v12593_v40, 16  ;;  %v1279_v61 = vrot.slane %v1277_v24, 1  ;;  %v12637_v50 = vcombine.low %v916_v22, %v917_v19  ;;  %v441_v14 = vor.u32 %v439_v32, %v438_v17  ;;  %8831 = vmatprep.subr.bf16.mxu1 %v11579_v25 }
  0x9a   : > { %15460 = vst [vmem:[#allocation49_spill] sm:$0xff] %v12628_v21  ;;  %15461 = vst [vmem:[#allocation50_spill] sm:$0xff] %v12631_v4  ;;  %v747_v35 = vld [vmem:[#allocation2 + $0xb4] sm:$0x1]  ;;  %v11580_v0 = vld [vmem:[%s15112_s2 + $0xe0] sm:$0xff]   ;;  %v442_v16 = vrot.slane %v438_v17, 4  ;;  %1850 = vmatprep.mubr.bf16.mxu0 %v12628_v21 }
  0x9b   : > { %15462 = vst [vmem:[#allocation51_spill] sm:$0xff] %v12637_v50  ;;  %v446_v2 = vrot.slane %v444_v53, 7  ;;  %v11582_v57 = vld [vmem:[%s15112_s2 + $0x128] sm:$0xff]   ;;  %v1261_v36 = vshrl.u32 %v12631_v4, 16  ;;  %v1263_v24 = vshll.u32 %v12631_v4, 16  ;;  %v15463_v5 = vrot.slane %v12555_v28, 1  ;;  %1851 = vmatmul.mubr.bf16.gmra.mrb[24].mxu0 %v12600_v7  ;;  %9936 = vmatmul.mubr.bf16.gmra.mrb[24].mxu1 %v12589_v8 }
  0x9c   : > { %v15464_v10 = vrot.slane %v12523_v46, 1  ;;  %v750_v19 = vld [vmem:[#allocation2 + $0xb8] sm:$0xf]  ;;  %v753_v32 = vld [vmem:[#allocation2 + $0xbc] sm:$0x1]  ;;  %v1268_v17 = vshrl.u32 %v12637_v50, 16  ;;  %v748_v12 = vsel %vm12096_vm5, %v442_v16, %v747_v35  ;;  %8832 = vmatpush3.bf16.msra.mxu1 %v11580_v0 }
  0x9d   : > { %v1270_v53 = vshll.u32 %v12637_v50, 16  ;;  %v1265_v28 = vrot.slane %v1263_v24, 1  ;;  %v450_v46 = vrot.slane %v446_v2, 4  ;;  %v449_v25 = vor.u32 %v447_v52, %v446_v2  ;;  %749 = vst [vmem:[#allocation2 + $0xb4] sm:$0x1] %v748_v12  ;;  %8833 = vmatprep.subr.bf16.mxu1 %v11582_v57 }
  0x9e   : > { %v12649_v38 = vcombine.low %v15464_v10, %v15463_v5  ;;  %v745_v5 = vsel %vm12082_vm4, %v441_v14, %v744_v41  ;;  %v11584_v10 = vld [vmem:[%s15112_s2 + $0xe8] sm:$0xff]   ;;  %v1402_v41 = vrot.slane %v12593_v40, 1  ;;  %v343_v16 = vld [vmem:[%s11897_s18 + $0x30] sm:$0xf]  ;;  %v12678_v52 = vcombine.low %v12543_v27, %v12618_v42  ;;  %v759_v12 = vld [vmem:[#allocation2 + $0xc4] sm:$0x1] }
  0x9f   : > { %v1272_v20 = vrot.slane %v1270_v53, 1  ;;  %746 = vst [vmem:[#allocation2 + $0xb0] sm:$0xf] %v745_v5  ;;  %v12665_v24 = vor.u32 %v1265_v28, %v1261_v36  ;;  %v754_v35 = vsel %vm12096_vm5, %v450_v46, %v753_v32  ;;  %v342_v14 = vld [vmem:[%s11897_s18 + $0x2c] sm:$0xf]  ;;  %v11587_v53 = vld [vmem:[%s15112_s2 + $0x130] sm:$0xff]   ;;  %v751_v40 = vsel %vm12082_vm4, %v449_v25, %v750_v19 }
  0xa0   : > { %15465 = vst [vmem:[#allocation52_spill] sm:$0xff] %v12649_v38  ;;  %9939 = vmatprep.mubr.bf16.mxu1 %v12649_v38  ;;  %15466 = vst [vmem:[#allocation53_spill] sm:$0xff] %v12678_v52  ;;  %v12682_v2 = vld [vmem:[#allocation2 + $0xa8] sm:$0xf]  ;;  %v925_v36 = vld [vmem:[#allocation2 + $0xac] sm:$0x1]  ;;  %v12687_v32 = vcombine.low %v12618_v42, %v916_v22  ;;  %v1280_v42 = vor.u32 %v1279_v61, %v1275_v58  ;;  %8834 = vmatpush3.bf16.msra.mxu1 %v11584_v10 }
  0xa1   : > { %v12680_v28 = vor.u32 %v1272_v20, %v1268_v17  ;;  %755 = vst [vmem:[#allocation2 + $0xbc] sm:$0x1] %v754_v35  ;;  %v452_v46 = vshrl.u32 %v342_v14, 16  ;;  %v455_v0 = vshll.u32 %v342_v14, 16  ;;  %v12690_v5 = vcombine.low %v12682_v2, %v925_v36  ;;  %752 = vst [vmem:[#allocation2 + $0xb8] sm:$0xf] %v751_v40  ;;  %8835 = vmatprep.subr.bf16.mxu1 %v11587_v53 }
  0xa2   : > { %15468 = vst [vmem:[#allocation55_spill] sm:$0xff] %v12687_v32  ;;  %v460_v27 = vshrl.u32 %v343_v16, 16  ;;  %v463_v20 = vshll.u32 %v343_v16, 16  ;;  %v756_v17 = vld [vmem:[#allocation2 + $0xc0] sm:$0xf]  ;;  %v15471_v19 = vrot.slane %v12637_v50, 1 }
  0xa3   : > { %15467 = vst [vmem:[#allocation54_spill] sm:$0xff] %v12680_v28  ;;  %15469 = vst [vmem:[#allocation56_spill] sm:$0xff] %v12690_v5  ;;  %v12694_v15 = vcombine.low %v12665_v24, %v12680_v28  ;;  %v15472_v25 = vrot.slane %v12631_v4, 1  ;;  %v454_v22 = vrot.slane %v452_v46, 7  ;;  %v762_v35 = vld [vmem:[#allocation2 + $0xc8] sm:$0xf] }
  0xa4   : > { %v344_v14 = vld [vmem:[%s11897_s18 + $0x34] sm:$0xf]  ;;  %v1282_v36 = vshrl.u32 %v12690_v5, 16  ;;  %v1284_v40 = vshll.u32 %v12690_v5, 16  ;;  %v15176_v38 = vrot.slane %v12690_v5, 1  ;;  %v462_v8 = vrot.slane %v460_v27, 7 }
  0xa5   : > { %15470 = vst [vmem:[#allocation57_spill] sm:$0xff] %v12694_v15  ;;  %v12700_v57 = vcombine.low %v15472_v25, %v15471_v19  ;;  %v11588_v16 = vld [vmem:[%s15112_s2 + $0xf0] sm:$0xff]   ;;  %v765_v50 = vld [vmem:[#allocation2 + $0xcc] sm:$0x1]  ;;  %1858 = vmatprep.mubr.bf16.mxu0 %v12694_v15  ;;  %v457_v19 = vor.u32 %v455_v0, %v454_v22  ;;  %v458_v58 = vrot.slane %v454_v22, 4  ;;  %v468_v46 = vshrl.u32 %v344_v14, 16 }
  0xa6   : > { %v345_v61 = vld [vmem:[%s11897_s18 + $0x38] sm:$0xf]  ;;  %v471_v25 = vshll.u32 %v344_v14, 16  ;;  %1859 = vmatmul.mubr.bf16.gmra.mrb[28].mxu0 %v12687_v32  ;;  %v1286_v52 = vrot.slane %v1284_v40, 1  ;;  %v12717_v27 = vcombine.low %v1402_v41, %v15176_v38  ;;  %v12719_v10 = vld [vmem:[#allocation2 + $0xb0] sm:$0xf]  ;;  %v465_v0 = vor.u32 %v463_v20, %v462_v8  ;;  %8836 = vmatpush3.bf16.msra.mxu1 %v11588_v16 }
  0xa7   : > { %15473 = vst [vmem:[#allocation58_spill] sm:$0xff] %v12700_v57  ;;  %v11589_v4 = vld [vmem:[%s15112_s2 + $0x138] sm:$0xff]   ;;  %v927_v28 = vld [vmem:[#allocation2 + $0xb4] sm:$0x1]  ;;  %v466_v22 = vrot.slane %v462_v8, 4  ;;  %9940 = vmatmul.mubr.bf16.gmra.mrb[28].mxu1 %v12700_v57  ;;  %v757_v14 = vsel %vm12082_vm4, %v457_v19, %v756_v17  ;;  %v760_v40 = vsel %vm12096_vm5, %v458_v58, %v759_v12  ;;  %v470_v32 = vrot.slane %v468_v46, 7 }
  0xa8   : > { %15474 = vst [vmem:[#allocation59_spill] sm:$0xff] %v12717_v27  ;;  %v12723_v53 = vcombine.low %v12719_v10, %v927_v28  ;;  %v768_v5 = vld [vmem:[#allocation2 + $0xd0] sm:$0xf]  ;;  %v11591_v41 = vld [vmem:[%s15112_s2 + $0x280] sm:$0xff]   ;;  %v1287_v38 = vor.u32 %v1286_v52, %v1282_v36  ;;  %9943 = vmatprep.mubr.bf16.mxu1 %v12717_v27  ;;  %v929_v8 = vld [vmem:[#allocation2 + $0xbc] sm:$0x1]  ;;  %v763_v28 = vsel %vm12082_vm4, %v465_v0, %v762_v35 }
  0xa9   : > { %758 = vst [vmem:[#allocation2 + $0xc0] sm:$0xf] %v757_v14  ;;  %761 = vst [vmem:[#allocation2 + $0xc4] sm:$0x1] %v760_v40  ;;  %v766_v20 = vsel %vm12096_vm5, %v466_v22, %v765_v50  ;;  %v476_v17 = vshrl.u32 %v345_v61, 16  ;;  %v11590_v19 = vld [vmem:[%s15112_s2 + $0xf8] sm:$0xff]   ;;  %v12742_v52 = vcombine.low %v12568_v6, %v12682_v2  ;;  %v473_v35 = vor.u32 %v471_v25, %v470_v32 }
  0xaa   : > { %v771_v12 = vld [vmem:[#allocation2 + $0xd4] sm:$0x1]  ;;  %v928_v36 = vld [vmem:[#allocation2 + $0xb8] sm:$0xf]  ;;  %v1289_v58 = vshrl.u32 %v12723_v53, 16  ;;  %v1291_v46 = vshll.u32 %v12723_v53, 16  ;;  %8837 = vmatprep.subr.bf16.mxu1 %v11589_v4  ;;  %9095 = vmatprep.subr.bf16.mxu0 %v11591_v41  ;;  %v12751_v16 = vcombine.low %v1280_v42, %v1287_v38 }
  0xab   : > { %15475 = vst [vmem:[#allocation60_spill] sm:$0xff] %v12742_v52  ;;  %764 = vst [vmem:[#allocation2 + $0xc8] sm:$0xf] %v763_v28  ;;  %v12749_v50 = vld [vmem:[%s15112_s2 + $0x140] sm:$0xff]   ;;  %v12753_v0 = vcombine.low %v928_v36, %v929_v8  ;;  %v15180_v6 = vrot.slane %v12723_v53, 1  ;;  %v474_v22 = vrot.slane %v470_v32, 4  ;;  %v769_v4 = vsel %vm12082_vm4, %v473_v35, %v768_v5  ;;  %8838 = vmatpush3.bf16.msra.mxu1 %v11590_v19 }
  0xac   : > { %767 = vst [vmem:[#allocation2 + $0xcc] sm:$0x1] %v766_v20  ;;  %15476 = vst [vmem:[#allocation61_spill] sm:$0xff] %v12751_v16  ;;  %v774_v14 = vld [vmem:[#allocation2 + $0xd8] sm:$0xf]  ;;  %v1293_v27 = vrot.slane %v1291_v46, 1  ;;  %1866 = vmatprep.mubr.bf16.mxu0 %v12751_v16  ;;  %9959 = vmatprep.subr.bf16.mxu1 %v12749_v50  ;;  %v12774_v35 = vcombine.low %v12607_v29, %v12665_v24  ;;  %v12787_v29 = vcombine.low %v12682_v2, %v12719_v10 }
  0xad   : > { %15477 = vst [vmem:[#allocation62_spill] sm:$0xff] %v12753_v0  ;;  %v777_v40 = vld [vmem:[#allocation2 + $0xdc] sm:$0x1]  ;;  %v478_v28 = vrot.slane %v476_v17, 7  ;;  %v479_v20 = vshll.u32 %v345_v61, 16  ;;  %v15179_v25 = vrot.slane %v12753_v0, 1  ;;  %v772_v32 = vsel %vm12096_vm5, %v474_v22, %v771_v12 }
  0xae   : > { %v1296_v42 = vshrl.u32 %v12753_v0, 16  ;;  %v1298_v41 = vshll.u32 %v12753_v0, 16  ;;  %770 = vst [vmem:[#allocation2 + $0xd0] sm:$0xf] %v769_v4  ;;  %v1294_v8 = vor.u32 %v1293_v27, %v1289_v58  ;;  %773 = vst [vmem:[#allocation2 + $0xd4] sm:$0x1] %v772_v32  ;;  %1867 = vmatmul.mubr.bf16.gmra.mrb[32].mxu0 %v12742_v52 }
  0xaf   : > { %v481_v46 = vor.u32 %v479_v20, %v478_v28  ;;  %v482_v17 = vrot.slane %v478_v28, 4  ;;  %v12770_v5 = vcombine.low %v15180_v6, %v15179_v25  ;;  %15479 = vst [vmem:[#allocation64_spill] sm:$0xff] %v12774_v35  ;;  %15482 = vst [vmem:[#allocation67_spill] sm:$0xff] %v12787_v29  ;;  %v1410_v25 = vrot.slane %v12127_v1, 1 }
  0xb0   : > { %v1300_v61 = vrot.slane %v1298_v41, 1  ;;  %v930_v12 = vld [vmem:[#allocation2 + $0xc0] sm:$0xf]  ;;  %v931_v27 = vld [vmem:[#allocation2 + $0xc4] sm:$0x1]  ;;  %v12780_v22 = vcombine.low %v1287_v38, %v1294_v8 }
  0xb1   : > { %15478 = vst [vmem:[#allocation63_spill] sm:$0xff] %v12770_v5  ;;  %v775_v19 = vsel %vm12082_vm4, %v481_v46, %v774_v14  ;;  %v778_v58 = vsel %vm12096_vm5, %v482_v17, %v777_v40  ;;  %9944 = vmatmul.mubr.bf16.gmra.mrb[32].mxu1 %v12770_v5  ;;  %v12783_v41 = vcombine.low %v930_v12, %v931_v27 }
  0xb2   : > { %15480 = vst [vmem:[#allocation65_spill] sm:$0xff] %v12780_v22  ;;  %v1301_v28 = vor.u32 %v1300_v61, %v1296_v42  ;;  %v932_v20 = vld [vmem:[#allocation2 + $0xc8] sm:$0xf]  ;;  %776 = vst [vmem:[#allocation2 + $0xd8] sm:$0xf] %v775_v19  ;;  %v12789_v24 = vcombine.low %v928_v36, %v930_v12  ;;  %v12792_v14 = vcombine.low %v12719_v10, %v928_v36 }
  0xb3   : > { %v933_v4 = vld [vmem:[#allocation2 + $0xcc] sm:$0x1]  ;;  %15481 = vst [vmem:[#allocation66_spill] sm:$0xff] %v12783_v41  ;;  %779 = vst [vmem:[#allocation2 + $0xdc] sm:$0x1] %v778_v58  ;;  %v15189_v42 = vrot.slane %v12783_v41, 1 }
  0xb4   : > { %15483 = vst [vmem:[#allocation68_spill] sm:$0xff] %v12789_v24  ;;  %15484 = vst [vmem:[#allocation69_spill] sm:$0xff] %v12792_v14  ;;  %v12794_v38 = vcombine.low %v932_v20, %v933_v4  ;;  %v12796_v40 = vcombine.low %v1294_v8, %v1301_v28  ;;  %v1303_v32 = vshrl.u32 %v12783_v41, 16  ;;  %v1305_v46 = vshll.u32 %v12783_v41, 16 }
  0xb5   : > { %v934_v61 = vld [vmem:[#allocation2 + $0xd0] sm:$0xf]  ;;  %v935_v10 = vld [vmem:[#allocation2 + $0xd4] sm:$0x1] }
  0xb6   : > { %15485 = vst [vmem:[#allocation70_spill] sm:$0xff] %v12794_v38  ;;  %15486 = vst [vmem:[#allocation71_spill] sm:$0xff] %v12796_v40  ;;  %v15188_v17 = vrot.slane %v12794_v38, 1  ;;  %v1310_v2 = vshrl.u32 %v12794_v38, 16  ;;  %v1312_v27 = vshll.u32 %v12794_v38, 16  ;;  %1874 = vmatprep.mubr.bf16.mxu0 %v12796_v40  ;;  %v1307_v36 = vrot.slane %v1305_v46, 1 }
  0xb7   : > { %v12805_v19 = vcombine.low %v932_v20, %v934_v61  ;;  %v12813_v58 = vcombine.low %v934_v61, %v935_v10  ;;  %1875 = vmatmul.mubr.bf16.gmra.mrb[36].mxu0 %v12792_v14  ;;  %v15192_v38 = vrot.slane %v12182_v56, 1 }
  0xb8   : > { %v12811_v8 = vcombine.low %v15189_v42, %v15188_v17  ;;  %v1314_v4 = vrot.slane %v1312_v27, 1  ;;  %v1308_v6 = vor.u32 %v1307_v36, %v1303_v32  ;;  %v12828_v32 = vcombine.low %v930_v12, %v932_v20 }
  0xb9   : > { %15487 = vst [vmem:[#allocation72_spill] sm:$0xff] %v12805_v19  ;;  %v936_v5 = vld [vmem:[#allocation2 + $0xd8] sm:$0xf]  ;;  %v1317_v10 = vshrl.u32 %v12813_v58, 16  ;;  %v1319_v27 = vshll.u32 %v12813_v58, 16 }
  0xba   : > { %15488 = vst [vmem:[#allocation73_spill] sm:$0xff] %v12811_v8  ;;  %9947 = vmatprep.mubr.bf16.mxu1 %v12811_v8  ;;  %v937_v46 = vld [vmem:[#allocation2 + $0xdc] sm:$0x1]  ;;  %v1315_v0 = vor.u32 %v1314_v4, %v1310_v2  ;;  %v12824_v17 = vcombine.low %v1301_v28, %v1308_v6  ;;  %15491 = vst [vmem:[#allocation76_spill] sm:$0xff] %v12828_v32  ;;  %v12836_v4 = vcombine.low %v1410_v25, %v15192_v38 }
  0xbb   : > { %v12820_v41 = vcombine.low %v936_v5, %v937_v46  ;;  %v1321_v42 = vrot.slane %v1319_v27, 1  ;;  %v15199_v46 = vrot.slane %v12238_v49, 1  ;;  %v15198_v27 = vrot.slane %v12246_v63, 1  ;;  %v732_v63 = vld [vmem:[#allocation2 + $0x90] sm:$0xf] }
  0xbc   : > { %15489 = vst [vmem:[#allocation74_spill] sm:$0xff] %v12824_v17  ;;  %v12826_v1 = vcombine.low %v1308_v6, %v1315_v0  ;;  %15492 = vst [vmem:[#allocation77_spill] sm:$0xff] %v12836_v4  ;;  %v15493_v6 = vrot.slane %v12813_v58, 1  ;;  %v15202_v25 = vrot.slane %v12306_v9, 1  ;;  %v15201_v38 = vrot.slane %v12319_v47, 1 }
  0xbd   : > { %v15193_v36 = vrot.slane %v12820_v41, 1  ;;  %v1324_v57 = vshrl.u32 %v12820_v41, 16  ;;  %v1326_v2 = vshll.u32 %v12820_v41, 16  ;;  %v1322_v12 = vor.u32 %v1321_v42, %v1317_v10 }
  0xbe   : > { %15490 = vst [vmem:[#allocation75_spill] sm:$0xff] %v12826_v1  ;;  %1882 = vmatprep.mubr.bf16.mxu0 %v12826_v1  ;;  %v12862_v10 = vcombine.low %v15199_v46, %v15198_v27  ;;  %v12877_v27 = vld [vmem:[#allocation2 + $0x48] sm:$0xf]  ;;  %v901_v46 = vld [vmem:[#allocation2 + $0x4c] sm:$0x1]  ;;  %v15500_v47 = vrot.slane %v12397_v23, 1 }
  0xbf   : > { %v12842_v28 = vcombine.low %v15493_v6, %v15193_v36  ;;  %v1328_v20 = vrot.slane %v1326_v2, 1  ;;  %1883 = vmatmul.mubr.bf16.gmra.mrb[40].mxu0 %v12828_v32  ;;  %v12853_v6 = vcombine.low %v1315_v0, %v1322_v12  ;;  %v12871_v2 = vcombine.low %v15202_v25, %v15201_v38  ;;  %v899_v36 = vld [vmem:[#allocation2 + $0x44] sm:$0x1] }
  0xc0   : > { %15497 = vst [vmem:[#allocation81_spill] sm:$0xff] %v12862_v10  ;;  %v12894_v9 = vcombine.low %v12877_v27, %v901_v46 }
  0xc1   : > { %15494 = vst [vmem:[#allocation78_spill] sm:$0xff] %v12842_v28  ;;  %9948 = vmatmul.mubr.bf16.gmra.mrb[36].mxu1 %v12842_v28  ;;  %v12848_v8 = vor.u32 %v1328_v20, %v1324_v57  ;;  %15495 = vst [vmem:[#allocation79_spill] sm:$0xff] %v12853_v6  ;;  %v12865_v57 = vcombine.low %v934_v61, %v936_v5  ;;  %v12875_v20 = vld [vmem:[#allocation2 + $0x40] sm:$0xf]  ;;  %v735_v5 = vld [vmem:[#allocation2 + $0x94] sm:$0x1] }
  0xc2   : > { %9951 = vmatprep.mubr.bf16.mxu1 %v12836_v4  ;;  %15499 = vst [vmem:[#allocation83_spill] sm:$0xff] %v12871_v2  ;;  %v15207_v61 = vrot.slane %v12406_v54, 1  ;;  %v12885_v25 = vcombine.low %v12875_v20, %v899_v36  ;;  %v11592_v36 = vld [vmem:[%s15112_s2 + $0x240] sm:$0xff]  }
  0xc3   : > { %v12856_v42 = vcombine.low %v1322_v12, %v12848_v8  ;;  %15498 = vst [vmem:[#allocation82_spill] sm:$0xff] %v12865_v57  ;;  %v338_v12 = vld [vmem:[%s11897_s18 + $0x1c] sm:$0xf] }
  0xc4   : > { %v420_v4 = vshrl.u32 %v338_v12, 16  ;;  %v423_v28 = vshll.u32 %v338_v12, 16 }
  0xc5   : > { %15496 = vst [vmem:[#allocation80_spill] sm:$0xff] %v12856_v42  ;;  %1890 = vmatprep.mubr.bf16.mxu0 %v12856_v42 }
  0xc6   : > { %v422_v38 = vrot.slane %v420_v4, 7 }
  0xc7   : > { %1891 = vmatmul.mubr.bf16.gmra.mrb[44].mxu0 %v12865_v57 }
  0xc8   : > { %3200 = vmatprep.mubr.bf16.mxu0 %v12199_v13  ;;  %v425_v12 = vor.u32 %v423_v28, %v422_v38  ;;  %v426_v0 = vrot.slane %v422_v38, 4  ;;  %v346_v38 = vld [vmem:[%s11897_s18 + $0x3c] sm:$0xf]  ;;  %v2147_v28 = vshll.u32 %v12885_v25, 16 }
  0xc9   : > { %9952 = vmatmul.mubr.bf16.gmra.mrb[40].mxu1 %v12862_v10  ;;  %v12891_v10 = vcombine.low %v15500_v47, %v15207_v61  ;;  %v11595_v47 = vld [vmem:[%s15112_s2 + $0x288] sm:$0xff]   ;;  %v484_v46 = vshrl.u32 %v346_v38, 16  ;;  %v487_v61 = vshll.u32 %v346_v38, 16  ;;  %v11603_v38 = vld [vmem:[%s15112_s2 + $0x290] sm:$0xff]  }
  0xca   : > { %9955 = vmatprep.mubr.bf16.mxu1 %v12871_v2  ;;  %v733_v4 = vsel %vm12082_vm4, %v425_v12, %v732_v63  ;;  %v736_v13 = vsel %vm12096_vm5, %v426_v0, %v735_v5  ;;  %v11596_v63 = vld [vmem:[%s15112_s2 + $0x248] sm:$0xff]   ;;  %v2914_v0 = vshll.u32 %v12894_v9, 16  ;;  %v15502_v12 = vcombine.low %v12150_v26, %v12173_v55 }
  0xcb   : > { %15501 = vst [vmem:[#allocation84_spill] sm:$0xff] %v12891_v10  ;;  %734 = vst [vmem:[#allocation2 + $0x90] sm:$0xf] %v733_v4  ;;  %v486_v5 = vrot.slane %v484_v46, 7  ;;  %v780_v4 = vld [vmem:[#allocation2 + $0xe0] sm:$0xf] }
  0xcc   : > { %737 = vst [vmem:[#allocation2 + $0x94] sm:$0x1] %v736_v13  ;;  %v783_v13 = vld [vmem:[#allocation2 + $0xe4] sm:$0x1]  ;;  %v2145_v2 = vshrl.u32 %v12885_v25, 16  ;;  %v2149_v46 = vrot.slane %v2147_v28, 1 }
  0xcd   : > { %v11606_v28 = vld [vmem:[%s15112_s2 + $0x298] sm:$0xff]  }
  0xcf   : > { %3201 = vmatmul.mubr.bf16.vlgmr.msra.gmra.mrb[48].mxu0 %v12177_v33  ;;  %v490_v33 = vrot.slane %v486_v5, 4 }
  0xd0   : > { %9096 = vmatpush3.bf16.msra.mxu0 %v11592_v36  ;;  %3208 = vmatprep.mubr.bf16.mxu0 %v12250_v60  ;;  %v2912_v36 = vshrl.u32 %v12894_v9, 16  ;;  %v2916_v60 = vrot.slane %v2914_v0, 1 }
  0xd1   : > { %9956 = vmatmul.mubr.bf16.gmra.mrb[44].mxu1 %v12891_v10  ;;  %9097 = vmatprep.subr.bf16.mxu0 %v11595_v47  ;;  %v489_v10 = vor.u32 %v487_v61, %v486_v5  ;;  %v784_v55 = vsel %vm12096_vm5, %v490_v33, %v783_v13  ;;  %v354_v47 = vld [vmem:[%s11897_s18 + $0x5c] sm:$0xf]  ;;  %v11602_v61 = vld [vmem:[%s15112_s2 + $0x148] sm:$0xff]   ;;  %v15504_v13 = vcombine.low %v12184_v59, %v12224_v31  ;;  %v11612_v31 = vld [vmem:[%s15112_s2 + $0x2a0] sm:$0xff]  }
  0xd2   : > { %2505 = vmatprep.mubr.bf16.mxu1 %v15502_v12  ;;  %785 = vst [vmem:[#allocation2 + $0xe4] sm:$0x1] %v784_v55  ;;  %v548_v5 = vshrl.u32 %v354_v47, 16  ;;  %v551_v12 = vshll.u32 %v354_v47, 16  ;;  %v2917_v33 = vor.u32 %v2916_v60, %v2912_v36  ;;  %v11607_v59 = vld [vmem:[%s15112_s2 + $0x258] sm:$0xff]   ;;  %v11613_v55 = vld [vmem:[%s15112_s2 + $0x260] sm:$0xff]   ;;  %v15505_v60 = vcombine.low %v12129_v3, %v12156_v30 }
  0xd3   : > { %v781_v26 = vsel %vm12082_vm4, %v489_v10, %v780_v4  ;;  %v11604_v10 = vld [vmem:[%s15112_s2 + $0x250] sm:$0xff]   ;;  %v11611_v36 = vld [vmem:[%s15112_s2 + $0x158] sm:$0xff]   ;;  %v15506_v47 = vld [vmem:[#allocation23_spill] sm:$0xff] }
  0xd4   : > { %9098 = vmatpush3.bf16.msra.mxu0 %v11596_v63  ;;  %782 = vst [vmem:[#allocation2 + $0xe0] sm:$0xf] %v781_v26  ;;  %v828_v4 = vld [vmem:[#allocation2 + $0x130] sm:$0xf]  ;;  %v15503_v63 = vcombine.low %v12106_v51, %v12122_v62  ;;  %v550_v0 = vrot.slane %v548_v5, 7  ;;  %v11614_v3 = vld [vmem:[%s15112_s2 + $0x160] sm:$0xff]  }
  0xd5   : > { %9099 = vmatprep.subr.bf16.mxu0 %v11603_v38  ;;  %v2150_v38 = vor.u32 %v2149_v46, %v2145_v2  ;;  %v831_v26 = vld [vmem:[#allocation2 + $0x134] sm:$0x1]  ;;  %v12965_v46 = vld [vmem:[#allocation2 + $0x98] sm:$0xf]  ;;  %v921_v5 = vld [vmem:[#allocation2 + $0x9c] sm:$0x1] }
  0xd6   : > { %v11605_v51 = vld [vmem:[%s15112_s2 + $0x150] sm:$0xff]   ;;  %v553_v62 = vor.u32 %v551_v12, %v550_v0  ;;  %v11615_v12 = vld [vmem:[%s15112_s2 + $0x2a8] sm:$0xff]  }
  0xd7   : > { %3209 = vmatmul.mubr.bf16.gmra.mrb[52].mxu0 %v12296_v34  ;;  %v554_v34 = vrot.slane %v550_v0, 4  ;;  %v8141_v2 = vcombine.low %v2150_v38, %v2917_v33  ;;  %v11616_v30 = vld [vmem:[%s15112_s2 + $0x268] sm:$0xff]   ;;  %v8140_v0 = vcombine.low %v12875_v20, %v12877_v27  ;;  %v11621_v33 = vld [vmem:[%s15112_s2 + $0x2b0] sm:$0xff]  }
  0xd8   : > { %3216 = vmatprep.mubr.bf16.mxu0 %v12325_v48  ;;  %9100 = vmatpush3.bf16.msra.mxu0 %v11604_v10  ;;  %v829_v48 = vsel %vm12082_vm4, %v553_v62, %v828_v4  ;;  %v15507_v10 = vld [vmem:[#allocation6_spill] sm:$0xff]  ;;  %v15508_v4 = vld [vmem:[#allocation15_spill] sm:$0xff]  ;;  %v11622_v27 = vld [vmem:[%s15112_s2 + $0x270] sm:$0xff]  }
  0xd9   : > { %2506 = vmatmul.mubr.bf16.vlgmr.msra.gmra.mrb[48].mxu1 %v15503_v63  ;;  %9101 = vmatprep.subr.bf16.mxu0 %v11606_v28  ;;  %830 = vst [vmem:[#allocation2 + $0x130] sm:$0xf] %v829_v48  ;;  %v15509_v63 = vcombine.low %v15507_v10, %v15508_v4  ;;  %v919_v28 = vld [vmem:[#allocation2 + $0x94] sm:$0x1]  ;;  %v939_v4 = vld [vmem:[#allocation2 + $0xe4] sm:$0x1] }
  0xda   : > { %2513 = vmatprep.mubr.bf16.mxu1 %v15504_v13  ;;  %9960 = vmatpush3.bf16.msra.mxu1 %v12749_v50  ;;  %v832_v50 = vsel %vm12096_vm5, %v554_v34, %v831_v26  ;;  %v12988_v13 = vcombine.low %v12965_v46, %v921_v5  ;;  %v15510_v26 = vld [vmem:[#allocation18_spill] sm:$0xff] }
  0xdb   : > { %9961 = vmatprep.subr.bf16.mxu1 %v11602_v61  ;;  %833 = vst [vmem:[#allocation2 + $0x134] sm:$0x1] %v832_v50  ;;  %v8026_v62 = vcombine.low %v15510_v26, %v2150_v38  ;;  %v11623_v50 = vld [vmem:[%s15112_s2 + $0x170] sm:$0xff]   ;;  %v13035_v10 = vld [vmem:[#allocation2 + $0xe0] sm:$0xf] }
  0xdc   : > { %9102 = vmatpush3.bf16.msra.mxu0 %v11607_v59  ;;  %v15511_v59 = vcombine.low %v12164_v37, %v12206_v18  ;;  %v2921_v38 = vshll.u32 %v12988_v13, 16  ;;  %v11625_v37 = vld [vmem:[%s15112_s2 + $0x278] sm:$0xff]  }
  0xdd   : > { %9103 = vmatprep.subr.bf16.mxu0 %v11612_v31  ;;  %v11624_v31 = vld [vmem:[%s15112_s2 + $0x2b8] sm:$0xff]  }
  0xde   : > { %9962 = vmatpush3.bf16.msra.mxu1 %v11602_v61  ;;  %v12971_v61 = vld [vmem:[#allocation2 + $0x90] sm:$0xf]  ;;  %v11800_v18 = vld [vmem:[#allocation2 + $0x38] sm:$0xf]  ;;  %v2923_v5 = vrot.slane %v2921_v38, 1 }
  0xdf   : > { %9963 = vmatprep.subr.bf16.mxu1 %v11605_v51  ;;  %3217 = vmatmul.mubr.bf16.gmra.mrb[56].mxu0 %v15506_v47  ;;  %v12995_v34 = vcombine.low %v12971_v61, %v919_v28  ;;  %v15513_v28 = vld [vmem:[#allocation48_spill] sm:$0xff] }
  0xe0   : > { %3224 = vmatprep.mubr.bf16.mxu0 %v8141_v2  ;;  %9104 = vmatpush3.bf16.msra.mxu0 %v11613_v55  ;;  %v8025_v2 = vcombine.low %v11800_v18, %v12875_v20  ;;  %v11629_v55 = vld [vmem:[%s15112_s2 + $0x178] sm:$0xff]   ;;  %v2919_v20 = vshrl.u32 %v12988_v13, 16  ;;  %v940_v38 = vld [vmem:[#allocation2 + $0xe8] sm:$0xf]  ;;  %v15522_v18 = vld [vmem:[#allocation53_spill] sm:$0xff] }
  0xe1   : > { %2514 = vmatmul.mubr.bf16.gmra.mrb[52].mxu1 %v15505_v60  ;;  %9105 = vmatprep.subr.bf16.mxu0 %v11615_v12  ;;  %v2154_v48 = vshll.u32 %v12995_v34, 16  ;;  %v2152_v60 = vshrl.u32 %v12995_v34, 16  ;;  %v13033_v12 = vld [vmem:[%s15112_s2 + $0x200] sm:$0xff]  }
  0xe2   : > { %2521 = vmatprep.mubr.bf16.mxu1 %v15509_v63  ;;  %9964 = vmatpush3.bf16.msra.mxu1 %v11605_v51  ;;  %v11620_v51 = vld [vmem:[%s15112_s2 + $0x168] sm:$0xff]   ;;  %v15512_v63 = vld [vmem:[#allocation34_spill] sm:$0xff] }
  0xe3   : > { %9965 = vmatprep.subr.bf16.mxu1 %v11611_v36  ;;  %v2156_v47 = vrot.slane %v2154_v48, 1  ;;  %v13060_v48 = vcombine.low %v12971_v61, %v12965_v46 }
  0xe4   : > { %9106 = vmatpush3.bf16.msra.mxu0 %v11616_v30  ;;  %v2924_v30 = vor.u32 %v2923_v5, %v2919_v20 }
  0xe5   : > { %9107 = vmatprep.subr.bf16.mxu0 %v11621_v33  ;;  %15519 = vst [vmem:[#allocation15_spill] sm:$0xff] %v13060_v48 }
  0xe6   : > { %9966 = vmatpush3.bf16.msra.mxu1 %v11611_v36  ;;  %v11630_v36 = vld [vmem:[%s15112_s2 + $0x340] sm:$0xff]  }
  0xe7   : > { %9967 = vmatprep.subr.bf16.mxu1 %v11614_v3  ;;  %3225 = vmatmul.mubr.bf16.gmra.mrb[60].mxu0 %v8140_v0  ;;  %v13043_v0 = vcombine.low %v13035_v10, %v939_v4 }
  0xe8   : > { %3232 = vmatprep.mubr.bf16.mxu0 %v12534_v45  ;;  %9108 = vmatpush3.bf16.msra.mxu0 %v11622_v27  ;;  %v15517_v27 = vld [vmem:[#allocation41_spill] sm:$0xff] }
  0xe9   : > { %2522 = vmatmul.mubr.bf16.gmra.mrb[56].mxu1 %v15511_v59  ;;  %9109 = vmatprep.subr.bf16.mxu0 %v11624_v31  ;;  %v15212_v33 = vrot.slane %v13043_v0, 1  ;;  %v15518_v59 = vld [vmem:[#allocation55_spill] sm:$0xff]  ;;  %v941_v31 = vld [vmem:[#allocation2 + $0xec] sm:$0x1]  ;;  %v15633_v44 = vrot.slane %v13043_v0, 1 }
  0xea   : > { %2529 = vmatprep.mubr.bf16.mxu1 %v8026_v62  ;;  %9968 = vmatpush3.bf16.msra.mxu1 %v11614_v3  ;;  %v2157_v3 = vor.u32 %v2156_v47, %v2152_v60  ;;  %v15515_v62 = vrot.slane %v12820_v41, 1  ;;  %v13065_v41 = vcombine.low %v940_v38, %v941_v31  ;;  %v2159_v60 = vshrl.u32 %v13043_v0, 16 }
  0xeb   : > { %9969 = vmatprep.subr.bf16.mxu1 %v11620_v51 }
  0xec   : > { %9110 = vmatpush3.bf16.msra.mxu0 %v11625_v37  ;;  %v13046_v26 = vcombine.low %v2157_v3, %v2924_v30  ;;  %v2926_v20 = vshrl.u32 %v13065_v41, 16 }
  0xed   : > { %9231 = vmatprep.subr.bf16.mxu0 %v11630_v36  ;;  %v2928_v36 = vshll.u32 %v13065_v41, 16 }
  0xee   : > { %9970 = vmatpush3.bf16.msra.mxu1 %v11620_v51  ;;  %15514 = vst [vmem:[#allocation23_spill] sm:$0xff] %v13046_v26  ;;  %v13052_v51 = vcombine.low %v15515_v62, %v15212_v33  ;;  %v837_v33 = vld [vmem:[#allocation2 + $0x14c] sm:$0x1] }
  0xef   : > { %9971 = vmatprep.subr.bf16.mxu1 %v11623_v50  ;;  %3233 = vmatmul.mubr.bf16.gmra.mrb[64].mxu0 %v12519_v11  ;;  %v2930_v5 = vrot.slane %v2928_v36, 1 }
  0xf0   : > { %3240 = vmatprep.mubr.bf16.mxu0 %v12628_v21  ;;  %15516 = vst [vmem:[#allocation6_spill] sm:$0xff] %v13052_v51 }
  0xf1   : > { %2530 = vmatmul.mubr.bf16.gmra.mrb[60].mxu1 %v8025_v2  ;;  %v2161_v2 = vshll.u32 %v13043_v0, 16  ;;  %v2931_v4 = vor.u32 %v2930_v5, %v2926_v20  ;;  %v356_v20 = vld [vmem:[%s11897_s18 + $0x64] sm:$0xf]  ;;  %v357_v5 = vld [vmem:[%s11897_s18 + $0x68] sm:$0xf] }
  0xf2   : > { %2537 = vmatprep.mubr.bf16.mxu1 %v12528_v43  ;;  %9972 = vmatpush3.bf16.msra.mxu1 %v11623_v50  ;;  %v15520_v50 = vld [vmem:[#allocation54_spill] sm:$0xff] }
  0xf3   : > { %9973 = vmatprep.subr.bf16.mxu1 %v11629_v55  ;;  %v13063_v37 = vcombine.low %v15520_v50, %v2157_v3  ;;  %v2163_v47 = vrot.slane %v2161_v2, 1  ;;  %v355_v3 = vld [vmem:[%s11897_s18 + $0x60] sm:$0xf] }
  0xf4   : > { %v556_v30 = vshrl.u32 %v355_v3, 16  ;;  %v559_v31 = vshll.u32 %v355_v3, 16  ;;  %v572_v3 = vshrl.u32 %v357_v5, 16 }
  0xf5   : > { %15521 = vst [vmem:[#allocation18_spill] sm:$0xff] %v13063_v37 }
  0xf6   : > { %9974 = vmatpush3.bf16.msra.mxu1 %v11629_v55  ;;  %v11801_v55 = vld [vmem:[#allocation2 + $0x88] sm:$0xf]  ;;  %v558_v62 = vrot.slane %v556_v30, 7  ;;  %v13100_v30 = vcombine.low %v13035_v10, %v940_v38  ;;  %v13109_v38 = vld [vmem:[#allocation2 + $0x130] sm:$0xf] }
  0xf7   : > { %10007 = vmatprep.subr.bf16.mxu1 %v13033_v12  ;;  %3241 = vmatmul.mubr.bf16.gmra.mrb[68].mxu0 %v12600_v7  ;;  %v13074_v46 = vcombine.low %v11801_v55, %v12971_v61  ;;  %v2164_v61 = vor.u32 %v2163_v47, %v2159_v60  ;;  %v834_v55 = vld [vmem:[#allocation2 + $0x148] sm:$0xf] }
  0xf8   : > { %3248 = vmatprep.mubr.bf16.mxu0 %v12694_v15  ;;  %v561_v2 = vor.u32 %v559_v31, %v558_v62  ;;  %v562_v36 = vrot.slane %v558_v62, 4  ;;  %15525 = vst [vmem:[#allocation86_spill] sm:$0xff] %v13100_v30  ;;  %v567_v31 = vshll.u32 %v356_v20, 16 }
  0xf9   : > { %2538 = vmatmul.mubr.bf16.gmra.mrb[64].mxu1 %v15512_v63  ;;  %15523 = vst [vmem:[#allocation54_spill] sm:$0xff] %v13074_v46  ;;  %v13087_v50 = vcombine.low %v2164_v61, %v2931_v4  ;;  %v564_v4 = vshrl.u32 %v356_v20, 16  ;;  %v870_v63 = vld [vmem:[#allocation2 + $0x178] sm:$0xf] }
  0xfa   : > { %2545 = vmatprep.mubr.bf16.mxu1 %v15513_v28  ;;  %v835_v60 = vsel %vm12082_vm4, %v561_v2, %v834_v55  ;;  %v838_v47 = vsel %vm12096_vm5, %v562_v36, %v837_v33  ;;  %v13103_v2 = vcombine.low %v12848_v8, %v2164_v61  ;;  %v13105_v33 = vld [vmem:[#allocation2 + $0x138] sm:$0xf]  ;;  %v961_v36 = vld [vmem:[#allocation2 + $0x13c] sm:$0x1]  ;;  %v574_v55 = vrot.slane %v572_v3, 7 }
  0xfb   : > { %15524 = vst [vmem:[#allocation85_spill] sm:$0xff] %v13087_v50  ;;  %836 = vst [vmem:[#allocation2 + $0x148] sm:$0xf] %v835_v60  ;;  %v566_v62 = vrot.slane %v564_v4, 7  ;;  %v959_v8 = vld [vmem:[#allocation2 + $0x134] sm:$0x1]  ;;  %v13118_v4 = vcombine.low %v13105_v33, %v961_v36 }
  0xfc   : > { %839 = vst [vmem:[#allocation2 + $0x14c] sm:$0x1] %v838_v47  ;;  %15526 = vst [vmem:[#allocation87_spill] sm:$0xff] %v13103_v2  ;;  %v15538_v28 = vld [vmem:[#allocation22_spill] sm:$0xff] }
  0xfd   : > { %v570_v60 = vrot.slane %v566_v62, 4 }
  0xff   : > { %3249 = vmatmul.mubr.bf16.gmra.mrb[72].mxu0 %v15518_v59 }
 0x100   : > { %3256 = vmatprep.mubr.bf16.mxu0 %v13046_v26  ;;  %v578_v26 = vrot.slane %v574_v55, 4 }
 0x101   : > { %2546 = vmatmul.mubr.bf16.gmra.mrb[68].mxu1 %v15517_v27 }
 0x102   : > { %2553 = vmatprep.mubr.bf16.mxu1 %v12774_v35 }
 0x107   : > { %3257 = vmatmul.mubr.bf16.gmra.mrb[76].mxu0 %v13060_v48  ;;  %v575_v48 = vshll.u32 %v357_v5, 16  ;;  %v846_v5 = vld [vmem:[#allocation2 + $0x158] sm:$0xf] }
 0x108   : > { %3264 = vmatprep.mubr.bf16.mxu0 %v12796_v40 }
 0x109   : > { %2554 = vmatmul.mubr.bf16.gmra.mrb[72].mxu1 %v15522_v18  ;;  %v577_v47 = vor.u32 %v575_v48, %v574_v55  ;;  %v15527_v48 = vld [vmem:[#allocation19_spill] sm:$0xff]  ;;  %v359_v55 = vld [vmem:[%s11897_s18 + $0x70] sm:$0xf]  ;;  %v15536_v18 = vld [vmem:[#allocation14_spill] sm:$0xff] }
 0x10a   : > { %2561 = vmatprep.mubr.bf16.mxu1 %v13063_v37 }
 0x10b   : > { %v847_v3 = vsel %vm12082_vm4, %v577_v47, %v846_v5  ;;  %v15529_v47 = vld [vmem:[#allocation13_spill] sm:$0xff]  ;;  %v15530_v5 = vld [vmem:[#allocation7_spill] sm:$0xff] }
 0x10c   : > { %848 = vst [vmem:[#allocation2 + $0x158] sm:$0xf] %v847_v3 }
 0x10f   : > { %3265 = vmatmul.mubr.bf16.gmra.mrb[80].mxu0 %v12792_v14 }
 0x110   : > { %3272 = vmatprep.mubr.bf16.mxu0 %v12826_v1 }
 0x111   : > { %2562 = vmatmul.mubr.bf16.gmra.mrb[76].mxu1 %v13074_v46  ;;  %v11804_v46 = vld [vmem:[#allocation2 + $0x100] sm:$0xf] }
 0x112   : > { %2569 = vmatprep.mubr.bf16.mxu1 %v12780_v22  ;;  %v855_v22 = vld [vmem:[#allocation2 + $0x164] sm:$0x1] }
 0x117   : > { %3273 = vmatmul.mubr.bf16.gmra.mrb[84].mxu0 %v12828_v32 }
 0x118   : > { %3280 = vmatprep.mubr.bf16.mxu0 %v12856_v42 }
 0x119   : > { %2570 = vmatmul.mubr.bf16.gmra.mrb[80].mxu1 %v12787_v29  ;;  %v852_v29 = vld [vmem:[#allocation2 + $0x160] sm:$0xf] }
 0x11a   : > { %2577 = vmatprep.mubr.bf16.mxu1 %v12824_v17 }
 0x11f   : > { %3281 = vmatmul.mubr.bf16.gmra.mrb[88].mxu0 %v12865_v57 }
 0x120   : > { %3288 = vmatprep.mubr.bf16.mxu0 %v13087_v50  ;;  %v569_v50 = vor.u32 %v567_v31, %v566_v62  ;;  %v849_v62 = vld [vmem:[#allocation2 + $0x15c] sm:$0x1]  ;;  %v358_v31 = vld [vmem:[%s11897_s18 + $0x6c] sm:$0xf] }
 0x121   : > { %2578 = vmatmul.mubr.bf16.gmra.mrb[84].mxu1 %v12789_v24  ;;  %v843_v24 = vld [vmem:[#allocation2 + $0x154] sm:$0x1]  ;;  %v583_v36 = vshll.u32 %v358_v31, 16 }
 0x122   : > { %2585 = vmatprep.mubr.bf16.mxu1 %v12853_v6  ;;  %v840_v6 = vld [vmem:[#allocation2 + $0x150] sm:$0xf]  ;;  %v844_v20 = vsel %vm12096_vm5, %v570_v60, %v843_v24  ;;  %v850_v24 = vsel %vm12096_vm5, %v578_v26, %v849_v62  ;;  %v588_v60 = vshrl.u32 %v359_v55, 16 }
 0x123   : > { %v841_v61 = vsel %vm12082_vm4, %v569_v50, %v840_v6  ;;  %845 = vst [vmem:[#allocation2 + $0x154] sm:$0x1] %v844_v20  ;;  %v13125_v6 = vcombine.low %v13109_v38, %v959_v8  ;;  %v580_v50 = vshrl.u32 %v358_v31, 16  ;;  %851 = vst [vmem:[#allocation2 + $0x15c] sm:$0x1] %v850_v24  ;;  %v2935_v8 = vshll.u32 %v13118_v4, 16 }
 0x124   : > { %842 = vst [vmem:[#allocation2 + $0x150] sm:$0xf] %v841_v61  ;;  %v11802_v61 = vld [vmem:[#allocation2 + $0xd8] sm:$0xf]  ;;  %v590_v3 = vrot.slane %v588_v60, 7  ;;  %v15533_v24 = vld [vmem:[#allocation25_spill] sm:$0xff] }
 0x125   : > { %v13130_v20 = vcombine.low %v11802_v61, %v13035_v10  ;;  %v2168_v26 = vshll.u32 %v13125_v6, 16  ;;  %v15532_v10 = vld [vmem:[#allocation16_spill] sm:$0xff] }
 0x126   : > { %v861_v61 = vld [vmem:[#allocation2 + $0x16c] sm:$0x1] }
 0x127   : > { %3289 = vmatmul.mubr.bf16.gmra.mrb[92].mxu0 %v13100_v30  ;;  %15528 = vst [vmem:[#allocation88_spill] sm:$0xff] %v13130_v20  ;;  %v591_v30 = vshll.u32 %v359_v55, 16  ;;  %v594_v55 = vrot.slane %v590_v3, 4 }
 0x128   : > { %3296 = vmatprep.mubr.bf16.mxu0 %v15527_v48 }
 0x129   : > { %2586 = vmatmul.mubr.bf16.gmra.mrb[88].mxu1 %v12805_v19  ;;  %v582_v19 = vrot.slane %v580_v50, 7  ;;  %v593_v31 = vor.u32 %v591_v30, %v590_v3  ;;  %v862_v3 = vsel %vm12096_vm5, %v594_v55, %v861_v61  ;;  %v8703_v61 = vpop.f32.mrb[0].mxu0 }
 0x12a   : > { %2593 = vmatprep.mubr.bf16.mxu1 %v13103_v2  ;;  %v13134_v2 = vcombine.low %v15530_v5, %v15529_v47  ;;  %v2933_v47 = vshrl.u32 %v13118_v4, 16  ;;  %v2937_v5 = vrot.slane %v2935_v8, 1  ;;  %863 = vst [vmem:[#allocation2 + $0x16c] sm:$0x1] %v862_v3  ;;  %v867_v3 = vld [vmem:[#allocation2 + $0x174] sm:$0x1] }
 0x12b   : > { %v585_v62 = vor.u32 %v583_v36, %v582_v19  ;;  %v586_v17 = vrot.slane %v582_v19, 4  ;;  %v858_v19 = vld [vmem:[#allocation2 + $0x168] sm:$0xf]  ;;  %v360_v36 = vld [vmem:[%s11897_s18 + $0x74] sm:$0xf] }
 0x12c   : > { %15531 = vst [vmem:[#allocation13_spill] sm:$0xff] %v13134_v2  ;;  %v859_v30 = vsel %vm12082_vm4, %v593_v31, %v858_v19  ;;  %v599_v8 = vshll.u32 %v360_v36, 16 }
 0x12d   : > { %v853_v50 = vsel %vm12082_vm4, %v585_v62, %v852_v29  ;;  %v856_v60 = vsel %vm12096_vm5, %v586_v17, %v855_v22  ;;  %v2166_v29 = vshrl.u32 %v13125_v6, 16  ;;  %v2170_v62 = vrot.slane %v2168_v26, 1  ;;  %860 = vst [vmem:[#allocation2 + $0x168] sm:$0xf] %v859_v30  ;;  %v864_v30 = vld [vmem:[#allocation2 + $0x170] sm:$0xf] }
 0x12e   : > { %854 = vst [vmem:[#allocation2 + $0x160] sm:$0xf] %v853_v50  ;;  %857 = vst [vmem:[#allocation2 + $0x164] sm:$0x1] %v856_v60  ;;  %v596_v22 = vshrl.u32 %v360_v36, 16  ;;  %v15535_v60 = vld [vmem:[#allocation21_spill] sm:$0xff]  ;;  %v2938_v36 = vor.u32 %v2937_v5, %v2933_v47 }
 0x12f   : > { %3297 = vmatmul.mubr.bf16.gmra.mrb[96].mxu0 %v15532_v10  ;;  %v13158_v31 = vcombine.low %v15536_v18, %v15535_v60  ;;  %v15539_v18 = vld [vmem:[#allocation31_spill] sm:$0xff] }
 0x130   : > { %3304 = vmatprep.mubr.bf16.mxu0 %v15533_v24  ;;  %v598_v19 = vrot.slane %v596_v22, 7 }
 0x131   : > { %2594 = vmatmul.mubr.bf16.gmra.mrb[92].mxu1 %v13130_v20  ;;  %v11803_v20 = vld [vmem:[#allocation2 + $0xf8] sm:$0xf]  ;;  %15537 = vst [vmem:[#allocation21_spill] sm:$0xff] %v13158_v31 }
 0x132   : > { %2601 = vmatprep.mubr.bf16.mxu1 %v13134_v2  ;;  %v361_v2 = vld [vmem:[%s11897_s18 + $0x78] sm:$0xf]  ;;  %v13154_v37 = vcombine.low %v11803_v20, %v11804_v46  ;;  %v601_v35 = vor.u32 %v599_v8, %v598_v19  ;;  %v602_v27 = vrot.slane %v598_v19, 4  ;;  %v8704_v46 = vpop.f32.mrb[1].mxu0  ;;  %v2171_v20 = vor.u32 %v2170_v62, %v2166_v29  ;;  %v873_v29 = vld [vmem:[#allocation2 + $0x17c] sm:$0x1] }
 0x133   : > { %v604_v17 = vshrl.u32 %v361_v2, 16  ;;  %v607_v50 = vshll.u32 %v361_v2, 16  ;;  %v13164_v22 = vadd.f32 %v8704_v46, %v8703_v61  ;;  %v11805_v62 = vld [vmem:[#allocation2 + $0x108] sm:$0xf]  ;;  %v11806_v19 = vld [vmem:[#allocation2 + $0x110] sm:$0xf] }
 0x134   : > { %15534 = vst [vmem:[#allocation7_spill] sm:$0xff] %v13154_v37  ;;  %v865_v8 = vsel %vm12082_vm4, %v601_v35, %v864_v30  ;;  %v15541_v61 = vld [vmem:[#allocation27_spill] sm:$0xff]  ;;  %v15542_v30 = vld [vmem:[#allocation24_spill] sm:$0xff] }
 0x135   : > { %v606_v55 = vrot.slane %v604_v17, 7  ;;  %v8706_v17 = vpop.f32.mrb[2].mxu0  ;;  %866 = vst [vmem:[#allocation2 + $0x170] sm:$0xf] %v865_v8 }
 0x136   : > { %v8707_v60 = vpop.f32.mrb[3].mxu0 }
 0x137   : > { %v609_v26 = vor.u32 %v607_v50, %v606_v55  ;;  %3305 = vmatmul.mubr.bf16.gmra.mrb[100].mxu0 %v15538_v28  ;;  %v610_v2 = vrot.slane %v606_v55, 4  ;;  %v868_v50 = vsel %vm12096_vm5, %v602_v27, %v867_v3  ;;  %v13172_v5 = vadd.f32 %v8707_v60, %v8706_v17 }
 0x138   : > { %3312 = vmatprep.mubr.bf16.mxu0 %v15539_v18  ;;  %869 = vst [vmem:[#allocation2 + $0x174] sm:$0x1] %v868_v50  ;;  %v13174_v55 = vcombine.low %v11805_v62, %v11806_v19  ;;  %v13180_v27 = vcombine.low %v15542_v30, %v15541_v61  ;;  %v13182_v3 = vcombine.low %v2171_v20, %v2938_v36  ;;  %v11807_v19 = vld [vmem:[#allocation2 + $0x118] sm:$0xf] }
 0x139   : > { %2602 = vmatmul.mubr.bf16.gmra.mrb[96].mxu1 %v13154_v37  ;;  %v871_v47 = vsel %vm12082_vm4, %v609_v26, %v870_v63  ;;  %v874_v35 = vsel %vm12096_vm5, %v610_v2, %v873_v29  ;;  %v8709_v63 = vpop.f32.mrb[4].mxu0  ;;  %v15545_v26 = vld [vmem:[#allocation30_spill] sm:$0xff]  ;;  %v13202_v30 = vcombine.low %v13109_v38, %v13105_v33 }
 0x13a   : > { %2609 = vmatprep.mubr.bf16.mxu1 %v13158_v31  ;;  %872 = vst [vmem:[#allocation2 + $0x178] sm:$0xf] %v871_v47  ;;  %15540 = vst [vmem:[#allocation14_spill] sm:$0xff] %v13174_v55  ;;  %v8710_v46 = vpop.f32.mrb[5].mxu0 }
 0x13b   : > { %15543 = vst [vmem:[#allocation27_spill] sm:$0xff] %v13180_v27  ;;  %15544 = vst [vmem:[#allocation24_spill] sm:$0xff] %v13182_v3  ;;  %v8775_v17 = vpop.f32.mrb[0].mxu1  ;;  %v13194_v36 = vadd.f32 %v8710_v46, %v8709_v63  ;;  %v8712_v2 = vpop.f32.mrb[6].mxu0  ;;  %v15548_v63 = vld [vmem:[#allocation29_spill] sm:$0xff] }
 0x13c   : > { %875 = vst [vmem:[#allocation2 + $0x17c] sm:$0x1] %v874_v35  ;;  %v8776_v8 = vpop.f32.mrb[1].mxu1  ;;  %v8713_v50 = vpop.f32.mrb[7].mxu0  ;;  %v11808_v35 = vld [vmem:[#allocation2 + $0x120] sm:$0xf]  ;;  %v13206_v46 = vcombine.low %v15548_v63, %v2171_v20 }
 0x13d   : > { %v8777_v60 = vadd.f32 %v8776_v8, %v8775_v17  ;;  %v8778_v47 = vpop.f32.mrb[2].mxu1  ;;  %v13196_v29 = vadd.f32 %v8713_v50, %v8712_v2  ;;  %v13198_v61 = vcombine.low %v11807_v19, %v11808_v35  ;;  %15547 = vst [vmem:[#allocation90_spill] sm:$0xff] %v13202_v30  ;;  %v15550_v8 = vld [vmem:[#allocation37_spill] sm:$0xff]  ;;  %v11809_v35 = vld [vmem:[#allocation2 + $0x128] sm:$0xf] }
 0x13e   : > { %v8779_v62 = vpop.f32.mrb[3].mxu1  ;;  %15549 = vst [vmem:[#allocation29_spill] sm:$0xff] %v13206_v46  ;;  %v13218_v63 = vcombine.low %v11809_v35, %v13109_v38  ;;  %v11634_v38 = vld [vmem:[%s15112_s2 + $0x308] sm:$0xff]  }
 0x13f   : > { %3313 = vmatmul.mubr.bf16.gmra.mrb[104].mxu0 %v15545_v26  ;;  %15546 = vst [vmem:[#allocation89_spill] sm:$0xff] %v13198_v61  ;;  %11034 = vst [vmem:[%s13190_s28 + $0xc0] sm:$0xff] %v8777_v60 }
 0x140   : > { %3320 = vmatprep.mubr.bf16.mxu0 %v13182_v3  ;;  %v8780_v3 = vadd.f32 %v8779_v62, %v8778_v47  ;;  %15551 = vst [vmem:[#allocation37_spill] sm:$0xff] %v13218_v63 }
 0x141   : > { %2610 = vmatmul.mubr.bf16.gmra.mrb[100].mxu1 %v13174_v55 }
 0x142   : > { %2617 = vmatprep.mubr.bf16.mxu1 %v13180_v27  ;;  %11088 = vst [vmem:[%s13190_s28 + $0xc8] sm:$0xff] %v8780_v3  ;;  %v8715_v27 = vpop.f32.mrb[8].mxu0 }
 0x143   : > { %v8716_v17 = vpop.f32.mrb[9].mxu0  ;;  %v8781_v2 = vpop.f32.mrb[4].mxu1 }
 0x144   : > { %v13213_v33 = vadd.f32 %v8716_v17, %v8715_v27  ;;  %v8718_v50 = vpop.f32.mrb[10].mxu0  ;;  %v8782_v60 = vpop.f32.mrb[5].mxu1  ;;  %v15552_v27 = vld [vmem:[#allocation4_spill] sm:$0xff] }
 0x145   : > { %v8719_v20 = vpop.f32.mrb[11].mxu0  ;;  %v8783_v47 = vadd.f32 %v8782_v60, %v8781_v2  ;;  %v8784_v3 = vpop.f32.mrb[6].mxu1  ;;  %v15553_v17 = vrot.slane %v15552_v27, 1  ;;  %v11633_v2 = vld [vmem:[%s15112_s2 + $0x348] sm:$0xff]   ;;  %v15556_v60 = vld [vmem:[#allocation35_spill] sm:$0xff]  ;;  %v11637_v27 = vld [vmem:[%s15112_s2 + $0x350] sm:$0xff]  }
 0x146   : > { %v13215_v62 = vadd.f32 %v8719_v20, %v8718_v50  ;;  %v8785_v19 = vpop.f32.mrb[7].mxu1  ;;  %v8721_v50 = vpop.f32.mrb[12].mxu0 }
 0x147   : > { %3321 = vmatmul.mubr.bf16.gmra.mrb[108].mxu0 %v13202_v30  ;;  %11007 = vst [vmem:[%s13190_s28 + $0xd0] sm:$0xff] %v8783_v47  ;;  %v8786_v30 = vadd.f32 %v8785_v19, %v8784_v3  ;;  %v8722_v20 = vpop.f32.mrb[13].mxu0 }
 0x148   : > { %3955 = vmatprep.mubr.bf16.mxu0 %v15550_v8  ;;  %v11631_v8 = vld [vmem:[%s15112_s2 + $0x300] sm:$0xff]  }
 0x149   : > { %2618 = vmatmul.mubr.bf16.gmra.mrb[104].mxu1 %v13198_v61  ;;  %11061 = vst [vmem:[%s13190_s28 + $0xd8] sm:$0xff] %v8786_v30  ;;  %v8724_v30 = vpop.f32.mrb[14].mxu0 }
 0x14a   : > { %2625 = vmatprep.mubr.bf16.mxu1 %v13206_v46  ;;  %v15554_v46 = vld [vmem:[#allocation3_spill] sm:$0xff]  ;;  %v8725_v3 = vpop.f32.mrb[15].mxu0 }
 0x14b   : > { %v15555_v61 = vrot.slane %v15554_v46, 1  ;;  %v8787_v47 = vpop.f32.mrb[8].mxu1 }
 0x14c   : > { %v8788_v46 = vpop.f32.mrb[9].mxu1 }
 0x14d   : > { %v8018_v55 = vcombine.low %v15555_v61, %v15553_v17  ;;  %v13237_v61 = vadd.f32 %v8722_v20, %v8721_v50  ;;  %v8789_v19 = vadd.f32 %v8788_v46, %v8787_v47  ;;  %v8790_v35 = vpop.f32.mrb[10].mxu1  ;;  %v13243_v17 = vadd.f32 %v8725_v3, %v8724_v30  ;;  %v15557_v50 = vld [vmem:[#allocation10_spill] sm:$0xff]  ;;  %v11638_v30 = vld [vmem:[%s15112_s2 + $0x310] sm:$0xff]  }
 0x14e   : > { %v15558_v20 = vrot.slane %v15557_v50, 1  ;;  %v11641_v46 = vld [vmem:[%s15112_s2 + $0x358] sm:$0xff]   ;;  %v15566_v50 = vld [vmem:[#allocation28_spill] sm:$0xff] }
 0x14f   : > { %3956 = vmatmul.mubr.bf16.vlgmr.msra.gmra.mrb[112].mxu0 %v15556_v60  ;;  %v8791_v60 = vpop.f32.mrb[11].mxu1  ;;  %11142 = vst [vmem:[%s13190_s28 + $0xe0] sm:$0xff] %v8789_v19  ;;  %v15561_v3 = vld [vmem:[#allocation26_spill] sm:$0xff] }
 0x150   : > { %9232 = vmatpush3.bf16.msra.mxu0 %v11631_v8  ;;  %3963 = vmatprep.mubr.bf16.mxu0 %v12534_v45  ;;  %v11635_v8 = vld [vmem:[%s15112_s2 + $0x208] sm:$0xff]   ;;  %v15559_v45 = vld [vmem:[#allocation5_spill] sm:$0xff] }
 0x151   : > { %2626 = vmatmul.mubr.bf16.gmra.mrb[108].mxu1 %v13218_v63  ;;  %9233 = vmatprep.subr.bf16.mxu0 %v11633_v2  ;;  %v15560_v63 = vrot.slane %v15559_v45, 1  ;;  %v15255_v2 = vrot.slane %v12885_v25, 1  ;;  %v11636_v45 = vld [vmem:[%s15112_s2 + $0x210] sm:$0xff]  }
 0x152   : > { %9975 = vmatprep.mubr.bf16.mxu1 %v8018_v55  ;;  %v8792_v55 = vadd.f32 %v8791_v60, %v8790_v35  ;;  %v15564_v60 = vld [vmem:[#allocation32_spill] sm:$0xff] }
 0x153   : > { %v8024_v47 = vcombine.low %v15560_v63, %v15558_v20  ;;  %v11642_v63 = vld [vmem:[%s15112_s2 + $0x318] sm:$0xff]  }
 0x154   : > { %9234 = vmatpush3.bf16.msra.mxu0 %v11634_v38  ;;  %11196 = vst [vmem:[%s13190_s28 + $0xe8] sm:$0xff] %v8792_v55  ;;  %v15562_v38 = vld [vmem:[#allocation12_spill] sm:$0xff]  ;;  %v15565_v55 = vrot.slane %v15564_v60, 1 }
 0x155   : > { %9235 = vmatprep.subr.bf16.mxu0 %v11637_v27  ;;  %v15563_v19 = vrot.slane %v15562_v38, 1 }
 0x156   : > { %v8793_v27 = vpop.f32.mrb[12].mxu1 }
 0x157   : > { %3964 = vmatmul.mubr.bf16.gmra.mrb[116].mxu0 %v12519_v11  ;;  %v8027_v35 = vcombine.low %v15563_v19, %v15255_v2 }
 0x158   : > { %3971 = vmatprep.mubr.bf16.mxu0 %v12628_v21  ;;  %9236 = vmatpush3.bf16.msra.mxu0 %v11638_v30  ;;  %v11639_v30 = vld [vmem:[%s15112_s2 + $0x218] sm:$0xff]  }
 0x159   : > { %9976 = vmatmul.mubr.bf16.vlgmr.msra.gmra.mrb[16].mxu1 %v15561_v3  ;;  %9237 = vmatprep.subr.bf16.mxu0 %v11641_v46  ;;  %v11646_v3 = vld [vmem:[%s15112_s2 + $0x360] sm:$0xff]  }
 0x15a   : > { %9979 = vmatprep.mubr.bf16.mxu1 %v8024_v47  ;;  %10008 = vmatpush3.bf16.msra.mxu1 %v13033_v12  ;;  %v15567_v12 = vrot.slane %v15566_v50, 1  ;;  %v8794_v47 = vpop.f32.mrb[13].mxu1  ;;  %v11647_v46 = vld [vmem:[%s15112_s2 + $0x320] sm:$0xff]  }
 0x15b   : > { %10009 = vmatprep.subr.bf16.mxu1 %v11635_v8  ;;  %v8795_v38 = vadd.f32 %v8794_v47, %v8793_v27  ;;  %v8796_v19 = vpop.f32.mrb[14].mxu1  ;;  %v8727_v27 = vpop.f32.mrb[16].mxu0  ;;  %v11650_v47 = vld [vmem:[%s15112_s2 + $0x328] sm:$0xff]  }
 0x15c   : > { %v13279_v20 = vcombine.low %v15567_v12, %v15565_v55  ;;  %v8797_v60 = vpop.f32.mrb[15].mxu1  ;;  %9238 = vmatpush3.bf16.msra.mxu0 %v11642_v63  ;;  %v8728_v50 = vpop.f32.mrb[17].mxu0  ;;  %v11640_v63 = vld [vmem:[%s15112_s2 + $0x220] sm:$0xff]  }
 0x15d   : > { %11115 = vst [vmem:[%s13190_s28 + $0xf0] sm:$0xff] %v8795_v38  ;;  %v8798_v55 = vadd.f32 %v8797_v60, %v8796_v19  ;;  %9239 = vmatprep.subr.bf16.mxu0 %v11646_v3  ;;  %v13301_v12 = vadd.f32 %v8728_v50, %v8727_v27  ;;  %v15569_v38 = vld [vmem:[#allocation40_spill] sm:$0xff]  ;;  %v15574_v3 = vld [vmem:[#allocation50_spill] sm:$0xff]  ;;  %v15576_v50 = vld [vmem:[#allocation43_spill] sm:$0xff] }
 0x15e   : > { %15568 = vst [vmem:[#allocation4_spill] sm:$0xff] %v13279_v20  ;;  %10010 = vmatpush3.bf16.msra.mxu1 %v11635_v8  ;;  %v11649_v8 = vld [vmem:[%s15112_s2 + $0x368] sm:$0xff]   ;;  %v15570_v19 = vrot.slane %v15569_v38, 1  ;;  %v15575_v27 = vrot.slane %v15574_v3, 1  ;;  %v15579_v3 = vld [vmem:[#allocation51_spill] sm:$0xff] }
 0x15f   : > { %10011 = vmatprep.subr.bf16.mxu1 %v11636_v45  ;;  %3972 = vmatmul.mubr.bf16.gmra.mrb[120].mxu0 %v12600_v7  ;;  %11169 = vst [vmem:[%s13190_s28 + $0xf8] sm:$0xff] %v8798_v55  ;;  %v15571_v60 = vld [vmem:[#allocation36_spill] sm:$0xff]  ;;  %v15577_v7 = vrot.slane %v15576_v50, 1 }
 0x160   : > { %3979 = vmatprep.mubr.bf16.mxu0 %v12694_v15  ;;  %9240 = vmatpush3.bf16.msra.mxu0 %v11647_v46  ;;  %v15572_v2 = vrot.slane %v15571_v60, 1  ;;  %v11656_v46 = vld [vmem:[%s15112_s2 + $0x370] sm:$0xff]  }
 0x161   : > { %9980 = vmatmul.mubr.bf16.gmra.mrb[20].mxu1 %v8027_v35  ;;  %v8730_v35 = vpop.f32.mrb[18].mxu0  ;;  %9241 = vmatprep.subr.bf16.mxu0 %v11649_v8  ;;  %v13318_v21 = vcombine.low %v15577_v7, %v15575_v27  ;;  %v11657_v8 = vld [vmem:[%s15112_s2 + $0x330] sm:$0xff]   ;;  %v15261_v7 = vrot.slane %v12995_v34, 1  ;;  %v15580_v27 = vrot.slane %v15579_v3, 1  ;;  %v11645_v3 = vld [vmem:[%s15112_s2 + $0x238] sm:$0xff]  }
 0x162   : > { %9983 = vmatprep.mubr.bf16.mxu1 %v13279_v20  ;;  %10012 = vmatpush3.bf16.msra.mxu1 %v11636_v45  ;;  %v13310_v55 = vcombine.low %v15572_v2, %v15570_v19  ;;  %v8731_v45 = vpop.f32.mrb[19].mxu0  ;;  %v11643_v2 = vld [vmem:[%s15112_s2 + $0x228] sm:$0xff]   ;;  %v11644_v60 = vld [vmem:[%s15112_s2 + $0x230] sm:$0xff]  }
 0x163   : > { %10013 = vmatprep.subr.bf16.mxu1 %v11639_v30  ;;  %v13312_v15 = vadd.f32 %v8731_v45, %v8730_v35  ;;  %15578 = vst [vmem:[#allocation35_spill] sm:$0xff] %v13318_v21  ;;  %v8733_v35 = vpop.f32.mrb[20].mxu0  ;;  %v11667_v45 = vld [vmem:[%s15112_s2 + $0x338] sm:$0xff]   ;;  %v13349_v50 = vcombine.low %v15580_v27, %v15261_v7  ;;  %v15591_v7 = vrot.slane %v12813_v58, 1 }
 0x164   : > { %15573 = vst [vmem:[#allocation3_spill] sm:$0xff] %v13310_v55  ;;  %9242 = vmatpush3.bf16.msra.mxu0 %v11650_v47  ;;  %v8734_v47 = vpop.f32.mrb[21].mxu0 }
 0x165   : > { %9243 = vmatprep.subr.bf16.mxu0 %v11656_v46  ;;  %v13337_v38 = vadd.f32 %v8734_v47, %v8733_v35  ;;  %v8736_v19 = vpop.f32.mrb[22].mxu0  ;;  %15581 = vst [vmem:[#allocation10_spill] sm:$0xff] %v13349_v50  ;;  %v15582_v35 = vrot.slane %v12723_v53, 1  ;;  %v15583_v47 = vld [vmem:[#allocation56_spill] sm:$0xff] }
 0x166   : > { %10014 = vmatpush3.bf16.msra.mxu1 %v11639_v30  ;;  %v11666_v30 = vld [vmem:[%s15112_s2 + $0x378] sm:$0xff]  }
 0x167   : > { %10015 = vmatprep.subr.bf16.mxu1 %v11640_v63  ;;  %3980 = vmatmul.mubr.bf16.gmra.mrb[124].mxu0 %v15518_v59  ;;  %v15584_v59 = vrot.slane %v15583_v47, 1 }
 0x168   : > { %3987 = vmatprep.mubr.bf16.mxu0 %v12751_v16  ;;  %9244 = vmatpush3.bf16.msra.mxu0 %v11657_v8  ;;  %v11674_v8 = vld [vmem:[%s15112_s2 + $0x4c0] sm:$0xff]  }
 0x169   : > { %9984 = vmatmul.mubr.bf16.gmra.mrb[24].mxu1 %v13310_v55  ;;  %9245 = vmatprep.subr.bf16.mxu0 %v11666_v30  ;;  %v13355_v11 = vcombine.low %v15584_v59, %v15582_v35  ;;  %v15586_v30 = vld [vmem:[#allocation66_spill] sm:$0xff] }
 0x16a   : > { %9987 = vmatprep.mubr.bf16.mxu1 %v13318_v21  ;;  %10016 = vmatpush3.bf16.msra.mxu1 %v11640_v63  ;;  %v8737_v63 = vpop.f32.mrb[23].mxu0 }
 0x16b   : > { %10017 = vmatprep.subr.bf16.mxu1 %v11643_v2  ;;  %v8738_v46 = vadd.f32 %v8737_v63, %v8736_v19  ;;  %15585 = vst [vmem:[#allocation5_spill] sm:$0xff] %v13355_v11  ;;  %v15587_v19 = vrot.slane %v15586_v30, 1  ;;  %v15595_v30 = vrot.slane %v12238_v49, 1  ;;  %v15598_v49 = vld [vmem:[#allocation17_spill] sm:$0xff] }
 0x16c   : > { %9246 = vmatpush3.bf16.msra.mxu0 %v11667_v45  ;;  %v15588_v45 = vld [vmem:[#allocation62_spill] sm:$0xff] }
 0x16d   : > { %10629 = vst [vmem:[%s13190_s28 + $0x58] sm:$0xff] %v8738_v46  ;;  %9503 = vmatprep.subr.bf16.mxu0 %v11674_v8  ;;  %v15589_v27 = vrot.slane %v15588_v45, 1 }
 0x16e   : > { %10018 = vmatpush3.bf16.msra.mxu1 %v11643_v2  ;;  %v8739_v53 = vpop.f32.mrb[24].mxu0  ;;  %v13371_v2 = vld [vmem:[%s15112_s2 + $0x2c0] sm:$0xff]  }
 0x16f   : > { %10019 = vmatprep.subr.bf16.mxu1 %v11644_v60  ;;  %3988 = vmatmul.mubr.bf16.gmra.mrb[128].mxu0 %v12742_v52  ;;  %v8740_v59 = vpop.f32.mrb[25].mxu0  ;;  %v13377_v63 = vcombine.low %v15589_v27, %v15587_v19 }
 0x170   : > { %3995 = vmatprep.mubr.bf16.mxu0 %v12796_v40  ;;  %v8741_v46 = vadd.f32 %v8740_v59, %v8739_v53  ;;  %v8742_v35 = vpop.f32.mrb[26].mxu0 }
 0x171   : > { %9988 = vmatmul.mubr.bf16.gmra.mrb[28].mxu1 %v13349_v50  ;;  %15590 = vst [vmem:[#allocation26_spill] sm:$0xff] %v13377_v63  ;;  %v8743_v47 = vpop.f32.mrb[27].mxu0 }
 0x172   : > { %9991 = vmatprep.mubr.bf16.mxu1 %v13355_v11  ;;  %10020 = vmatpush3.bf16.msra.mxu1 %v11644_v60  ;;  %v15592_v60 = vld [vmem:[#allocation70_spill] sm:$0xff]  ;;  %10710 = vst [vmem:[%s13190_s28 + $0x60] sm:$0xff] %v8741_v46  ;;  %v8744_v52 = vadd.f32 %v8743_v47, %v8742_v35  ;;  %v15599_v46 = vrot.slane %v15598_v49, 1  ;;  %v15608_v49 = vrot.slane %v12406_v54, 1  ;;  %v963_v54 = vld [vmem:[#allocation2 + $0x144] sm:$0x1] }
 0x173   : > { %10021 = vmatprep.subr.bf16.mxu1 %v11645_v3  ;;  %v15593_v8 = vrot.slane %v15592_v60, 1 }
 0x174   : > { %10764 = vst [vmem:[%s13190_s28 + $0x68] sm:$0xff] %v8744_v52 }
 0x175   : > { %v13383_v40 = vcombine.low %v15593_v8, %v15591_v7 }
 0x176   : > { %10022 = vmatpush3.bf16.msra.mxu1 %v11645_v3  ;;  %v15596_v3 = vrot.slane %v12182_v56, 1  ;;  %v15600_v56 = vld [vmem:[#allocation9_spill] sm:$0xff] }
 0x177   : > { %15594 = vst [vmem:[#allocation12_spill] sm:$0xff] %v13383_v40  ;;  %10055 = vmatprep.subr.bf16.mxu1 %v13371_v2  ;;  %3996 = vmatmul.mubr.bf16.gmra.mrb[132].mxu0 %v12792_v14  ;;  %v15601_v35 = vrot.slane %v15600_v56, 1 }
 0x178   : > { %4003 = vmatprep.mubr.bf16.mxu0 %v12826_v1  ;;  %v13396_v19 = vcombine.low %v15596_v3, %v15595_v30 }
 0x179   : > { %9992 = vmatmul.mubr.bf16.gmra.mrb[32].mxu1 %v13377_v63  ;;  %v8745_v58 = vpop.f32.mrb[28].mxu0  ;;  %v13408_v47 = vcombine.low %v15601_v35, %v15599_v46 }
 0x17a   : > { %9995 = vmatprep.mubr.bf16.mxu1 %v13383_v40  ;;  %v8746_v53 = vpop.f32.mrb[29].mxu0  ;;  %15597 = vst [vmem:[#allocation32_spill] sm:$0xff] %v13396_v19  ;;  %v13522_v40 = vld [vmem:[#allocation2 + $0x178] sm:$0xf] }
 0x17b   : > { %v8747_v7 = vadd.f32 %v8746_v53, %v8745_v58  ;;  %v8748_v59 = vpop.f32.mrb[30].mxu0  ;;  %15602 = vst [vmem:[#allocation28_spill] sm:$0xff] %v13408_v47  ;;  %v15603_v53 = vrot.slane %v12397_v23, 1 }
 0x17c   : > { %v8749_v45 = vpop.f32.mrb[31].mxu0 }
 0x17d   : > { %10683 = vst [vmem:[%s13190_s28 + $0x70] sm:$0xff] %v8747_v7  ;;  %v8750_v52 = vadd.f32 %v8749_v45, %v8748_v59  ;;  %v15604_v7 = vld [vmem:[#allocation20_spill] sm:$0xff] }
 0x17e   : > { %v15605_v59 = vrot.slane %v15604_v7, 1  ;;  %v13432_v7 = vld [vmem:[#allocation2 + $0x140] sm:$0xf] }
 0x17f   : > { %4004 = vmatmul.mubr.bf16.gmra.mrb[136].mxu0 %v12828_v32  ;;  %10737 = vst [vmem:[%s13190_s28 + $0x78] sm:$0xff] %v8750_v52  ;;  %v15265_v52 = vrot.slane %v13125_v6, 1 }
 0x180   : > { %4011 = vmatprep.mubr.bf16.mxu0 %v12856_v42  ;;  %v13414_v30 = vcombine.low %v15605_v59, %v15603_v53  ;;  %v15610_v53 = vld [vmem:[#allocation8_spill] sm:$0xff]  ;;  %v15611_v59 = vld [vmem:[#allocation33_spill] sm:$0xff] }
 0x181   : > { %9996 = vmatmul.mubr.bf16.gmra.mrb[36].mxu1 %v13052_v51  ;;  %v8751_v27 = vpop.f32.mrb[32].mxu0  ;;  %v13427_v46 = vcombine.low %v15608_v49, %v15265_v52 }
 0x182   : > { %9999 = vmatprep.mubr.bf16.mxu1 %v13396_v19  ;;  %v8752_v60 = vpop.f32.mrb[33].mxu0  ;;  %15606 = vst [vmem:[#allocation40_spill] sm:$0xff] %v13414_v30  ;;  %v15618_v19 = vld [vmem:[#allocation52_spill] sm:$0xff] }
 0x183   : > { %v8753_v8 = vadd.f32 %v8752_v60, %v8751_v27  ;;  %v8754_v58 = vpop.f32.mrb[34].mxu0  ;;  %v15607_v27 = vld [vmem:[#allocation11_spill] sm:$0xff]  ;;  %15609 = vst [vmem:[#allocation36_spill] sm:$0xff] %v13427_v46 }
 0x184   : > { %v8755_v3 = vpop.f32.mrb[35].mxu0 }
 0x185   : > { %10818 = vst [vmem:[%s13190_s28 + $0x80] sm:$0xff] %v8753_v8  ;;  %v8756_v45 = vadd.f32 %v8755_v3, %v8754_v58  ;;  %v13437_v3 = vld [vmem:[#allocation2 + $0x148] sm:$0xf] }
 0x187   : > { %4012 = vmatmul.mubr.bf16.gmra.mrb[140].mxu0 %v12865_v57  ;;  %10872 = vst [vmem:[%s13190_s28 + $0x88] sm:$0xff] %v8756_v45  ;;  %v965_v45 = vld [vmem:[#allocation2 + $0x14c] sm:$0x1] }
 0x188   : > { %4019 = vmatprep.mubr.bf16.mxu0 %v15607_v27  ;;  %v967_v27 = vld [vmem:[#allocation2 + $0x154] sm:$0x1] }
 0x189   : > { %10000 = vmatmul.mubr.bf16.gmra.mrb[40].mxu1 %v13408_v47 }
 0x18a   : > { %10003 = vmatprep.mubr.bf16.mxu1 %v13414_v30  ;;  %v8757_v23 = vpop.f32.mrb[36].mxu0 }
 0x18b   : > { %v8758_v56 = vpop.f32.mrb[37].mxu0 }
 0x18c   : > { %v8759_v35 = vadd.f32 %v8758_v56, %v8757_v23  ;;  %v8760_v60 = vpop.f32.mrb[38].mxu0  ;;  %v13440_v56 = vcombine.low %v13432_v7, %v963_v54 }
 0x18d   : > { %v8761_v8 = vpop.f32.mrb[39].mxu0 }
 0x18e   : > { %10791 = vst [vmem:[%s13190_s28 + $0x90] sm:$0xff] %v8759_v35  ;;  %v8762_v58 = vadd.f32 %v8761_v8, %v8760_v60  ;;  %v13443_v35 = vcombine.low %v13437_v3, %v965_v45  ;;  %v3629_v54 = vshll.u32 %v13440_v56, 16 }
 0x18f   : > { %4020 = vmatmul.mubr.bf16.gmra.mrb[144].mxu0 %v15610_v53  ;;  %v15612_v53 = vld [vmem:[#allocation38_spill] sm:$0xff] }
 0x190   : > { %10845 = vst [vmem:[%s13190_s28 + $0x98] sm:$0xff] %v8762_v58  ;;  %4027 = vmatprep.mubr.bf16.mxu0 %v15527_v48  ;;  %v2939_v48 = vrot.slane %v12894_v9, 1  ;;  %v3636_v45 = vshll.u32 %v13443_v35, 16  ;;  %v11652_v9 = vld [vmem:[%s15112_s2 + $0x2d0] sm:$0xff]   ;;  %v3634_v57 = vshrl.u32 %v13443_v35, 16 }
 0x191   : > { %10004 = vmatmul.mubr.bf16.gmra.mrb[44].mxu1 %v13427_v46 }
 0x192   : > { %10023 = vmatprep.mubr.bf16.mxu1 %v15611_v59  ;;  %v8763_v23 = vpop.f32.mrb[40].mxu0  ;;  %v11651_v59 = vld [vmem:[%s15112_s2 + $0x2c8] sm:$0xff]  }
 0x193   : > { %v8764_v49 = vpop.f32.mrb[41].mxu0 }
 0x194   : > { %v8765_v60 = vadd.f32 %v8764_v49, %v8763_v23  ;;  %v8766_v8 = vpop.f32.mrb[42].mxu0  ;;  %v15613_v23 = vld [vmem:[#allocation44_spill] sm:$0xff]  ;;  %v13457_v49 = vld [vmem:[#allocation2 + $0x150] sm:$0xf] }
 0x195   : > { %v8767_v58 = vpop.f32.mrb[43].mxu0  ;;  %v13470_v1 = vcombine.low %v13457_v49, %v967_v27 }
 0x196   : > { %10926 = vst [vmem:[%s13190_s28 + $0xa0] sm:$0xff] %v8765_v60  ;;  %v8768_v52 = vadd.f32 %v8767_v58, %v8766_v8  ;;  %v969_v60 = vld [vmem:[#allocation2 + $0x15c] sm:$0x1] }
 0x197   : > { %4028 = vmatmul.mubr.bf16.gmra.mrb[148].mxu0 %v15532_v10  ;;  %v3631_v10 = vrot.slane %v3629_v54, 1  ;;  %v13479_v54 = vld [vmem:[#allocation2 + $0x160] sm:$0xf] }
 0x198   : > { %10980 = vst [vmem:[%s13190_s28 + $0xa8] sm:$0xff] %v8768_v52  ;;  %4035 = vmatprep.mubr.bf16.mxu0 %v15533_v24  ;;  %v15614_v52 = vrot.slane %v12885_v25, 1  ;;  %v3638_v24 = vrot.slane %v3636_v45, 1  ;;  %v971_v45 = vld [vmem:[#allocation2 + $0x164] sm:$0x1] }
 0x199   : > { %10024 = vmatmul.mubr.bf16.vlgmr.msra.gmra.mrb[16].mxu1 %v15612_v53  ;;  %v13463_v53 = vld [vmem:[#allocation2 + $0x158] sm:$0xf] }
 0x19a   : > { %10027 = vmatprep.mubr.bf16.mxu1 %v15613_v23  ;;  %10056 = vmatpush3.bf16.msra.mxu1 %v13371_v2  ;;  %v8769_v8 = vpop.f32.mrb[44].mxu0  ;;  %v8142_v58 = vcombine.low %v15614_v52, %v2939_v48  ;;  %v3627_v2 = vshrl.u32 %v13440_v56, 16  ;;  %v13473_v14 = vcombine.low %v13463_v53, %v969_v60  ;;  %v11658_v48 = vld [vmem:[%s15112_s2 + $0x2d8] sm:$0xff]   ;;  %v13482_v27 = vor.u32 %v3638_v24, %v3634_v57  ;;  %v973_v60 = vld [vmem:[#allocation2 + $0x16c] sm:$0x1]  ;;  %v11662_v57 = vld [vmem:[%s15112_s2 + $0x2e0] sm:$0xff]  }
 0x19b   : > { %10057 = vmatprep.subr.bf16.mxu1 %v11651_v59  ;;  %v8770_v23 = vpop.f32.mrb[45].mxu0  ;;  %v15616_v52 = vld [vmem:[#allocation46_spill] sm:$0xff] }
 0x19c   : > { %v8771_v42 = vadd.f32 %v8770_v23, %v8769_v8  ;;  %v8772_v32 = vpop.f32.mrb[46].mxu0  ;;  %15615 = vst [vmem:[#allocation50_spill] sm:$0xff] %v13482_v27  ;;  %v13484_v8 = vld [vmem:[#allocation2 + $0x168] sm:$0xf] }
 0x19d   : > { %v8773_v16 = vpop.f32.mrb[47].mxu0 }
 0x19e   : > { %10058 = vmatpush3.bf16.msra.mxu1 %v11651_v59  ;;  %10899 = vst [vmem:[%s13190_s28 + $0xb0] sm:$0xff] %v8771_v42  ;;  %v8774_v25 = vadd.f32 %v8773_v16, %v8772_v32  ;;  %v3632_v59 = vor.u32 %v3631_v10, %v3627_v2  ;;  %v3643_v16 = vshll.u32 %v13470_v1, 16  ;;  %v3650_v32 = vshll.u32 %v13473_v14, 16 }
 0x19f   : > { %10059 = vmatprep.subr.bf16.mxu1 %v11652_v9  ;;  %4036 = vmatmul.mubr.bf16.gmra.mrb[152].mxu0 %v15538_v28  ;;  %v13492_v42 = vcombine.low %v13479_v54, %v971_v45  ;;  %v13498_v10 = vcombine.low %v13484_v8, %v973_v60  ;;  %v3641_v2 = vshrl.u32 %v13470_v1, 16  ;;  %v3648_v45 = vshrl.u32 %v13473_v14, 16 }
 0x1a0   : > { %10953 = vst [vmem:[%s13190_s28 + $0xb8] sm:$0xff] %v8774_v25  ;;  %4043 = vmatprep.mubr.bf16.mxu0 %v15539_v18  ;;  %v13501_v23 = vcombine.low %v3632_v59, %v13482_v27  ;;  %v3645_v18 = vrot.slane %v3643_v16, 1  ;;  %v3652_v28 = vrot.slane %v3650_v32, 1  ;;  %v11668_v59 = vld [vmem:[%s15112_s2 + $0x2e8] sm:$0xff]   ;;  %v2940_v16 = vrot.slane %v12988_v13, 1 }
 0x1a1   : > { %10028 = vmatmul.mubr.bf16.gmra.mrb[20].mxu1 %v8142_v58  ;;  %v3657_v30 = vshll.u32 %v13492_v42, 16  ;;  %v3664_v60 = vshll.u32 %v13498_v10, 16  ;;  %v13519_v32 = vld [vmem:[#allocation2 + $0x170] sm:$0xf]  ;;  %v3662_v27 = vshrl.u32 %v13498_v10, 16 }
 0x1a2   : > { %10031 = vmatprep.mubr.bf16.mxu1 %v15616_v52  ;;  %10060 = vmatpush3.bf16.msra.mxu1 %v11652_v9  ;;  %v8975_v58 = vpop.f32.mrb[48].mxu0  ;;  %15617 = vst [vmem:[#allocation43_spill] sm:$0xff] %v13501_v23 }
 0x1a3   : > { %10061 = vmatprep.subr.bf16.mxu1 %v11658_v48  ;;  %v8976_v24 = vpop.f32.mrb[49].mxu0  ;;  %v3659_v51 = vrot.slane %v3657_v30, 1  ;;  %v3666_v11 = vrot.slane %v3664_v60, 1  ;;  %v13534_v30 = vcombine.low %v13432_v7, %v13437_v3 }
 0x1a4   : > { %v8977_v25 = vadd.f32 %v8976_v24, %v8975_v58  ;;  %v8978_v9 = vpop.f32.mrb[50].mxu0  ;;  %v15619_v58 = vld [vmem:[#allocation58_spill] sm:$0xff]  ;;  %v975_v24 = vld [vmem:[#allocation2 + $0x174] sm:$0x1] }
 0x1a5   : > { %v8979_v46 = vpop.f32.mrb[51].mxu0  ;;  %15624 = vst [vmem:[#allocation62_spill] sm:$0xff] %v13534_v30 }
 0x1a6   : > { %10062 = vmatpush3.bf16.msra.mxu1 %v11658_v48  ;;  %v8980_v47 = vadd.f32 %v8979_v46, %v8978_v9  ;;  %v13515_v48 = vor.u32 %v3645_v18, %v3641_v2  ;;  %v13517_v46 = vor.u32 %v3652_v28, %v3648_v45  ;;  %v3655_v9 = vshrl.u32 %v13492_v42, 16  ;;  %v11672_v28 = vld [vmem:[%s15112_s2 + $0x2f0] sm:$0xff]  }
 0x1a7   : > { %10063 = vmatprep.subr.bf16.mxu1 %v11662_v57  ;;  %4044 = vmatmul.mubr.bf16.gmra.mrb[156].mxu0 %v15545_v26  ;;  %v977_v26 = vld [vmem:[#allocation2 + $0x17c] sm:$0x1]  ;;  %v15622_v2 = vrot.slane %v12995_v34, 1 }
 0x1a8   : > { %4051 = vmatprep.mubr.bf16.mxu0 %v13501_v23  ;;  %15620 = vst [vmem:[#allocation51_spill] sm:$0xff] %v13515_v48  ;;  %15621 = vst [vmem:[#allocation56_spill] sm:$0xff] %v13517_v46  ;;  %v13537_v23 = vcombine.low %v13519_v32, %v975_v24  ;;  %v13543_v31 = vcombine.low %v13515_v48, %v13517_v46  ;;  %v13546_v34 = vcombine.low %v13522_v40, %v977_v26 }
 0x1a9   : > { %10032 = vmatmul.mubr.bf16.gmra.mrb[24].mxu1 %v15618_v19  ;;  %v13548_v20 = vor.u32 %v3659_v51, %v3655_v9  ;;  %v13551_v24 = vor.u32 %v3666_v11, %v3662_v27 }
 0x1aa   : > { %10035 = vmatprep.mubr.bf16.mxu1 %v15619_v58  ;;  %10064 = vmatpush3.bf16.msra.mxu1 %v11662_v57  ;;  %v8981_v13 = vpop.f32.mrb[52].mxu0  ;;  %v13530_v57 = vcombine.low %v15622_v2, %v2940_v16  ;;  %15625 = vst [vmem:[#allocation70_spill] sm:$0xff] %v13543_v31  ;;  %v3671_v51 = vshll.u32 %v13537_v23, 16  ;;  %v3678_v11 = vshll.u32 %v13546_v34, 16 }
 0x1ab   : > { %10065 = vmatprep.subr.bf16.mxu1 %v11668_v59  ;;  %v8982_v45 = vpop.f32.mrb[53].mxu0  ;;  %15626 = vst [vmem:[#allocation17_spill] sm:$0xff] %v13548_v20  ;;  %15627 = vst [vmem:[#allocation9_spill] sm:$0xff] %v13551_v24 }
 0x1ac   : > { %v8839_v63 = vpop.f32.mrb[48].mxu1  ;;  %15623 = vst [vmem:[#allocation66_spill] sm:$0xff] %v13530_v57  ;;  %v13539_v21 = vadd.f32 %v8982_v45, %v8981_v13  ;;  %v8984_v55 = vpop.f32.mrb[54].mxu0  ;;  %v11673_v13 = vld [vmem:[%s15112_s2 + $0x2f8] sm:$0xff]   ;;  %v13567_v45 = vcombine.low %v13457_v49, %v13463_v53 }
 0x1ad   : > { %v8840_v18 = vpop.f32.mrb[49].mxu1  ;;  %v8985_v2 = vpop.f32.mrb[55].mxu0 }
 0x1ae   : > { %v8841_v50 = vadd.f32 %v8840_v18, %v8839_v63  ;;  %v8842_v60 = vpop.f32.mrb[50].mxu1  ;;  %10066 = vmatpush3.bf16.msra.mxu1 %v11668_v59  ;;  %v8986_v3 = vadd.f32 %v8985_v2, %v8984_v55  ;;  %v362_v55 = vld [vmem:[%s11897_s18 + $0x7c] sm:$0xf]  ;;  %15629 = vst [vmem:[#allocation20_spill] sm:$0xff] %v13567_v45 }
 0x1af   : > { %v8843_v16 = vpop.f32.mrb[51].mxu1  ;;  %10067 = vmatprep.subr.bf16.mxu1 %v11672_v28  ;;  %4052 = vmatmul.mubr.bf16.gmra.mrb[160].mxu0 %v13534_v30 }
 0x1b0   : > { %v10388_v7 = vadd.f32 %v8841_v50, %v13164_v22  ;;  %v8844_v63 = vadd.f32 %v8843_v16, %v8842_v60  ;;  %v15628_v22 = vld [vmem:[#allocation63_spill] sm:$0xff]  ;;  %4059 = vmatprep.mubr.bf16.mxu0 %v13543_v31  ;;  %v612_v50 = vshrl.u32 %v362_v55, 16  ;;  %v3673_v16 = vrot.slane %v3671_v51, 1 }
 0x1b1   : > { %10036 = vmatmul.mubr.bf16.gmra.mrb[28].mxu1 %v13530_v57  ;;  %v3680_v57 = vrot.slane %v3678_v11, 1  ;;  %v876_v51 = vld [vmem:[#allocation2 + $0x180] sm:$0xf]  ;;  %v2941_v11 = vrot.slane %v13065_v41, 1 }
 0x1b2   : > { %v10391_v26 = vadd.f32 %v10388_v7, %v8977_v25  ;;  %v10442_v59 = vadd.f32 %v8844_v63, %v13172_v5  ;;  %10039 = vmatprep.mubr.bf16.mxu1 %v15628_v22  ;;  %10068 = vmatpush3.bf16.msra.mxu1 %v11672_v28  ;;  %v8987_v18 = vpop.f32.mrb[56].mxu0  ;;  %v13571_v5 = vcombine.low %v13548_v20, %v13551_v24  ;;  %v13576_v25 = vld [vmem:[%s15112_s2 + $0x380] sm:$0xff]   ;;  %v614_v2 = vrot.slane %v612_v50, 7  ;;  %v15631_v50 = vld [vmem:[#allocation73_spill] sm:$0xff] }
 0x1b3   : > { %10069 = vmatprep.subr.bf16.mxu1 %v11673_v13  ;;  %v8988_v60 = vpop.f32.mrb[57].mxu0  ;;  %v615_v7 = vshll.u32 %v362_v55, 16  ;;  %v879_v55 = vld [vmem:[#allocation2 + $0x184] sm:$0x1] }
 0x1b4   : > { %10392 = vst [vmem:[%s13190_s28] sm:$0xff] %v10391_v26  ;;  %v10445_v27 = vadd.f32 %v10442_v59, %v8980_v47  ;;  %v8845_v9 = vpop.f32.mrb[52].mxu1  ;;  %15630 = vst [vmem:[#allocation33_spill] sm:$0xff] %v13571_v5  ;;  %v3669_v47 = vshrl.u32 %v13537_v23, 16  ;;  %v8989_v63 = vadd.f32 %v8988_v60, %v8987_v18  ;;  %v8990_v26 = vpop.f32.mrb[58].mxu0  ;;  %v3676_v59 = vshrl.u32 %v13546_v34, 16 }
 0x1b5   : > { %v8846_v28 = vpop.f32.mrb[53].mxu1  ;;  %v8991_v30 = vpop.f32.mrb[59].mxu0  ;;  %v617_v24 = vor.u32 %v615_v7, %v614_v2  ;;  %v618_v46 = vrot.slane %v614_v2, 4 }
 0x1b6   : > { %10446 = vst [vmem:[%s13190_s28 + $0x8] sm:$0xff] %v10445_v27  ;;  %v8847_v49 = vadd.f32 %v8846_v28, %v8845_v9  ;;  %v8848_v53 = vpop.f32.mrb[54].mxu1  ;;  %10070 = vmatpush3.bf16.msra.mxu1 %v11673_v13  ;;  %v8992_v37 = vadd.f32 %v8991_v30, %v8990_v26  ;;  %v13586_v27 = vor.u32 %v3673_v16, %v3669_v47  ;;  %v15632_v9 = vld [vmem:[#allocation78_spill] sm:$0xff]  ;;  %v3686_v26 = vrot.slane %v13492_v42, 1 }
 0x1b7   : > { %v8849_v31 = vpop.f32.mrb[55].mxu1  ;;  %10103 = vmatprep.subr.bf16.mxu1 %v13576_v25  ;;  %4060 = vmatmul.mubr.bf16.gmra.mrb[164].mxu0 %v13567_v45  ;;  %v877_v13 = vsel %vm12082_vm4, %v617_v24, %v876_v51  ;;  %v13596_v18 = vor.u32 %v3680_v57, %v3676_v59 }
 0x1b8   : > { %v10361_v20 = vadd.f32 %v8847_v49, %v13194_v36  ;;  %v8850_v48 = vadd.f32 %v8849_v31, %v8848_v53  ;;  %v880_v31 = vsel %vm12096_vm5, %v618_v46, %v879_v55  ;;  %4067 = vmatprep.mubr.bf16.mxu0 %v13571_v5  ;;  %878 = vst [vmem:[#allocation2 + $0x180] sm:$0xf] %v877_v13  ;;  %v15637_v49 = vld [vmem:[#allocation81_spill] sm:$0xff]  ;;  %v3685_v53 = vrot.slane %v13473_v14, 1 }
 0x1b9   : > { %10040 = vmatmul.mubr.bf16.gmra.mrb[32].mxu1 %v15631_v50  ;;  %881 = vst [vmem:[#allocation2 + $0x184] sm:$0x1] %v880_v31  ;;  %v13601_v46 = vcombine.low %v15633_v44, %v2941_v11  ;;  %v13629_v11 = vcombine.low %v13519_v32, %v13522_v40  ;;  %v15640_v44 = vld [vmem:[#allocation83_spill] sm:$0xff]  ;;  %v2942_v40 = vrot.slane %v13118_v4, 1 }
 0x1ba   : > { %v10364_v36 = vadd.f32 %v10361_v20, %v13539_v21  ;;  %v10415_v30 = vadd.f32 %v8850_v48, %v13196_v29  ;;  %10043 = vmatprep.mubr.bf16.mxu1 %v15632_v9  ;;  %v8993_v24 = vpop.f32.mrb[60].mxu0  ;;  %v13605_v29 = vcombine.low %v13479_v54, %v13484_v8  ;;  %v13625_v55 = vcombine.low %v3685_v53, %v3686_v26 }
 0x1bb   : > { %15634 = vst [vmem:[#allocation38_spill] sm:$0xff] %v13601_v46  ;;  %v8994_v21 = vpop.f32.mrb[61].mxu0  ;;  %15639 = vst [vmem:[#allocation58_spill] sm:$0xff] %v13629_v11 }
 0x1bc   : > { %10365 = vst [vmem:[%s13190_s28 + $0x10] sm:$0xff] %v10364_v36  ;;  %v10418_v41 = vadd.f32 %v10415_v30, %v8986_v3  ;;  %v8851_v39 = vpop.f32.mrb[56].mxu1  ;;  %15635 = vst [vmem:[#allocation44_spill] sm:$0xff] %v13605_v29  ;;  %v8995_v57 = vadd.f32 %v8994_v21, %v8993_v24  ;;  %v8996_v60 = vpop.f32.mrb[62].mxu0  ;;  %v13610_v3 = vcombine.low %v13586_v27, %v13596_v18 }
 0x1bd   : > { %v8852_v28 = vpop.f32.mrb[57].mxu1  ;;  %v8997_v16 = vpop.f32.mrb[63].mxu0  ;;  %15638 = vst [vmem:[#allocation52_spill] sm:$0xff] %v13625_v55 }
 0x1be   : > { %10419 = vst [vmem:[%s13190_s28 + $0x18] sm:$0xff] %v10418_v41  ;;  %v8853_v20 = vadd.f32 %v8852_v28, %v8851_v39  ;;  %v8854_v48 = vpop.f32.mrb[58].mxu1  ;;  %15636 = vst [vmem:[#allocation46_spill] sm:$0xff] %v13610_v3  ;;  %v8998_v7 = vadd.f32 %v8997_v16, %v8996_v60  ;;  %v15642_v16 = vrot.slane %v13125_v6, 1 }
 0x1bf   : > { %v8855_v47 = vpop.f32.mrb[59].mxu1  ;;  %4068 = vmatmul.mubr.bf16.gmra.mrb[168].mxu0 %v13605_v29 }
 0x1c0   : > { %v10496_v0 = vadd.f32 %v8853_v20, %v13213_v33  ;;  %v8856_v2 = vadd.f32 %v8855_v47, %v8854_v48  ;;  %4075 = vmatprep.mubr.bf16.mxu0 %v13610_v3  ;;  %v15641_v20 = vld [vmem:[#allocation84_spill] sm:$0xff] }
 0x1c1   : > { %10044 = vmatmul.mubr.bf16.gmra.mrb[36].mxu1 %v13601_v46  ;;  %v15715_v46 = vld [vmem:[#allocation69_spill] sm:$0xff] }
 0x1c2   : > { %v10499_v54 = vadd.f32 %v10496_v0, %v8989_v63  ;;  %v10550_v8 = vadd.f32 %v8856_v2, %v13215_v62  ;;  %10047 = vmatprep.mubr.bf16.mxu1 %v15637_v49  ;;  %v8999_v51 = vpop.f32.mrb[64].mxu0  ;;  %v13642_v0 = vcombine.low %v15642_v16, %v2942_v40 }
 0x1c3   : > { %v9000_v62 = vpop.f32.mrb[65].mxu0 }
 0x1c4   : > { %10500 = vst [vmem:[%s13190_s28 + $0x20] sm:$0xff] %v10499_v54  ;;  %v10553_v33 = vadd.f32 %v10550_v8, %v8992_v37  ;;  %v8857_v59 = vpop.f32.mrb[60].mxu1  ;;  %v9001_v36 = vadd.f32 %v9000_v62, %v8999_v51  ;;  %v9002_v37 = vpop.f32.mrb[66].mxu0  ;;  %15643 = vst [vmem:[#allocation91_spill] sm:$0xff] %v13642_v0 }
 0x1c5   : > { %v8858_v63 = vpop.f32.mrb[61].mxu1  ;;  %v9003_v41 = vpop.f32.mrb[67].mxu0 }
 0x1c6   : > { %10554 = vst [vmem:[%s13190_s28 + $0x28] sm:$0xff] %v10553_v33  ;;  %v8859_v13 = vadd.f32 %v8858_v63, %v8857_v59  ;;  %v8860_v31 = vpop.f32.mrb[62].mxu1  ;;  %v9004_v28 = vadd.f32 %v9003_v41, %v9002_v37  ;;  %v11677_v33 = vld [vmem:[%s15112_s2 + $0x4c8] sm:$0xff]   ;;  %v15644_v63 = vld [vmem:[#allocation34_spill] sm:$0xff] }
 0x1c7   : > { %v8861_v30 = vpop.f32.mrb[63].mxu1  ;;  %4076 = vmatmul.mubr.bf16.gmra.mrb[172].mxu0 %v13629_v11  ;;  %v11678_v37 = vld [vmem:[%s15112_s2 + $0x488] sm:$0xff]  }
 0x1c8   : > { %v10469_v39 = vadd.f32 %v8859_v13, %v13237_v61  ;;  %v8862_v24 = vadd.f32 %v8861_v30, %v8860_v31  ;;  %4605 = vmatprep.mubr.bf16.mxu0 %v12528_v43  ;;  %v15645_v31 = vld [vmem:[#allocation45_spill] sm:$0xff]  ;;  %v15646_v30 = vld [vmem:[#allocation48_spill] sm:$0xff] }
 0x1c9   : > { %10048 = vmatmul.mubr.bf16.gmra.mrb[40].mxu1 %v15640_v44 }
 0x1ca   : > { %v10472_v32 = vadd.f32 %v10469_v39, %v8995_v57  ;;  %v10523_v21 = vadd.f32 %v8862_v24, %v13243_v17  ;;  %10051 = vmatprep.mubr.bf16.mxu1 %v15641_v20  ;;  %v9005_v61 = vpop.f32.mrb[68].mxu0  ;;  %v11675_v17 = vld [vmem:[%s15112_s2 + $0x480] sm:$0xff]  }
 0x1cb   : > { %v9006_v2 = vpop.f32.mrb[69].mxu0 }
 0x1cc   : > { %10473 = vst [vmem:[%s13190_s28 + $0x30] sm:$0xff] %v10472_v32  ;;  %v10526_v48 = vadd.f32 %v10523_v21, %v8998_v7  ;;  %v8863_v60 = vpop.f32.mrb[64].mxu1  ;;  %v9007_v57 = vadd.f32 %v9006_v2, %v9005_v61  ;;  %v9008_v8 = vpop.f32.mrb[70].mxu0 }
 0x1cd   : > { %v8864_v47 = vpop.f32.mrb[65].mxu1  ;;  %v9009_v7 = vpop.f32.mrb[71].mxu0 }
 0x1ce   : > { %10527 = vst [vmem:[%s13190_s28 + $0x38] sm:$0xff] %v10526_v48  ;;  %v8865_v54 = vadd.f32 %v8864_v47, %v8863_v60  ;;  %v8866_v4 = vpop.f32.mrb[66].mxu1  ;;  %v9010_v51 = vadd.f32 %v9009_v7, %v9008_v8  ;;  %v11679_v47 = vld [vmem:[%s15112_s2 + $0x388] sm:$0xff]   ;;  %v15647_v8 = vld [vmem:[#allocation41_spill] sm:$0xff] }
 0x1cf   : > { %v8867_v43 = vpop.f32.mrb[67].mxu1  ;;  %4606 = vmatmul.mubr.bf16.vlgmr.msra.gmra.mrb[176].mxu0 %v15644_v63 }
 0x1d0   : > { %v10604_v6 = vadd.f32 %v8865_v54, %v13301_v12  ;;  %v8868_v59 = vadd.f32 %v8867_v43, %v8866_v4  ;;  %9504 = vmatpush3.bf16.msra.mxu0 %v11675_v17  ;;  %4613 = vmatprep.mubr.bf16.mxu0 %v15646_v30  ;;  %v11681_v12 = vld [vmem:[%s15112_s2 + $0x4d0] sm:$0xff]   ;;  %v10630_v4 = vld [vmem:[%s13190_s28 + $0x58] sm:$0xff] }
 0x1d1   : > { %10052 = vmatmul.mubr.bf16.gmra.mrb[44].mxu1 %v13642_v0  ;;  %9505 = vmatprep.subr.bf16.mxu0 %v11677_v33  ;;  %v11682_v54 = vld [vmem:[%s15112_s2 + $0x490] sm:$0xff]   ;;  %v11685_v17 = vld [vmem:[%s15112_s2 + $0x4d8] sm:$0xff]  }
 0x1d2   : > { %v10607_v62 = vadd.f32 %v10604_v6, %v9001_v36  ;;  %v10658_v13 = vadd.f32 %v8868_v59, %v13312_v15  ;;  %10071 = vmatprep.mubr.bf16.mxu1 %v15645_v31  ;;  %v9011_v36 = vpop.f32.mrb[72].mxu0  ;;  %v11680_v33 = vld [vmem:[%s15112_s2 + $0x390] sm:$0xff]  }
 0x1d3   : > { %v9012_v15 = vpop.f32.mrb[73].mxu0 }
 0x1d4   : > { %10608 = vst [vmem:[%s13190_s28 + $0x40] sm:$0xff] %v10607_v62  ;;  %v10661_v41 = vadd.f32 %v10658_v13, %v9004_v28  ;;  %v8869_v39 = vpop.f32.mrb[68].mxu1  ;;  %v9013_v21 = vadd.f32 %v9012_v15, %v9011_v36  ;;  %v9014_v48 = vpop.f32.mrb[74].mxu0  ;;  %9506 = vmatpush3.bf16.msra.mxu0 %v11678_v37 }
 0x1d5   : > { %v8870_v24 = vpop.f32.mrb[69].mxu1  ;;  %v9015_v61 = vpop.f32.mrb[75].mxu0  ;;  %9507 = vmatprep.subr.bf16.mxu0 %v11681_v12  ;;  %v10711_v12 = vld [vmem:[%s13190_s28 + $0x60] sm:$0xff] }
 0x1d6   : > { %10662 = vst [vmem:[%s13190_s28 + $0x48] sm:$0xff] %v10661_v41  ;;  %v8871_v40 = vadd.f32 %v8870_v24, %v8869_v39  ;;  %v8872_v32 = vpop.f32.mrb[70].mxu1  ;;  %v9016_v2 = vadd.f32 %v9015_v61, %v9014_v48  ;;  %v11690_v39 = vld [vmem:[%s15112_s2 + $0x4e0] sm:$0xff]   ;;  %v10765_v48 = vld [vmem:[%s13190_s28 + $0x68] sm:$0xff] }
 0x1d7   : > { %v8873_v60 = vpop.f32.mrb[71].mxu1  ;;  %4614 = vmatmul.mubr.bf16.gmra.mrb[180].mxu0 %v15647_v8  ;;  %v11694_v61 = vld [vmem:[%s15112_s2 + $0x4e8] sm:$0xff]  }
 0x1d8   : > { %v10577_v28 = vadd.f32 %v8871_v40, %v13337_v38  ;;  %v8874_v16 = vadd.f32 %v8873_v60, %v8872_v32  ;;  %v15648_v38 = vld [vmem:[#allocation64_spill] sm:$0xff]  ;;  %9508 = vmatpush3.bf16.msra.mxu0 %v11682_v54  ;;  %v11683_v40 = vld [vmem:[%s15112_s2 + $0x398] sm:$0xff]   ;;  %v11691_v32 = vld [vmem:[%s15112_s2 + $0x4a0] sm:$0xff]  }
 0x1d9   : > { %10072 = vmatmul.mubr.bf16.vlgmr.msra.gmra.mrb[16].mxu1 %v15616_v52  ;;  %4621 = vmatprep.mubr.bf16.mxu0 %v15648_v38  ;;  %v15649_v60 = vld [vmem:[#allocation53_spill] sm:$0xff]  ;;  %v15651_v54 = vld [vmem:[#allocation18_spill] sm:$0xff] }
 0x1da   : > { %v10580_v43 = vadd.f32 %v10577_v28, %v9007_v57  ;;  %v10631_v7 = vadd.f32 %v10630_v4, %v8874_v16  ;;  %10075 = vmatprep.mubr.bf16.mxu1 %v15618_v19  ;;  %10104 = vmatpush3.bf16.msra.mxu1 %v13576_v25  ;;  %v9017_v63 = vpop.f32.mrb[76].mxu0  ;;  %v11686_v57 = vld [vmem:[%s15112_s2 + $0x498] sm:$0xff]   ;;  %v15650_v16 = vld [vmem:[#allocation59_spill] sm:$0xff] }
 0x1db   : > { %10105 = vmatprep.subr.bf16.mxu1 %v11679_v47  ;;  %v9018_v13 = vpop.f32.mrb[77].mxu0  ;;  %9509 = vmatprep.subr.bf16.mxu0 %v11685_v17 }
 0x1dc   : > { %10581 = vst [vmem:[%s13190_s28 + $0x50] sm:$0xff] %v10580_v43  ;;  %v10634_v6 = vadd.f32 %v10631_v7, %v9010_v51  ;;  %v8875_v59 = vpop.f32.mrb[72].mxu1  ;;  %v9019_v37 = vadd.f32 %v9018_v13, %v9017_v63  ;;  %v9020_v30 = vpop.f32.mrb[78].mxu0  ;;  %9510 = vmatpush3.bf16.msra.mxu0 %v11686_v57  ;;  %v11684_v43 = vld [vmem:[%s15112_s2 + $0x3a0] sm:$0xff]   ;;  %v10684_v63 = vld [vmem:[%s13190_s28 + $0x70] sm:$0xff] }
 0x1dd   : > { %v8876_v62 = vpop.f32.mrb[73].mxu1  ;;  %v9021_v51 = vpop.f32.mrb[79].mxu0  ;;  %9511 = vmatprep.subr.bf16.mxu0 %v11690_v39  ;;  %v11700_v13 = vld [vmem:[%s15112_s2 + $0x4f0] sm:$0xff]   ;;  %v15652_v39 = vld [vmem:[#allocation54_spill] sm:$0xff] }
 0x1de   : > { %10635 = vst [vmem:[%s13190_s28 + $0x58] sm:$0xff] %v10634_v6  ;;  %v8877_v25 = vadd.f32 %v8876_v62, %v8875_v59  ;;  %v8878_v31 = vpop.f32.mrb[74].mxu1  ;;  %10106 = vmatpush3.bf16.msra.mxu1 %v11679_v47  ;;  %v9022_v15 = vadd.f32 %v9021_v51, %v9020_v30  ;;  %v10738_v51 = vld [vmem:[%s13190_s28 + $0x78] sm:$0xff] }
 0x1df   : > { %v8879_v41 = vpop.f32.mrb[75].mxu1  ;;  %10107 = vmatprep.subr.bf16.mxu1 %v11680_v33  ;;  %4622 = vmatmul.mubr.bf16.gmra.mrb[184].mxu0 %v15649_v60 }
 0x1e0   : > { %v10712_v36 = vadd.f32 %v10711_v12, %v8877_v25  ;;  %v8880_v24 = vadd.f32 %v8879_v41, %v8878_v31  ;;  %4629 = vmatprep.mubr.bf16.mxu0 %v15651_v54  ;;  %9512 = vmatpush3.bf16.msra.mxu0 %v11691_v32  ;;  %v11687_v12 = vld [vmem:[%s15112_s2 + $0x3a8] sm:$0xff]   ;;  %v11701_v41 = vld [vmem:[%s15112_s2 + $0x4b0] sm:$0xff]  }
 0x1e1   : > { %10076 = vmatmul.mubr.bf16.gmra.mrb[20].mxu1 %v15619_v58  ;;  %9513 = vmatprep.subr.bf16.mxu0 %v11694_v61  ;;  %v15653_v32 = vld [vmem:[#allocation65_spill] sm:$0xff] }
 0x1e2   : > { %v10715_v47 = vadd.f32 %v10712_v36, %v9013_v21  ;;  %v10766_v28 = vadd.f32 %v10765_v48, %v8880_v24  ;;  %10079 = vmatprep.mubr.bf16.mxu1 %v15650_v16  ;;  %10108 = vmatpush3.bf16.msra.mxu1 %v11680_v33  ;;  %v9023_v17 = vpop.f32.mrb[80].mxu0  ;;  %v11695_v21 = vld [vmem:[%s15112_s2 + $0x4a8] sm:$0xff]   ;;  %v11706_v36 = vld [vmem:[%s15112_s2 + $0x4f8] sm:$0xff]   ;;  %v15673_v16 = vld [vmem:[#allocation27_spill] sm:$0xff] }
 0x1e3   : > { %10109 = vmatprep.subr.bf16.mxu1 %v11683_v40  ;;  %v9024_v38 = vpop.f32.mrb[81].mxu0 }
 0x1e4   : > { %10716 = vst [vmem:[%s13190_s28 + $0x60] sm:$0xff] %v10715_v47  ;;  %v10769_v4 = vadd.f32 %v10766_v28, %v9016_v2  ;;  %v8881_v8 = vpop.f32.mrb[76].mxu1  ;;  %v9025_v2 = vadd.f32 %v9024_v38, %v9023_v17  ;;  %v9026_v59 = vpop.f32.mrb[82].mxu0  ;;  %9514 = vmatpush3.bf16.msra.mxu0 %v11695_v21  ;;  %v11688_v47 = vld [vmem:[%s15112_s2 + $0x3b0] sm:$0xff]   ;;  %v11715_v38 = vld [vmem:[%s15112_s2 + $0x580] sm:$0xff]  }
 0x1e5   : > { %v8882_v7 = vpop.f32.mrb[77].mxu1  ;;  %v9027_v62 = vpop.f32.mrb[83].mxu0  ;;  %9515 = vmatprep.subr.bf16.mxu0 %v11700_v13 }
 0x1e6   : > { %10770 = vst [vmem:[%s13190_s28 + $0x68] sm:$0xff] %v10769_v4  ;;  %v8883_v33 = vadd.f32 %v8882_v7, %v8881_v8  ;;  %v8884_v6 = vpop.f32.mrb[78].mxu1  ;;  %10110 = vmatpush3.bf16.msra.mxu1 %v11683_v40  ;;  %v9028_v30 = vadd.f32 %v9027_v62, %v9026_v59  ;;  %v15654_v62 = vld [vmem:[#allocation67_spill] sm:$0xff] }
 0x1e7   : > { %v8885_v57 = vpop.f32.mrb[79].mxu1  ;;  %10111 = vmatprep.subr.bf16.mxu1 %v11684_v43  ;;  %4630 = vmatmul.mubr.bf16.gmra.mrb[188].mxu0 %v15652_v39 }
 0x1e8   : > { %v10685_v25 = vadd.f32 %v10684_v63, %v8883_v33  ;;  %v8886_v31 = vadd.f32 %v8885_v57, %v8884_v6  ;;  %4637 = vmatprep.mubr.bf16.mxu0 %v15653_v32  ;;  %9516 = vmatpush3.bf16.msra.mxu0 %v11701_v41  ;;  %v11689_v63 = vld [vmem:[%s15112_s2 + $0x3b8] sm:$0xff]   ;;  %v10873_v57 = vld [vmem:[%s13190_s28 + $0x88] sm:$0xff] }
 0x1e9   : > { %10080 = vmatmul.mubr.bf16.gmra.mrb[24].mxu1 %v15628_v22  ;;  %9517 = vmatprep.subr.bf16.mxu0 %v11706_v36  ;;  %v11692_v36 = vld [vmem:[%s15112_s2 + $0x400] sm:$0xff]  }
 0x1ea   : > { %v10688_v24 = vadd.f32 %v10685_v25, %v9019_v37  ;;  %v10739_v40 = vadd.f32 %v10738_v51, %v8886_v31  ;;  %10083 = vmatprep.mubr.bf16.mxu1 %v15631_v50  ;;  %10112 = vmatpush3.bf16.msra.mxu1 %v11684_v43  ;;  %v9029_v61 = vpop.f32.mrb[84].mxu0  ;;  %v11707_v37 = vld [vmem:[%s15112_s2 + $0x4b8] sm:$0xff]   ;;  %v10819_v43 = vld [vmem:[%s13190_s28 + $0x80] sm:$0xff]  ;;  %v15655_v31 = vld [vmem:[#allocation77_spill] sm:$0xff] }
 0x1eb   : > { %10113 = vmatprep.subr.bf16.mxu1 %v11687_v12  ;;  %v9030_v54 = vpop.f32.mrb[85].mxu0  ;;  %v15722_v50 = vld [vmem:[#allocation57_spill] sm:$0xff] }
 0x1ec   : > { %10689 = vst [vmem:[%s13190_s28 + $0x70] sm:$0xff] %v10688_v24  ;;  %v10742_v48 = vadd.f32 %v10739_v40, %v9022_v15  ;;  %v8887_v60 = vpop.f32.mrb[80].mxu1  ;;  %v9031_v15 = vadd.f32 %v9030_v54, %v9029_v61  ;;  %v9032_v17 = vpop.f32.mrb[86].mxu0  ;;  %9518 = vmatpush3.bf16.msra.mxu0 %v11707_v37  ;;  %v10792_v37 = vld [vmem:[%s13190_s28 + $0x90] sm:$0xff] }
 0x1ed   : > { %v8888_v28 = vpop.f32.mrb[81].mxu1  ;;  %v9033_v7 = vpop.f32.mrb[87].mxu0  ;;  %9639 = vmatprep.subr.bf16.mxu0 %v11715_v38  ;;  %v3682_v38 = vrot.slane %v13440_v56, 1  ;;  %v10927_v56 = vld [vmem:[%s13190_s28 + $0xa0] sm:$0xff] }
 0x1ee   : > { %10743 = vst [vmem:[%s13190_s28 + $0x78] sm:$0xff] %v10742_v48  ;;  %v8889_v4 = vadd.f32 %v8888_v28, %v8887_v60  ;;  %v8890_v8 = vpop.f32.mrb[82].mxu1  ;;  %10114 = vmatpush3.bf16.msra.mxu1 %v11687_v12  ;;  %v9034_v59 = vadd.f32 %v9033_v7, %v9032_v17  ;;  %v15656_v12 = vld [vmem:[#allocation74_spill] sm:$0xff]  ;;  %v15657_v17 = vld [vmem:[#allocation68_spill] sm:$0xff]  ;;  %v15658_v7 = vld [vmem:[#allocation79_spill] sm:$0xff] }
 0x1ef   : > { %v8891_v21 = vpop.f32.mrb[83].mxu1  ;;  %10115 = vmatprep.subr.bf16.mxu1 %v11688_v47  ;;  %4638 = vmatmul.mubr.bf16.gmra.mrb[192].mxu0 %v15654_v62 }
 0x1f0   : > { %v10820_v33 = vadd.f32 %v10819_v43, %v8889_v4  ;;  %v8892_v6 = vadd.f32 %v8891_v21, %v8890_v8  ;;  %4645 = vmatprep.mubr.bf16.mxu0 %v15656_v12  ;;  %v10846_v8 = vld [vmem:[%s13190_s28 + $0x98] sm:$0xff] }
 0x1f1   : > { %10084 = vmatmul.mubr.bf16.gmra.mrb[28].mxu1 %v15632_v9  ;;  %v11727_v9 = vld [vmem:[%s15112_s2 + $0x5a0] sm:$0xff]  }
 0x1f2   : > { %v10823_v13 = vadd.f32 %v10820_v33, %v9025_v2  ;;  %v10874_v25 = vadd.f32 %v10873_v57, %v8892_v6  ;;  %10087 = vmatprep.mubr.bf16.mxu1 %v15655_v31  ;;  %10116 = vmatpush3.bf16.msra.mxu1 %v11688_v47  ;;  %v9035_v39 = vpop.f32.mrb[88].mxu0  ;;  %v15320_v33 = vrot.slane %v13443_v35, 1  ;;  %v11697_v31 = vld [vmem:[%s15112_s2 + $0x3c8] sm:$0xff]  }
 0x1f3   : > { %10117 = vmatprep.subr.bf16.mxu1 %v11689_v63  ;;  %v9036_v2 = vpop.f32.mrb[89].mxu0 }
 0x1f4   : > { %10824 = vst [vmem:[%s13190_s28 + $0x80] sm:$0xff] %v10823_v13  ;;  %v10877_v41 = vadd.f32 %v10874_v25, %v9028_v30  ;;  %v8893_v51 = vpop.f32.mrb[84].mxu1  ;;  %v9037_v60 = vadd.f32 %v9036_v2, %v9035_v39  ;;  %v9038_v61 = vpop.f32.mrb[90].mxu0 }
 0x1f5   : > { %v8894_v24 = vpop.f32.mrb[85].mxu1  ;;  %v9039_v28 = vpop.f32.mrb[91].mxu0 }
 0x1f6   : > { %10878 = vst [vmem:[%s13190_s28 + $0x88] sm:$0xff] %v10877_v41  ;;  %v8895_v40 = vadd.f32 %v8894_v24, %v8893_v51  ;;  %v8896_v48 = vpop.f32.mrb[86].mxu1  ;;  %10118 = vmatpush3.bf16.msra.mxu1 %v11689_v63  ;;  %v9040_v4 = vadd.f32 %v9039_v28, %v9038_v61  ;;  %v10981_v61 = vld [vmem:[%s13190_s28 + $0xa8] sm:$0xff] }
 0x1f7   : > { %v8897_v47 = vpop.f32.mrb[87].mxu1  ;;  %9367 = vmatprep.subr.bf16.mxu1 %v11692_v36  ;;  %4646 = vmatmul.mubr.bf16.gmra.mrb[196].mxu0 %v15657_v17  ;;  %v13770_v36 = vcombine.low %v3682_v38, %v15320_v33 }
 0x1f8   : > { %v10793_v30 = vadd.f32 %v10792_v37, %v8895_v40  ;;  %v8898_v54 = vadd.f32 %v8897_v47, %v8896_v48  ;;  %4653 = vmatprep.mubr.bf16.mxu0 %v15658_v7  ;;  %v15660_v37 = vld [vmem:[#allocation72_spill] sm:$0xff]  ;;  %v15321_v47 = vrot.slane %v13470_v1, 1 }
 0x1f9   : > { %10088 = vmatmul.mubr.bf16.gmra.mrb[32].mxu1 %v15637_v49  ;;  %15659 = vst [vmem:[#allocation34_spill] sm:$0xff] %v13770_v36  ;;  %v15698_v49 = vrot.slane %v13470_v1, 1 }
 0x1fa   : > { %v10796_v43 = vadd.f32 %v10793_v30, %v9031_v15  ;;  %v10847_v21 = vadd.f32 %v10846_v8, %v8898_v54  ;;  %10091 = vmatprep.mubr.bf16.mxu1 %v15640_v44  ;;  %v9041_v57 = vpop.f32.mrb[92].mxu0  ;;  %v15661_v54 = vld [vmem:[#allocation87_spill] sm:$0xff]  ;;  %v15317_v8 = vrot.slane %v13498_v10, 1 }
 0x1fb   : > { %v9042_v25 = vpop.f32.mrb[93].mxu0 }
 0x1fc   : > { %10797 = vst [vmem:[%s13190_s28 + $0x90] sm:$0xff] %v10796_v43  ;;  %v10850_v6 = vadd.f32 %v10847_v21, %v9034_v59  ;;  %v8899_v63 = vpop.f32.mrb[88].mxu1  ;;  %v9043_v51 = vadd.f32 %v9042_v25, %v9041_v57  ;;  %v9044_v39 = vpop.f32.mrb[94].mxu0 }
 0x1fd   : > { %v8900_v13 = vpop.f32.mrb[89].mxu1  ;;  %v9045_v2 = vpop.f32.mrb[95].mxu0 }
 0x1fe   : > { %10851 = vst [vmem:[%s13190_s28 + $0x98] sm:$0xff] %v10850_v6  ;;  %v8901_v41 = vadd.f32 %v8900_v13, %v8899_v63  ;;  %v8902_v15 = vpop.f32.mrb[90].mxu1  ;;  %v9046_v48 = vadd.f32 %v9045_v2, %v9044_v39  ;;  %v13785_v63 = vcombine.low %v15321_v47, %v3685_v53  ;;  %v10954_v53 = vld [vmem:[%s13190_s28 + $0xb8] sm:$0xff] }
 0x1ff   : > { %v8903_v24 = vpop.f32.mrb[91].mxu1  ;;  %4654 = vmatmul.mubr.bf16.gmra.mrb[200].mxu0 %v15660_v37  ;;  %v11062_v47 = vld [vmem:[%s13190_s28 + $0xd8] sm:$0xff] }
 0x200   : > { %v10928_v40 = vadd.f32 %v10927_v56, %v8901_v41  ;;  %v8904_v59 = vadd.f32 %v8903_v24, %v8902_v15  ;;  %4661 = vmatprep.mubr.bf16.mxu0 %v15661_v54  ;;  %15662 = vst [vmem:[#allocation45_spill] sm:$0xff] %v13785_v63  ;;  %v10900_v15 = vld [vmem:[%s13190_s28 + $0xb0] sm:$0xff] }
 0x201   : > { %10092 = vmatmul.mubr.bf16.gmra.mrb[36].mxu1 %v15641_v20 }
 0x202   : > { %v10931_v28 = vadd.f32 %v10928_v40, %v9037_v60  ;;  %v10982_v30 = vadd.f32 %v10981_v61, %v8904_v59  ;;  %10095 = vmatprep.mubr.bf16.mxu1 %v13770_v36  ;;  %v9047_v38 = vpop.f32.mrb[96].mxu0  ;;  %v15664_v40 = vld [vmem:[#allocation88_spill] sm:$0xff]  ;;  %v15319_v59 = vrot.slane %v13537_v23, 1  ;;  %v15318_v61 = vrot.slane %v13546_v34, 1  ;;  %v15670_v36 = vld [vmem:[#allocation3_spill] sm:$0xff] }
 0x203   : > { %v9048_v60 = vpop.f32.mrb[97].mxu0 }
 0x204   : > { %10932 = vst [vmem:[%s13190_s28 + $0xa0] sm:$0xff] %v10931_v28  ;;  %v10985_v43 = vadd.f32 %v10982_v30, %v9040_v4  ;;  %v8905_v21 = vpop.f32.mrb[92].mxu1  ;;  %v9049_v25 = vadd.f32 %v9048_v60, %v9047_v38  ;;  %v9050_v41 = vpop.f32.mrb[98].mxu0  ;;  %v13792_v4 = vcombine.low %v3686_v26, %v15317_v8  ;;  %v15665_v26 = vld [vmem:[#allocation13_spill] sm:$0xff] }
 0x205   : > { %v8906_v6 = vpop.f32.mrb[93].mxu1  ;;  %v9051_v56 = vpop.f32.mrb[99].mxu0 }
 0x206   : > { %10986 = vst [vmem:[%s13190_s28 + $0xa8] sm:$0xff] %v10985_v43  ;;  %v8907_v57 = vadd.f32 %v8906_v6, %v8905_v21  ;;  %v8908_v13 = vpop.f32.mrb[94].mxu1  ;;  %15663 = vst [vmem:[#allocation48_spill] sm:$0xff] %v13792_v4  ;;  %v9052_v2 = vadd.f32 %v9051_v56, %v9050_v41  ;;  %v13810_v6 = vcombine.low %v15319_v59, %v15318_v61  ;;  %v15668_v59 = vld [vmem:[#allocation4_spill] sm:$0xff] }
 0x207   : > { %v8909_v39 = vpop.f32.mrb[95].mxu1  ;;  %4662 = vmatmul.mubr.bf16.gmra.mrb[204].mxu0 %v15664_v40 }
 0x208   : > { %v10901_v14 = vadd.f32 %v10900_v15, %v8907_v57  ;;  %v8910_v24 = vadd.f32 %v8909_v39, %v8908_v13  ;;  %4669 = vmatprep.mubr.bf16.mxu0 %v15665_v26  ;;  %15666 = vst [vmem:[#allocation41_spill] sm:$0xff] %v13810_v6  ;;  %v11035_v15 = vld [vmem:[%s13190_s28 + $0xc0] sm:$0xff] }
 0x209   : > { %10096 = vmatmul.mubr.bf16.gmra.mrb[40].mxu1 %v13785_v63  ;;  %v15677_v63 = vld [vmem:[#allocation29_spill] sm:$0xff] }
 0x20a   : > { %v13800_v28 = vadd.f32 %v10901_v14, %v9043_v51  ;;  %v10955_v42 = vadd.f32 %v10954_v53, %v8910_v24  ;;  %10099 = vmatprep.mubr.bf16.mxu1 %v13792_v4  ;;  %v9053_v21 = vpop.f32.mrb[100].mxu0  ;;  %v11089_v53 = vld [vmem:[%s13190_s28 + $0xc8] sm:$0xff]  ;;  %v11702_v4 = vld [vmem:[%s15112_s2 + $0x418] sm:$0xff]  }
 0x20b   : > { %v9054_v60 = vpop.f32.mrb[101].mxu0 }
 0x20c   : > { %v13804_v30 = vadd.f32 %v10955_v42, %v9046_v48  ;;  %v8911_v43 = vpop.f32.mrb[96].mxu1  ;;  %v9055_v13 = vadd.f32 %v9054_v60, %v9053_v21  ;;  %v9056_v41 = vpop.f32.mrb[102].mxu0  ;;  %v15667_v42 = vld [vmem:[#allocation7_spill] sm:$0xff] }
 0x20d   : > { %v8912_v38 = vpop.f32.mrb[97].mxu1  ;;  %v9057_v56 = vpop.f32.mrb[103].mxu0 }
 0x20e   : > { %v8913_v51 = vadd.f32 %v8912_v38, %v8911_v43  ;;  %v8914_v57 = vpop.f32.mrb[98].mxu1  ;;  %v9058_v24 = vadd.f32 %v9057_v56, %v9056_v41  ;;  %v15669_v43 = vld [vmem:[#allocation21_spill] sm:$0xff] }
 0x20f   : > { %v8915_v39 = vpop.f32.mrb[99].mxu1  ;;  %4670 = vmatmul.mubr.bf16.gmra.mrb[208].mxu0 %v15667_v42 }
 0x210   : > { %v11036_v48 = vadd.f32 %v11035_v15, %v8913_v51  ;;  %v8916_v14 = vadd.f32 %v8915_v39, %v8914_v57  ;;  %4677 = vmatprep.mubr.bf16.mxu0 %v15669_v43  ;;  %v15694_v43 = vld [vmem:[#allocation28_spill] sm:$0xff] }
 0x211   : > { %10100 = vmatmul.mubr.bf16.gmra.mrb[44].mxu1 %v13810_v6 }
 0x212   : > { %v13816_v8 = vadd.f32 %v11036_v48, %v9049_v25  ;;  %v11090_v61 = vadd.f32 %v11089_v53, %v8916_v14  ;;  %10119 = vmatprep.mubr.bf16.mxu1 %v15668_v59  ;;  %v9059_v60 = vpop.f32.mrb[104].mxu0  ;;  %v11693_v25 = vld [vmem:[%s15112_s2 + $0x3c0] sm:$0xff]   ;;  %v11008_v48 = vld [vmem:[%s13190_s28 + $0xd0] sm:$0xff] }
 0x213   : > { %v9060_v57 = vpop.f32.mrb[105].mxu0 }
 0x214   : > { %v13820_v21 = vadd.f32 %v11090_v61, %v9052_v2  ;;  %v8917_v38 = vpop.f32.mrb[100].mxu1  ;;  %v9061_v39 = vadd.f32 %v9060_v57, %v9059_v60  ;;  %v9062_v56 = vpop.f32.mrb[106].mxu0  ;;  %v11696_v2 = vld [vmem:[%s15112_s2 + $0x408] sm:$0xff]   ;;  %v15672_v57 = vld [vmem:[#allocation35_spill] sm:$0xff] }
 0x215   : > { %v8918_v51 = vpop.f32.mrb[101].mxu1  ;;  %v9063_v59 = vpop.f32.mrb[107].mxu0 }
 0x216   : > { %v8919_v41 = vadd.f32 %v8918_v51, %v8917_v38  ;;  %v8920_v15 = vpop.f32.mrb[102].mxu1  ;;  %v9064_v33 = vadd.f32 %v9063_v59, %v9062_v56  ;;  %v15671_v38 = vld [vmem:[#allocation14_spill] sm:$0xff] }
 0x217   : > { %v8921_v14 = vpop.f32.mrb[103].mxu1  ;;  %4678 = vmatmul.mubr.bf16.gmra.mrb[212].mxu0 %v15671_v38 }
 0x218   : > { %v11009_v61 = vadd.f32 %v11008_v48, %v8919_v41  ;;  %v8922_v53 = vadd.f32 %v8921_v14, %v8920_v15  ;;  %4685 = vmatprep.mubr.bf16.mxu0 %v15673_v16 }
 0x219   : > { %10120 = vmatmul.mubr.bf16.vlgmr.msra.gmra.mrb[16].mxu1 %v15670_v36  ;;  %v11698_v36 = vld [vmem:[%s15112_s2 + $0x410] sm:$0xff]  }
 0x21a   : > { %v13832_v60 = vadd.f32 %v11009_v61, %v9055_v13  ;;  %v11063_v51 = vadd.f32 %v11062_v47, %v8922_v53  ;;  %10123 = vmatprep.mubr.bf16.mxu1 %v15672_v57  ;;  %9368 = vmatpush3.bf16.msra.mxu1 %v11693_v25  ;;  %v9065_v15 = vpop.f32.mrb[108].mxu0  ;;  %v11143_v61 = vld [vmem:[%s13190_s28 + $0xe0] sm:$0xff] }
 0x21b   : > { %9369 = vmatprep.subr.bf16.mxu1 %v11696_v2  ;;  %v9066_v56 = vpop.f32.mrb[109].mxu0  ;;  %v11699_v2 = vld [vmem:[%s15112_s2 + $0x3d0] sm:$0xff]  }
 0x21c   : > { %v13842_v41 = vadd.f32 %v11063_v51, %v9058_v24  ;;  %v8923_v13 = vpop.f32.mrb[104].mxu1  ;;  %v9067_v14 = vadd.f32 %v9066_v56, %v9065_v15  ;;  %v9068_v59 = vpop.f32.mrb[110].mxu0  ;;  %v15675_v15 = vld [vmem:[#allocation89_spill] sm:$0xff] }
 0x21d   : > { %v8924_v47 = vpop.f32.mrb[105].mxu1  ;;  %v9069_v57 = vpop.f32.mrb[111].mxu0 }
 0x21e   : > { %v8925_v48 = vadd.f32 %v8924_v47, %v8923_v13  ;;  %v8926_v25 = vpop.f32.mrb[106].mxu1  ;;  %9370 = vmatpush3.bf16.msra.mxu1 %v11697_v31  ;;  %v9070_v6 = vadd.f32 %v9069_v57, %v9068_v59  ;;  %v11197_v13 = vld [vmem:[%s13190_s28 + $0xe8] sm:$0xff]  ;;  %v15674_v47 = vld [vmem:[#allocation10_spill] sm:$0xff] }
 0x21f   : > { %v8927_v53 = vpop.f32.mrb[107].mxu1  ;;  %9371 = vmatprep.subr.bf16.mxu1 %v11698_v36  ;;  %4686 = vmatmul.mubr.bf16.gmra.mrb[216].mxu0 %v15675_v15  ;;  %v15676_v36 = vld [vmem:[#allocation5_spill] sm:$0xff] }
 0x220   : > { %v11144_v24 = vadd.f32 %v11143_v61, %v8925_v48  ;;  %v8928_v51 = vadd.f32 %v8927_v53, %v8926_v25  ;;  %4693 = vmatprep.mubr.bf16.mxu0 %v15677_v63  ;;  %v11703_v48 = vld [vmem:[%s15112_s2 + $0x3d8] sm:$0xff]  }
 0x221   : > { %10124 = vmatmul.mubr.bf16.gmra.mrb[20].mxu1 %v15674_v47  ;;  %v15678_v47 = vld [vmem:[#allocation51_spill] sm:$0xff] }
 0x222   : > { %v13854_v31 = vadd.f32 %v11144_v24, %v9061_v39  ;;  %v11198_v56 = vadd.f32 %v11197_v13, %v8928_v51  ;;  %10127 = vmatprep.mubr.bf16.mxu1 %v15676_v36  ;;  %9372 = vmatpush3.bf16.msra.mxu1 %v11699_v2  ;;  %v9111_v61 = vpop.f32.mrb[112].mxu0  ;;  %v11704_v39 = vld [vmem:[%s15112_s2 + $0x420] sm:$0xff]   ;;  %v15679_v36 = vld [vmem:[#allocation50_spill] sm:$0xff] }
 0x223   : > { %9373 = vmatprep.subr.bf16.mxu1 %v11702_v4  ;;  %v9112_v57 = vpop.f32.mrb[113].mxu0  ;;  %v13870_v63 = vcombine.low %v15679_v36, %v15678_v47  ;;  %v11705_v4 = vld [vmem:[%s15112_s2 + $0x3e0] sm:$0xff]   ;;  %v15681_v36 = vld [vmem:[#allocation26_spill] sm:$0xff]  ;;  %v15683_v47 = vld [vmem:[#allocation12_spill] sm:$0xff] }
 0x224   : > { %v13861_v25 = vadd.f32 %v11198_v56, %v9064_v33  ;;  %v8929_v59 = vpop.f32.mrb[108].mxu1  ;;  %v13866_v13 = vadd.f32 %v9112_v57, %v9111_v61  ;;  %v9114_v2 = vpop.f32.mrb[114].mxu0  ;;  %v11116_v33 = vld [vmem:[%s13190_s28 + $0xf0] sm:$0xff]  ;;  %v11170_v61 = vld [vmem:[%s13190_s28 + $0xf8] sm:$0xff] }
 0x225   : > { %v8930_v53 = vpop.f32.mrb[109].mxu1  ;;  %15680 = vst [vmem:[#allocation64_spill] sm:$0xff] %v13870_v63  ;;  %v9115_v15 = vpop.f32.mrb[115].mxu0 }
 0x226   : > { %v8931_v24 = vadd.f32 %v8930_v53, %v8929_v59  ;;  %v8932_v51 = vpop.f32.mrb[110].mxu1  ;;  %9374 = vmatpush3.bf16.msra.mxu1 %v11703_v48  ;;  %v13876_v20 = vadd.f32 %v9115_v15, %v9114_v2  ;;  %v11708_v59 = vld [vmem:[%s15112_s2 + $0x428] sm:$0xff]   ;;  %v15682_v53 = vld [vmem:[#allocation37_spill] sm:$0xff] }
 0x227   : > { %v8933_v56 = vpop.f32.mrb[111].mxu1  ;;  %9375 = vmatprep.subr.bf16.mxu1 %v11704_v39  ;;  %4694 = vmatmul.mubr.bf16.gmra.mrb[220].mxu0 %v15682_v53  ;;  %v11709_v15 = vld [vmem:[%s15112_s2 + $0x3e8] sm:$0xff]   ;;  %v13891_v39 = vld [vmem:[#allocation2 + $0x180] sm:$0xf] }
 0x228   : > { %v11117_v0 = vadd.f32 %v11116_v33, %v8931_v24  ;;  %v8934_v16 = vadd.f32 %v8933_v56, %v8932_v51  ;;  %4701 = vmatprep.mubr.bf16.mxu0 %v13870_v63  ;;  %v979_v24 = vld [vmem:[#allocation2 + $0x184] sm:$0x1]  ;;  %v11811_v33 = vld [vmem:[#allocation2 + $0x150] sm:$0xf] }
 0x229   : > { %10128 = vmatmul.mubr.bf16.gmra.mrb[24].mxu1 %v15681_v36  ;;  %v15686_v36 = vld [vmem:[#allocation56_spill] sm:$0xff] }
 0x22a   : > { %v13884_v57 = vadd.f32 %v11117_v0, %v9067_v14  ;;  %v11171_v48 = vadd.f32 %v11170_v61, %v8934_v16  ;;  %10131 = vmatprep.mubr.bf16.mxu1 %v15683_v47  ;;  %9376 = vmatpush3.bf16.msra.mxu1 %v11705_v4  ;;  %v9117_v2 = vpop.f32.mrb[116].mxu0  ;;  %v11711_v0 = vld [vmem:[%s15112_s2 + $0x430] sm:$0xff]   ;;  %v11810_v14 = vld [vmem:[#allocation2 + $0x148] sm:$0xf] }
 0x22b   : > { %9377 = vmatprep.subr.bf16.mxu1 %v11708_v59  ;;  %v9118_v16 = vpop.f32.mrb[117].mxu0  ;;  %v13898_v56 = vcombine.low %v11810_v14, %v11811_v33  ;;  %v15685_v47 = vld [vmem:[#allocation17_spill] sm:$0xff]  ;;  %v11812_v33 = vld [vmem:[#allocation2 + $0x158] sm:$0xf] }
 0x22c   : > { %v13893_v51 = vadd.f32 %v11171_v48, %v9070_v6  ;;  %v13900_v4 = vadd.f32 %v9118_v16, %v9117_v2  ;;  %v9120_v61 = vpop.f32.mrb[118].mxu0  ;;  %v13904_v63 = vcombine.low %v15686_v36, %v15685_v47  ;;  %v13907_v6 = vcombine.low %v13891_v39, %v979_v24  ;;  %v11712_v48 = vld [vmem:[%s15112_s2 + $0x3f0] sm:$0xff]   ;;  %v11713_v2 = vld [vmem:[%s15112_s2 + $0x438] sm:$0xff]   ;;  %v15690_v36 = vld [vmem:[#allocation32_spill] sm:$0xff] }
 0x22d   : > { %15684 = vst [vmem:[#allocation53_spill] sm:$0xff] %v13898_v56  ;;  %v9121_v59 = vpop.f32.mrb[119].mxu0  ;;  %v15689_v16 = vld [vmem:[#allocation6_spill] sm:$0xff] }
 0x22e   : > { %15687 = vst [vmem:[#allocation18_spill] sm:$0xff] %v13904_v63  ;;  %15688 = vst [vmem:[#allocation54_spill] sm:$0xff] %v13907_v6  ;;  %9378 = vmatpush3.bf16.msra.mxu1 %v11709_v15  ;;  %v13912_v53 = vadd.f32 %v9121_v59, %v9120_v61  ;;  %v4349_v47 = vshll.u32 %v13907_v6, 16  ;;  %v11714_v15 = vld [vmem:[%s15112_s2 + $0x3f8] sm:$0xff]   ;;  %v11813_v61 = vld [vmem:[#allocation2 + $0x160] sm:$0xf] }
 0x22f   : > { %9379 = vmatprep.subr.bf16.mxu1 %v11711_v0  ;;  %4702 = vmatmul.mubr.bf16.gmra.mrb[224].mxu0 %v13898_v56  ;;  %v13928_v0 = vld [vmem:[%s15112_s2 + $0x440] sm:$0xff]   ;;  %v13930_v59 = vcombine.low %v11812_v33, %v11813_v61  ;;  %v4347_v56 = vshrl.u32 %v13907_v6, 16  ;;  %v15696_v33 = vld [vmem:[#allocation40_spill] sm:$0xff]  ;;  %v11815_v61 = vld [vmem:[#allocation2 + $0x170] sm:$0xf]  ;;  %v15344_v1 = vrot.slane %v13907_v6, 1 }
 0x230   : > { %4709 = vmatprep.mubr.bf16.mxu0 %v13904_v63  ;;  %v15714_v6 = vld [vmem:[#allocation39_spill] sm:$0xff] }
 0x231   : > { %10132 = vmatmul.mubr.bf16.gmra.mrb[28].mxu1 %v15689_v16  ;;  %15691 = vst [vmem:[#allocation65_spill] sm:$0xff] %v13930_v59 }
 0x232   : > { %10135 = vmatprep.mubr.bf16.mxu1 %v15690_v36  ;;  %9380 = vmatpush3.bf16.msra.mxu1 %v11712_v48  ;;  %v9123_v24 = vpop.f32.mrb[120].mxu0  ;;  %v15692_v48 = vld [vmem:[#allocation9_spill] sm:$0xff] }
 0x233   : > { %9381 = vmatprep.subr.bf16.mxu1 %v11713_v2  ;;  %v9124_v14 = vpop.f32.mrb[121].mxu0  ;;  %v13936_v63 = vcombine.low %v15692_v48, %v13586_v27  ;;  %v4351_v2 = vrot.slane %v4349_v47, 1 }
 0x234   : > { %v13932_v36 = vadd.f32 %v9124_v14, %v9123_v24  ;;  %v9126_v16 = vpop.f32.mrb[122].mxu0  ;;  %v13944_v24 = vld [vmem:[#allocation2 + $0x198] sm:$0xf]  ;;  %v13946_v14 = vld [vmem:[#allocation2 + $0x1a0] sm:$0xf] }
 0x235   : > { %15693 = vst [vmem:[#allocation67_spill] sm:$0xff] %v13936_v63  ;;  %v9127_v38 = vpop.f32.mrb[123].mxu0  ;;  %15695 = vst [vmem:[#allocation74_spill] sm:$0xff] %v13944_v24  ;;  %v13950_v27 = vor.u32 %v4351_v2, %v4347_v56 }
 0x236   : > { %9382 = vmatpush3.bf16.msra.mxu1 %v11714_v15  ;;  %v13939_v44 = vadd.f32 %v9127_v38, %v9126_v16  ;;  %v11814_v15 = vld [vmem:[#allocation2 + $0x168] sm:$0xf] }
 0x237   : > { %10151 = vmatprep.subr.bf16.mxu1 %v13928_v0  ;;  %4710 = vmatmul.mubr.bf16.gmra.mrb[228].mxu0 %v13930_v59  ;;  %v13954_v48 = vcombine.low %v11814_v15, %v11815_v61  ;;  %v13966_v56 = vcombine.low %v13596_v18, %v13950_v27  ;;  %v15705_v61 = vrot.slane %v13537_v23, 1  ;;  %v14000_v23 = vld [vmem:[#allocation2 + $0x1c0] sm:$0xf] }
 0x238   : > { %4717 = vmatprep.mubr.bf16.mxu0 %v13936_v63  ;;  %v15702_v63 = vld [vmem:[#allocation36_spill] sm:$0xff] }
 0x239   : > { %10136 = vmatmul.mubr.bf16.gmra.mrb[32].mxu1 %v15694_v43  ;;  %15697 = vst [vmem:[#allocation68_spill] sm:$0xff] %v13954_v48  ;;  %15701 = vst [vmem:[#allocation3_spill] sm:$0xff] %v13966_v56 }
 0x23a   : > { %10139 = vmatprep.mubr.bf16.mxu1 %v15696_v33  ;;  %v9129_v16 = vpop.f32.mrb[124].mxu0  ;;  %v15699_v33 = vrot.slane %v13443_v35, 1 }
 0x23b   : > { %v9130_v47 = vpop.f32.mrb[125].mxu0 }
 0x23c   : > { %v13956_v43 = vadd.f32 %v9130_v47, %v9129_v16  ;;  %v9132_v59 = vpop.f32.mrb[126].mxu0  ;;  %v13962_v42 = vcombine.low %v15699_v33, %v15698_v49  ;;  %v13972_v16 = vld [vmem:[#allocation2 + $0x1a8] sm:$0xf]  ;;  %v13974_v47 = vld [vmem:[#allocation2 + $0x1b0] sm:$0xf] }
 0x23d   : > { %v9133_v2 = vpop.f32.mrb[127].mxu0  ;;  %15703 = vst [vmem:[#allocation35_spill] sm:$0xff] %v13972_v16  ;;  %v11816_v49 = vld [vmem:[#allocation2 + $0x178] sm:$0xf] }
 0x23e   : > { %15700 = vst [vmem:[#allocation4_spill] sm:$0xff] %v13962_v42  ;;  %v13968_v38 = vadd.f32 %v9133_v2, %v9132_v59  ;;  %v13981_v59 = vcombine.low %v11816_v49, %v13891_v39  ;;  %v15706_v2 = vrot.slane %v13498_v10, 1  ;;  %v11718_v10 = vld [vmem:[%s15112_s2 + $0x588] sm:$0xff]  }
 0x23f   : > { %4718 = vmatmul.mubr.bf16.gmra.mrb[232].mxu0 %v13954_v48 }
 0x240   : > { %4725 = vmatprep.mubr.bf16.mxu0 %v13966_v56  ;;  %15704 = vst [vmem:[#allocation10_spill] sm:$0xff] %v13981_v59 }
 0x241   : > { %10140 = vmatmul.mubr.bf16.gmra.mrb[36].mxu1 %v15702_v63  ;;  %v13989_v63 = vcombine.low %v15706_v2, %v15705_v61 }
 0x242   : > { %10143 = vmatprep.mubr.bf16.mxu1 %v13962_v42  ;;  %v9135_v35 = vpop.f32.mrb[128].mxu0 }
 0x243   : > { %v9136_v18 = vpop.f32.mrb[129].mxu0  ;;  %15707 = vst [vmem:[#allocation51_spill] sm:$0xff] %v13989_v63 }
 0x244   : > { %v13983_v33 = vadd.f32 %v9136_v18, %v9135_v35  ;;  %v9138_v15 = vpop.f32.mrb[130].mxu0  ;;  %v15708_v35 = vld [vmem:[#allocation61_spill] sm:$0xff]  ;;  %v13998_v18 = vld [vmem:[#allocation2 + $0x1b8] sm:$0xf] }
 0x245   : > { %v9139_v42 = vpop.f32.mrb[131].mxu0 }
 0x246   : > { %v13991_v56 = vadd.f32 %v9139_v42, %v9138_v15  ;;  %v15709_v42 = vrot.slane %v13546_v34, 1  ;;  %v15711_v34 = vld [vmem:[#allocation60_spill] sm:$0xff] }
 0x247   : > { %4726 = vmatmul.mubr.bf16.gmra.mrb[236].mxu0 %v13981_v59 }
 0x248   : > { %5992 = vmatprep.mubr.bf16.mxu0 %v15708_v35  ;;  %v14008_v15 = vcombine.low %v15709_v42, %v15344_v1  ;;  %v11716_v35 = vld [vmem:[%s15112_s2 + $0x540] sm:$0xff]   ;;  %v15712_v42 = vld [vmem:[#allocation42_spill] sm:$0xff]  ;;  %v11721_v1 = vld [vmem:[%s15112_s2 + $0x590] sm:$0xff]  }
 0x249   : > { %10144 = vmatmul.mubr.bf16.gmra.mrb[40].mxu1 %v13625_v55 }
 0x24a   : > { %10147 = vmatprep.mubr.bf16.mxu1 %v13989_v63  ;;  %v9141_v49 = vpop.f32.mrb[132].mxu0  ;;  %15710 = vst [vmem:[#allocation50_spill] sm:$0xff] %v14008_v15 }
 0x24b   : > { %v9142_v61 = vpop.f32.mrb[133].mxu0 }
 0x24c   : > { %v14010_v2 = vadd.f32 %v9142_v61, %v9141_v49  ;;  %v9144_v63 = vpop.f32.mrb[134].mxu0  ;;  %v11719_v49 = vld [vmem:[%s15112_s2 + $0x548] sm:$0xff]   ;;  %v15713_v61 = vld [vmem:[#allocation71_spill] sm:$0xff] }
 0x24d   : > { %v9145_v55 = vpop.f32.mrb[135].mxu0 }
 0x24e   : > { %v14018_v59 = vadd.f32 %v9145_v55, %v9144_v63 }
 0x24f   : > { %5993 = vmatmul.mubr.bf16.vlgmr.msra.gmra.mrb[240].mxu0 %v15711_v34  ;;  %v11720_v34 = vld [vmem:[%s15112_s2 + $0x448] sm:$0xff]  }
 0x250   : > { %9640 = vmatpush3.bf16.msra.mxu0 %v11716_v35  ;;  %6000 = vmatprep.mubr.bf16.mxu0 %v15713_v61 }
 0x251   : > { %10148 = vmatmul.mubr.bf16.gmra.mrb[44].mxu1 %v14008_v15  ;;  %9641 = vmatprep.subr.bf16.mxu0 %v11718_v10  ;;  %v11722_v10 = vld [vmem:[%s15112_s2 + $0x550] sm:$0xff]  }
 0x252   : > { %5237 = vmatprep.mubr.bf16.mxu1 %v15712_v42  ;;  %v9147_v55 = vpop.f32.mrb[136].mxu0 }
 0x253   : > { %v9148_v63 = vpop.f32.mrb[137].mxu0 }
 0x254   : > { %v14030_v48 = vadd.f32 %v9148_v63, %v9147_v55  ;;  %v9150_v15 = vpop.f32.mrb[138].mxu0  ;;  %9642 = vmatpush3.bf16.msra.mxu0 %v11719_v49  ;;  %v11724_v49 = vld [vmem:[%s15112_s2 + $0x598] sm:$0xff]   ;;  %v15716_v55 = vld [vmem:[#allocation49_spill] sm:$0xff]  ;;  %v15717_v63 = vld [vmem:[#allocation75_spill] sm:$0xff] }
 0x255   : > { %v9151_v35 = vpop.f32.mrb[139].mxu0  ;;  %9643 = vmatprep.subr.bf16.mxu0 %v11721_v1  ;;  %v11723_v1 = vld [vmem:[%s15112_s2 + $0x450] sm:$0xff]  }
 0x256   : > { %v14035_v42 = vadd.f32 %v9151_v35, %v9150_v15 }
 0x257   : > { %6001 = vmatmul.mubr.bf16.gmra.mrb[244].mxu0 %v15715_v46 }
 0x258   : > { %6008 = vmatprep.mubr.bf16.mxu0 %v15717_v63  ;;  %9644 = vmatpush3.bf16.msra.mxu0 %v11722_v10  ;;  %v11726_v10 = vld [vmem:[%s15112_s2 + $0x458] sm:$0xff]  }
 0x259   : > { %5238 = vmatmul.mubr.bf16.vlgmr.msra.gmra.mrb[112].mxu1 %v15714_v6  ;;  %v11725_v6 = vld [vmem:[%s15112_s2 + $0x558] sm:$0xff]   ;;  %9645 = vmatprep.subr.bf16.mxu0 %v11724_v49  ;;  %v11728_v49 = vld [vmem:[%s15112_s2 + $0x560] sm:$0xff]  }
 0x25a   : > { %5245 = vmatprep.mubr.bf16.mxu1 %v15716_v55  ;;  %10152 = vmatpush3.bf16.msra.mxu1 %v13928_v0  ;;  %v9153_v15 = vpop.f32.mrb[140].mxu0 }
 0x25b   : > { %10153 = vmatprep.subr.bf16.mxu1 %v11720_v34  ;;  %v9154_v35 = vpop.f32.mrb[141].mxu0 }
 0x25c   : > { %v14054_v26 = vadd.f32 %v9154_v35, %v9153_v15  ;;  %v9156_v55 = vpop.f32.mrb[142].mxu0  ;;  %9646 = vmatpush3.bf16.msra.mxu0 %v11725_v6  ;;  %v15720_v15 = vld [vmem:[#allocation47_spill] sm:$0xff]  ;;  %v11730_v35 = vld [vmem:[%s15112_s2 + $0x5a8] sm:$0xff]  }
 0x25d   : > { %v9157_v0 = vpop.f32.mrb[143].mxu0  ;;  %9647 = vmatprep.subr.bf16.mxu0 %v11727_v9  ;;  %v11736_v9 = vld [vmem:[%s15112_s2 + $0x5b0] sm:$0xff]  }
 0x25e   : > { %15718 = vst [vmem:[#allocation17_spill] sm:$0xff] %v14054_v26  ;;  %10154 = vmatpush3.bf16.msra.mxu1 %v11720_v34  ;;  %v14059_v40 = vadd.f32 %v9157_v0, %v9156_v55  ;;  %v15721_v34 = vld [vmem:[#allocation76_spill] sm:$0xff]  ;;  %v11729_v0 = vld [vmem:[%s15112_s2 + $0x460] sm:$0xff]  }
 0x25f   : > { %10155 = vmatprep.subr.bf16.mxu1 %v11723_v1  ;;  %6009 = vmatmul.mubr.bf16.gmra.mrb[248].mxu0 %v15721_v34  ;;  %v15723_v55 = vld [vmem:[#allocation80_spill] sm:$0xff] }
 0x260   : > { %15719 = vst [vmem:[#allocation56_spill] sm:$0xff] %v14059_v40  ;;  %6016 = vmatprep.mubr.bf16.mxu0 %v15723_v55  ;;  %9648 = vmatpush3.bf16.msra.mxu0 %v11728_v49  ;;  %v11732_v49 = vld [vmem:[%s15112_s2 + $0x468] sm:$0xff]  }
 0x261   : > { %5246 = vmatmul.mubr.bf16.gmra.mrb[116].mxu1 %v15720_v15  ;;  %v11731_v15 = vld [vmem:[%s15112_s2 + $0x568] sm:$0xff]   ;;  %9649 = vmatprep.subr.bf16.mxu0 %v11730_v35  ;;  %v15726_v35 = vld [vmem:[#allocation55_spill] sm:$0xff] }
 0x262   : > { %5253 = vmatprep.mubr.bf16.mxu1 %v15722_v50  ;;  %10156 = vmatpush3.bf16.msra.mxu1 %v11723_v1  ;;  %v9159_v6 = vpop.f32.mrb[144].mxu0 }
 0x263   : > { %10157 = vmatprep.subr.bf16.mxu1 %v11726_v10  ;;  %v9160_v54 = vpop.f32.mrb[145].mxu0 }
 0x264   : > { %v14080_v22 = vadd.f32 %v9160_v54, %v9159_v6  ;;  %v9162_v50 = vpop.f32.mrb[146].mxu0  ;;  %9650 = vmatpush3.bf16.msra.mxu0 %v11731_v15  ;;  %v11737_v54 = vld [vmem:[%s15112_s2 + $0x570] sm:$0xff]   ;;  %v15727_v6 = vld [vmem:[#allocation82_spill] sm:$0xff] }
 0x265   : > { %v9163_v37 = vpop.f32.mrb[147].mxu0  ;;  %9651 = vmatprep.subr.bf16.mxu0 %v11736_v9 }
 0x266   : > { %15724 = vst [vmem:[#allocation9_spill] sm:$0xff] %v14080_v22  ;;  %10158 = vmatpush3.bf16.msra.mxu1 %v11726_v10  ;;  %v14085_v1 = vadd.f32 %v9163_v37, %v9162_v50  ;;  %v11747_v10 = vld [vmem:[%s15112_s2 + $0x5b8] sm:$0xff]   ;;  %v15728_v37 = vld [vmem:[#allocation23_spill] sm:$0xff] }
 0x267   : > { %10159 = vmatprep.subr.bf16.mxu1 %v11729_v0  ;;  %6017 = vmatmul.mubr.bf16.gmra.mrb[252].mxu0 %v15727_v6  ;;  %v15729_v50 = vld [vmem:[#allocation11_spill] sm:$0xff] }
 0x268   : > { %15725 = vst [vmem:[#allocation61_spill] sm:$0xff] %v14085_v1  ;;  %6024 = vmatprep.mubr.bf16.mxu0 %v15729_v50  ;;  %9652 = vmatpush3.bf16.msra.mxu0 %v11737_v54  ;;  %v11742_v1 = vld [vmem:[%s15112_s2 + $0x470] sm:$0xff]   ;;  %v11755_v54 = vld [vmem:[%s15112_s2 + $0x478] sm:$0xff]   ;;  %v15732_v50 = vld [vmem:[#allocation15_spill] sm:$0xff] }
 0x269   : > { %5254 = vmatmul.mubr.bf16.gmra.mrb[120].mxu1 %v15726_v35  ;;  %v11748_v35 = vld [vmem:[%s15112_s2 + $0x578] sm:$0xff]   ;;  %9653 = vmatprep.subr.bf16.mxu0 %v11747_v10  ;;  %v15733_v10 = vld [vmem:[#allocation8_spill] sm:$0xff] }
 0x26a   : > { %5261 = vmatprep.mubr.bf16.mxu1 %v15728_v37  ;;  %10160 = vmatpush3.bf16.msra.mxu1 %v11729_v0  ;;  %v9165_v15 = vpop.f32.mrb[148].mxu0  ;;  %v11756_v0 = vld [vmem:[%s15112_s2 + $0x640] sm:$0xff]  }
 0x26b   : > { %10161 = vmatprep.subr.bf16.mxu1 %v11732_v49  ;;  %v9166_v22 = vpop.f32.mrb[149].mxu0 }
 0x26c   : > { %v14106_v40 = vadd.f32 %v9166_v22, %v9165_v15  ;;  %v9168_v37 = vpop.f32.mrb[150].mxu0  ;;  %9654 = vmatpush3.bf16.msra.mxu0 %v11748_v35  ;;  %v15734_v22 = vld [vmem:[#allocation19_spill] sm:$0xff] }
 0x26d   : > { %v9169_v26 = vpop.f32.mrb[151].mxu0  ;;  %9775 = vmatprep.subr.bf16.mxu0 %v11756_v0  ;;  %v15738_v0 = vld [vmem:[#allocation25_spill] sm:$0xff] }
 0x26e   : > { %15730 = vst [vmem:[#allocation60_spill] sm:$0xff] %v14106_v40  ;;  %10162 = vmatpush3.bf16.msra.mxu1 %v11732_v49  ;;  %v14111_v9 = vadd.f32 %v9169_v26, %v9168_v37  ;;  %v14123_v26 = vld [vmem:[%s15112_s2 + $0x500] sm:$0xff]  }
 0x26f   : > { %10163 = vmatprep.subr.bf16.mxu1 %v11742_v1  ;;  %6025 = vmatmul.mubr.bf16.gmra.mrb[0].mxu0 %v15733_v10 }
 0x270   : > { %15731 = vst [vmem:[#allocation42_spill] sm:$0xff] %v14111_v9  ;;  %6032 = vmatprep.mubr.bf16.mxu0 %v15734_v22 }
 0x271   : > { %5262 = vmatmul.mubr.bf16.gmra.mrb[124].mxu1 %v15732_v50 }
 0x272   : > { %5269 = vmatprep.mubr.bf16.mxu1 %v15713_v61  ;;  %10164 = vmatpush3.bf16.msra.mxu1 %v11742_v1  ;;  %v9171_v49 = vpop.f32.mrb[152].mxu0  ;;  %v15737_v1 = vld [vmem:[#allocation16_spill] sm:$0xff] }
 0x273   : > { %10165 = vmatprep.subr.bf16.mxu1 %v11755_v54  ;;  %v9172_v15 = vpop.f32.mrb[153].mxu0 }
 0x274   : > { %v14125_v35 = vadd.f32 %v9172_v15, %v9171_v49  ;;  %v9174_v37 = vpop.f32.mrb[154].mxu0 }
 0x275   : > { %v9175_v50 = vpop.f32.mrb[155].mxu0 }
 0x276   : > { %15735 = vst [vmem:[#allocation39_spill] sm:$0xff] %v14125_v35  ;;  %10166 = vmatpush3.bf16.msra.mxu1 %v11755_v54  ;;  %v14127_v10 = vadd.f32 %v9175_v50, %v9174_v37  ;;  %v15739_v37 = vld [vmem:[#allocation22_spill] sm:$0xff] }
 0x277   : > { %10199 = vmatprep.subr.bf16.mxu1 %v14123_v26  ;;  %6033 = vmatmul.mubr.bf16.gmra.mrb[4].mxu0 %v15737_v1 }
 0x278   : > { %15736 = vst [vmem:[#allocation49_spill] sm:$0xff] %v14127_v10  ;;  %6040 = vmatprep.mubr.bf16.mxu0 %v15738_v0 }
 0x279   : > { %5270 = vmatmul.mubr.bf16.gmra.mrb[128].mxu1 %v15715_v46 }
 0x27a   : > { %5277 = vmatprep.mubr.bf16.mxu1 %v15717_v63  ;;  %v9177_v61 = vpop.f32.mrb[156].mxu0  ;;  %v15741_v63 = vld [vmem:[#allocation31_spill] sm:$0xff] }
 0x27b   : > { %v9178_v9 = vpop.f32.mrb[157].mxu0 }
 0x27c   : > { %v9179_v40 = vadd.f32 %v9178_v9, %v9177_v61  ;;  %v9180_v49 = vpop.f32.mrb[158].mxu0 }
 0x27d   : > { %v9181_v15 = vpop.f32.mrb[159].mxu0 }
 0x27e   : > { %v14135_v35 = vadd.f32 %v13800_v28, %v9179_v40  ;;  %v9182_v54 = vadd.f32 %v9181_v15, %v9180_v49  ;;  %v15742_v49 = vld [vmem:[#allocation30_spill] sm:$0xff]  ;;  %v15743_v15 = vld [vmem:[#allocation85_spill] sm:$0xff] }
 0x27f   : > { %6041 = vmatmul.mubr.bf16.gmra.mrb[8].mxu0 %v15739_v37 }
 0x280   : > { %v14140_v50 = vadd.f32 %v13804_v30, %v9182_v54  ;;  %6048 = vmatprep.mubr.bf16.mxu0 %v15741_v63  ;;  %v15744_v54 = vld [vmem:[#allocation43_spill] sm:$0xff] }
 0x281   : > { %5278 = vmatmul.mubr.bf16.gmra.mrb[132].mxu1 %v15721_v34 }
 0x282   : > { %15740 = vst [vmem:[#allocation47_spill] sm:$0xff] %v14140_v50  ;;  %5285 = vmatprep.mubr.bf16.mxu1 %v15723_v55  ;;  %v9183_v46 = vpop.f32.mrb[160].mxu0 }
 0x283   : > { %v9184_v10 = vpop.f32.mrb[161].mxu0 }
 0x284   : > { %v9185_v61 = vadd.f32 %v9184_v10, %v9183_v46  ;;  %v9186_v9 = vpop.f32.mrb[162].mxu0 }
 0x285   : > { %v9187_v7 = vpop.f32.mrb[163].mxu0 }
 0x286   : > { %v14145_v40 = vadd.f32 %v13816_v8, %v9185_v61  ;;  %v9188_v28 = vadd.f32 %v9187_v7, %v9186_v9  ;;  %v15746_v61 = vld [vmem:[#allocation86_spill] sm:$0xff] }
 0x287   : > { %6049 = vmatmul.mubr.bf16.gmra.mrb[12].mxu0 %v15742_v49  ;;  %v15747_v9 = vld [vmem:[#allocation62_spill] sm:$0xff] }
 0x288   : > { %v14150_v30 = vadd.f32 %v13820_v21, %v9188_v28  ;;  %6056 = vmatprep.mubr.bf16.mxu0 %v15744_v54  ;;  %v15749_v28 = vld [vmem:[#allocation70_spill] sm:$0xff]  ;;  %v14164_v54 = vld [vmem:[#allocation2 + $0x190] sm:$0xf] }
 0x289   : > { %5286 = vmatmul.mubr.bf16.gmra.mrb[136].mxu1 %v15727_v6 }
 0x28a   : > { %5293 = vmatprep.mubr.bf16.mxu1 %v15743_v15  ;;  %v9189_v55 = vpop.f32.mrb[164].mxu0 }
 0x28b   : > { %v9190_v34 = vpop.f32.mrb[165].mxu0 }
 0x28c   : > { %v9191_v46 = vadd.f32 %v9190_v34, %v9189_v55  ;;  %v9192_v10 = vpop.f32.mrb[166].mxu0  ;;  %v983_v34 = vld [vmem:[#allocation2 + $0x194] sm:$0x1]  ;;  %v985_v55 = vld [vmem:[#allocation2 + $0x19c] sm:$0x1] }
 0x28d   : > { %v9193_v50 = vpop.f32.mrb[167].mxu0 }
 0x28e   : > { %v14155_v8 = vadd.f32 %v13832_v60, %v9191_v46  ;;  %v9194_v7 = vadd.f32 %v9193_v50, %v9192_v10  ;;  %v14167_v60 = vcombine.low %v14164_v54, %v983_v34  ;;  %v14170_v50 = vcombine.low %v13944_v24, %v985_v55 }
 0x28f   : > { %6057 = vmatmul.mubr.bf16.gmra.mrb[16].mxu0 %v15747_v9 }
 0x290   : > { %15745 = vst [vmem:[#allocation57_spill] sm:$0xff] %v14155_v8  ;;  %v14160_v21 = vadd.f32 %v13842_v41, %v9194_v7  ;;  %6064 = vmatprep.mubr.bf16.mxu0 %v15749_v28  ;;  %15750 = vst [vmem:[#allocation23_spill] sm:$0xff] %v14167_v60 }
 0x291   : > { %5294 = vmatmul.mubr.bf16.gmra.mrb[140].mxu1 %v15746_v61  ;;  %15751 = vst [vmem:[#allocation11_spill] sm:$0xff] %v14170_v50  ;;  %v5673_v61 = vshll.u32 %v14170_v50, 16 }
 0x292   : > { %15748 = vst [vmem:[#allocation55_spill] sm:$0xff] %v14160_v21  ;;  %5301 = vmatprep.mubr.bf16.mxu1 %v15734_v22  ;;  %v9195_v15 = vpop.f32.mrb[168].mxu0  ;;  %v5666_v22 = vshll.u32 %v14167_v60, 16 }
 0x293   : > { %v9196_v6 = vpop.f32.mrb[169].mxu0 }
 0x294   : > { %v9197_v46 = vadd.f32 %v9196_v6, %v9195_v15  ;;  %v9198_v10 = vpop.f32.mrb[170].mxu0  ;;  %v987_v6 = vld [vmem:[#allocation2 + $0x1a4] sm:$0x1]  ;;  %v989_v15 = vld [vmem:[#allocation2 + $0x1ac] sm:$0x1] }
 0x295   : > { %v9199_v41 = vpop.f32.mrb[171].mxu0  ;;  %v14187_v8 = vcombine.low %v13946_v14, %v987_v6 }
 0x296   : > { %v14173_v7 = vadd.f32 %v13854_v31, %v9197_v46  ;;  %v9200_v9 = vadd.f32 %v9199_v41, %v9198_v10  ;;  %v5664_v46 = vshrl.u32 %v14167_v60, 16  ;;  %v5668_v10 = vrot.slane %v5666_v22, 1 }
 0x297   : > { %6065 = vmatmul.mubr.bf16.gmra.mrb[20].mxu0 %v13567_v45  ;;  %v5671_v41 = vshrl.u32 %v14170_v50, 16  ;;  %15754 = vst [vmem:[#allocation43_spill] sm:$0xff] %v14187_v8  ;;  %v5680_v6 = vshll.u32 %v14187_v8, 16 }
 0x298   : > { %15752 = vst [vmem:[#allocation15_spill] sm:$0xff] %v14173_v7  ;;  %v14180_v34 = vadd.f32 %v13861_v25, %v9200_v9  ;;  %6072 = vmatprep.mubr.bf16.mxu0 %v13571_v5  ;;  %v14190_v25 = vcombine.low %v13972_v16, %v989_v15  ;;  %v5669_v22 = vor.u32 %v5668_v10, %v5664_v46  ;;  %v10393_v15 = vld [vmem:[%s13190_s28] sm:$0xff] }
 0x299   : > { %5302 = vmatmul.mubr.bf16.gmra.mrb[144].mxu1 %v15737_v1  ;;  %v5675_v1 = vrot.slane %v5673_v61, 1 }
 0x29a   : > { %15753 = vst [vmem:[#allocation8_spill] sm:$0xff] %v14180_v34  ;;  %5309 = vmatprep.mubr.bf16.mxu1 %v15738_v0  ;;  %v9201_v31 = vpop.f32.mrb[172].mxu0  ;;  %v5685_v50 = vshrl.u32 %v14190_v25, 16 }
 0x29b   : > { %v9202_v55 = vpop.f32.mrb[173].mxu0  ;;  %v14197_v61 = vor.u32 %v5675_v1, %v5671_v41 }
 0x29c   : > { %v9203_v7 = vadd.f32 %v9202_v55, %v9201_v31  ;;  %v9204_v21 = vpop.f32.mrb[174].mxu0  ;;  %v10394_v55 = vadd.f32 %v10393_v15, %v13866_v13  ;;  %v10447_v13 = vld [vmem:[%s13190_s28 + $0x8] sm:$0xff] }
 0x29d   : > { %v9205_v9 = vpop.f32.mrb[175].mxu0  ;;  %v8486_v10 = vcombine.low %v5669_v22, %v14197_v61 }
 0x29e   : > { %v14193_v0 = vadd.f32 %v13884_v57, %v9203_v7  ;;  %v9206_v34 = vadd.f32 %v9205_v9, %v9204_v21  ;;  %v5687_v57 = vshll.u32 %v14190_v25, 16  ;;  %v991_v21 = vld [vmem:[#allocation2 + $0x1b4] sm:$0x1]  ;;  %v993_v7 = vld [vmem:[#allocation2 + $0x1bc] sm:$0x1] }
 0x29f   : > { %6073 = vmatmul.mubr.bf16.gmra.mrb[24].mxu0 %v13605_v29  ;;  %v14214_v41 = vcombine.low %v13998_v18, %v993_v7 }
 0x2a0   : > { %v14200_v31 = vadd.f32 %v13893_v51, %v9206_v34  ;;  %6080 = vmatprep.mubr.bf16.mxu0 %v13610_v3  ;;  %v5678_v51 = vshrl.u32 %v14187_v8, 16  ;;  %v14211_v34 = vcombine.low %v13974_v47, %v991_v21  ;;  %v5689_v60 = vrot.slane %v5687_v57, 1 }
 0x2a1   : > { %5310 = vmatmul.mubr.bf16.gmra.mrb[148].mxu1 %v15739_v37  ;;  %15756 = vst [vmem:[#allocation92_spill] sm:$0xff] %v14214_v41  ;;  %v5682_v37 = vrot.slane %v5680_v6, 1  ;;  %v5701_v7 = vshll.u32 %v14214_v41, 16 }
 0x2a2   : > { %15755 = vst [vmem:[#allocation62_spill] sm:$0xff] %v14200_v31  ;;  %5317 = vmatprep.mubr.bf16.mxu1 %v15741_v63  ;;  %v9247_v46 = vpop.f32.mrb[176].mxu0  ;;  %v10448_v31 = vadd.f32 %v10447_v13, %v13876_v20  ;;  %v5694_v21 = vshll.u32 %v14211_v34, 16  ;;  %v14231_v20 = vor.u32 %v5689_v60, %v5685_v50 }
 0x2a3   : > { %v9248_v1 = vpop.f32.mrb[177].mxu0  ;;  %v14229_v57 = vor.u32 %v5682_v37, %v5678_v51  ;;  %v5699_v37 = vshrl.u32 %v14214_v41, 16 }
 0x2a4   : > { %v9249_v9 = vadd.f32 %v9248_v1, %v9247_v46  ;;  %v9250_v63 = vpop.f32.mrb[178].mxu0  ;;  %v10366_v46 = vld [vmem:[%s13190_s28 + $0x10] sm:$0xff]  ;;  %v15758_v1 = vld [vmem:[#allocation24_spill] sm:$0xff] }
 0x2a5   : > { %v9251_v15 = vpop.f32.mrb[179].mxu0  ;;  %v10367_v13 = vadd.f32 %v10366_v46, %v13900_v4  ;;  %v14242_v51 = vcombine.low %v14229_v57, %v14231_v20 }
 0x2a6   : > { %v14219_v22 = vadd.f32 %v10394_v55, %v9249_v9  ;;  %v9252_v8 = vadd.f32 %v9251_v15, %v9250_v63  ;;  %v995_v55 = vld [vmem:[#allocation2 + $0x1c4] sm:$0x1]  ;;  %v14233_v63 = vld [vmem:[#allocation2 + $0x1c8] sm:$0xf]  ;;  %v997_v9 = vld [vmem:[#allocation2 + $0x1cc] sm:$0x1] }
 0x2a7   : > { %6081 = vmatmul.mubr.bf16.gmra.mrb[28].mxu0 %v13629_v11  ;;  %15759 = vst [vmem:[#allocation94_spill] sm:$0xff] %v14242_v51  ;;  %v14248_v4 = vcombine.low %v14233_v63, %v997_v9 }
 0x2a8   : > { %v14226_v6 = vadd.f32 %v10448_v31, %v9252_v8  ;;  %6088 = vmatprep.mubr.bf16.mxu0 %v8486_v10  ;;  %v5692_v31 = vshrl.u32 %v14211_v34, 16  ;;  %v5703_v10 = vrot.slane %v5701_v7, 1 }
 0x2a9   : > { %5318 = vmatmul.mubr.bf16.gmra.mrb[152].mxu1 %v15742_v49  ;;  %v8485_v49 = vcombine.low %v14164_v54, %v13944_v24  ;;  %15760 = vst [vmem:[#allocation95_spill] sm:$0xff] %v14248_v4  ;;  %v10420_v54 = vld [vmem:[%s13190_s28 + $0x18] sm:$0xff] }
 0x2aa   : > { %15757 = vst [vmem:[#allocation93_spill] sm:$0xff] %v14226_v6  ;;  %5325 = vmatprep.mubr.bf16.mxu1 %v15758_v1  ;;  %v9253_v15 = vpop.f32.mrb[180].mxu0  ;;  %v5696_v1 = vrot.slane %v5694_v21, 1  ;;  %v14245_v6 = vcombine.low %v14000_v23, %v995_v55  ;;  %v10421_v21 = vadd.f32 %v10420_v54, %v13912_v53  ;;  %v14257_v41 = vor.u32 %v5703_v10, %v5699_v37 }
 0x2ab   : > { %v9254_v8 = vpop.f32.mrb[181].mxu0  ;;  %v5715_v53 = vshll.u32 %v14248_v4, 16  ;;  %v14271_v37 = vcombine.low %v13946_v14, %v13972_v16 }
 0x2ac   : > { %v9255_v60 = vadd.f32 %v9254_v8, %v9253_v15  ;;  %v9256_v50 = vpop.f32.mrb[182].mxu0  ;;  %v15762_v15 = vld [vmem:[#allocation90_spill] sm:$0xff]  ;;  %v14255_v8 = vor.u32 %v5696_v1, %v5692_v31  ;;  %v5708_v9 = vshll.u32 %v14245_v6, 16  ;;  %v5706_v54 = vshrl.u32 %v14245_v6, 16 }
 0x2ad   : > { %v9257_v46 = vpop.f32.mrb[183].mxu0  ;;  %15764 = vst [vmem:[#allocation98_spill] sm:$0xff] %v14271_v37 }
 0x2ae   : > { %v14252_v24 = vadd.f32 %v10367_v13, %v9255_v60  ;;  %v9258_v7 = vadd.f32 %v9257_v46, %v9256_v50  ;;  %v10501_v13 = vld [vmem:[%s13190_s28 + $0x20] sm:$0xff]  ;;  %v14266_v60 = vld [vmem:[#allocation2 + $0x188] sm:$0xf]  ;;  %v981_v50 = vld [vmem:[#allocation2 + $0x18c] sm:$0x1]  ;;  %v14275_v10 = vcombine.low %v14255_v8, %v14257_v41  ;;  %v5713_v46 = vshrl.u32 %v14248_v4, 16 }
 0x2af   : > { %6089 = vmatmul.mubr.bf16.gmra.mrb[32].mxu0 %v8485_v49  ;;  %v10502_v49 = vadd.f32 %v10501_v13, %v13932_v36  ;;  %v14280_v36 = vcombine.low %v14266_v60, %v981_v50  ;;  %v10555_v13 = vld [vmem:[%s13190_s28 + $0x28] sm:$0xff]  ;;  %v10474_v50 = vld [vmem:[%s13190_s28 + $0x30] sm:$0xff] }
 0x2b0   : > { %15761 = vst [vmem:[#allocation96_spill] sm:$0xff] %v14252_v24  ;;  %v14259_v55 = vadd.f32 %v10421_v21, %v9258_v7  ;;  %6096 = vmatprep.mubr.bf16.mxu0 %v14242_v51  ;;  %15765 = vst [vmem:[#allocation99_spill] sm:$0xff] %v14275_v10  ;;  %v5710_v51 = vrot.slane %v5708_v9, 1 }
 0x2b1   : > { %5326 = vmatmul.mubr.bf16.gmra.mrb[156].mxu1 %v15762_v15 }
 0x2b2   : > { %15763 = vst [vmem:[#allocation97_spill] sm:$0xff] %v14259_v55  ;;  %5333 = vmatprep.mubr.bf16.mxu1 %v15749_v28  ;;  %v9259_v1 = vpop.f32.mrb[184].mxu0  ;;  %v5717_v28 = vrot.slane %v5715_v53, 1  ;;  %v10556_v55 = vadd.f32 %v10555_v13, %v13939_v44  ;;  %v14292_v9 = vor.u32 %v5710_v51, %v5706_v54  ;;  %v4999_v44 = vshll.u32 %v14280_v36, 16 }
 0x2b3   : > { %v9260_v31 = vpop.f32.mrb[185].mxu0 }
 0x2b4   : > { %v9261_v21 = vadd.f32 %v9260_v31, %v9259_v1  ;;  %v9262_v7 = vpop.f32.mrb[186].mxu0  ;;  %v14294_v53 = vor.u32 %v5717_v28, %v5713_v46  ;;  %v4997_v28 = vshrl.u32 %v14280_v36, 16  ;;  %v5001_v54 = vrot.slane %v4999_v44, 1  ;;  %v10528_v46 = vld [vmem:[%s13190_s28 + $0x38] sm:$0xff] }
 0x2b5   : > { %v9263_v15 = vpop.f32.mrb[187].mxu0 }
 0x2b6   : > { %v14284_v16 = vadd.f32 %v10502_v49, %v9261_v21  ;;  %v9264_v24 = vadd.f32 %v9263_v15, %v9262_v7  ;;  %v10475_v15 = vadd.f32 %v10474_v50, %v13956_v43  ;;  %v14305_v51 = vcombine.low %v14292_v9, %v14294_v53 }
 0x2b7   : > { %6097 = vmatmul.mubr.bf16.gmra.mrb[36].mxu0 %v14271_v37  ;;  %v10529_v7 = vadd.f32 %v10528_v46, %v13968_v38  ;;  %v14321_v38 = vcombine.low %v14000_v23, %v14233_v63 }
 0x2b8   : > { %v14288_v4 = vadd.f32 %v10556_v55, %v9264_v24  ;;  %6104 = vmatprep.mubr.bf16.mxu0 %v14275_v10  ;;  %v14301_v24 = vcombine.low %v13974_v47, %v13998_v18  ;;  %15767 = vst [vmem:[#allocation101_spill] sm:$0xff] %v14305_v51 }
 0x2b9   : > { %5334 = vmatmul.mubr.bf16.gmra.mrb[160].mxu1 %v13567_v45  ;;  %15768 = vst [vmem:[#allocation102_spill] sm:$0xff] %v14321_v38 }
 0x2ba   : > { %5341 = vmatprep.mubr.bf16.mxu1 %v13571_v5  ;;  %v9265_v49 = vpop.f32.mrb[188].mxu0  ;;  %15766 = vst [vmem:[#allocation100_spill] sm:$0xff] %v14301_v24 }
 0x2bb   : > { %v9266_v1 = vpop.f32.mrb[189].mxu0 }
 0x2bc   : > { %v9267_v55 = vadd.f32 %v9266_v1, %v9265_v49  ;;  %v9268_v31 = vpop.f32.mrb[190].mxu0  ;;  %v5002_v49 = vor.u32 %v5001_v54, %v4997_v28  ;;  %v10609_v1 = vld [vmem:[%s13190_s28 + $0x40] sm:$0xff] }
 0x2bd   : > { %v9269_v21 = vpop.f32.mrb[191].mxu0 }
 0x2be   : > { %v14310_v43 = vadd.f32 %v10475_v15, %v9267_v55  ;;  %v9270_v13 = vadd.f32 %v9269_v21, %v9268_v31  ;;  %v10610_v15 = vadd.f32 %v10609_v1, %v13983_v33  ;;  %v14325_v46 = vcombine.low %v13950_v27, %v5002_v49  ;;  %v10663_v21 = vld [vmem:[%s13190_s28 + $0x48] sm:$0xff]  ;;  %v10582_v33 = vld [vmem:[%s13190_s28 + $0x50] sm:$0xff] }
 0x2bf   : > { %6105 = vmatmul.mubr.bf16.gmra.mrb[40].mxu0 %v14301_v24  ;;  %v10583_v49 = vadd.f32 %v10582_v33, %v14010_v2  ;;  %v11771_v24 = vld [vmem:[%s15112_s2 + $0x538] sm:$0xff]  }
 0x2c0   : > { %v14314_v50 = vadd.f32 %v10529_v7, %v9270_v13  ;;  %6112 = vmatprep.mubr.bf16.mxu0 %v14305_v51  ;;  %15769 = vst [vmem:[#allocation103_spill] sm:$0xff] %v14325_v46  ;;  %v10664_v13 = vadd.f32 %v10663_v21, %v13991_v56 }
 0x2c1   : > { %5342 = vmatmul.mubr.bf16.gmra.mrb[164].mxu1 %v13605_v29  ;;  %v15807_v29 = vld [vmem:[#allocation64_spill] sm:$0xff] }
 0x2c2   : > { %5349 = vmatprep.mubr.bf16.mxu1 %v13610_v3  ;;  %v9271_v44 = vpop.f32.mrb[192].mxu0 }
 0x2c3   : > { %v9272_v10 = vpop.f32.mrb[193].mxu0 }
 0x2c4   : > { %v9273_v55 = vadd.f32 %v9272_v10, %v9271_v44  ;;  %v9274_v31 = vpop.f32.mrb[194].mxu0  ;;  %v14340_v10 = vcombine.low %v13891_v39, %v14266_v60 }
 0x2c5   : > { %v9275_v7 = vpop.f32.mrb[195].mxu0 }
 0x2c6   : > { %v14329_v28 = vadd.f32 %v10610_v15, %v9273_v55  ;;  %v9276_v54 = vadd.f32 %v9275_v7, %v9274_v31  ;;  %15770 = vst [vmem:[#allocation104_spill] sm:$0xff] %v14340_v10  ;;  %v11757_v15 = vld [vmem:[%s15112_s2 + $0x600] sm:$0xff]   ;;  %v10636_v55 = vld [vmem:[%s13190_s28 + $0x58] sm:$0xff]  ;;  %v11760_v7 = vld [vmem:[%s15112_s2 + $0x608] sm:$0xff]  }
 0x2c7   : > { %6113 = vmatmul.mubr.bf16.gmra.mrb[44].mxu0 %v14321_v38  ;;  %v10637_v21 = vadd.f32 %v10636_v55, %v14018_v59  ;;  %v11763_v59 = vld [vmem:[%s15112_s2 + $0x650] sm:$0xff]   ;;  %v11767_v55 = vld [vmem:[%s15112_s2 + $0x658] sm:$0xff]  }
 0x2c8   : > { %v14333_v51 = vadd.f32 %v10664_v13, %v9276_v54  ;;  %6642 = vmatprep.mubr.bf16.mxu0 %v15653_v32  ;;  %v11759_v32 = vld [vmem:[%s15112_s2 + $0x648] sm:$0xff]   ;;  %v10717_v54 = vld [vmem:[%s13190_s28 + $0x60] sm:$0xff] }
 0x2c9   : > { %5350 = vmatmul.mubr.bf16.gmra.mrb[168].mxu1 %v13629_v11 }
 0x2ca   : > { %5357 = vmatprep.mubr.bf16.mxu1 %v14325_v46  ;;  %v9277_v27 = vpop.f32.mrb[196].mxu0  ;;  %v15793_v46 = vld [vmem:[#allocation14_spill] sm:$0xff] }
 0x2cb   : > { %v9278_v56 = vpop.f32.mrb[197].mxu0 }
 0x2cc   : > { %v9279_v44 = vadd.f32 %v9278_v56, %v9277_v27  ;;  %v9280_v1 = vpop.f32.mrb[198].mxu0 }
 0x2cd   : > { %v9281_v31 = vpop.f32.mrb[199].mxu0 }
 0x2ce   : > { %v14351_v39 = vadd.f32 %v10583_v49, %v9279_v44  ;;  %v9282_v60 = vadd.f32 %v9281_v31, %v9280_v1  ;;  %v11761_v44 = vld [vmem:[%s15112_s2 + $0x508] sm:$0xff]  }
 0x2cf   : > { %6643 = vmatmul.mubr.bf16.vlgmr.msra.gmra.mrb[48].mxu0 %v15654_v62  ;;  %v10718_v62 = vadd.f32 %v10717_v54, %v14030_v48  ;;  %v11764_v48 = vld [vmem:[%s15112_s2 + $0x610] sm:$0xff]  }
 0x2d0   : > { %v14355_v2 = vadd.f32 %v10637_v21, %v9282_v60  ;;  %9776 = vmatpush3.bf16.msra.mxu0 %v11757_v15  ;;  %6650 = vmatprep.mubr.bf16.mxu0 %v15656_v12  ;;  %v10690_v21 = vld [vmem:[%s13190_s28 + $0x70] sm:$0xff] }
 0x2d1   : > { %5358 = vmatmul.mubr.bf16.gmra.mrb[172].mxu1 %v14340_v10  ;;  %9777 = vmatprep.subr.bf16.mxu0 %v11759_v32  ;;  %v15792_v10 = vld [vmem:[#allocation83_spill] sm:$0xff] }
 0x2d2   : > { %10167 = vmatprep.mubr.bf16.mxu1 %v15616_v52  ;;  %v9283_v13 = vpop.f32.mrb[200].mxu0  ;;  %v10771_v52 = vld [vmem:[%s13190_s28 + $0x68] sm:$0xff] }
 0x2d3   : > { %v9284_v27 = vpop.f32.mrb[201].mxu0  ;;  %v10772_v12 = vadd.f32 %v10771_v52, %v14035_v42  ;;  %v15771_v42 = vld [vmem:[#allocation79_spill] sm:$0xff] }
 0x2d4   : > { %v9285_v33 = vadd.f32 %v9284_v27, %v9283_v13  ;;  %v9286_v56 = vpop.f32.mrb[202].mxu0  ;;  %9778 = vmatpush3.bf16.msra.mxu0 %v11760_v7  ;;  %v15772_v7 = vld [vmem:[#allocation17_spill] sm:$0xff]  ;;  %v10744_v13 = vld [vmem:[%s13190_s28 + $0x78] sm:$0xff]  ;;  %v11772_v27 = vld [vmem:[%s15112_s2 + $0x660] sm:$0xff]  }
 0x2d5   : > { %v9287_v49 = vpop.f32.mrb[203].mxu0  ;;  %9779 = vmatprep.subr.bf16.mxu0 %v11763_v59 }
 0x2d6   : > { %v14372_v1 = vadd.f32 %v10718_v62, %v9285_v33  ;;  %v9288_v15 = vadd.f32 %v9287_v49, %v9286_v56  ;;  %v15773_v62 = vld [vmem:[#allocation56_spill] sm:$0xff]  ;;  %v11765_v49 = vld [vmem:[%s15112_s2 + $0x518] sm:$0xff]  }
 0x2d7   : > { %6651 = vmatmul.mubr.bf16.gmra.mrb[52].mxu0 %v15657_v17  ;;  %v11768_v17 = vld [vmem:[%s15112_s2 + $0x618] sm:$0xff]   ;;  %v10745_v33 = vadd.f32 %v10744_v13, %v15773_v62  ;;  %v11779_v62 = vld [vmem:[%s15112_s2 + $0x670] sm:$0xff]  }
 0x2d8   : > { %v14382_v31 = vadd.f32 %v10772_v12, %v9288_v15  ;;  %6658 = vmatprep.mubr.bf16.mxu0 %v15771_v42  ;;  %9780 = vmatpush3.bf16.msra.mxu0 %v11764_v48  ;;  %v15774_v12 = vld [vmem:[#allocation66_spill] sm:$0xff]  ;;  %v15775_v15 = vld [vmem:[#allocation72_spill] sm:$0xff]  ;;  %v15776_v42 = vld [vmem:[#allocation63_spill] sm:$0xff] }
 0x2d9   : > { %10168 = vmatmul.mubr.bf16.vlgmr.msra.gmra.mrb[16].mxu1 %v15618_v19  ;;  %v11762_v19 = vld [vmem:[%s15112_s2 + $0x510] sm:$0xff]   ;;  %9781 = vmatprep.subr.bf16.mxu0 %v11767_v55  ;;  %v11775_v48 = vld [vmem:[%s15112_s2 + $0x668] sm:$0xff]  }
 0x2da   : > { %10171 = vmatprep.mubr.bf16.mxu1 %v15619_v58  ;;  %10200 = vmatpush3.bf16.msra.mxu1 %v14123_v26  ;;  %v9289_v32 = vpop.f32.mrb[204].mxu0  ;;  %v10691_v58 = vadd.f32 %v10690_v21, %v15772_v7  ;;  %v11766_v21 = vld [vmem:[%s15112_s2 + $0x520] sm:$0xff]  }
 0x2db   : > { %10201 = vmatprep.subr.bf16.mxu1 %v11761_v44  ;;  %v9290_v60 = vpop.f32.mrb[205].mxu0  ;;  %v10825_v7 = vld [vmem:[%s13190_s28 + $0x80] sm:$0xff] }
 0x2dc   : > { %v9291_v59 = vadd.f32 %v9290_v60, %v9289_v32  ;;  %v9292_v26 = vpop.f32.mrb[206].mxu0  ;;  %9782 = vmatpush3.bf16.msra.mxu0 %v11768_v17  ;;  %v15777_v32 = vld [vmem:[#allocation87_spill] sm:$0xff]  ;;  %v11776_v60 = vld [vmem:[%s15112_s2 + $0x628] sm:$0xff]  }
 0x2dd   : > { %v9293_v54 = vpop.f32.mrb[207].mxu0  ;;  %9783 = vmatprep.subr.bf16.mxu0 %v11772_v27 }
 0x2de   : > { %10202 = vmatpush3.bf16.msra.mxu1 %v11761_v44  ;;  %v14400_v56 = vadd.f32 %v10691_v58, %v9291_v59  ;;  %v9294_v52 = vadd.f32 %v9293_v54, %v9292_v26  ;;  %v11773_v44 = vld [vmem:[%s15112_s2 + $0x620] sm:$0xff]   ;;  %v15778_v59 = vld [vmem:[#allocation9_spill] sm:$0xff] }
 0x2df   : > { %10203 = vmatprep.subr.bf16.mxu1 %v11762_v19  ;;  %6659 = vmatmul.mubr.bf16.gmra.mrb[56].mxu0 %v15775_v15  ;;  %v10826_v26 = vadd.f32 %v10825_v7, %v15778_v59  ;;  %v11769_v15 = vld [vmem:[%s15112_s2 + $0x528] sm:$0xff]   ;;  %v15783_v59 = vld [vmem:[#allocation13_spill] sm:$0xff] }
 0x2e0   : > { %v14413_v55 = vadd.f32 %v10745_v33, %v9294_v52  ;;  %6666 = vmatprep.mubr.bf16.mxu0 %v15777_v32  ;;  %9784 = vmatpush3.bf16.msra.mxu0 %v11773_v44  ;;  %v15779_v33 = vld [vmem:[#allocation61_spill] sm:$0xff]  ;;  %v15781_v32 = vld [vmem:[#allocation88_spill] sm:$0xff] }
 0x2e1   : > { %10172 = vmatmul.mubr.bf16.gmra.mrb[20].mxu1 %v15774_v12  ;;  %9785 = vmatprep.subr.bf16.mxu0 %v11775_v48  ;;  %v15780_v48 = vld [vmem:[#allocation73_spill] sm:$0xff] }
 0x2e2   : > { %10175 = vmatprep.mubr.bf16.mxu1 %v15776_v42  ;;  %10204 = vmatpush3.bf16.msra.mxu1 %v11762_v19  ;;  %v9295_v17 = vpop.f32.mrb[208].mxu0  ;;  %v10879_v19 = vld [vmem:[%s13190_s28 + $0x88] sm:$0xff] }
 0x2e3   : > { %10205 = vmatprep.subr.bf16.mxu1 %v11765_v49  ;;  %v9296_v58 = vpop.f32.mrb[209].mxu0  ;;  %v10880_v52 = vadd.f32 %v10879_v19, %v15779_v33 }
 0x2e4   : > { %v9297_v13 = vadd.f32 %v9296_v58, %v9295_v17  ;;  %v9298_v54 = vpop.f32.mrb[210].mxu0  ;;  %9786 = vmatpush3.bf16.msra.mxu0 %v11776_v60  ;;  %v11783_v17 = vld [vmem:[%s15112_s2 + $0x678] sm:$0xff]  }
 0x2e5   : > { %v9299_v27 = vpop.f32.mrb[211].mxu0  ;;  %v15782_v58 = vld [vmem:[#allocation78_spill] sm:$0xff]  ;;  %9787 = vmatprep.subr.bf16.mxu0 %v11779_v62 }
 0x2e6   : > { %10206 = vmatpush3.bf16.msra.mxu1 %v11765_v49  ;;  %v14430_v44 = vadd.f32 %v10826_v26, %v9297_v13  ;;  %v9300_v12 = vadd.f32 %v9299_v27, %v9298_v54  ;;  %v11780_v49 = vld [vmem:[%s15112_s2 + $0x630] sm:$0xff]   ;;  %v11784_v13 = vld [vmem:[%s15112_s2 + $0x638] sm:$0xff]   ;;  %v15784_v27 = vld [vmem:[#allocation60_spill] sm:$0xff] }
 0x2e7   : > { %10207 = vmatprep.subr.bf16.mxu1 %v11766_v21  ;;  %6667 = vmatmul.mubr.bf16.gmra.mrb[60].mxu0 %v15781_v32  ;;  %v11770_v26 = vld [vmem:[%s15112_s2 + $0x530] sm:$0xff]   ;;  %v15785_v32 = vld [vmem:[#allocation42_spill] sm:$0xff] }
 0x2e8   : > { %v14443_v7 = vadd.f32 %v10880_v52, %v9300_v12  ;;  %6674 = vmatprep.mubr.bf16.mxu0 %v15783_v59  ;;  %9788 = vmatpush3.bf16.msra.mxu0 %v11780_v49  ;;  %v10798_v54 = vld [vmem:[%s13190_s28 + $0x90] sm:$0xff] }
 0x2e9   : > { %10176 = vmatmul.mubr.bf16.gmra.mrb[24].mxu1 %v15780_v48  ;;  %9789 = vmatprep.subr.bf16.mxu0 %v11783_v17  ;;  %v10799_v33 = vadd.f32 %v10798_v54, %v15784_v27  ;;  %v15786_v17 = vld [vmem:[#allocation38_spill] sm:$0xff] }
 0x2ea   : > { %10179 = vmatprep.mubr.bf16.mxu1 %v15782_v58  ;;  %10208 = vmatpush3.bf16.msra.mxu1 %v11766_v21  ;;  %v9301_v60 = vpop.f32.mrb[212].mxu0  ;;  %v10852_v21 = vld [vmem:[%s13190_s28 + $0x98] sm:$0xff] }
 0x2eb   : > { %10209 = vmatprep.subr.bf16.mxu1 %v11769_v15  ;;  %v9302_v19 = vpop.f32.mrb[213].mxu0  ;;  %v10853_v59 = vadd.f32 %v10852_v21, %v15785_v32 }
 0x2ec   : > { %v9303_v52 = vadd.f32 %v9302_v19, %v9301_v60  ;;  %v9304_v12 = vpop.f32.mrb[214].mxu0  ;;  %9790 = vmatpush3.bf16.msra.mxu0 %v11784_v13  ;;  %v15787_v60 = vld [vmem:[#allocation7_spill] sm:$0xff]  ;;  %v15789_v19 = vld [vmem:[#allocation21_spill] sm:$0xff] }
 0x2ed   : > { %v9305_v62 = vpop.f32.mrb[215].mxu0 }
 0x2ee   : > { %10210 = vmatpush3.bf16.msra.mxu1 %v11769_v15  ;;  %v14457_v38 = vadd.f32 %v10799_v33, %v9303_v52  ;;  %v9306_v49 = vadd.f32 %v9305_v62, %v9304_v12  ;;  %v15788_v15 = vld [vmem:[#allocation81_spill] sm:$0xff]  ;;  %v14471_v33 = vld [vmem:[%s15112_s2 + $0x5c0] sm:$0xff]  }
 0x2ef   : > { %10211 = vmatprep.subr.bf16.mxu1 %v11770_v26  ;;  %6675 = vmatmul.mubr.bf16.gmra.mrb[64].mxu0 %v15787_v60  ;;  %v10933_v52 = vld [vmem:[%s13190_s28 + $0xa0] sm:$0xff]  ;;  %v15791_v60 = vld [vmem:[#allocation49_spill] sm:$0xff] }
 0x2f0   : > { %v14464_v54 = vadd.f32 %v10853_v59, %v9306_v49  ;;  %6682 = vmatprep.mubr.bf16.mxu0 %v15789_v19  ;;  %v15790_v12 = vld [vmem:[#allocation39_spill] sm:$0xff]  ;;  %v10987_v59 = vld [vmem:[%s13190_s28 + $0xa8] sm:$0xff] }
 0x2f1   : > { %10180 = vmatmul.mubr.bf16.gmra.mrb[28].mxu1 %v15786_v17  ;;  %v10934_v21 = vadd.f32 %v10933_v52, %v15790_v12  ;;  %v10988_v37 = vadd.f32 %v10987_v59, %v15791_v60  ;;  %v15794_v17 = vld [vmem:[#allocation84_spill] sm:$0xff]  ;;  %v15800_v60 = vld [vmem:[#allocation45_spill] sm:$0xff] }
 0x2f2   : > { %10183 = vmatprep.mubr.bf16.mxu1 %v15788_v15  ;;  %10212 = vmatpush3.bf16.msra.mxu1 %v11770_v26  ;;  %v9307_v27 = vpop.f32.mrb[216].mxu0 }
 0x2f3   : > { %10213 = vmatprep.subr.bf16.mxu1 %v11771_v24  ;;  %v9308_v13 = vpop.f32.mrb[217].mxu0 }
 0x2f4   : > { %v9309_v62 = vadd.f32 %v9308_v13, %v9307_v27  ;;  %v9310_v32 = vpop.f32.mrb[218].mxu0  ;;  %v15795_v27 = vld [vmem:[#allocation27_spill] sm:$0xff] }
 0x2f5   : > { %v9311_v49 = vpop.f32.mrb[219].mxu0 }
 0x2f6   : > { %10214 = vmatpush3.bf16.msra.mxu1 %v11771_v24  ;;  %v14477_v19 = vadd.f32 %v10934_v21, %v9309_v62  ;;  %v9312_v26 = vadd.f32 %v9311_v49, %v9310_v32  ;;  %v15796_v32 = vld [vmem:[#allocation91_spill] sm:$0xff]  ;;  %v15797_v49 = vld [vmem:[#allocation89_spill] sm:$0xff] }
 0x2f7   : > { %10247 = vmatprep.subr.bf16.mxu1 %v14471_v33  ;;  %6683 = vmatmul.mubr.bf16.gmra.mrb[68].mxu0 %v15793_v46  ;;  %v15798_v46 = vld [vmem:[#allocation47_spill] sm:$0xff] }
 0x2f8   : > { %v14482_v11 = vadd.f32 %v10988_v37, %v9312_v26  ;;  %6690 = vmatprep.mubr.bf16.mxu0 %v15795_v27  ;;  %v15801_v26 = vld [vmem:[#allocation29_spill] sm:$0xff] }
 0x2f9   : > { %10184 = vmatmul.mubr.bf16.gmra.mrb[32].mxu1 %v15792_v10 }
 0x2fa   : > { %10187 = vmatprep.mubr.bf16.mxu1 %v15794_v17  ;;  %v9313_v52 = vpop.f32.mrb[220].mxu0 }
 0x2fb   : > { %v9314_v13 = vpop.f32.mrb[221].mxu0 }
 0x2fc   : > { %v9315_v24 = vadd.f32 %v9314_v13, %v9313_v52  ;;  %v9316_v12 = vpop.f32.mrb[222].mxu0  ;;  %v15390_v52 = vrot.slane %v14190_v25, 1  ;;  %v15389_v13 = vrot.slane %v14211_v34, 1 }
 0x2fd   : > { %v9317_v59 = vpop.f32.mrb[223].mxu0 }
 0x2fe   : > { %v14487_v21 = vadd.f32 %v14135_v35, %v9315_v24  ;;  %v9318_v62 = vadd.f32 %v9317_v59, %v9316_v12  ;;  %v14502_v59 = vcombine.low %v15390_v52, %v15389_v13  ;;  %v15808_v13 = vld [vmem:[#allocation54_spill] sm:$0xff] }
 0x2ff   : > { %6691 = vmatmul.mubr.bf16.gmra.mrb[72].mxu0 %v15797_v49  ;;  %v15809_v52 = vrot.slane %v15808_v13, 1  ;;  %v15815_v13 = vld [vmem:[#allocation18_spill] sm:$0xff] }
 0x300   : > { %v14492_v37 = vadd.f32 %v15798_v46, %v9318_v62  ;;  %6698 = vmatprep.mubr.bf16.mxu0 %v15801_v26  ;;  %v15803_v46 = vld [vmem:[#allocation48_spill] sm:$0xff]  ;;  %v15804_v26 = vld [vmem:[#allocation37_spill] sm:$0xff] }
 0x301   : > { %10188 = vmatmul.mubr.bf16.gmra.mrb[36].mxu1 %v15796_v32  ;;  %v5003_v32 = vrot.slane %v14280_v36, 1 }
 0x302   : > { %15799 = vst [vmem:[#allocation79_spill] sm:$0xff] %v14492_v37  ;;  %10191 = vmatprep.mubr.bf16.mxu1 %v15800_v60  ;;  %v9319_v27 = vpop.f32.mrb[224].mxu0 }
 0x303   : > { %v9320_v3 = vpop.f32.mrb[225].mxu0  ;;  %v14517_v45 = vcombine.low %v15809_v52, %v5003_v32 }
 0x304   : > { %v9321_v35 = vadd.f32 %v9320_v3, %v9319_v27  ;;  %v9322_v24 = vpop.f32.mrb[226].mxu0  ;;  %v15806_v27 = vld [vmem:[#allocation41_spill] sm:$0xff] }
 0x305   : > { %v9323_v12 = vpop.f32.mrb[227].mxu0  ;;  %15810 = vst [vmem:[#allocation66_spill] sm:$0xff] %v14517_v45 }
 0x306   : > { %v14505_v62 = vadd.f32 %v14145_v40, %v9321_v35  ;;  %v9324_v49 = vadd.f32 %v9323_v12, %v9322_v24 }
 0x307   : > { %6699 = vmatmul.mubr.bf16.gmra.mrb[76].mxu0 %v15804_v26 }
 0x308   : > { %15802 = vst [vmem:[#allocation17_spill] sm:$0xff] %v14505_v62  ;;  %v14511_v3 = vadd.f32 %v14150_v30, %v9324_v49  ;;  %6706 = vmatprep.mubr.bf16.mxu0 %v15807_v29  ;;  %v15811_v62 = vld [vmem:[#allocation57_spill] sm:$0xff]  ;;  %v15813_v49 = vld [vmem:[#allocation55_spill] sm:$0xff] }
 0x309   : > { %10192 = vmatmul.mubr.bf16.gmra.mrb[40].mxu1 %v15803_v46  ;;  %v15812_v30 = vld [vmem:[#allocation53_spill] sm:$0xff]  ;;  %v15814_v29 = vld [vmem:[#allocation59_spill] sm:$0xff] }
 0x30a   : > { %15805 = vst [vmem:[#allocation56_spill] sm:$0xff] %v14511_v3  ;;  %10195 = vmatprep.mubr.bf16.mxu1 %v15806_v27  ;;  %v9325_v5 = vpop.f32.mrb[228].mxu0 }
 0x30b   : > { %v9326_v40 = vpop.f32.mrb[229].mxu0 }
 0x30c   : > { %v9327_v35 = vadd.f32 %v9326_v40, %v9325_v5  ;;  %v9328_v24 = vpop.f32.mrb[230].mxu0 }
 0x30d   : > { %v9329_v12 = vpop.f32.mrb[231].mxu0 }
 0x30e   : > { %v14520_v26 = vadd.f32 %v15811_v62, %v9327_v35  ;;  %v9330_v36 = vadd.f32 %v9329_v12, %v9328_v24  ;;  %v11777_v62 = vld [vmem:[%s15112_s2 + $0x5c8] sm:$0xff]   ;;  %v15816_v35 = vld [vmem:[#allocation15_spill] sm:$0xff] }
 0x30f   : > { %6707 = vmatmul.mubr.bf16.gmra.mrb[80].mxu0 %v15812_v30  ;;  %v15819_v30 = vld [vmem:[#allocation8_spill] sm:$0xff] }
 0x310   : > { %v14525_v3 = vadd.f32 %v15813_v49, %v9330_v36  ;;  %6714 = vmatprep.mubr.bf16.mxu0 %v15815_v13  ;;  %v15818_v36 = vld [vmem:[#allocation65_spill] sm:$0xff] }
 0x311   : > { %10196 = vmatmul.mubr.bf16.gmra.mrb[44].mxu1 %v14517_v45  ;;  %v11778_v13 = vld [vmem:[%s15112_s2 + $0x5d0] sm:$0xff]  }
 0x312   : > { %10215 = vmatprep.mubr.bf16.mxu1 %v15814_v29  ;;  %v9331_v32 = vpop.f32.mrb[232].mxu0  ;;  %v15821_v29 = vld [vmem:[#allocation67_spill] sm:$0xff] }
 0x313   : > { %v9332_v52 = vpop.f32.mrb[233].mxu0 }
 0x314   : > { %v9333_v5 = vadd.f32 %v9332_v52, %v9331_v32  ;;  %v9334_v40 = vpop.f32.mrb[234].mxu0 }
 0x315   : > { %v9335_v37 = vpop.f32.mrb[235].mxu0 }
 0x316   : > { %v14533_v24 = vadd.f32 %v15816_v35, %v9333_v5  ;;  %v9336_v12 = vadd.f32 %v9335_v37, %v9334_v40 }
 0x317   : > { %6715 = vmatmul.mubr.bf16.gmra.mrb[84].mxu0 %v15818_v36  ;;  %v15823_v36 = vld [vmem:[#allocation68_spill] sm:$0xff] }
 0x318   : > { %15817 = vst [vmem:[#allocation72_spill] sm:$0xff] %v14533_v24  ;;  %v14538_v49 = vadd.f32 %v15819_v30, %v9336_v12  ;;  %6722 = vmatprep.mubr.bf16.mxu0 %v15821_v29  ;;  %v15824_v30 = vld [vmem:[#allocation62_spill] sm:$0xff] }
 0x319   : > { %10216 = vmatmul.mubr.bf16.vlgmr.msra.gmra.mrb[16].mxu1 %v15776_v42 }
 0x31a   : > { %15820 = vst [vmem:[#allocation63_spill] sm:$0xff] %v14538_v49  ;;  %10219 = vmatprep.mubr.bf16.mxu1 %v15780_v48  ;;  %10248 = vmatpush3.bf16.msra.mxu1 %v14471_v33  ;;  %v9337_v32 = vpop.f32.mrb[236].mxu0  ;;  %v11781_v33 = vld [vmem:[%s15112_s2 + $0x5d8] sm:$0xff]  }
 0x31b   : > { %10249 = vmatprep.subr.bf16.mxu1 %v11777_v62  ;;  %v9338_v37 = vpop.f32.mrb[237].mxu0 }
 0x31c   : > { %v9339_v52 = vadd.f32 %v9338_v37, %v9337_v32  ;;  %v9340_v5 = vpop.f32.mrb[238].mxu0  ;;  %v15826_v32 = vld [vmem:[#allocation77_spill] sm:$0xff] }
 0x31d   : > { %v9341_v40 = vpop.f32.mrb[239].mxu0 }
 0x31e   : > { %10250 = vmatpush3.bf16.msra.mxu1 %v11777_v62  ;;  %v14547_v35 = vadd.f32 %v14193_v0, %v9339_v52  ;;  %v9342_v12 = vadd.f32 %v9341_v40, %v9340_v5  ;;  %v15827_v62 = vld [vmem:[#allocation3_spill] sm:$0xff] }
 0x31f   : > { %10251 = vmatprep.subr.bf16.mxu1 %v11778_v13  ;;  %6723 = vmatmul.mubr.bf16.gmra.mrb[88].mxu0 %v15823_v36  ;;  %v11782_v0 = vld [vmem:[%s15112_s2 + $0x5e0] sm:$0xff]   ;;  %v8571_v36 = vcombine.low %v14197_v61, %v14229_v57 }
 0x320   : > { %15822 = vst [vmem:[#allocation87_spill] sm:$0xff] %v14547_v35  ;;  %v14555_v29 = vadd.f32 %v15824_v30, %v9342_v12  ;;  %6730 = vmatprep.mubr.bf16.mxu0 %v15827_v62  ;;  %v15828_v30 = vld [vmem:[#allocation10_spill] sm:$0xff]  ;;  %v999_v62 = vld [vmem:[#allocation2 + $0x1d4] sm:$0x1] }
 0x321   : > { %10220 = vmatmul.mubr.bf16.gmra.mrb[20].mxu1 %v15782_v58 }
 0x322   : > { %15825 = vst [vmem:[#allocation9_spill] sm:$0xff] %v14555_v29  ;;  %10223 = vmatprep.mubr.bf16.mxu1 %v15826_v32  ;;  %10252 = vmatpush3.bf16.msra.mxu1 %v11778_v13  ;;  %v9519_v37 = vpop.f32.mrb[240].mxu0  ;;  %v11785_v13 = vld [vmem:[%s15112_s2 + $0x5e8] sm:$0xff]   ;;  %v14570_v32 = vld [vmem:[#allocation2 + $0x1d0] sm:$0xf] }
 0x323   : > { %10253 = vmatprep.subr.bf16.mxu1 %v11781_v33  ;;  %v9520_v52 = vpop.f32.mrb[241].mxu0 }
 0x324   : > { %v9521_v5 = vadd.f32 %v9520_v52, %v9519_v37  ;;  %v9522_v40 = vpop.f32.mrb[242].mxu0 }
 0x325   : > { %v9523_v45 = vpop.f32.mrb[243].mxu0 }
 0x326   : > { %10254 = vmatpush3.bf16.msra.mxu1 %v11781_v33  ;;  %v9524_v12 = vadd.f32 %v9523_v45, %v9522_v40  ;;  %v11788_v45 = vld [vmem:[%s15112_s2 + $0x5f0] sm:$0xff]  }
 0x327   : > { %10255 = vmatprep.subr.bf16.mxu1 %v11782_v0  ;;  %6731 = vmatmul.mubr.bf16.gmra.mrb[92].mxu0 %v15828_v30 }
 0x328   : > { %6738 = vmatprep.mubr.bf16.mxu0 %v8571_v36  ;;  %v8574_v36 = vcombine.low %v14231_v20, %v14255_v8  ;;  %v15831_v8 = vld [vmem:[#allocation93_spill] sm:$0xff] }
 0x329   : > { %10224 = vmatmul.mubr.bf16.gmra.mrb[24].mxu1 %v15788_v15 }
 0x32a   : > { %10227 = vmatprep.mubr.bf16.mxu1 %v15792_v10  ;;  %10256 = vmatpush3.bf16.msra.mxu1 %v11782_v0  ;;  %v9525_v57 = vpop.f32.mrb[244].mxu0  ;;  %v14578_v0 = vcombine.low %v14570_v32, %v999_v62 }
 0x32b   : > { %10257 = vmatprep.subr.bf16.mxu1 %v11785_v13  ;;  %v9526_v37 = vpop.f32.mrb[245].mxu0 }
 0x32c   : > { %v9383_v61 = vpop.f32.mrb[112].mxu1  ;;  %v9527_v29 = vadd.f32 %v9526_v37, %v9525_v57  ;;  %v9528_v30 = vpop.f32.mrb[246].mxu0  ;;  %v15829_v57 = vld [vmem:[#allocation74_spill] sm:$0xff]  ;;  %v14596_v37 = vld [vmem:[%s15112_s2 + $0x680] sm:$0xff]  }
 0x32d   : > { %v9384_v33 = vpop.f32.mrb[113].mxu1  ;;  %v9529_v35 = vpop.f32.mrb[247].mxu0  ;;  %v15830_v20 = vcombine.low %v15829_v57, %v13946_v14 }
 0x32e   : > { %v9385_v52 = vadd.f32 %v9384_v33, %v9383_v61  ;;  %v9386_v40 = vpop.f32.mrb[114].mxu1  ;;  %10258 = vmatpush3.bf16.msra.mxu1 %v11785_v13  ;;  %v9530_v24 = vadd.f32 %v9529_v35, %v9528_v30  ;;  %v11789_v61 = vld [vmem:[%s15112_s2 + $0x5f8] sm:$0xff]  }
 0x32f   : > { %v9387_v10 = vpop.f32.mrb[115].mxu1  ;;  %10259 = vmatprep.subr.bf16.mxu1 %v11788_v45  ;;  %6739 = vmatmul.mubr.bf16.gmra.mrb[96].mxu0 %v15830_v20  ;;  %v15832_v33 = vld [vmem:[#allocation34_spill] sm:$0xff] }
 0x330   : > { %v10400_v15 = vadd.f32 %v14219_v22, %v9385_v52  ;;  %v9388_v49 = vadd.f32 %v9387_v10, %v9386_v40  ;;  %6746 = vmatprep.mubr.bf16.mxu0 %v8574_v36  ;;  %v6386_v22 = vshll.u32 %v14578_v0, 16  ;;  %v8577_v40 = vcombine.low %v14257_v41, %v14292_v9  ;;  %v15837_v9 = vld [vmem:[#allocation23_spill] sm:$0xff] }
 0x331   : > { %10228 = vmatmul.mubr.bf16.gmra.mrb[28].mxu1 %v15794_v17 }
 0x332   : > { %v10454_v62 = vadd.f32 %v15831_v8, %v9388_v49  ;;  %10231 = vmatprep.mubr.bf16.mxu1 %v15832_v33  ;;  %v14591_v10 = vadd.f32 %v10400_v15, %v9521_v5  ;;  %10260 = vmatpush3.bf16.msra.mxu1 %v11788_v45  ;;  %v9531_v13 = vpop.f32.mrb[248].mxu0  ;;  %v6384_v45 = vshrl.u32 %v14578_v0, 16  ;;  %v6388_v57 = vrot.slane %v6386_v22, 1  ;;  %v15834_v33 = vld [vmem:[#allocation96_spill] sm:$0xff] }
 0x333   : > { %10261 = vmatprep.subr.bf16.mxu1 %v11789_v61  ;;  %v9532_v49 = vpop.f32.mrb[249].mxu0 }
 0x334   : > { %15833 = vst [vmem:[#allocation61_spill] sm:$0xff] %v14591_v10  ;;  %v9389_v35 = vpop.f32.mrb[116].mxu1  ;;  %v14598_v14 = vadd.f32 %v10454_v62, %v9524_v12  ;;  %v9533_v15 = vadd.f32 %v9532_v49, %v9531_v13  ;;  %v9534_v5 = vpop.f32.mrb[250].mxu0  ;;  %v15835_v62 = vld [vmem:[#allocation35_spill] sm:$0xff]  ;;  %v15838_v13 = vld [vmem:[#allocation97_spill] sm:$0xff]  ;;  %v14613_v49 = vor.u32 %v6388_v57, %v6384_v45 }
 0x335   : > { %v9390_v52 = vpop.f32.mrb[117].mxu1  ;;  %v9535_v8 = vpop.f32.mrb[251].mxu0  ;;  %v15836_v41 = vcombine.low %v15835_v62, %v13974_v47 }
 0x336   : > { %v9391_v30 = vadd.f32 %v9390_v52, %v9389_v35  ;;  %v9392_v36 = vpop.f32.mrb[118].mxu1  ;;  %10262 = vmatpush3.bf16.msra.mxu1 %v11789_v61  ;;  %v9536_v12 = vadd.f32 %v9535_v8, %v9534_v5  ;;  %v5719_v35 = vrot.slane %v15837_v9, 1  ;;  %v15839_v61 = vld [vmem:[#allocation11_spill] sm:$0xff] }
 0x337   : > { %v9393_v20 = vpop.f32.mrb[119].mxu1  ;;  %10295 = vmatprep.subr.bf16.mxu1 %v14596_v37  ;;  %6747 = vmatmul.mubr.bf16.gmra.mrb[100].mxu0 %v15836_v41  ;;  %v15397_v22 = vrot.slane %v15839_v61, 1 }
 0x338   : > { %v10373_v17 = vadd.f32 %v15834_v33, %v9391_v30  ;;  %v9394_v10 = vadd.f32 %v9393_v20, %v9392_v36  ;;  %6754 = vmatprep.mubr.bf16.mxu0 %v8577_v40  ;;  %v8580_v40 = vcombine.low %v14294_v53, %v14613_v49 }
 0x339   : > { %10232 = vmatmul.mubr.bf16.gmra.mrb[32].mxu1 %v15800_v60 }
 0x33a   : > { %v10427_v52 = vadd.f32 %v15838_v13, %v9394_v10  ;;  %10235 = vmatprep.mubr.bf16.mxu1 %v15803_v46  ;;  %v14615_v30 = vadd.f32 %v10373_v17, %v9527_v29  ;;  %v9537_v5 = vpop.f32.mrb[252].mxu0  ;;  %v8487_v10 = vcombine.low %v5719_v35, %v15397_v22  ;;  %v15842_v35 = vld [vmem:[#allocation92_spill] sm:$0xff]  ;;  %v15848_v22 = vld [vmem:[#allocation5_spill] sm:$0xff] }
 0x33b   : > { %v9538_v47 = vpop.f32.mrb[253].mxu0  ;;  %v15396_v53 = vrot.slane %v15842_v35, 1 }
 0x33c   : > { %v9395_v36 = vpop.f32.mrb[120].mxu1  ;;  %v14617_v20 = vadd.f32 %v10427_v52, %v9530_v24  ;;  %v9539_v41 = vadd.f32 %v9538_v47, %v9537_v5  ;;  %v9540_v9 = vpop.f32.mrb[254].mxu0  ;;  %v15840_v24 = vcombine.low %v13998_v18, %v14000_v23  ;;  %v15841_v52 = vld [vmem:[#allocation43_spill] sm:$0xff] }
 0x33d   : > { %v9396_v8 = vpop.f32.mrb[121].mxu1  ;;  %v9541_v57 = vpop.f32.mrb[255].mxu0 }
 0x33e   : > { %v9397_v33 = vadd.f32 %v9396_v8, %v9395_v36  ;;  %v9398_v62 = vpop.f32.mrb[122].mxu1  ;;  %v9542_v13 = vadd.f32 %v9541_v57, %v9540_v9  ;;  %v5721_v36 = vrot.slane %v15841_v52, 1  ;;  %v15843_v9 = vrot.slane %v14190_v25, 1 }
 0x33f   : > { %v9399_v45 = vpop.f32.mrb[123].mxu1  ;;  %6755 = vmatmul.mubr.bf16.gmra.mrb[104].mxu0 %v15840_v24 }
 0x340   : > { %v10508_v17 = vadd.f32 %v14284_v16, %v9397_v33  ;;  %v9400_v29 = vadd.f32 %v9399_v45, %v9398_v62  ;;  %6762 = vmatprep.mubr.bf16.mxu0 %v8580_v40  ;;  %v14639_v18 = vcombine.low %v5721_v36, %v15843_v9 }
 0x341   : > { %10236 = vmatmul.mubr.bf16.gmra.mrb[36].mxu1 %v15806_v27 }
 0x342   : > { %v10562_v5 = vadd.f32 %v14288_v4, %v9400_v29  ;;  %10239 = vmatprep.mubr.bf16.mxu1 %v8487_v10  ;;  %v14631_v8 = vadd.f32 %v10508_v17, %v9533_v15  ;;  %v9543_v16 = vpop.f32.mrb[0].mxu0  ;;  %v8579_v4 = vcombine.low %v14233_v63, %v14570_v32  ;;  %v15399_v63 = vrot.slane %v14245_v6, 1 }
 0x343   : > { %v9544_v23 = vpop.f32.mrb[1].mxu0 }
 0x344   : > { %v9401_v47 = vpop.f32.mrb[124].mxu1  ;;  %v14633_v33 = vadd.f32 %v10562_v5, %v9536_v12  ;;  %v9545_v45 = vadd.f32 %v9544_v23, %v9543_v16  ;;  %v9546_v15 = vpop.f32.mrb[2].mxu0  ;;  %v15844_v12 = vrot.slane %v14211_v34, 1  ;;  %v15846_v34 = vld [vmem:[#allocation71_spill] sm:$0xff] }
 0x345   : > { %v9402_v62 = vpop.f32.mrb[125].mxu1  ;;  %v9547_v25 = vpop.f32.mrb[3].mxu0 }
 0x346   : > { %v9403_v10 = vadd.f32 %v9402_v62, %v9401_v47  ;;  %v9404_v40 = vpop.f32.mrb[126].mxu1  ;;  %v14647_v57 = vcombine.low %v15844_v12, %v15396_v53  ;;  %v9548_v5 = vadd.f32 %v9547_v25, %v9546_v15  ;;  %v15845_v47 = vld [vmem:[#allocation95_spill] sm:$0xff] }
 0x347   : > { %v9405_v17 = vpop.f32.mrb[127].mxu1  ;;  %6763 = vmatmul.mubr.bf16.gmra.mrb[108].mxu0 %v8579_v4  ;;  %v15398_v16 = vrot.slane %v15845_v47, 1 }
 0x348   : > { %v10481_v29 = vadd.f32 %v14310_v43, %v9403_v10  ;;  %v9406_v24 = vadd.f32 %v9405_v17, %v9404_v40  ;;  %7274 = vmatprep.mubr.bf16.mxu0 %v15846_v34 }
 0x349   : > { %10240 = vmatmul.mubr.bf16.gmra.mrb[40].mxu1 %v14639_v18  ;;  %v14664_v4 = vcombine.low %v15399_v63, %v15398_v16  ;;  %v15849_v16 = vld [vmem:[#allocation75_spill] sm:$0xff] }
 0x34a   : > { %v10535_v62 = vadd.f32 %v14314_v50, %v9406_v24  ;;  %10243 = vmatprep.mubr.bf16.mxu1 %v14647_v57  ;;  %v14656_v9 = vadd.f32 %v10481_v29, %v9539_v41  ;;  %v9549_v12 = vpop.f32.mrb[4].mxu0 }
 0x34b   : > { %v9550_v40 = vpop.f32.mrb[5].mxu0 }
 0x34c   : > { %v9407_v23 = vpop.f32.mrb[128].mxu1  ;;  %v14658_v43 = vadd.f32 %v10535_v62, %v9542_v13  ;;  %v9551_v17 = vadd.f32 %v9550_v40, %v9549_v12  ;;  %v9552_v25 = vpop.f32.mrb[6].mxu0  ;;  %v15847_v13 = vld [vmem:[#allocation69_spill] sm:$0xff] }
 0x34d   : > { %v9408_v10 = vpop.f32.mrb[129].mxu1  ;;  %v9553_v34 = vpop.f32.mrb[7].mxu0 }
 0x34e   : > { %v9409_v15 = vadd.f32 %v9408_v10, %v9407_v23  ;;  %v9410_v50 = vpop.f32.mrb[130].mxu1  ;;  %v9554_v53 = vadd.f32 %v9553_v34, %v9552_v25 }
 0x34f   : > { %v9411_v24 = vpop.f32.mrb[131].mxu1  ;;  %7275 = vmatmul.mubr.bf16.vlgmr.msra.gmra.mrb[112].mxu0 %v15847_v13 }
 0x350   : > { %v10616_v41 = vadd.f32 %v14329_v28, %v9409_v15  ;;  %v9412_v29 = vadd.f32 %v9411_v24, %v9410_v50  ;;  %7282 = vmatprep.mubr.bf16.mxu0 %v15849_v16 }
 0x351   : > { %10244 = vmatmul.mubr.bf16.gmra.mrb[44].mxu1 %v14664_v4 }
 0x352   : > { %v10670_v62 = vadd.f32 %v14333_v51, %v9412_v29  ;;  %10263 = vmatprep.mubr.bf16.mxu1 %v15848_v22  ;;  %v14672_v23 = vadd.f32 %v10616_v41, %v9545_v45  ;;  %v9555_v10 = vpop.f32.mrb[8].mxu0  ;;  %v11791_v51 = vld [vmem:[%s15112_s2 + $0x688] sm:$0xff]   ;;  %v15850_v41 = vld [vmem:[#allocation26_spill] sm:$0xff] }
 0x353   : > { %v9556_v28 = vpop.f32.mrb[9].mxu0 }
 0x354   : > { %v9413_v12 = vpop.f32.mrb[132].mxu1  ;;  %v14674_v40 = vadd.f32 %v10670_v62, %v9548_v5  ;;  %v9557_v25 = vadd.f32 %v9556_v28, %v9555_v10  ;;  %v9558_v24 = vpop.f32.mrb[10].mxu0  ;;  %v15851_v5 = vld [vmem:[#allocation76_spill] sm:$0xff] }
 0x355   : > { %v9414_v63 = vpop.f32.mrb[133].mxu1  ;;  %v9559_v13 = vpop.f32.mrb[11].mxu0 }
 0x356   : > { %v9415_v15 = vadd.f32 %v9414_v63, %v9413_v12  ;;  %v9416_v50 = vpop.f32.mrb[134].mxu1  ;;  %v9560_v16 = vadd.f32 %v9559_v13, %v9558_v24  ;;  %v15852_v63 = vld [vmem:[#allocation12_spill] sm:$0xff] }
 0x357   : > { %v9417_v34 = vpop.f32.mrb[135].mxu1  ;;  %7283 = vmatmul.mubr.bf16.gmra.mrb[116].mxu0 %v15851_v5  ;;  %v15853_v12 = vld [vmem:[#allocation80_spill] sm:$0xff] }
 0x358   : > { %v10589_v22 = vadd.f32 %v14351_v39, %v9415_v15  ;;  %v9418_v45 = vadd.f32 %v9417_v34, %v9416_v50  ;;  %7290 = vmatprep.mubr.bf16.mxu0 %v15853_v12  ;;  %v11792_v39 = vld [vmem:[%s15112_s2 + $0x690] sm:$0xff]  }
 0x359   : > { %10264 = vmatmul.mubr.bf16.vlgmr.msra.gmra.mrb[16].mxu1 %v15850_v41 }
 0x35a   : > { %v10643_v29 = vadd.f32 %v14355_v2, %v9418_v45  ;;  %10267 = vmatprep.mubr.bf16.mxu1 %v15852_v63  ;;  %10296 = vmatpush3.bf16.msra.mxu1 %v14596_v37  ;;  %v14685_v62 = vadd.f32 %v10589_v22, %v9551_v17  ;;  %v9561_v28 = vpop.f32.mrb[12].mxu0  ;;  %v11793_v63 = vld [vmem:[%s15112_s2 + $0x698] sm:$0xff]  }
 0x35b   : > { %10297 = vmatprep.subr.bf16.mxu1 %v11791_v51  ;;  %v9562_v24 = vpop.f32.mrb[13].mxu0 }
 0x35c   : > { %v9419_v10 = vpop.f32.mrb[136].mxu1  ;;  %v14691_v15 = vadd.f32 %v10643_v29, %v9554_v53  ;;  %v9563_v13 = vadd.f32 %v9562_v24, %v9561_v28  ;;  %v9564_v45 = vpop.f32.mrb[14].mxu0  ;;  %v15854_v53 = vld [vmem:[#allocation6_spill] sm:$0xff]  ;;  %v11794_v24 = vld [vmem:[%s15112_s2 + $0x6a0] sm:$0xff]  }
 0x35d   : > { %v9420_v50 = vpop.f32.mrb[137].mxu1  ;;  %v9565_v17 = vpop.f32.mrb[15].mxu0  ;;  %v15855_v29 = vld [vmem:[#allocation82_spill] sm:$0xff] }
 0x35e   : > { %v9421_v2 = vadd.f32 %v9420_v50, %v9419_v10  ;;  %v9422_v34 = vpop.f32.mrb[138].mxu1  ;;  %10298 = vmatpush3.bf16.msra.mxu1 %v11791_v51  ;;  %v9566_v5 = vadd.f32 %v9565_v17, %v9564_v45  ;;  %v15856_v10 = vld [vmem:[#allocation32_spill] sm:$0xff]  ;;  %v15857_v51 = vld [vmem:[#allocation85_spill] sm:$0xff] }
 0x35f   : > { %v9423_v37 = vpop.f32.mrb[139].mxu1  ;;  %10299 = vmatprep.subr.bf16.mxu1 %v11792_v39  ;;  %7291 = vmatmul.mubr.bf16.gmra.mrb[120].mxu0 %v15855_v29 }
 0x360   : > { %v10724_v22 = vadd.f32 %v14372_v1, %v9421_v2  ;;  %v9424_v41 = vadd.f32 %v9423_v37, %v9422_v34  ;;  %7298 = vmatprep.mubr.bf16.mxu0 %v15857_v51 }
 0x361   : > { %10268 = vmatmul.mubr.bf16.gmra.mrb[20].mxu1 %v15854_v53 }
 0x362   : > { %v10778_v12 = vadd.f32 %v14382_v31, %v9424_v41  ;;  %10271 = vmatprep.mubr.bf16.mxu1 %v15856_v10  ;;  %v14702_v28 = vadd.f32 %v10724_v22, %v9557_v25  ;;  %10300 = vmatpush3.bf16.msra.mxu1 %v11792_v39  ;;  %v9567_v50 = vpop.f32.mrb[16].mxu0  ;;  %v11795_v10 = vld [vmem:[%s15112_s2 + $0x6a8] sm:$0xff]  }
 0x363   : > { %10301 = vmatprep.subr.bf16.mxu1 %v11793_v63  ;;  %v9568_v45 = vpop.f32.mrb[17].mxu0 }
 0x364   : > { %v9425_v1 = vpop.f32.mrb[140].mxu1  ;;  %v14707_v2 = vadd.f32 %v10778_v12, %v9560_v16  ;;  %v9569_v17 = vadd.f32 %v9568_v45, %v9567_v50  ;;  %v9570_v41 = vpop.f32.mrb[18].mxu0  ;;  %v15858_v16 = vld [vmem:[#allocation28_spill] sm:$0xff]  ;;  %v15859_v12 = vld [vmem:[#allocation86_spill] sm:$0xff]  ;;  %v15861_v50 = vld [vmem:[#allocation19_spill] sm:$0xff] }
 0x365   : > { %v9426_v34 = vpop.f32.mrb[141].mxu1  ;;  %v9571_v29 = vpop.f32.mrb[19].mxu0  ;;  %v11796_v45 = vld [vmem:[%s15112_s2 + $0x6b0] sm:$0xff]  }
 0x366   : > { %v9427_v37 = vadd.f32 %v9426_v34, %v9425_v1  ;;  %v9428_v31 = vpop.f32.mrb[142].mxu1  ;;  %10302 = vmatpush3.bf16.msra.mxu1 %v11793_v63  ;;  %v9572_v22 = vadd.f32 %v9571_v29, %v9570_v41  ;;  %v15860_v1 = vld [vmem:[#allocation40_spill] sm:$0xff] }
 0x367   : > { %v9429_v53 = vpop.f32.mrb[143].mxu1  ;;  %10303 = vmatprep.subr.bf16.mxu1 %v11794_v24  ;;  %7299 = vmatmul.mubr.bf16.gmra.mrb[124].mxu0 %v15859_v12 }
 0x368   : > { %v10697_v25 = vadd.f32 %v14400_v56, %v9427_v37  ;;  %v9430_v39 = vadd.f32 %v9429_v53, %v9428_v31  ;;  %7306 = vmatprep.mubr.bf16.mxu0 %v15861_v50 }
 0x369   : > { %10272 = vmatmul.mubr.bf16.gmra.mrb[24].mxu1 %v15858_v16 }
 0x36a   : > { %v10751_v51 = vadd.f32 %v14413_v55, %v9430_v39  ;;  %10275 = vmatprep.mubr.bf16.mxu1 %v15860_v1  ;;  %v14718_v63 = vadd.f32 %v10697_v25, %v9563_v13  ;;  %10304 = vmatpush3.bf16.msra.mxu1 %v11794_v24  ;;  %v9573_v34 = vpop.f32.mrb[20].mxu0  ;;  %v11797_v1 = vld [vmem:[%s15112_s2 + $0x6b8] sm:$0xff]  }
 0x36b   : > { %10305 = vmatprep.subr.bf16.mxu1 %v11795_v10  ;;  %v9574_v41 = vpop.f32.mrb[21].mxu0 }
 0x36c   : > { %v9431_v56 = vpop.f32.mrb[144].mxu1  ;;  %v14723_v37 = vadd.f32 %v10751_v51, %v9566_v5  ;;  %v9575_v29 = vadd.f32 %v9574_v41, %v9573_v34  ;;  %v9576_v39 = vpop.f32.mrb[22].mxu0  ;;  %v15862_v5 = vld [vmem:[#allocation36_spill] sm:$0xff]  ;;  %v15865_v34 = vld [vmem:[#allocation25_spill] sm:$0xff] }
 0x36d   : > { %v9432_v31 = vpop.f32.mrb[145].mxu1  ;;  %v9577_v12 = vpop.f32.mrb[23].mxu0  ;;  %v15863_v51 = vld [vmem:[#allocation16_spill] sm:$0xff] }
 0x36e   : > { %v9433_v53 = vadd.f32 %v9432_v31, %v9431_v56  ;;  %v9434_v55 = vpop.f32.mrb[146].mxu1  ;;  %10306 = vmatpush3.bf16.msra.mxu1 %v11795_v10  ;;  %v9578_v25 = vadd.f32 %v9577_v12, %v9576_v39  ;;  %v15864_v56 = vld [vmem:[#allocation4_spill] sm:$0xff] }
 0x36f   : > { %v9435_v16 = vpop.f32.mrb[147].mxu1  ;;  %10307 = vmatprep.subr.bf16.mxu1 %v11796_v45  ;;  %7307 = vmatmul.mubr.bf16.gmra.mrb[128].mxu0 %v15863_v51 }
 0x370   : > { %v10832_v13 = vadd.f32 %v14430_v44, %v9433_v53  ;;  %v9436_v24 = vadd.f32 %v9435_v16, %v9434_v55  ;;  %7314 = vmatprep.mubr.bf16.mxu0 %v15865_v34  ;;  %v15869_v34 = vld [vmem:[#allocation31_spill] sm:$0xff] }
 0x371   : > { %10276 = vmatmul.mubr.bf16.gmra.mrb[28].mxu1 %v15862_v5 }
 0x372   : > { %v10886_v50 = vadd.f32 %v14443_v7, %v9436_v24  ;;  %10279 = vmatprep.mubr.bf16.mxu1 %v15864_v56  ;;  %v14734_v10 = vadd.f32 %v10832_v13, %v9569_v17  ;;  %10308 = vmatpush3.bf16.msra.mxu1 %v11796_v45  ;;  %v9579_v31 = vpop.f32.mrb[24].mxu0  ;;  %v15866_v13 = vld [vmem:[#allocation52_spill] sm:$0xff]  ;;  %v15867_v45 = vld [vmem:[#allocation22_spill] sm:$0xff] }
 0x373   : > { %10309 = vmatprep.subr.bf16.mxu1 %v11797_v1  ;;  %v9580_v55 = vpop.f32.mrb[25].mxu0 }
 0x374   : > { %v9437_v44 = vpop.f32.mrb[148].mxu1  ;;  %v14736_v41 = vadd.f32 %v10886_v50, %v9572_v22  ;;  %v9581_v12 = vadd.f32 %v9580_v55, %v9579_v31  ;;  %v9582_v5 = vpop.f32.mrb[26].mxu0  ;;  %v15868_v50 = vld [vmem:[#allocation51_spill] sm:$0xff] }
 0x375   : > { %v9438_v53 = vpop.f32.mrb[149].mxu1  ;;  %v9583_v7 = vpop.f32.mrb[27].mxu0 }
 0x376   : > { %v9439_v39 = vadd.f32 %v9438_v53, %v9437_v44  ;;  %v9440_v16 = vpop.f32.mrb[150].mxu1  ;;  %10310 = vmatpush3.bf16.msra.mxu1 %v11797_v1  ;;  %v9584_v17 = vadd.f32 %v9583_v7, %v9582_v5 }
 0x377   : > { %v9441_v51 = vpop.f32.mrb[151].mxu1  ;;  %7315 = vmatmul.mubr.bf16.gmra.mrb[132].mxu0 %v15867_v45 }
 0x378   : > { %v10805_v24 = vadd.f32 %v14457_v38, %v9439_v39  ;;  %v9442_v56 = vadd.f32 %v9441_v51, %v9440_v16  ;;  %7322 = vmatprep.mubr.bf16.mxu0 %v15869_v34  ;;  %v15873_v34 = vld [vmem:[#allocation24_spill] sm:$0xff] }
 0x379   : > { %10280 = vmatmul.mubr.bf16.gmra.mrb[32].mxu1 %v15866_v13 }
 0x37a   : > { %v10859_v22 = vadd.f32 %v14464_v54, %v9442_v56  ;;  %10283 = vmatprep.mubr.bf16.mxu1 %v15868_v50  ;;  %v14744_v44 = vadd.f32 %v10805_v24, %v9575_v29  ;;  %v9585_v53 = vpop.f32.mrb[28].mxu0  ;;  %v15870_v54 = vrot.slane %v15839_v61, 1  ;;  %v15871_v50 = vld [vmem:[#allocation50_spill] sm:$0xff] }
 0x37b   : > { %v9586_v38 = vpop.f32.mrb[29].mxu0 }
 0x37c   : > { %v9443_v31 = vpop.f32.mrb[152].mxu1  ;;  %v14746_v55 = vadd.f32 %v10859_v22, %v9578_v25  ;;  %v9587_v5 = vadd.f32 %v9586_v38, %v9585_v53  ;;  %v9588_v51 = vpop.f32.mrb[30].mxu0  ;;  %v8572_v7 = vcombine.low %v15870_v54, %v5721_v36  ;;  %v15872_v25 = vld [vmem:[#allocation30_spill] sm:$0xff]  ;;  %v15875_v54 = vrot.slane %v15842_v35, 1 }
 0x37d   : > { %v9444_v1 = vpop.f32.mrb[153].mxu1  ;;  %v9589_v13 = vpop.f32.mrb[31].mxu0 }
 0x37e   : > { %v9445_v39 = vadd.f32 %v9444_v1, %v9443_v31  ;;  %v9446_v16 = vpop.f32.mrb[154].mxu1  ;;  %v9590_v45 = vadd.f32 %v9589_v13, %v9588_v51  ;;  %v15874_v51 = vrot.slane %v14245_v6, 1 }
 0x37f   : > { %v9447_v56 = vpop.f32.mrb[155].mxu1  ;;  %7323 = vmatmul.mubr.bf16.gmra.mrb[136].mxu0 %v15872_v25 }
 0x380   : > { %v10940_v29 = vadd.f32 %v14477_v19, %v9445_v39  ;;  %v9448_v24 = vadd.f32 %v9447_v56, %v9446_v16  ;;  %7330 = vmatprep.mubr.bf16.mxu0 %v15873_v34 }
 0x381   : > { %10284 = vmatmul.mubr.bf16.gmra.mrb[36].mxu1 %v15871_v50  ;;  %v15877_v50 = vld [vmem:[#allocation79_spill] sm:$0xff] }
 0x382   : > { %v10994_v22 = vadd.f32 %v14482_v11, %v9448_v24  ;;  %10287 = vmatprep.mubr.bf16.mxu1 %v8572_v7  ;;  %v14757_v31 = vadd.f32 %v10940_v29, %v9581_v12  ;;  %v9591_v61 = vpop.f32.mrb[32].mxu0  ;;  %v8578_v11 = vcombine.low %v15875_v54, %v15874_v51  ;;  %v6390_v24 = vrot.slane %v14578_v0, 1 }
 0x383   : > { %v9592_v1 = vpop.f32.mrb[33].mxu0 }
 0x384   : > { %v9449_v52 = vpop.f32.mrb[156].mxu1  ;;  %v14759_v36 = vadd.f32 %v10994_v22, %v9584_v17  ;;  %v9593_v39 = vadd.f32 %v9592_v1, %v9591_v61  ;;  %v9594_v16 = vpop.f32.mrb[34].mxu0  ;;  %v15876_v17 = vld [vmem:[#allocation90_spill] sm:$0xff] }
 0x385   : > { %v9450_v53 = vpop.f32.mrb[157].mxu1  ;;  %v9595_v56 = vpop.f32.mrb[35].mxu0  ;;  %v15878_v22 = vld [vmem:[#allocation70_spill] sm:$0xff] }
 0x386   : > { %v9451_v19 = vadd.f32 %v9450_v53, %v9449_v52  ;;  %v9452_v38 = vpop.f32.mrb[158].mxu1  ;;  %v9596_v29 = vadd.f32 %v9595_v56, %v9594_v16 }
 0x387   : > { %v9453_v7 = vpop.f32.mrb[159].mxu1  ;;  %7331 = vmatmul.mubr.bf16.gmra.mrb[140].mxu0 %v15876_v17 }
 0x388   : > { %v10913_v12 = vadd.f32 %v14487_v21, %v9451_v19  ;;  %v9454_v13 = vadd.f32 %v9453_v7, %v9452_v38  ;;  %7338 = vmatprep.mubr.bf16.mxu0 %v15878_v22 }
 0x389   : > { %10288 = vmatmul.mubr.bf16.gmra.mrb[40].mxu1 %v14502_v59  ;;  %v15879_v59 = vrot.slane %v15845_v47, 1  ;;  %v15883_v47 = vld [vmem:[#allocation33_spill] sm:$0xff] }
 0x38a   : > { %v10967_v25 = vadd.f32 %v15877_v50, %v9454_v13  ;;  %10291 = vmatprep.mubr.bf16.mxu1 %v8578_v11  ;;  %v14771_v6 = vadd.f32 %v10913_v12, %v9587_v5  ;;  %v9597_v34 = vpop.f32.mrb[36].mxu0  ;;  %v15880_v11 = vld [vmem:[#allocation17_spill] sm:$0xff]  ;;  %v15882_v12 = vld [vmem:[#allocation56_spill] sm:$0xff] }
 0x38b   : > { %v8581_v61 = vcombine.low %v15879_v59, %v6390_v24  ;;  %v9598_v53 = vpop.f32.mrb[37].mxu0 }
 0x38c   : > { %v9455_v35 = vpop.f32.mrb[160].mxu1  ;;  %v14773_v52 = vadd.f32 %v10967_v25, %v9590_v45  ;;  %v9599_v38 = vadd.f32 %v9598_v53, %v9597_v34  ;;  %v9600_v16 = vpop.f32.mrb[38].mxu0  ;;  %v15881_v45 = vld [vmem:[#allocation20_spill] sm:$0xff] }
 0x38d   : > { %v9456_v21 = vpop.f32.mrb[161].mxu1  ;;  %v9601_v54 = vpop.f32.mrb[39].mxu0 }
 0x38e   : > { %v9457_v1 = vadd.f32 %v9456_v21, %v9455_v35  ;;  %v9458_v19 = vpop.f32.mrb[162].mxu1  ;;  %v9602_v56 = vadd.f32 %v9601_v54, %v9600_v16 }
 0x38f   : > { %v9459_v51 = vpop.f32.mrb[163].mxu1  ;;  %7339 = vmatmul.mubr.bf16.gmra.mrb[144].mxu0 %v15881_v45 }
 0x390   : > { %v11048_v5 = vadd.f32 %v15880_v11, %v9457_v1  ;;  %v9460_v7 = vadd.f32 %v9459_v51, %v9458_v19  ;;  %7346 = vmatprep.mubr.bf16.mxu0 %v15883_v47 }
 0x391   : > { %10292 = vmatmul.mubr.bf16.gmra.mrb[44].mxu1 %v8581_v61 }
 0x392   : > { %v11102_v13 = vadd.f32 %v15882_v12, %v9460_v7  ;;  %10311 = vmatprep.mubr.bf16.mxu1 %v15776_v42  ;;  %v14784_v17 = vadd.f32 %v11048_v5, %v9593_v39  ;;  %v9603_v25 = vpop.f32.mrb[40].mxu0  ;;  %v15884_v39 = vld [vmem:[#allocation44_spill] sm:$0xff] }
 0x393   : > { %v9604_v34 = vpop.f32.mrb[41].mxu0 }
 0x394   : > { %v9461_v50 = vpop.f32.mrb[164].mxu1  ;;  %v14786_v22 = vadd.f32 %v11102_v13, %v9596_v29  ;;  %v9605_v53 = vadd.f32 %v9604_v34, %v9603_v25  ;;  %v9606_v61 = vpop.f32.mrb[42].mxu0  ;;  %v15885_v29 = vld [vmem:[#allocation46_spill] sm:$0xff]  ;;  %v15886_v34 = vld [vmem:[#allocation72_spill] sm:$0xff] }
 0x395   : > { %v9462_v35 = vpop.f32.mrb[165].mxu1  ;;  %v9607_v19 = vpop.f32.mrb[43].mxu0 }
 0x396   : > { %v9463_v21 = vadd.f32 %v9462_v35, %v9461_v50  ;;  %v9464_v59 = vpop.f32.mrb[166].mxu1  ;;  %v9608_v42 = vadd.f32 %v9607_v19, %v9606_v61  ;;  %v15889_v61 = vld [vmem:[#allocation63_spill] sm:$0xff] }
 0x397   : > { %v9465_v1 = vpop.f32.mrb[167].mxu1  ;;  %7347 = vmatmul.mubr.bf16.gmra.mrb[148].mxu0 %v15884_v39  ;;  %v15891_v19 = vld [vmem:[#allocation103_spill] sm:$0xff] }
 0x398   : > { %v11021_v16 = vadd.f32 %v14520_v26, %v9463_v21  ;;  %v9466_v51 = vadd.f32 %v9465_v1, %v9464_v59  ;;  %7354 = vmatprep.mubr.bf16.mxu0 %v15885_v29  ;;  %v15887_v59 = vld [vmem:[#allocation38_spill] sm:$0xff] }
 0x399   : > { %10312 = vmatmul.mubr.bf16.vlgmr.msra.gmra.mrb[16].mxu1 %v15780_v48 }
 0x39a   : > { %v11075_v54 = vadd.f32 %v14525_v3, %v9466_v51  ;;  %10315 = vmatprep.mubr.bf16.mxu1 %v15782_v58  ;;  %v14794_v11 = vadd.f32 %v11021_v16, %v9599_v38  ;;  %v9609_v7 = vpop.f32.mrb[44].mxu0  ;;  %v15888_v38 = vld [vmem:[#allocation58_spill] sm:$0xff] }
 0x39b   : > { %v9610_v26 = vpop.f32.mrb[45].mxu0 }
 0x39c   : > { %v9467_v5 = vpop.f32.mrb[168].mxu1  ;;  %v14796_v45 = vadd.f32 %v11075_v54, %v9602_v56  ;;  %v9611_v50 = vadd.f32 %v9610_v26, %v9609_v7  ;;  %v9612_v48 = vpop.f32.mrb[46].mxu0  ;;  %v15890_v56 = vld [vmem:[#allocation81_spill] sm:$0xff] }
 0x39d   : > { %v9468_v12 = vpop.f32.mrb[169].mxu1  ;;  %v9613_v35 = vpop.f32.mrb[47].mxu0 }
 0x39e   : > { %v9469_v13 = vadd.f32 %v9468_v12, %v9467_v5  ;;  %v9470_v47 = vpop.f32.mrb[170].mxu1  ;;  %v9614_v58 = vadd.f32 %v9613_v35, %v9612_v48 }
 0x39f   : > { %v9471_v25 = vpop.f32.mrb[171].mxu1  ;;  %7355 = vmatmul.mubr.bf16.gmra.mrb[152].mxu0 %v15888_v38  ;;  %v15895_v38 = vld [vmem:[#allocation104_spill] sm:$0xff] }
 0x3a0   : > { %v11156_v3 = vadd.f32 %v15886_v34, %v9469_v13  ;;  %v9472_v21 = vadd.f32 %v9471_v25, %v9470_v47  ;;  %7362 = vmatprep.mubr.bf16.mxu0 %v15891_v19  ;;  %v15892_v25 = vld [vmem:[#allocation87_spill] sm:$0xff]  ;;  %v15898_v19 = vld [vmem:[#allocation94_spill] sm:$0xff] }
 0x3a1   : > { %10316 = vmatmul.mubr.bf16.gmra.mrb[20].mxu1 %v15887_v59 }
 0x3a2   : > { %v11210_v1 = vadd.f32 %v15889_v61, %v9472_v21  ;;  %10319 = vmatprep.mubr.bf16.mxu1 %v15890_v56  ;;  %v14804_v16 = vadd.f32 %v11156_v3, %v9605_v53  ;;  %v9655_v39 = vpop.f32.mrb[48].mxu0  ;;  %v15893_v21 = vld [vmem:[#allocation61_spill] sm:$0xff]  ;;  %v15894_v3 = vld [vmem:[#allocation83_spill] sm:$0xff]  ;;  %v15897_v56 = vld [vmem:[#allocation84_spill] sm:$0xff] }
 0x3a3   : > { %v9656_v5 = vpop.f32.mrb[49].mxu0 }
 0x3a4   : > { %v9473_v51 = vpop.f32.mrb[172].mxu1  ;;  %v14806_v54 = vadd.f32 %v11210_v1, %v9608_v42  ;;  %v9657_v26 = vadd.f32 %v9656_v5, %v9655_v39  ;;  %v9658_v13 = vpop.f32.mrb[50].mxu0  ;;  %v15896_v42 = vld [vmem:[#allocation9_spill] sm:$0xff]  ;;  %v1000_v39 = vld [vmem:[#allocation2 + $0x1d8] sm:$0xf] }
 0x3a5   : > { %v9474_v29 = vpop.f32.mrb[173].mxu1  ;;  %v9659_v48 = vpop.f32.mrb[51].mxu0 }
 0x3a6   : > { %v9475_v7 = vadd.f32 %v9474_v29, %v9473_v51  ;;  %v9476_v12 = vpop.f32.mrb[174].mxu1  ;;  %v14810_v59 = vadd.f32 %v15893_v21, %v9657_v26  ;;  %v9660_v53 = vadd.f32 %v9659_v48, %v9658_v13  ;;  %v1001_v29 = vld [vmem:[#allocation2 + $0x1dc] sm:$0x1] }
 0x3a7   : > { %v9477_v47 = vpop.f32.mrb[175].mxu1  ;;  %7363 = vmatmul.mubr.bf16.gmra.mrb[156].mxu0 %v15895_v38  ;;  %v15900_v21 = vld [vmem:[#allocation98_spill] sm:$0xff] }
 0x3a8   : > { %v11129_v35 = vadd.f32 %v15892_v25, %v9475_v7  ;;  %v9478_v34 = vadd.f32 %v9477_v47, %v9476_v12  ;;  %v14816_v1 = vadd.f32 %v14598_v14, %v9660_v53  ;;  %7370 = vmatprep.mubr.bf16.mxu0 %v15898_v19  ;;  %v8606_v47 = vcombine.low %v1000_v39, %v1001_v29 }
 0x3a9   : > { %10320 = vmatmul.mubr.bf16.gmra.mrb[24].mxu1 %v15894_v3 }
 0x3aa   : > { %v11183_v61 = vadd.f32 %v15896_v42, %v9478_v34  ;;  %10323 = vmatprep.mubr.bf16.mxu1 %v15897_v56  ;;  %v14820_v51 = vadd.f32 %v11129_v35, %v9611_v50  ;;  %v9661_v5 = vpop.f32.mrb[52].mxu0  ;;  %v15899_v34 = vld [vmem:[#allocation91_spill] sm:$0xff]  ;;  %v7036_v35 = vshll.u32 %v8606_v47, 16 }
 0x3ab   : > { %v9662_v12 = vpop.f32.mrb[53].mxu0 }
 0x3ac   : > { %v14822_v7 = vadd.f32 %v11183_v61, %v9614_v58  ;;  %v9663_v26 = vadd.f32 %v9662_v12, %v9661_v5  ;;  %v9664_v13 = vpop.f32.mrb[54].mxu0  ;;  %v15901_v58 = vld [vmem:[#allocation99_spill] sm:$0xff]  ;;  %v7034_v61 = vshrl.u32 %v8606_v47, 16  ;;  %v15903_v5 = vld [vmem:[#allocation101_spill] sm:$0xff] }
 0x3ad   : > { %v9665_v48 = vpop.f32.mrb[55].mxu0 }
 0x3ae   : > { %v14825_v25 = vadd.f32 %v14615_v30, %v9663_v26  ;;  %v9666_v14 = vadd.f32 %v9665_v48, %v9664_v13  ;;  %v7038_v30 = vrot.slane %v7036_v35, 1 }
 0x3af   : > { %7371 = vmatmul.mubr.bf16.gmra.mrb[160].mxu0 %v15900_v21 }
 0x3b0   : > { %v14830_v50 = vadd.f32 %v14617_v20, %v9666_v14  ;;  %7378 = vmatprep.mubr.bf16.mxu0 %v15901_v58  ;;  %v15902_v20 = vld [vmem:[#allocation100_spill] sm:$0xff]  ;;  %v7039_v12 = vor.u32 %v7038_v30, %v7034_v61  ;;  %v15904_v58 = vld [vmem:[#allocation66_spill] sm:$0xff]  ;;  %v7040_v30 = vrot.slane %v8606_v47, 1 }
 0x3b1   : > { %10324 = vmatmul.mubr.bf16.gmra.mrb[28].mxu1 %v15899_v34 }
 0x3b2   : > { %10327 = vmatprep.mubr.bf16.mxu1 %v15800_v60  ;;  %v9667_v53 = vpop.f32.mrb[56].mxu0 }
 0x3b3   : > { %v9668_v3 = vpop.f32.mrb[57].mxu0 }
 0x3b4   : > { %v9669_v38 = vadd.f32 %v9668_v3, %v9667_v53  ;;  %v9670_v42 = vpop.f32.mrb[58].mxu0  ;;  %v8655_v3 = vcombine.low %v14570_v32, %v1000_v39  ;;  %v8657_v32 = vcombine.low %v6390_v24, %v7040_v30 }
 0x3b5   : > { %v9671_v56 = vpop.f32.mrb[59].mxu0 }
 0x3b6   : > { %v14835_v19 = vadd.f32 %v14631_v8, %v9669_v38  ;;  %v9672_v29 = vadd.f32 %v9671_v56, %v9670_v42  ;;  %v8656_v8 = vcombine.low %v14613_v49, %v7039_v12 }
 0x3b7   : > { %7379 = vmatmul.mubr.bf16.gmra.mrb[164].mxu0 %v15902_v20 }
 0x3b8   : > { %v14840_v60 = vadd.f32 %v14633_v33, %v9672_v29  ;;  %7386 = vmatprep.mubr.bf16.mxu0 %v15903_v5  ;;  %v15905_v33 = vld [vmem:[#allocation102_spill] sm:$0xff] }
 0x3b9   : > { %10328 = vmatmul.mubr.bf16.gmra.mrb[32].mxu1 %v15803_v46 }
 0x3ba   : > { %10331 = vmatprep.mubr.bf16.mxu1 %v15806_v27  ;;  %v9673_v26 = vpop.f32.mrb[60].mxu0 }
 0x3bb   : > { %v9674_v13 = vpop.f32.mrb[61].mxu0 }
 0x3bc   : > { %v9675_v48 = vadd.f32 %v9674_v13, %v9673_v26  ;;  %v9676_v14 = vpop.f32.mrb[62].mxu0 }
 0x3bd   : > { %v9677_v34 = vpop.f32.mrb[63].mxu0 }
 0x3be   : > { %v14846_v21 = vadd.f32 %v14656_v9, %v9675_v48  ;;  %v9678_v46 = vadd.f32 %v9677_v34, %v9676_v14 }
 0x3bf   : > { %7387 = vmatmul.mubr.bf16.gmra.mrb[168].mxu0 %v15905_v33 }
 0x3c0   : > { %v14851_v27 = vadd.f32 %v14658_v43, %v9678_v46  ;;  %7394 = vmatprep.mubr.bf16.mxu0 %v8656_v8 }
 0x3c1   : > { %10332 = vmatmul.mubr.bf16.gmra.mrb[36].mxu1 %v15904_v58 }
 0x3c2   : > { %10335 = vmatprep.mubr.bf16.mxu1 %v14639_v18  ;;  %v9679_v35 = vpop.f32.mrb[64].mxu0 }
 0x3c3   : > { %v9680_v53 = vpop.f32.mrb[65].mxu0 }
 0x3c4   : > { %v9681_v49 = vadd.f32 %v9680_v53, %v9679_v35  ;;  %v9682_v38 = vpop.f32.mrb[66].mxu0 }
 0x3c5   : > { %v9683_v42 = vpop.f32.mrb[67].mxu0 }
 0x3c6   : > { %v14856_v9 = vadd.f32 %v14672_v23, %v9681_v49  ;;  %v9684_v61 = vadd.f32 %v9683_v42, %v9682_v38 }
 0x3c7   : > { %7395 = vmatmul.mubr.bf16.gmra.mrb[172].mxu0 %v8655_v3 }
 0x3c8   : > { %v14860_v43 = vadd.f32 %v14674_v40, %v9684_v61 }
 0x3c9   : > { %10336 = vmatmul.mubr.bf16.gmra.mrb[40].mxu1 %v14647_v57 }
 0x3ca   : > { %10339 = vmatprep.mubr.bf16.mxu1 %v14664_v4  ;;  %v9685_v18 = vpop.f32.mrb[68].mxu0 }
 0x3cb   : > { %v9686_v39 = vpop.f32.mrb[69].mxu0 }
 0x3cc   : > { %v9687_v56 = vadd.f32 %v9686_v39, %v9685_v18  ;;  %v9688_v29 = vpop.f32.mrb[70].mxu0 }
 0x3cd   : > { %v9689_v20 = vpop.f32.mrb[71].mxu0 }
 0x3ce   : > { %v14866_v23 = vadd.f32 %v14685_v62, %v9687_v56  ;;  %v9690_v5 = vadd.f32 %v9689_v20, %v9688_v29 }
 0x3d0   : > { %v14869_v57 = vadd.f32 %v14691_v15, %v9690_v5 }
 0x3d1   : > { %10340 = vmatmul.mubr.bf16.gmra.mrb[44].mxu1 %v8657_v32 }
 0x3d2   : > { %v9691_v40 = vpop.f32.mrb[72].mxu0 }
 0x3d3   : > { %v9692_v47 = vpop.f32.mrb[73].mxu0 }
 0x3d4   : > { %v9693_v12 = vadd.f32 %v9692_v47, %v9691_v40  ;;  %v9694_v4 = vpop.f32.mrb[74].mxu0 }
 0x3d5   : > { %v9695_v26 = vpop.f32.mrb[75].mxu0 }
 0x3d6   : > { %v14872_v0 = vadd.f32 %v14702_v28, %v9693_v12  ;;  %v9696_v24 = vadd.f32 %v9695_v26, %v9694_v4 }
 0x3d8   : > { %v14875_v13 = vadd.f32 %v14707_v2, %v9696_v24 }
 0x3da   : > { %v9697_v48 = vpop.f32.mrb[76].mxu0 }
 0x3db   : > { %v9698_v62 = vpop.f32.mrb[77].mxu0 }
 0x3dc   : > { %v9699_v14 = vadd.f32 %v9698_v62, %v9697_v48  ;;  %v9700_v8 = vpop.f32.mrb[78].mxu0 }
 0x3dd   : > { %v9701_v34 = vpop.f32.mrb[79].mxu0 }
 0x3de   : > { %v14878_v15 = vadd.f32 %v14718_v63, %v9699_v14  ;;  %v9702_v46 = vadd.f32 %v9701_v34, %v9700_v8 }
 0x3e0   : > { %v14881_v58 = vadd.f32 %v14723_v37, %v9702_v46 }
 0x3e2   : > { %v9703_v33 = vpop.f32.mrb[80].mxu0 }
 0x3e3   : > { %v9704_v35 = vpop.f32.mrb[81].mxu0 }
 0x3e4   : > { %v9705_v28 = vadd.f32 %v9704_v35, %v9703_v33  ;;  %v9706_v53 = vpop.f32.mrb[82].mxu0 }
 0x3e5   : > { %v9707_v3 = vpop.f32.mrb[83].mxu0 }
 0x3e6   : > { %v14884_v2 = vadd.f32 %v14734_v10, %v9705_v28  ;;  %v9708_v49 = vadd.f32 %v9707_v3, %v9706_v53 }
 0x3e8   : > { %v14887_v38 = vadd.f32 %v14736_v41, %v9708_v49 }
 0x3ea   : > { %v9709_v42 = vpop.f32.mrb[84].mxu0 }
 0x3eb   : > { %v9710_v61 = vpop.f32.mrb[85].mxu0 }
 0x3ec   : > { %v9711_v63 = vadd.f32 %v9710_v61, %v9709_v42  ;;  %v9712_v30 = vpop.f32.mrb[86].mxu0 }
 0x3ed   : > { %v9713_v18 = vpop.f32.mrb[87].mxu0 }
 0x3ee   : > { %v14890_v37 = vadd.f32 %v14744_v44, %v9711_v63  ;;  %v9714_v32 = vadd.f32 %v9713_v18, %v9712_v30 }
 0x3f0   : > { %v14893_v39 = vadd.f32 %v14746_v55, %v9714_v32 }
 0x3f2   : > { %v9715_v56 = vpop.f32.mrb[88].mxu0 }
 0x3f3   : > { %v9716_v29 = vpop.f32.mrb[89].mxu0 }
 0x3f4   : > { %v9717_v10 = vadd.f32 %v9716_v29, %v9715_v56  ;;  %v9718_v20 = vpop.f32.mrb[90].mxu0 }
 0x3f5   : > { %v9719_v5 = vpop.f32.mrb[91].mxu0 }
 0x3f6   : > { %v14896_v41 = vadd.f32 %v14757_v31, %v9717_v10  ;;  %v9720_v40 = vadd.f32 %v9719_v5, %v9718_v20 }
 0x3f8   : > { %v14899_v47 = vadd.f32 %v14759_v36, %v9720_v40 }
 0x3fa   : > { %v9721_v12 = vpop.f32.mrb[92].mxu0 }
 0x3fb   : > { %v9722_v4 = vpop.f32.mrb[93].mxu0 }
 0x3fc   : > { %v9723_v44 = vadd.f32 %v9722_v4, %v9721_v12  ;;  %v9724_v26 = vpop.f32.mrb[94].mxu0 }
 0x3fd   : > { %v9725_v24 = vpop.f32.mrb[95].mxu0 }
 0x3fe   : > { %v14902_v55 = vadd.f32 %v14771_v6, %v9723_v44  ;;  %v9726_v48 = vadd.f32 %v9725_v24, %v9724_v26 }
 0x400   : > { %v14905_v62 = vadd.f32 %v14773_v52, %v9726_v48 }
 0x402   : > { %v9727_v14 = vpop.f32.mrb[96].mxu0 }
 0x403   : > { %v9728_v8 = vpop.f32.mrb[97].mxu0 }
 0x404   : > { %v9729_v31 = vadd.f32 %v9728_v8, %v9727_v14  ;;  %v9730_v34 = vpop.f32.mrb[98].mxu0 }
 0x405   : > { %v9731_v46 = vpop.f32.mrb[99].mxu0 }
 0x406   : > { %v14908_v36 = vadd.f32 %v14784_v17, %v9729_v31  ;;  %v9732_v33 = vadd.f32 %v9731_v46, %v9730_v34 }
 0x408   : > { %v14911_v35 = vadd.f32 %v14786_v22, %v9732_v33 }
 0x40a   : > { %v9733_v28 = vpop.f32.mrb[100].mxu0 }
 0x40b   : > { %v9734_v53 = vpop.f32.mrb[101].mxu0 }
 0x40c   : > { %v9735_v6 = vadd.f32 %v9734_v53, %v9733_v28  ;;  %v9736_v3 = vpop.f32.mrb[102].mxu0 }
 0x40d   : > { %v9737_v49 = vpop.f32.mrb[103].mxu0 }
 0x40e   : > { %v14914_v52 = vadd.f32 %v14794_v11, %v9735_v6  ;;  %v9738_v42 = vadd.f32 %v9737_v49, %v9736_v3 }
 0x410   : > { %v14917_v61 = vadd.f32 %v14796_v45, %v9738_v42 }
 0x412   : > { %v9739_v63 = vpop.f32.mrb[104].mxu0 }
 0x413   : > { %v9740_v30 = vpop.f32.mrb[105].mxu0 }
 0x414   : > { %v9741_v17 = vadd.f32 %v9740_v30, %v9739_v63  ;;  %v9742_v18 = vpop.f32.mrb[106].mxu0 }
 0x415   : > { %v9743_v32 = vpop.f32.mrb[107].mxu0 }
 0x416   : > { %v14920_v22 = vadd.f32 %v14804_v16, %v9741_v17  ;;  %v9744_v56 = vadd.f32 %v9743_v32, %v9742_v18 }
 0x418   : > { %v14923_v29 = vadd.f32 %v14806_v54, %v9744_v56 }
 0x41a   : > { %v9745_v10 = vpop.f32.mrb[108].mxu0 }
 0x41b   : > { %v9746_v20 = vpop.f32.mrb[109].mxu0 }
 0x41c   : > { %v9747_v11 = vadd.f32 %v9746_v20, %v9745_v10  ;;  %v9748_v5 = vpop.f32.mrb[110].mxu0 }
 0x41d   : > { %v9749_v40 = vpop.f32.mrb[111].mxu0 }
 0x41e   : > { %v14926_v45 = vadd.f32 %v14820_v51, %v9747_v11  ;;  %v9750_v12 = vadd.f32 %v9749_v40, %v9748_v5 }
 0x420   : > { %v14929_v4 = vadd.f32 %v14822_v7, %v9750_v12 }
 0x422   : > { %v9791_v44 = vpop.f32.mrb[112].mxu0 }
 0x423   : > { %v9792_v26 = vpop.f32.mrb[113].mxu0 }
 0x424   : > { %v9793_v16 = vadd.f32 %v9792_v26, %v9791_v44  ;;  %v9794_v24 = vpop.f32.mrb[114].mxu0 }
 0x425   : > { %v9795_v48 = vpop.f32.mrb[115].mxu0 }
 0x426   : > { %v14932_v54 = vadd.f32 %v14810_v59, %v9793_v16  ;;  %v9796_v14 = vadd.f32 %v9795_v48, %v9794_v24 }
 0x428   : > { %v14935_v8 = vadd.f32 %v14816_v1, %v9796_v14 }
 0x42a   : > { %v9797_v31 = vpop.f32.mrb[116].mxu0 }
 0x42b   : > { %v9798_v34 = vpop.f32.mrb[117].mxu0 }
 0x42c   : > { %v9799_v51 = vadd.f32 %v9798_v34, %v9797_v31  ;;  %v9800_v46 = vpop.f32.mrb[118].mxu0 }
 0x42d   : > { %v9801_v33 = vpop.f32.mrb[119].mxu0 }
 0x42e   : > { %v10382_v7 = vadd.f32 %v14825_v25, %v9799_v51  ;;  %v9802_v28 = vadd.f32 %v9801_v33, %v9800_v46 }
 0x430   : > { %v14939_v53 = vadd.f32 %v14830_v50, %v9802_v28 }
 0x432   : > { %v9803_v6 = vpop.f32.mrb[120].mxu0 }
 0x433   : > { %v9804_v3 = vpop.f32.mrb[121].mxu0 }
 0x434   : > { %v9805_v49 = vadd.f32 %v9804_v3, %v9803_v6  ;;  %v9806_v59 = vpop.f32.mrb[122].mxu0 }
 0x435   : > { %v9807_v42 = vpop.f32.mrb[123].mxu0 }
 0x436   : > { %v14942_v63 = vadd.f32 %v14835_v19, %v9805_v49  ;;  %v9808_v1 = vadd.f32 %v9807_v42, %v9806_v59 }
 0x438   : > { %v14945_v30 = vadd.f32 %v14840_v60, %v9808_v1 }
 0x43a   : > { %v9809_v17 = vpop.f32.mrb[124].mxu0 }
 0x43b   : > { %v9810_v18 = vpop.f32.mrb[125].mxu0 }
 0x43c   : > { %v9811_v32 = vadd.f32 %v9810_v18, %v9809_v17  ;;  %v9812_v25 = vpop.f32.mrb[126].mxu0 }
 0x43d   : > { %v9813_v56 = vpop.f32.mrb[127].mxu0 }
 0x43e   : > { %v14948_v50 = vadd.f32 %v14846_v21, %v9811_v32  ;;  %v9814_v10 = vadd.f32 %v9813_v56, %v9812_v25 }
 0x440   : > { %v14951_v20 = vadd.f32 %v14851_v27, %v9814_v10 }
 0x442   : > { %v9815_v11 = vpop.f32.mrb[128].mxu0 }
 0x443   : > { %v9816_v5 = vpop.f32.mrb[129].mxu0 }
 0x444   : > { %v9817_v19 = vadd.f32 %v9816_v5, %v9815_v11  ;;  %v9818_v40 = vpop.f32.mrb[130].mxu0 }
 0x445   : > { %v9819_v12 = vpop.f32.mrb[131].mxu0 }
 0x446   : > { %v14954_v60 = vadd.f32 %v14856_v9, %v9817_v19  ;;  %v9820_v44 = vadd.f32 %v9819_v12, %v9818_v40 }
 0x448   : > { %v14957_v26 = vadd.f32 %v14860_v43, %v9820_v44 }
 0x44a   : > { %v9821_v16 = vpop.f32.mrb[132].mxu0 }
 0x44b   : > { %v9822_v24 = vpop.f32.mrb[133].mxu0 }
 0x44c   : > { %v9823_v21 = vadd.f32 %v9822_v24, %v9821_v16  ;;  %v9824_v48 = vpop.f32.mrb[134].mxu0 }
 0x44d   : > { %v9825_v14 = vpop.f32.mrb[135].mxu0 }
 0x44e   : > { %v14960_v27 = vadd.f32 %v14866_v23, %v9823_v21  ;;  %v9826_v31 = vadd.f32 %v9825_v14, %v9824_v48 }
 0x450   : > { %v14963_v34 = vadd.f32 %v14869_v57, %v9826_v31 }
 0x452   : > { %v9827_v51 = vpop.f32.mrb[136].mxu0 }
 0x453   : > { %v9828_v46 = vpop.f32.mrb[137].mxu0 }
 0x454   : > { %v9829_v9 = vadd.f32 %v9828_v46, %v9827_v51  ;;  %v9830_v33 = vpop.f32.mrb[138].mxu0 }
 0x455   : > { %v9831_v28 = vpop.f32.mrb[139].mxu0 }
 0x456   : > { %v14966_v43 = vadd.f32 %v14872_v0, %v9829_v9  ;;  %v9832_v6 = vadd.f32 %v9831_v28, %v9830_v33 }
 0x458   : > { %v14969_v3 = vadd.f32 %v14875_v13, %v9832_v6 }
 0x45a   : > { %v9833_v49 = vpop.f32.mrb[140].mxu0 }
 0x45b   : > { %v9834_v59 = vpop.f32.mrb[141].mxu0 }
 0x45c   : > { %v9835_v23 = vadd.f32 %v9834_v59, %v9833_v49  ;;  %v9836_v42 = vpop.f32.mrb[142].mxu0 }
 0x45d   : > { %v9837_v1 = vpop.f32.mrb[143].mxu0 }
 0x45e   : > { %v14972_v57 = vadd.f32 %v14878_v15, %v9835_v23  ;;  %v9838_v17 = vadd.f32 %v9837_v1, %v9836_v42  ;;  %v14986_v15 = vld [vmem:[%s15113_s3] ss:$0 sm:$0xff] }
 0x460   : > { %v14975_v18 = vadd.f32 %v14881_v58, %v9838_v17 }
 0x462   : > { %v9839_v32 = vpop.f32.mrb[144].mxu0 }
 0x463   : > { %v9840_v25 = vpop.f32.mrb[145].mxu0 }
 0x464   : > { %v9841_v0 = vadd.f32 %v9840_v25, %v9839_v32  ;;  %v9842_v56 = vpop.f32.mrb[146].mxu0 }
 0x465   : > { %v9843_v10 = vpop.f32.mrb[147].mxu0 }
 0x466   : > { %v14978_v13 = vadd.f32 %v14884_v2, %v9841_v0  ;;  %v9844_v11 = vadd.f32 %v9843_v10, %v9842_v56 }
 0x468   : > { %v14981_v5 = vadd.f32 %v14887_v38, %v9844_v11 }
 0x46a   : > { %v9845_v58 = vpop.f32.mrb[148].mxu0 }
 0x46b   : > { %v9846_v44 = vpop.f32.mrb[149].mxu0 }
 0x46c   : > { %v10313_v19 = vpop.f32.mrb[16].mxu1  ;;  %v9847_v2 = vadd.f32 %v9846_v44, %v9845_v58  ;;  %v9848_v21 = vpop.f32.mrb[150].mxu0 }
 0x46d   : > { %v10385_v40 = vadd.f32 %v10382_v7, %v10313_v19  ;;  %v7437_v12 = vpop.f32.mrb[17].mxu1  ;;  %v9849_v31 = vpop.f32.mrb[151].mxu0 }
 0x46e   : > { %v10412_v16 = vadd.f32 %v14932_v54, %v7437_v12  ;;  %v10314_v24 = vpop.f32.mrb[18].mxu1  ;;  %v14994_v46 = vadd.f32 %v14890_v37, %v9847_v2  ;;  %v9850_v54 = vadd.f32 %v9849_v31, %v9848_v21 }
 0x46f   : > { %v7701_v38 = vadd.f32 %v10385_v40, %v14986_v15  ;;  %v10439_v48 = vadd.f32 %v14939_v53, %v10314_v24  ;;  %v7440_v14 = vpop.f32.mrb[19].mxu1 }
 0x470   : > { %v7699_v51 = vadd.f32 %v10412_v16, %v14986_v15  ;;  %v10466_v7 = vadd.f32 %v14935_v8, %v7440_v14  ;;  %v14999_v53 = vadd.f32 %v14893_v39, %v9850_v54 }
 0x471   : > { %v7733_v9 = vmax.f32 %v7701_v38, 0.0  ;;  %v7702_v33 = vadd.f32 %v10439_v48, %v14986_v15 }
 0x472   : > { %v7731_v28 = vmax.f32 %v7699_v51, 0.0  ;;  %v7700_v6 = vadd.f32 %v10466_v7, %v14986_v15  ;;  %v9851_v8 = vpop.f32.mrb[152].mxu0 }
 0x473   : > { %7765 = vst [vmem:[%s13190_s28 + $0x10] sm:$0xff] %v7733_v9  ;;  %v7734_v49 = vmax.f32 %v7702_v33, 0.0  ;;  %v9852_v1 = vpop.f32.mrb[153].mxu0 }
 0x474   : > { %7763 = vst [vmem:[%s13190_s28] sm:$0xff] %v7731_v28  ;;  %v7732_v59 = vmax.f32 %v7700_v6, 0.0  ;;  %v10317_v23 = vpop.f32.mrb[20].mxu1  ;;  %v9853_v25 = vadd.f32 %v9852_v1, %v9851_v8  ;;  %v9854_v0 = vpop.f32.mrb[154].mxu0 }
 0x475   : > { %7766 = vst [vmem:[%s13190_s28 + $0x18] sm:$0xff] %v7734_v49  ;;  %v10493_v37 = vadd.f32 %v14948_v50, %v10317_v23  ;;  %v7453_v42 = vpop.f32.mrb[21].mxu1  ;;  %v9855_v11 = vpop.f32.mrb[155].mxu0 }
 0x476   : > { %7764 = vst [vmem:[%s13190_s28 + $0x8] sm:$0xff] %v7732_v59  ;;  %v10520_v17 = vadd.f32 %v14942_v63, %v7453_v42  ;;  %v10318_v32 = vpop.f32.mrb[22].mxu1  ;;  %v15012_v58 = vadd.f32 %v14896_v41, %v9853_v25  ;;  %v9856_v63 = vadd.f32 %v9855_v11, %v9854_v0 }
 0x477   : > { %v7705_v39 = vadd.f32 %v10493_v37, %v14986_v15  ;;  %v10547_v56 = vadd.f32 %v14951_v20, %v10318_v32  ;;  %v7456_v10 = vpop.f32.mrb[23].mxu1 }
 0x478   : > { %v7703_v19 = vadd.f32 %v10520_v17, %v14986_v15  ;;  %v10574_v50 = vadd.f32 %v14945_v30, %v7456_v10  ;;  %v15017_v20 = vadd.f32 %v14899_v47, %v9856_v63 }
 0x479   : > { %v7737_v40 = vmax.f32 %v7705_v39, 0.0  ;;  %v7706_v12 = vadd.f32 %v10547_v56, %v14986_v15 }
 0x47a   : > { %v7735_v44 = vmax.f32 %v7703_v19, 0.0  ;;  %v7704_v16 = vadd.f32 %v10574_v50, %v14986_v15  ;;  %v9857_v30 = vpop.f32.mrb[156].mxu0 }
 0x47b   : > { %7769 = vst [vmem:[%s13190_s28 + $0x30] sm:$0xff] %v7737_v40  ;;  %v7738_v24 = vmax.f32 %v7706_v12, 0.0  ;;  %v9858_v48 = vpop.f32.mrb[157].mxu0 }
 0x47c   : > { %7767 = vst [vmem:[%s13190_s28 + $0x20] sm:$0xff] %v7735_v44  ;;  %v7736_v2 = vmax.f32 %v7704_v16, 0.0  ;;  %v10321_v21 = vpop.f32.mrb[24].mxu1  ;;  %v9859_v51 = vadd.f32 %v9858_v48, %v9857_v30  ;;  %v9860_v7 = vpop.f32.mrb[158].mxu0 }
 0x47d   : > { %7770 = vst [vmem:[%s13190_s28 + $0x38] sm:$0xff] %v7738_v24  ;;  %v10601_v41 = vadd.f32 %v14960_v27, %v10321_v21  ;;  %v7469_v38 = vpop.f32.mrb[25].mxu1  ;;  %v9861_v33 = vpop.f32.mrb[159].mxu0 }
 0x47e   : > { %7768 = vst [vmem:[%s13190_s28 + $0x28] sm:$0xff] %v7736_v2  ;;  %v10628_v14 = vadd.f32 %v14954_v60, %v7469_v38  ;;  %v10322_v31 = vpop.f32.mrb[26].mxu1  ;;  %v15030_v6 = vadd.f32 %v14902_v55, %v9859_v51  ;;  %v9862_v60 = vadd.f32 %v9861_v33, %v9860_v7 }
 0x47f   : > { %v7709_v47 = vadd.f32 %v10601_v41, %v14986_v15  ;;  %v10655_v54 = vadd.f32 %v14963_v34, %v10322_v31  ;;  %v7472_v9 = vpop.f32.mrb[27].mxu1 }
 0x480   : > { %v7707_v28 = vadd.f32 %v10628_v14, %v14986_v15  ;;  %v10682_v27 = vadd.f32 %v14957_v26, %v7472_v9  ;;  %v15035_v34 = vadd.f32 %v14905_v62, %v9862_v60 }
 0x481   : > { %v7741_v49 = vmax.f32 %v7709_v47, 0.0  ;;  %v7710_v59 = vadd.f32 %v10655_v54, %v14986_v15 }
 0x482   : > { %v7739_v23 = vmax.f32 %v7707_v28, 0.0  ;;  %v7708_v8 = vadd.f32 %v10682_v27, %v14986_v15  ;;  %v9863_v26 = vpop.f32.mrb[160].mxu0 }
 0x483   : > { %7773 = vst [vmem:[%s13190_s28 + $0x50] sm:$0xff] %v7741_v49  ;;  %v7742_v37 = vmax.f32 %v7710_v59, 0.0  ;;  %v9864_v32 = vpop.f32.mrb[161].mxu0 }
 0x484   : > { %7771 = vst [vmem:[%s13190_s28 + $0x40] sm:$0xff] %v7739_v23  ;;  %v7740_v42 = vmax.f32 %v7708_v8, 0.0  ;;  %v10325_v1 = vpop.f32.mrb[28].mxu1  ;;  %v9865_v39 = vadd.f32 %v9864_v32, %v9863_v26  ;;  %v9866_v56 = vpop.f32.mrb[162].mxu0 }
 0x485   : > { %7774 = vst [vmem:[%s13190_s28 + $0x58] sm:$0xff] %v7742_v37  ;;  %v10709_v55 = vadd.f32 %v14972_v57, %v10325_v1  ;;  %v7485_v17 = vpop.f32.mrb[29].mxu1  ;;  %v9867_v19 = vpop.f32.mrb[163].mxu0 }
 0x486   : > { %7772 = vst [vmem:[%s13190_s28 + $0x48] sm:$0xff] %v7740_v42  ;;  %v10736_v25 = vadd.f32 %v14966_v43, %v7485_v17  ;;  %v10326_v0 = vpop.f32.mrb[30].mxu1  ;;  %v15048_v63 = vadd.f32 %v14908_v36, %v9865_v39  ;;  %v9868_v43 = vadd.f32 %v9867_v19, %v9866_v56 }
 0x487   : > { %v7713_v62 = vadd.f32 %v10709_v55, %v14986_v15  ;;  %v10763_v10 = vadd.f32 %v14975_v18, %v10326_v0  ;;  %v7488_v11 = vpop.f32.mrb[31].mxu1 }
 0x488   : > { %v7711_v50 = vadd.f32 %v10736_v25, %v14986_v15  ;;  %v10790_v57 = vadd.f32 %v14969_v3, %v7488_v11  ;;  %v15053_v18 = vadd.f32 %v14911_v35, %v9868_v43 }
 0x489   : > { %v7745_v40 = vmax.f32 %v7713_v62, 0.0  ;;  %v7714_v12 = vadd.f32 %v10763_v10, %v14986_v15 }
 0x48a   : > { %v7743_v44 = vmax.f32 %v7711_v50, 0.0  ;;  %v7712_v16 = vadd.f32 %v10790_v57, %v14986_v15  ;;  %v9869_v3 = vpop.f32.mrb[164].mxu0 }
 0x48b   : > { %7777 = vst [vmem:[%s13190_s28 + $0x70] sm:$0xff] %v7745_v40  ;;  %v7746_v24 = vmax.f32 %v7714_v12, 0.0  ;;  %v9870_v41 = vpop.f32.mrb[165].mxu0 }
 0x48c   : > { %7775 = vst [vmem:[%s13190_s28 + $0x60] sm:$0xff] %v7743_v44  ;;  %v7744_v2 = vmax.f32 %v7712_v16, 0.0  ;;  %v10329_v21 = vpop.f32.mrb[32].mxu1  ;;  %v9871_v14 = vadd.f32 %v9870_v41, %v9869_v3  ;;  %v9872_v31 = vpop.f32.mrb[166].mxu0 }
 0x48d   : > { %7778 = vst [vmem:[%s13190_s28 + $0x78] sm:$0xff] %v7746_v24  ;;  %v10817_v36 = vadd.f32 %v14994_v46, %v10329_v21  ;;  %v7501_v30 = vpop.f32.mrb[33].mxu1  ;;  %v9873_v47 = vpop.f32.mrb[167].mxu0 }
 0x48e   : > { %7776 = vst [vmem:[%s13190_s28 + $0x68] sm:$0xff] %v7744_v2  ;;  %v10844_v38 = vadd.f32 %v14978_v13, %v7501_v30  ;;  %v10330_v48 = vpop.f32.mrb[34].mxu1  ;;  %v11030_v9 = vadd.f32 %v14914_v52, %v9871_v14  ;;  %v9874_v33 = vadd.f32 %v9873_v47, %v9872_v31 }
 0x48f   : > { %v7717_v35 = vadd.f32 %v10817_v36, %v14986_v15  ;;  %v10871_v51 = vadd.f32 %v14999_v53, %v10330_v48  ;;  %v7504_v7 = vpop.f32.mrb[35].mxu1 }
 0x490   : > { %v7715_v54 = vadd.f32 %v10844_v38, %v14986_v15  ;;  %v10898_v46 = vadd.f32 %v14981_v5, %v7504_v7  ;;  %v11084_v49 = vadd.f32 %v14917_v61, %v9874_v33 }
 0x491   : > { %v7749_v13 = vmax.f32 %v7717_v35, 0.0  ;;  %v7718_v28 = vadd.f32 %v10871_v51, %v14986_v15 }
 0x492   : > { %v7747_v27 = vmax.f32 %v7715_v54, 0.0  ;;  %v7716_v60 = vadd.f32 %v10898_v46, %v14986_v15  ;;  %v9875_v8 = vpop.f32.mrb[168].mxu0 }
 0x493   : > { %7781 = vst [vmem:[%s13190_s28 + $0x90] sm:$0xff] %v7749_v13  ;;  %v7750_v53 = vmax.f32 %v7718_v28, 0.0  ;;  %v9876_v37 = vpop.f32.mrb[169].mxu0 }
 0x494   : > { %7779 = vst [vmem:[%s13190_s28 + $0x80] sm:$0xff] %v7747_v27  ;;  %v7748_v59 = vmax.f32 %v7716_v60, 0.0  ;;  %v10333_v23 = vpop.f32.mrb[36].mxu1  ;;  %v9877_v26 = vadd.f32 %v9876_v37, %v9875_v8  ;;  %v9878_v55 = vpop.f32.mrb[170].mxu0 }
 0x495   : > { %7782 = vst [vmem:[%s13190_s28 + $0x98] sm:$0xff] %v7750_v53  ;;  %v10925_v5 = vadd.f32 %v15030_v6, %v10333_v23  ;;  %v7517_v52 = vpop.f32.mrb[37].mxu1  ;;  %v9879_v25 = vpop.f32.mrb[171].mxu0 }
 0x496   : > { %7780 = vst [vmem:[%s13190_s28 + $0x88] sm:$0xff] %v7748_v59  ;;  %v10952_v42 = vadd.f32 %v15012_v58, %v7517_v52  ;;  %v10334_v1 = vpop.f32.mrb[38].mxu1  ;;  %v11165_v39 = vadd.f32 %v14920_v22, %v9877_v26  ;;  %v9880_v56 = vadd.f32 %v9879_v25, %v9878_v55 }
 0x497   : > { %v7721_v61 = vadd.f32 %v10925_v5, %v14986_v15  ;;  %v10979_v17 = vadd.f32 %v15035_v34, %v10334_v1  ;;  %v7520_v32 = vpop.f32.mrb[39].mxu1 }
 0x498   : > { %v7719_v0 = vadd.f32 %v10952_v42, %v14986_v15  ;;  %v11006_v6 = vadd.f32 %v15017_v20, %v7520_v32  ;;  %v11219_v19 = vadd.f32 %v14923_v29, %v9880_v56 }
 0x499   : > { %v7753_v58 = vmax.f32 %v7721_v61, 0.0  ;;  %v7722_v62 = vadd.f32 %v10979_v17, %v14986_v15 }
 0x49a   : > { %v7751_v10 = vmax.f32 %v7719_v0, 0.0  ;;  %v7720_v11 = vadd.f32 %v11006_v6, %v14986_v15  ;;  %v9881_v43 = vpop.f32.mrb[172].mxu0 }
 0x49b   : > { %7785 = vst [vmem:[%s13190_s28 + $0xb0] sm:$0xff] %v7753_v58  ;;  %v7754_v34 = vmax.f32 %v7722_v62, 0.0  ;;  %v9882_v22 = vpop.f32.mrb[173].mxu0 }
 0x49c   : > { %7783 = vst [vmem:[%s13190_s28 + $0xa0] sm:$0xff] %v7751_v10  ;;  %v7752_v50 = vmax.f32 %v7720_v11, 0.0  ;;  %v10337_v57 = vpop.f32.mrb[40].mxu1  ;;  %v9883_v16 = vadd.f32 %v9882_v22, %v9881_v43  ;;  %v9884_v24 = vpop.f32.mrb[174].mxu0 }
 0x49d   : > { %7786 = vst [vmem:[%s13190_s28 + $0xb8] sm:$0xff] %v7754_v34  ;;  %v11033_v20 = vadd.f32 %v11030_v9, %v10337_v57  ;;  %v7533_v40 = vpop.f32.mrb[41].mxu1  ;;  %v9885_v3 = vpop.f32.mrb[175].mxu0 }
 0x49e   : > { %7784 = vst [vmem:[%s13190_s28 + $0xa8] sm:$0xff] %v7752_v50  ;;  %v11060_v12 = vadd.f32 %v15048_v63, %v7533_v40  ;;  %v10338_v44 = vpop.f32.mrb[42].mxu1  ;;  %v11138_v41 = vadd.f32 %v14926_v45, %v9883_v16  ;;  %v9886_v38 = vadd.f32 %v9885_v3, %v9884_v24 }
 0x49f   : > { %v7725_v29 = vadd.f32 %v11033_v20, %v14986_v15  ;;  %v11087_v2 = vadd.f32 %v11084_v49, %v10338_v44  ;;  %v7536_v21 = vpop.f32.mrb[43].mxu1 }
 0x4a0   : > { %v7723_v36 = vadd.f32 %v11060_v12, %v14986_v15  ;;  %v11114_v30 = vadd.f32 %v15053_v18, %v7536_v21  ;;  %v11192_v35 = vadd.f32 %v14929_v4, %v9886_v38 }
 0x4a1   : > { %v7757_v63 = vmax.f32 %v7725_v29, 0.0  ;;  %v7726_v48 = vadd.f32 %v11087_v2, %v14986_v15 }
 0x4a2   : > { %v7755_v14 = vmax.f32 %v7723_v36, 0.0  ;;  %v7724_v31 = vadd.f32 %v11114_v30, %v14986_v15 }
 0x4a3   : > { %7789 = vst [vmem:[%s13190_s28 + $0xd0] sm:$0xff] %v7757_v63  ;;  %v7758_v51 = vmax.f32 %v7726_v48, 0.0 }
 0x4a4   : > { %7787 = vst [vmem:[%s13190_s28 + $0xc0] sm:$0xff] %v7755_v14  ;;  %v7756_v7 = vmax.f32 %v7724_v31, 0.0  ;;  %v10341_v47 = vpop.f32.mrb[44].mxu1 }
 0x4a5   : > { %7790 = vst [vmem:[%s13190_s28 + $0xd8] sm:$0xff] %v7758_v51  ;;  %v11141_v18 = vadd.f32 %v11138_v41, %v10341_v47  ;;  %v7549_v54 = vpop.f32.mrb[45].mxu1 }
 0x4a6   : > { %7788 = vst [vmem:[%s13190_s28 + $0xc8] sm:$0xff] %v7756_v7  ;;  %v11168_v45 = vadd.f32 %v11165_v39, %v7549_v54  ;;  %v10342_v46 = vpop.f32.mrb[46].mxu1 }
 0x4a7   : > { %v7729_v9 = vadd.f32 %v11141_v18, %v14986_v15  ;;  %v11195_v33 = vadd.f32 %v11192_v35, %v10342_v46  ;;  %v7552_v13 = vpop.f32.mrb[47].mxu1 }
 0x4a8   : > { %v7727_v4 = vadd.f32 %v11168_v45, %v14986_v15  ;;  %v11222_v28 = vadd.f32 %v11219_v19, %v7552_v13 }
 0x4a9   : > { %v7761_v27 = vmax.f32 %v7729_v9, 0.0  ;;  %v7730_v60 = vadd.f32 %v11195_v33, %v14986_v15 }
 0x4aa   : > { %v7759_v49 = vmax.f32 %v7727_v4, 0.0  ;;  %v7728_v53 = vadd.f32 %v11222_v28, %v14986_v15 }
 0x4ab   : > { %7793 = vst [vmem:[%s13190_s28 + $0xf0] sm:$0xff] %v7761_v27  ;;  %v7762_v59 = vmax.f32 %v7730_v60, 0.0 }
 0x4ac   : > { %7791 = vst [vmem:[%s13190_s28 + $0xe0] sm:$0xff] %v7759_v49  ;;  %v7760_v23 = vmax.f32 %v7728_v53, 0.0 }
 0x4ad   : > { %7794 = vst [vmem:[%s13190_s28 + $0xf8] sm:$0xff] %v7762_v59 }
 0x4ae   : > { %7792 = vst [vmem:[%s13190_s28 + $0xe8] sm:$0xff] %v7760_v23 }
 0x4af PF: > { %s14_s15 = sadd.s32 1, %s11823_s15  }
 0x4b0   : > { %p11_p4 = scmp.ge.s32.totalorder %s14_s15, 4  }
 0x4b2   :  { %13 = sbr.rel (!%p11_p4) target bundleno = 1 (0x1), region = 75 }

</bundles_post_ra>
